<compile_context>
chip_gen: v5e
topology: v5e:2x2
jax: 0.10.0
libtpu: 0.0.40
codegen_flags: <defaults>
</compile_context>

<pallas_src>
import math

import jax
import jax.numpy as jnp
from jax.experimental import pallas as pl
from jax.experimental.pallas import tpu as pltpu

LEAK = 0.01            # nn.LeakyReLU default negative_slope
EPS = 1e-5             # BatchNorm eps

IN_H, IN_W = 19, 1800
IN_ELEMS = IN_H * IN_W               # 34200 raw f32 elements per sample
KH, KW = 19, 300
SW = 100
OUT_W = (IN_W - KW) // SW + 1        # 16 conv output positions
C1, C2 = 4, 8
N1 = OUT_W * C1                      # 64  conv1 matmul output columns (w*4+c)
N2 = OUT_W * C2                      # 128 conv2 matmul output columns (w*8+c)
FEAT = N2                            # 128
HID = 32
NCLS = 2


def _leaky(x):
    return jnp.where(x > 0, x, LEAK * x)


def _cdiv(a, b):
    return -(-a // b)


def _round_up(a, m):
    return _cdiv(a, m) * m


# ---------------------------------------------------------------------------
# Kernel
# ---------------------------------------------------------------------------
def hdcnn_kernel(x_ref, w1_ref, b1_ref, w2_ref, b2_ref,
                 w3_ref, b3_ref, w4_ref, b4_ref, out_ref):
    # conv1 as ONE block-Toeplitz MXU matmul on the raw (bt, 19*1800) block.
    # bf16 cast happens in VMEM (no extra HBM pass); f32 accumulation on the MXU.
    xb = x_ref[...].astype(jnp.bfloat16)
    y = jnp.dot(xb, w1_ref[...], preferred_element_type=jnp.float32)      # (bt, 64)
    h1 = _leaky(y + b1_ref[...])                                          # BN2d(4) folded

    # 1x1 conv (4->8) + folded BN2d(8) + LeakyReLU as a block-diagonal matmul;
    # output columns are already in w*8+c order (matches permuted w3 rows).
    h2 = _leaky(jnp.dot(h1, w2_ref[...],
                        preferred_element_type=jnp.float32) + b2_ref[...])  # (bt, 128)

    # Linear(128,32) + folded BN1d(32) + LeakyReLU; Dropout(p=0.5) = identity (eval)
    h3 = _leaky(jnp.dot(h2, w3_ref[...],
                        preferred_element_type=jnp.float32) + b3_ref[...])  # (bt, 32)

    # output layer Linear(32, 2)
    out_ref[...] = (jnp.dot(h3, w4_ref[...],
                            preferred_element_type=jnp.float32) + b4_ref[...])


# ---------------------------------------------------------------------------
# Parameters (torch-layout init + kernel-layout packing)
# ---------------------------------------------------------------------------
def init_raw_params(key):
    """Deterministic synthetic parameters matching BaseClassifier._initialize_weights."""
    ks = jax.random.split(key, 6)

    # Conv2d(1, 4, (19, 300)): weight ~ N(0, sqrt(2/n)), n = kh*kw*out
    n1 = KH * KW * C1
    w1 = jax.random.normal(ks[0], (C1, 1, KH, KW), jnp.float32) * math.sqrt(2.0 / n1)
    bnd1 = 1.0 / math.sqrt(1 * KH * KW)
    b1 = jax.random.uniform(ks[1], (C1,), jnp.float32, -bnd1, bnd1)

    # Conv2d(4, 8, (1, 1)): n = 1*1*8
    n2 = 1 * 1 * C2
    w2 = jax.random.normal(ks[2], (C2, C1, 1, 1), jnp.float32) * math.sqrt(2.0 / n2)
    bnd2 = 1.0 / math.sqrt(C1)
    b2 = jax.random.uniform(ks[3], (C2,), jnp.float32, -bnd2, bnd2)

    # Linear(128, 32): bias zeroed by _initialize_weights
    bnd3 = 1.0 / math.sqrt(FEAT)
    w3 = jax.random.uniform(ks[4], (HID, FEAT), jnp.float32, -bnd3, bnd3)
    b3 = jnp.zeros((HID,), jnp.float32)

    # Linear(32, 2): bias zeroed
    bnd4 = 1.0 / math.sqrt(HID)
    w4 = jax.random.uniform(ks[5], (NCLS, HID), jnp.float32, -bnd4, bnd4)
    b4 = jnp.zeros((NCLS,), jnp.float32)

    return (w1, b1, w2, b2, w3, b3, w4, b4)


def pack_params(raw):
    """Fold inference-mode BatchNorm and repack weights into kernel layouts."""
    w1, b1, w2, b2, w3, b3, w4, b4 = raw

    # Fold BN with default running stats (gamma=1, beta=0, mean=0, var=1).
    # TODO(synk): if trained running stats are ever loaded, fold them here as
    # w' = w*gamma/sqrt(var+eps), b' = (b-mean)*gamma/sqrt(var+eps)+beta.
    bn_scale = 1.0 / math.sqrt(1.0 + EPS)

    # conv1 -> block-Toeplitz (34200, 64) bf16:
    #   W_big[h*1800 + w*100 + k, w*4 + c] = W1[c, 0, h, k]
    wt = w1.reshape(C1, KH, KW).transpose(1, 2, 0)                  # [h, k, c]
    wb = jnp.zeros((KH, IN_W, OUT_W, C1), jnp.float32)
    for w in range(OUT_W):
        wb = wb.at[:, w * SW:w * SW + KW, w, :].set(wt)
    w1m = (wb.reshape(IN_ELEMS, N1) * bn_scale).astype(jnp.bfloat16)
    b1m = jnp.tile(b1 * bn_scale, OUT_W).reshape(1, N1).astype(jnp.float32)

    # 1x1 conv -> block-diagonal (64, 128) f32 (columns w*8+d)
    w2s = (w2.reshape(C2, C1).T * bn_scale).astype(jnp.float32)     # (4, 8): [c, d]
    w2m = jnp.kron(jnp.eye(OUT_W, dtype=jnp.float32), w2s)          # (64, 128)
    b2m = jnp.tile(b2 * bn_scale, OUT_W).reshape(1, N2).astype(jnp.float32)

    # Permute Linear(128,32) rows from torch flatten order (c*16+w) to kernel
    # column order (w*8+c), then fold BatchNorm1d(32).
    w3m = (w3.T.reshape(C2, OUT_W, HID).transpose(1, 0, 2).reshape(FEAT, HID)
           * bn_scale).astype(jnp.float32)                          # (128, 32)
    b3m = (b3 * bn_scale).reshape(1, HID)

    w4m = w4.T.astype(jnp.float32)                                  # (32, 2)
    b4m = b4.reshape(1, NCLS)

    return (w1m, b1m, w2m, b2m, w3m, b3m, w4m, b4m)


# ---------------------------------------------------------------------------
# Generation-aware tiling
# ---------------------------------------------------------------------------
def _tpu_config():
    """Returns (per-TensorCore VMEM bytes, TensorCores per chip)."""
    vmem = 64 * 2 ** 20                       # conservative default (v7x per-TC VMEM)
    try:
        vmem = int(pltpu.get_tpu_info().vmem_capacity_bytes)
    except Exception:
        pass
    kind = ""
    try:
        kind = jax.devices()[0].device_kind.lower()
    except Exception:
        pass
    n_cores = 2 if "v7" in kind else 1
    if n_cores > 1:
        # v7x has 64 MiB per TensorCore; cap in case the query reports per-chip VMEM.
        vmem = min(vmem, 64 * 2 ** 20)
    return vmem, n_cores


def _choose_tiling(B, target, n_cores):
    """Largest batch tile that fits VMEM, with >= n_cores balanced grid steps."""
    if B <= 8 or (n_cores == 1 and B <= target):
        return B                                   # single exact block (no padding)
    n_steps = _cdiv(B, target)
    if n_cores > 1:
        # at least one step per TensorCore, and an even split across them
        n_steps = _round_up(max(n_steps, n_cores), n_cores)
    bt = _round_up(_cdiv(B, n_steps), 8)           # sublane-aligned, balanced tiles
    return min(bt, B)


# ---------------------------------------------------------------------------
# Forward
# ---------------------------------------------------------------------------
@jax.jit
def hdcnn_forward(x, params):
    # PyTorch: x = x.view(-1, 1, 19, 1800).  Row-major flatten is free (no copy).
    x2 = x.reshape(-1, IN_ELEMS).astype(jnp.float32)
    B = x2.shape[0]

    vmem, n_cores = _tpu_config()
    target = 128 if vmem >= 96 * 2 ** 20 else 64   # v5e/v6e vs v7x per-core budget
    bt = _choose_tiling(B, target, n_cores)
    n_steps = _cdiv(B, bt)
    Bp = n_steps * bt
    if Bp != B:
        # Only for batch sizes that do not tile evenly: one cheap pad pass on the
        # raw input (the relayout pass that previously preceded it no longer exists).
        x2 = jnp.pad(x2, ((0, Bp - B), (0, 0)))

    w1, b1, w2, b2, w3, b3, w4, b4 = params

    # Per-step VMEM estimate: double-buffered raw f32 input block + resident conv1
    # weight (lane-padded bf16, budget 2 buffers) + in-kernel bf16 input copy + misc.
    est = (2 * bt * IN_ELEMS * 4
           + 2 * IN_ELEMS * 128 * 2
           + bt * IN_ELEMS * 2
           + 2 * 2 ** 20)
    vmem_limit = int(min(vmem - 8 * 2 ** 20, est + 16 * 2 ** 20))
    vmem_limit = max(vmem_limit, 32 * 2 ** 20)

    out = pl.pallas_call(
        hdcnn_kernel,
        out_shape=jax.ShapeDtypeStruct((Bp, NCLS), jnp.float32),
        grid_spec=pltpu.PrefetchScalarGridSpec(
            num_scalar_prefetch=0,
            grid=(n_steps,),
            in_specs=[
                pl.BlockSpec((bt, IN_ELEMS), lambda i: (i, 0)),      # raw f32 input
                pl.BlockSpec((IN_ELEMS, N1), lambda i: (0, 0)),      # conv1 Toeplitz W (bf16)
                pl.BlockSpec((1, N1), lambda i: (0, 0)),
                pl.BlockSpec((N1, N2), lambda i: (0, 0)),            # 1x1 conv block-diag W
                pl.BlockSpec((1, N2), lambda i: (0, 0)),
                pl.BlockSpec((FEAT, HID), lambda i: (0, 0)),
                pl.BlockSpec((1, HID), lambda i: (0, 0)),
                pl.BlockSpec((HID, NCLS), lambda i: (0, 0)),
                pl.BlockSpec((1, NCLS), lambda i: (0, 0)),
            ],
            out_specs=pl.BlockSpec((bt, NCLS), lambda i: (i, 0)),
        ),
        compiler_params=pltpu.CompilerParams(
            dimension_semantics=("parallel",),     # independent batch tiles (v7x 2 TCs)
            vmem_limit_bytes=vmem_limit),
    )(x2, w1, b1, w2, b2, w3, b3, w4, b4)

    return out[:B]


# ---------------------------------------------------------------------------
# Pure-JAX reference (validates weight packing / BN folding)
# ---------------------------------------------------------------------------
def reference_forward(x, raw):
    w1, b1, w2, b2, w3, b3, w4, b4 = raw
    s = 1.0 / math.sqrt(1.0 + EPS)
    xr = x.reshape(-1, 1, IN_H, IN_W).astype(jnp.float32)
    y = jax.lax.conv_general_dilated(
        xr, w1, window_strides=(1, SW), padding="VALID",
        dimension_numbers=("NCHW", "OIHW", "NCHW"))                 # (B, 4, 1, 16)
    y = _leaky((y + b1[None, :, None, None]) * s)
    z = jnp.einsum("bchw,dc->bdhw", y, w2.reshape(C2, C1))          # (B, 8, 1, 16)
    z = _leaky((z + b2[None, :, None, None]) * s)
    feat = z.reshape(z.shape[0], -1)                                # flatten c*16+w
    h = _leaky((feat @ w3.T + b3) * s)                              # Dropout = identity
    return h @ w4.T + b4


if __name__ == "__main__":
    key = jax.random.PRNGKey(0)
    kx, kp = jax.random.split(key)
    raw = init_raw_params(kp)
    params = pack_params(raw)

    # Small deterministic input; forward views it as (-1, 1, 19, 1800).
    B = 2
    x = jax.random.normal(kx, (B, IN_H, IN_W), jnp.float32)
    out = jax.block_until_ready(hdcnn_forward(x, params))
    assert out.shape == (B, NCLS), out.shape
    assert out.dtype == jnp.float32
    assert bool(jnp.all(jnp.isfinite(out)))

    # Numerical check against the pure-JAX f32 reference (bf16 conv1 -> loose tol).
    ref = reference_forward(x, raw)
    assert bool(jnp.allclose(out, ref, rtol=5e-2, atol=5e-2)), \
        float(jnp.max(jnp.abs(out - ref)))

    # Exercise the multi-step, double-buffered (and megacore-sharded on v7x) grid path.
    B2 = 192
    x2 = jax.random.normal(kx, (B2, IN_H, IN_W), jnp.float32)
    out2 = jax.block_until_ready(hdcnn_forward(x2, params))
    assert out2.shape == (B2, NCLS), out2.shape
    assert bool(jnp.all(jnp.isfinite(out2)))

    print("KERNEL_OK")
</pallas_src>

<mosaic_0001>
module attributes {stable_mosaic.version = 11 : i64} {
  func.func @hdcnn_kernel(%arg0: i32, %arg1: memref<2x34200xf32, #tpu.memory_space<vmem>>, %arg2: memref<34200x64xbf16, #tpu.memory_space<vmem>>, %arg3: memref<1x64xf32, #tpu.memory_space<vmem>>, %arg4: memref<64x128xf32, #tpu.memory_space<vmem>>, %arg5: memref<1x128xf32, #tpu.memory_space<vmem>>, %arg6: memref<128x32xf32, #tpu.memory_space<vmem>>, %arg7: memref<1x32xf32, #tpu.memory_space<vmem>>, %arg8: memref<32x2xf32, #tpu.memory_space<vmem>>, %arg9: memref<1x2xf32, #tpu.memory_space<vmem>>, %arg10: memref<2x2xf32, #tpu.memory_space<vmem>>) attributes {dimension_semantics = [#tpu.dimension_semantics<parallel>], iteration_bounds = array<i64: 1>, scalar_prefetch = 0 : i64, scratch_operands = 0 : i64, tpu.core_type = #tpu.core_type<tc>, window_params = [{transform_indices = @transform_0, window_bounds = array<i64: 2, 34200>}, {pipeline_mode = #tpu.pipeline_mode<synchronous>, transform_indices = @transform_1, window_bounds = array<i64: 34200, 64>}, {pipeline_mode = #tpu.pipeline_mode<synchronous>, transform_indices = @transform_2, window_bounds = array<i64: 1, 64>}, {pipeline_mode = #tpu.pipeline_mode<synchronous>, transform_indices = @transform_3, window_bounds = array<i64: 64, 128>}, {pipeline_mode = #tpu.pipeline_mode<synchronous>, transform_indices = @transform_4, window_bounds = array<i64: 1, 128>}, {pipeline_mode = #tpu.pipeline_mode<synchronous>, transform_indices = @transform_5, window_bounds = array<i64: 128, 32>}, {pipeline_mode = #tpu.pipeline_mode<synchronous>, transform_indices = @transform_6, window_bounds = array<i64: 1, 32>}, {pipeline_mode = #tpu.pipeline_mode<synchronous>, transform_indices = @transform_7, window_bounds = array<i64: 32, 2>}, {pipeline_mode = #tpu.pipeline_mode<synchronous>, transform_indices = @transform_8, window_bounds = array<i64: 1, 2>}, {transform_indices = @transform_9, window_bounds = array<i64: 2, 2>}]} {
    %c0 = arith.constant 0 : index
    %c0_0 = arith.constant 0 : index
    %0 = vector.load %arg1[%c0, %c0_0] : memref<2x34200xf32, #tpu.memory_space<vmem>>, vector<2x34200xf32>
    %1 = arith.truncf %0 : vector<2x34200xf32> to vector<2x34200xbf16>
    %c0_1 = arith.constant 0 : index
    %c0_2 = arith.constant 0 : index
    %2 = vector.load %arg2[%c0_1, %c0_2] : memref<34200x64xbf16, #tpu.memory_space<vmem>>, vector<34200x64xbf16>
    %cst = arith.constant dense<0.000000e+00> : vector<2x64xf32>
    %3 = tpu.matmul %1, %2, %cst {dimension_numbers = #tpu.dot_dimension_numbers<[1], [0], [0], [1], [0, 0, 1, 1], [], []>} : vector<2x34200xbf16>, vector<34200x64xbf16>, vector<2x64xf32> -> vector<2x64xf32>
    %c0_3 = arith.constant 0 : index
    %c0_4 = arith.constant 0 : index
    %4 = vector.load %arg3[%c0_3, %c0_4] : memref<1x64xf32, #tpu.memory_space<vmem>>, vector<1x64xf32>
    %5 = vector.broadcast %4 : vector<1x64xf32> to vector<2x64xf32>
    %6 = arith.addf %3, %5 : vector<2x64xf32>
    %cst_5 = arith.constant 0.000000e+00 : f32
    %7 = vector.broadcast %cst_5 : f32 to vector<2x64xf32>
    %8 = arith.cmpf ogt, %6, %7 : vector<2x64xf32>
    %cst_6 = arith.constant 0.00999999977 : f32
    %9 = vector.broadcast %cst_6 : f32 to vector<2x64xf32>
    %10 = arith.mulf %9, %6 : vector<2x64xf32>
    %11 = arith.select %8, %6, %10 : vector<2x64xi1>, vector<2x64xf32>
    %c0_7 = arith.constant 0 : index
    %c0_8 = arith.constant 0 : index
    %12 = vector.load %arg4[%c0_7, %c0_8] : memref<64x128xf32, #tpu.memory_space<vmem>>, vector<64x128xf32>
    %cst_9 = arith.constant dense<0.000000e+00> : vector<2x128xf32>
    %13 = tpu.matmul %11, %12, %cst_9 {dimension_numbers = #tpu.dot_dimension_numbers<[1], [0], [0], [1], [0, 0, 1, 1], [], []>} : vector<2x64xf32>, vector<64x128xf32>, vector<2x128xf32> -> vector<2x128xf32>
    %c0_10 = arith.constant 0 : index
    %c0_11 = arith.constant 0 : index
    %14 = vector.load %arg5[%c0_10, %c0_11] : memref<1x128xf32, #tpu.memory_space<vmem>>, vector<1x128xf32>
    %15 = vector.broadcast %14 : vector<1x128xf32> to vector<2x128xf32>
    %16 = arith.addf %13, %15 : vector<2x128xf32>
    %cst_12 = arith.constant 0.000000e+00 : f32
    %17 = vector.broadcast %cst_12 : f32 to vector<2x128xf32>
    %18 = arith.cmpf ogt, %16, %17 : vector<2x128xf32>
    %cst_13 = arith.constant 0.00999999977 : f32
    %19 = vector.broadcast %cst_13 : f32 to vector<2x128xf32>
    %20 = arith.mulf %19, %16 : vector<2x128xf32>
    %21 = arith.select %18, %16, %20 : vector<2x128xi1>, vector<2x128xf32>
    %c0_14 = arith.constant 0 : index
    %c0_15 = arith.constant 0 : index
    %22 = vector.load %arg6[%c0_14, %c0_15] : memref<128x32xf32, #tpu.memory_space<vmem>>, vector<128x32xf32>
    %cst_16 = arith.constant dense<0.000000e+00> : vector<2x32xf32>
    %23 = tpu.matmul %21, %22, %cst_16 {dimension_numbers = #tpu.dot_dimension_numbers<[1], [0], [0], [1], [0, 0, 1, 1], [], []>} : vector<2x128xf32>, vector<128x32xf32>, vector<2x32xf32> -> vector<2x32xf32>
    %c0_17 = arith.constant 0 : index
    %c0_18 = arith.constant 0 : index
    %24 = vector.load %arg7[%c0_17, %c0_18] : memref<1x32xf32, #tpu.memory_space<vmem>>, vector<1x32xf32>
    %25 = vector.broadcast %24 : vector<1x32xf32> to vector<2x32xf32>
    %26 = arith.addf %23, %25 : vector<2x32xf32>
    %cst_19 = arith.constant 0.000000e+00 : f32
    %27 = vector.broadcast %cst_19 : f32 to vector<2x32xf32>
    %28 = arith.cmpf ogt, %26, %27 : vector<2x32xf32>
    %cst_20 = arith.constant 0.00999999977 : f32
    %29 = vector.broadcast %cst_20 : f32 to vector<2x32xf32>
    %30 = arith.mulf %29, %26 : vector<2x32xf32>
    %31 = arith.select %28, %26, %30 : vector<2x32xi1>, vector<2x32xf32>
    %c0_21 = arith.constant 0 : index
    %c0_22 = arith.constant 0 : index
    %32 = vector.load %arg8[%c0_21, %c0_22] : memref<32x2xf32, #tpu.memory_space<vmem>>, vector<32x2xf32>
    %cst_23 = arith.constant dense<0.000000e+00> : vector<2x2xf32>
    %33 = tpu.matmul %31, %32, %cst_23 {dimension_numbers = #tpu.dot_dimension_numbers<[1], [0], [0], [1], [0, 0, 1, 1], [], []>} : vector<2x32xf32>, vector<32x2xf32>, vector<2x2xf32> -> vector<2x2xf32>
    %c0_24 = arith.constant 0 : index
    %c0_25 = arith.constant 0 : index
    %34 = vector.load %arg9[%c0_24, %c0_25] : memref<1x2xf32, #tpu.memory_space<vmem>>, vector<1x2xf32>
    %35 = vector.broadcast %34 : vector<1x2xf32> to vector<2x2xf32>
    %36 = arith.addf %33, %35 : vector<2x2xf32>
    %c0_26 = arith.constant 0 : index
    %c0_27 = arith.constant 0 : index
    %37 = vector.load %arg10[%c0_26, %c0_27] : memref<2x2xf32, #tpu.memory_space<vmem>>, vector<2x2xf32>
    tpu.vector_store %arg10[%c0_26, %c0_27], %36 {strides = array<i32>} : memref<2x2xf32, #tpu.memory_space<vmem>>, vector<2x2xf32>,
    return
  }
  func.func @transform_0(%arg0: i32) -> (i32, i32) {
    %c0_i32 = arith.constant 0 : i32
    %c0_i32_0 = arith.constant 0 : i32
    return %arg0, %c0_i32 : i32, i32
  }
  func.func @transform_1(%arg0: i32) -> (i32, i32) {
    %c0_i32 = arith.constant 0 : i32
    %c0_i32_0 = arith.constant 0 : i32
    %c0_i32_1 = arith.constant 0 : i32
    return %c0_i32, %c0_i32_0 : i32, i32
  }
  func.func @transform_2(%arg0: i32) -> (i32, i32) {
    %c0_i32 = arith.constant 0 : i32
    %c0_i32_0 = arith.constant 0 : i32
    %c0_i32_1 = arith.constant 0 : i32
    return %c0_i32, %c0_i32_0 : i32, i32
  }
  func.func @transform_3(%arg0: i32) -> (i32, i32) {
    %c0_i32 = arith.constant 0 : i32
    %c0_i32_0 = arith.constant 0 : i32
    %c0_i32_1 = arith.constant 0 : i32
    return %c0_i32, %c0_i32_0 : i32, i32
  }
  func.func @transform_4(%arg0: i32) -> (i32, i32) {
    %c0_i32 = arith.constant 0 : i32
    %c0_i32_0 = arith.constant 0 : i32
    %c0_i32_1 = arith.constant 0 : i32
    return %c0_i32, %c0_i32_0 : i32, i32
  }
  func.func @transform_5(%arg0: i32) -> (i32, i32) {
    %c0_i32 = arith.constant 0 : i32
    %c0_i32_0 = arith.constant 0 : i32
    %c0_i32_1 = arith.constant 0 : i32
    return %c0_i32, %c0_i32_0 : i32, i32
  }
  func.func @transform_6(%arg0: i32) -> (i32, i32) {
    %c0_i32 = arith.constant 0 : i32
    %c0_i32_0 = arith.constant 0 : i32
    %c0_i32_1 = arith.constant 0 : i32
    return %c0_i32, %c0_i32_0 : i32, i32
  }
  func.func @transform_7(%arg0: i32) -> (i32, i32) {
    %c0_i32 = arith.constant 0 : i32
    %c0_i32_0 = arith.constant 0 : i32
    %c0_i32_1 = arith.constant 0 : i32
    return %c0_i32, %c0_i32_0 : i32, i32
  }
  func.func @transform_8(%arg0: i32) -> (i32, i32) {
    %c0_i32 = arith.constant 0 : i32
    %c0_i32_0 = arith.constant 0 : i32
    %c0_i32_1 = arith.constant 0 : i32
    return %c0_i32, %c0_i32_0 : i32, i32
  }
  func.func @transform_9(%arg0: i32) -> (i32, i32) {
    %c0_i32 = arith.constant 0 : i32
    %c0_i32_0 = arith.constant 0 : i32
    return %arg0, %c0_i32 : i32, i32
  }
}

</mosaic_0001>

<bundles_post_ra>
// kernel: hdcnn_forward.1
= control target key start
LH: loop header
LB: loop body
LE: loop exit
PB: predicated region body
PF: predicated region fallthrough
CT: control target
= control target key end

     0   :  { %s39438_s0 = inlined_call_operand.vmem [shape: f32[2,34200], index: 0, kind: input, shape index: {}]   ;;  %s39439_s1 = inlined_call_operand.vmem [shape: bf16[34200,64], index: 1, kind: input, shape index: {}]   ;;  %s39440_s2 = inlined_call_operand.vmem [shape: f32[1,64], index: 2, kind: input, shape index: {}]   ;;  %s39441_s3 = inlined_call_operand.vmem [shape: f32[64,128], index: 3, kind: input, shape index: {}]   ;;  %s39442_s4 = inlined_call_operand.vmem [shape: f32[1,128], index: 4, kind: input, shape index: {}]   ;;  %s39443_s5 = inlined_call_operand.vmem [shape: f32[128,32], index: 5, kind: input, shape index: {}]   ;;  %s39444_s6 = inlined_call_operand.vmem [shape: f32[1,32], index: 6, kind: input, shape index: {}]   ;;  %s39445_s7 = inlined_call_operand.vmem [shape: f32[32,2], index: 7, kind: input, shape index: {}]   ;;  %s39446_s8 = inlined_call_operand.vmem [shape: f32[1,2], index: 8, kind: input, shape index: {}]   ;;  %s39447_s9 = inlined_call_operand.hbm [shape: f32[2,2], index: 9, kind: output, shape index: {}]  }
   0x1   :  { %v30329_v0 = vld [vmem:[%s39439_s1 + $0x38] sm:$0xff]  ;;  %v30328_v4 = vld [vmem:[%s39439_s1 + $0x30] sm:$0xff]  ;;  %v30327_v8 = vld [vmem:[%s39439_s1 + $0x28] sm:$0xff] }
   0x2   :  { %v30337_v1 = vld [vmem:[%s39439_s1 + $0x78] sm:$0xff]  ;;  %18152 = vmatpush.bf16.msra.mxu0 %v30329_v0  ;;  %v30336_v5 = vld [vmem:[%s39439_s1 + $0x70] sm:$0xff]  ;;  %v30335_v9 = vld [vmem:[%s39439_s1 + $0x68] sm:$0xff] }
   0x3   :  { %v30345_v2 = vld [vmem:[%s39439_s1 + $0xb8] sm:$0xff]  ;;  %18165 = vmatpush.bf16.msra.mxu1 %v30337_v1  ;;  %v30344_v6 = vld [vmem:[%s39439_s1 + $0xb0] sm:$0xff]  ;;  %v30343_v10 = vld [vmem:[%s39439_s1 + $0xa8] sm:$0xff] }
   0x4   :  { %v30353_v3 = vld [vmem:[%s39439_s1 + $0xf8] sm:$0xff]  ;;  %18178 = vmatpush.bf16.msra.mxu2 %v30345_v2  ;;  %v30352_v7 = vld [vmem:[%s39439_s1 + $0xf0] sm:$0xff]  ;;  %v30351_v11 = vld [vmem:[%s39439_s1 + $0xe8] sm:$0xff] }
   0x5   :  { %18191 = vmatpush.bf16.msra.mxu3 %v30353_v3  ;;  %v30326_v12 = vld [vmem:[%s39439_s1 + $0x20] sm:$0xff]  ;;  %v30325_v16 = vld [vmem:[%s39439_s1 + $0x18] sm:$0xff]  ;;  %v30324_v20 = vld [vmem:[%s39439_s1 + $0x10] sm:$0xff] }
   0x6   :  { %18153 = vmatpush.bf16.msra.mxu0 %v30328_v4  ;;  %v30334_v13 = vld [vmem:[%s39439_s1 + $0x60] sm:$0xff]  ;;  %v30333_v17 = vld [vmem:[%s39439_s1 + $0x58] sm:$0xff]  ;;  %v30332_v22 = vld [vmem:[%s39439_s1 + $0x50] sm:$0xff] }
   0x7   :  { %18166 = vmatpush.bf16.msra.mxu1 %v30336_v5  ;;  %v30342_v14 = vld [vmem:[%s39439_s1 + $0xa0] sm:$0xff]  ;;  %v30341_v18 = vld [vmem:[%s39439_s1 + $0x98] sm:$0xff]  ;;  %v30340_v23 = vld [vmem:[%s39439_s1 + $0x90] sm:$0xff] }
   0x8   :  { %18179 = vmatpush.bf16.msra.mxu2 %v30344_v6  ;;  %v30350_v15 = vld [vmem:[%s39439_s1 + $0xe0] sm:$0xff]  ;;  %v30349_v19 = vld [vmem:[%s39439_s1 + $0xd8] sm:$0xff]  ;;  %v30348_v24 = vld [vmem:[%s39439_s1 + $0xd0] sm:$0xff] }
   0x9   :  { %18192 = vmatpush.bf16.msra.mxu3 %v30352_v7  ;;  %v34_v21 = vld [vmem:[%s39438_s0] sm:$0xff] }
   0xa   :  { %18154 = vmatpush.bf16.msra.mxu0 %v30327_v8  ;;  %168 = vst [vmem:[#allocation1] ss:$4 sm:$0xff] %v34_v21 }
   0xb   :  { %18167 = vmatpush.bf16.msra.mxu1 %v30335_v9 }
   0xc   :  { %18180 = vmatpush.bf16.msra.mxu2 %v30343_v10 }
   0xd   :  { %18193 = vmatpush.bf16.msra.mxu3 %v30351_v11 }
   0xe   :  { %18155 = vmatpush.bf16.msra.mxu0 %v30326_v12 }
   0xf   :  { %18168 = vmatpush.bf16.msra.mxu1 %v30334_v13 }
  0x10   :  { %18181 = vmatpush.bf16.msra.mxu2 %v30342_v14 }
  0x11   :  { %18194 = vmatpush.bf16.msra.mxu3 %v30350_v15 }
  0x12   :  { %18156 = vmatpush.bf16.msra.mxu0 %v30325_v16 }
  0x13   :  { %18169 = vmatpush.bf16.msra.mxu1 %v30333_v17 }
  0x14   :  { %18182 = vmatpush.bf16.msra.mxu2 %v30341_v18 }
  0x15   :  { %18195 = vmatpush.bf16.msra.mxu3 %v30349_v19 }
  0x16   :  { %14 = vsyncpa [#allocation3], 0  ;;  %18157 = vmatpush.bf16.msra.mxu0 %v30324_v20  ;;  %v30323_v25 = vld [vmem:[%s39439_s1 + $0x8] sm:$0xff]  ;;  %v30322_v29 = vld [vmem:[%s39439_s1] sm:$0xff]  ;;  %vm18148_vm0 = vcmask 1043456   ;;  %vm18144_vm1 = vcmask 195584  }
  0x17   :  { %18170 = vmatpush.bf16.msra.mxu1 %v30332_v22  ;;  %v30331_v26 = vld [vmem:[%s39439_s1 + $0x48] sm:$0xff]  ;;  %v30330_v30 = vld [vmem:[%s39439_s1 + $0x40] sm:$0xff]  ;;  %v30361_v33 = vld [vmem:[%s39439_s1 + $0x138] sm:$0xff]  ;;  %vm21651_vm3 = vcmask 523264   ;;  %vm21729_vm6 = vcmask 261120   ;;  %s32490_s20 = smov [#allocation2]  }
  0x18   :  { %18183 = vmatpush.bf16.msra.mxu2 %v30340_v23  ;;  %v30339_v27 = vld [vmem:[%s39439_s1 + $0x88] sm:$0xff]  ;;  %v171_v31 = vld.sshfl [vmem:[#allocation1] sm:$0xff pattern:$0x73625140]  ;;  %v30369_v35 = vld [vmem:[%s39439_s1 + $0x178] sm:$0xff]  ;;  %s21760_s21 = sshll.u32 %s32490_s20, 4  ;;  %s21761_s21 = int_to_ptr.vmem [resolvable:$true] %s21760_s21 }
  0x19   :  { %18196 = vmatpush.bf16.msra.mxu3 %v30348_v24  ;;  %v30347_v28 = vld [vmem:[%s39439_s1 + $0xc8] sm:$0xff]  ;;  %v30338_v32 = vld [vmem:[%s39439_s1 + $0x80] sm:$0xff]  ;;  %v173_v34 = vld.sshfl [vmem:[#allocation1 + $0x10] sm:$0xff pattern:$0x73625140]  ;;  %v772_v39 = vpack.c.bf16 %v171_v31, %v171_v31  ;;  %s21762_s23 = sshll.u32 %s39447_s9, 4  ;;  %s21763_s23 = int_to_ptr.hbm [resolvable:$true] %s21762_s23 }
  0x1a   :  { %18158 = vmatpush.bf16.msra.mxu0 %v30323_v25  ;;  %v30377_v36 = vld [vmem:[%s39439_s1 + $0x1b8] sm:$0xff]  ;;  %v172_v37 = vld.sshfl [vmem:[#allocation1 + $0x8] sm:$0xff pattern:$0x73625140]  ;;  %v30346_v38 = vld [vmem:[%s39439_s1 + $0xc0] sm:$0xff]  ;;  %v774_v42 = vpack.c.bf16 %v173_v34, %v173_v34  ;;  %vm21753_vm7 = vcmask 9216  }
  0x1b   :  { %18171 = vmatpush.bf16.msra.mxu1 %v30331_v26  ;;  %v35_v40 = vld [vmem:[%s39438_s0 + $0x8] sm:$0xff]  ;;  %v30385_v41 = vld [vmem:[%s39439_s1 + $0x1f8] sm:$0xff]  ;;  %v30360_v44 = vld [vmem:[%s39439_s1 + $0x130] sm:$0xff]  ;;  %v773_v45 = vpack.c.bf16 %v172_v37, %v172_v37 }
  0x1c   :  { %18184 = vmatpush.bf16.msra.mxu2 %v30339_v27  ;;  %v174_v43 = vld.sshfl [vmem:[#allocation1 + $0x18] sm:$0xff pattern:$0x73625140]  ;;  %170 = vst [vmem:[#allocation1 + $0x20] ss:$4 sm:$0xff] %v35_v40  ;;  %v30368_v46 = vld [vmem:[%s39439_s1 + $0x170] sm:$0xff] }
  0x1d   :  { %18197 = vmatpush.bf16.msra.mxu3 %v30347_v28  ;;  %v30376_v47 = vld [vmem:[%s39439_s1 + $0x1b0] sm:$0xff]  ;;  %v775_v48 = vpack.c.bf16 %v174_v43, %v174_v43  ;;  %v30359_v50 = vld [vmem:[%s39439_s1 + $0x128] sm:$0xff]  ;;  %v30358_v54 = vld [vmem:[%s39439_s1 + $0x120] sm:$0xff] }
  0x1e   :  { %18159 = vmatpush.bf16.msra.mxu0 %v30322_v29  ;;  %v30384_v49 = vld [vmem:[%s39439_s1 + $0x1f0] sm:$0xff]  ;;  %v30367_v51 = vld [vmem:[%s39439_s1 + $0x168] sm:$0xff]  ;;  %v30366_v55 = vld [vmem:[%s39439_s1 + $0x160] sm:$0xff] }
  0x1f   :  { %18172 = vmatpush.bf16.msra.mxu1 %v30330_v30  ;;  %v30375_v52 = vld [vmem:[%s39439_s1 + $0x1a8] sm:$0xff]  ;;  %v30374_v56 = vld [vmem:[%s39439_s1 + $0x1a0] sm:$0xff]  ;;  %v30357_v58 = vld [vmem:[%s39439_s1 + $0x118] sm:$0xff] }
  0x20   :  { %18185 = vmatpush.bf16.msra.mxu2 %v30338_v32  ;;  %v30383_v53 = vld [vmem:[%s39439_s1 + $0x1e8] sm:$0xff]  ;;  %v30382_v57 = vld [vmem:[%s39439_s1 + $0x1e0] sm:$0xff]  ;;  %v30365_v59 = vld [vmem:[%s39439_s1 + $0x158] sm:$0xff] }
  0x21   :  { %18198 = vmatpush.bf16.msra.mxu3 %v30346_v38  ;;  %18160 = vmatmul.bf16.vlgmr.msra.gmra.mxu0 %v772_v39  ;;  %v30373_v60 = vld [vmem:[%s39439_s1 + $0x198] sm:$0xff]  ;;  %v30356_v62 = vld [vmem:[%s39439_s1 + $0x110] sm:$0xff]  ;;  %v30355_v3 = vld [vmem:[%s39439_s1 + $0x108] sm:$0xff] }
  0x22   :  { %18204 = vmatpush.bf16.msrb.mxu0 %v30361_v33  ;;  %18173 = vmatmul.bf16.vlgmr.msra.gmra.mxu1 %v773_v45  ;;  %v30381_v61 = vld [vmem:[%s39439_s1 + $0x1d8] sm:$0xff]  ;;  %v30364_v63 = vld [vmem:[%s39439_s1 + $0x150] sm:$0xff]  ;;  %v30363_v4 = vld [vmem:[%s39439_s1 + $0x148] sm:$0xff] }
  0x23   :  { %18217 = vmatpush.bf16.msrb.mxu1 %v30369_v35  ;;  %18186 = vmatmul.bf16.vlgmr.msra.gmra.mxu2 %v774_v42  ;;  %v30372_v0 = vld [vmem:[%s39439_s1 + $0x190] sm:$0xff]  ;;  %v30371_v5 = vld [vmem:[%s39439_s1 + $0x188] sm:$0xff]  ;;  %v30354_v7 = vld [vmem:[%s39439_s1 + $0x100] sm:$0xff] }
  0x24   :  { %18230 = vmatpush.bf16.msrb.mxu2 %v30377_v36  ;;  %18199 = vmatmul.bf16.vlgmr.msra.gmra.mxu3 %v775_v48  ;;  %v30380_v1 = vld [vmem:[%s39439_s1 + $0x1d0] sm:$0xff]  ;;  %v30379_v6 = vld [vmem:[%s39439_s1 + $0x1c8] sm:$0xff]  ;;  %v30362_v8 = vld [vmem:[%s39439_s1 + $0x140] sm:$0xff] }
  0x25   :  { %18243 = vmatpush.bf16.msrb.mxu3 %v30385_v41  ;;  %v36_v2 = vld [vmem:[%s39438_s0 + $0x10] sm:$0xff]  ;;  %v30370_v9 = vld [vmem:[%s39439_s1 + $0x180] sm:$0xff]  ;;  %v30393_v10 = vld [vmem:[%s39439_s1 + $0x238] sm:$0xff] }
  0x26   :  { %18205 = vmatpush.bf16.msrb.mxu0 %v30360_v44  ;;  %179 = vst [vmem:[#allocation1] ss:$4 sm:$0xff] %v36_v2  ;;  %v30401_v11 = vld [vmem:[%s39439_s1 + $0x278] sm:$0xff]  ;;  %v177_v12 = vld.sshfl [vmem:[#allocation1 + $0x30] sm:$0xff pattern:$0x73625140] }
  0x27   :  { %18218 = vmatpush.bf16.msrb.mxu1 %v30368_v46  ;;  %v175_v13 = vld.sshfl [vmem:[#allocation1 + $0x20] sm:$0xff pattern:$0x73625140]  ;;  %v176_v14 = vld.sshfl [vmem:[#allocation1 + $0x28] sm:$0xff pattern:$0x73625140]  ;;  %v778_v18 = vpack.c.bf16 %v177_v12, %v177_v12 }
  0x28   :  { %18231 = vmatpush.bf16.msrb.mxu2 %v30376_v47  ;;  %v30409_v15 = vld [vmem:[%s39439_s1 + $0x2b8] sm:$0xff]  ;;  %v30378_v16 = vld [vmem:[%s39439_s1 + $0x1c0] sm:$0xff]  ;;  %v776_v20 = vpack.c.bf16 %v175_v13, %v175_v13  ;;  %v777_v21 = vpack.c.bf16 %v176_v14, %v176_v14  ;;  %v30392_v22 = vld [vmem:[%s39439_s1 + $0x230] sm:$0xff] }
  0x29   :  { %18244 = vmatpush.bf16.msrb.mxu3 %v30384_v49  ;;  %v30417_v17 = vld [vmem:[%s39439_s1 + $0x2f8] sm:$0xff]  ;;  %v30400_v23 = vld [vmem:[%s39439_s1 + $0x270] sm:$0xff]  ;;  %v30391_v27 = vld [vmem:[%s39439_s1 + $0x228] sm:$0xff] }
  0x2a   :  { %18206 = vmatpush.bf16.msrb.mxu0 %v30359_v50  ;;  %v178_v19 = vld.sshfl [vmem:[#allocation1 + $0x38] sm:$0xff pattern:$0x73625140]  ;;  %v30408_v24 = vld [vmem:[%s39439_s1 + $0x2b0] sm:$0xff]  ;;  %v30399_v28 = vld [vmem:[%s39439_s1 + $0x268] sm:$0xff] }
  0x2b   :  { %18219 = vmatpush.bf16.msrb.mxu1 %v30367_v51  ;;  %v779_v25 = vpack.c.bf16 %v178_v19, %v178_v19  ;;  %v30416_v26 = vld [vmem:[%s39439_s1 + $0x2f0] sm:$0xff]  ;;  %v30407_v29 = vld [vmem:[%s39439_s1 + $0x2a8] sm:$0xff]  ;;  %v30390_v31 = vld [vmem:[%s39439_s1 + $0x220] sm:$0xff] }
  0x2c   :  { %18232 = vmatpush.bf16.msrb.mxu2 %v30375_v52  ;;  %v30415_v30 = vld [vmem:[%s39439_s1 + $0x2e8] sm:$0xff]  ;;  %v30398_v32 = vld [vmem:[%s39439_s1 + $0x260] sm:$0xff]  ;;  %v30389_v35 = vld [vmem:[%s39439_s1 + $0x218] sm:$0xff] }
  0x2d   :  { %18245 = vmatpush.bf16.msrb.mxu3 %v30383_v53  ;;  %v30406_v33 = vld [vmem:[%s39439_s1 + $0x2a0] sm:$0xff]  ;;  %v30397_v36 = vld [vmem:[%s39439_s1 + $0x258] sm:$0xff]  ;;  %v30388_v39 = vld [vmem:[%s39439_s1 + $0x210] sm:$0xff] }
  0x2e   :  { %18207 = vmatpush.bf16.msrb.mxu0 %v30358_v54  ;;  %v30414_v34 = vld [vmem:[%s39439_s1 + $0x2e0] sm:$0xff]  ;;  %v30405_v37 = vld [vmem:[%s39439_s1 + $0x298] sm:$0xff]  ;;  %v30396_v40 = vld [vmem:[%s39439_s1 + $0x250] sm:$0xff] }
  0x2f   :  { %18220 = vmatpush.bf16.msrb.mxu1 %v30366_v55  ;;  %v30413_v38 = vld [vmem:[%s39439_s1 + $0x2d8] sm:$0xff]  ;;  %v30404_v41 = vld [vmem:[%s39439_s1 + $0x290] sm:$0xff]  ;;  %v30387_v44 = vld [vmem:[%s39439_s1 + $0x208] sm:$0xff] }
  0x30   :  { %18233 = vmatpush.bf16.msrb.mxu2 %v30374_v56  ;;  %v30412_v42 = vld [vmem:[%s39439_s1 + $0x2d0] sm:$0xff]  ;;  %v37_v43 = vld [vmem:[%s39438_s0 + $0x18] sm:$0xff]  ;;  %v30395_v45 = vld [vmem:[%s39439_s1 + $0x248] sm:$0xff] }
  0x31   :  { %18246 = vmatpush.bf16.msrb.mxu3 %v30382_v57  ;;  %180 = vst [vmem:[#allocation1 + $0x20] ss:$4 sm:$0xff] %v37_v43  ;;  %v30403_v46 = vld [vmem:[%s39439_s1 + $0x288] sm:$0xff]  ;;  %v30386_v48 = vld [vmem:[%s39439_s1 + $0x200] sm:$0xff]  ;;  %v30425_v52 = vld [vmem:[%s39439_s1 + $0x338] sm:$0xff] }
  0x32   :  { %18208 = vmatpush.bf16.msrb.mxu0 %v30357_v58  ;;  %v30411_v47 = vld [vmem:[%s39439_s1 + $0x2c8] sm:$0xff]  ;;  %v30394_v49 = vld [vmem:[%s39439_s1 + $0x240] sm:$0xff]  ;;  %v183_v53 = vld.sshfl [vmem:[#allocation1 + $0x10] sm:$0xff pattern:$0x73625140] }
  0x33   :  { %18221 = vmatpush.bf16.msrb.mxu1 %v30365_v59  ;;  %v181_v50 = vld.sshfl [vmem:[#allocation1] sm:$0xff pattern:$0x73625140]  ;;  %v30433_v54 = vld [vmem:[%s39439_s1 + $0x378] sm:$0xff]  ;;  %v30440_v2 = vld [vmem:[%s39439_s1 + $0x3b0] sm:$0xff] }
  0x34   :  { %18234 = vmatpush.bf16.msrb.mxu2 %v30373_v60  ;;  %v30402_v51 = vld [vmem:[%s39439_s1 + $0x280] sm:$0xff]  ;;  %v30441_v55 = vld [vmem:[%s39439_s1 + $0x3b8] sm:$0xff]  ;;  %v182_v56 = vld.sshfl [vmem:[#allocation1 + $0x8] sm:$0xff pattern:$0x73625140]  ;;  %v780_v58 = vpack.c.bf16 %v181_v50, %v181_v50  ;;  %v782_v60 = vpack.c.bf16 %v183_v53, %v183_v53 }
  0x35   :  { %18247 = vmatpush.bf16.msrb.mxu3 %v30381_v61  ;;  %v30410_v57 = vld [vmem:[%s39439_s1 + $0x2c0] sm:$0xff]  ;;  %v184_v59 = vld.sshfl [vmem:[#allocation1 + $0x18] sm:$0xff pattern:$0x73625140]  ;;  %v30444_v19 = vld [vmem:[%s39439_s1 + $0x3d0] sm:$0xff] }
  0x36   :  { %18209 = vmatpush.bf16.msrb.mxu0 %v30356_v62  ;;  %v30449_v61 = vld [vmem:[%s39439_s1 + $0x3f8] sm:$0xff]  ;;  %v781_v62 = vpack.c.bf16 %v182_v56, %v182_v56  ;;  %v30472_v43 = vld [vmem:[%s39439_s1 + $0x4b0] sm:$0xff]  ;;  %v30462_v50 = vld [vmem:[%s39439_s1 + $0x460] sm:$0xff] }
  0x37   :  { %18222 = vmatpush.bf16.msrb.mxu1 %v30364_v63  ;;  %v30424_v63 = vld [vmem:[%s39439_s1 + $0x330] sm:$0xff]  ;;  %v30421_v12 = vld [vmem:[%s39439_s1 + $0x318] sm:$0xff] }
  0x38   :  { %18235 = vmatpush.bf16.msrb.mxu2 %v30372_v0  ;;  %v783_v0 = vpack.c.bf16 %v184_v59, %v184_v59  ;;  %v30429_v13 = vld [vmem:[%s39439_s1 + $0x358] sm:$0xff]  ;;  %v30468_v59 = vld [vmem:[%s39439_s1 + $0x490] sm:$0xff] }
  0x39   :  { %18248 = vmatpush.bf16.msrb.mxu3 %v30380_v1  ;;  %v30432_v1 = vld [vmem:[%s39439_s1 + $0x370] sm:$0xff]  ;;  %v30437_v14 = vld [vmem:[%s39439_s1 + $0x398] sm:$0xff] }
  0x3a   :  { %18210 = vmatpush.bf16.msrb.mxu0 %v30355_v3  ;;  %v30448_v3 = vld [vmem:[%s39439_s1 + $0x3f0] sm:$0xff]  ;;  %v30453_v53 = vld [vmem:[%s39439_s1 + $0x418] sm:$0xff] }
  0x3b   :  { %18223 = vmatpush.bf16.msrb.mxu1 %v30363_v4  ;;  %v30423_v4 = vld [vmem:[%s39439_s1 + $0x328] sm:$0xff]  ;;  %v30477_v56 = vld [vmem:[%s39439_s1 + $0x4d8] sm:$0xff] }
  0x3c   :  { %18236 = vmatpush.bf16.msrb.mxu2 %v30371_v5  ;;  %v30431_v5 = vld [vmem:[%s39439_s1 + $0x368] sm:$0xff] }
  0x3d   :  { %18249 = vmatpush.bf16.msrb.mxu3 %v30379_v6  ;;  %v30439_v6 = vld [vmem:[%s39439_s1 + $0x3a8] sm:$0xff] }
  0x3e   :  { %18211 = vmatpush.bf16.msrb.mxu0 %v30354_v7  ;;  %v30447_v7 = vld [vmem:[%s39439_s1 + $0x3e8] sm:$0xff] }
  0x3f   :  { %18224 = vmatpush.bf16.msrb.mxu1 %v30362_v8  ;;  %v30422_v8 = vld [vmem:[%s39439_s1 + $0x320] sm:$0xff] }
  0x40   :  { %18237 = vmatpush.bf16.msrb.mxu2 %v30370_v9  ;;  %v30430_v9 = vld [vmem:[%s39439_s1 + $0x360] sm:$0xff] }
  0x41   :  { %18250 = vmatpush.bf16.msrb.mxu3 %v30378_v16  ;;  %18212 = vmatmul.bf16.vlgmr.msrb.gmra.mxu0 %v776_v20  ;;  %v30420_v16 = vld [vmem:[%s39439_s1 + $0x310] sm:$0xff]  ;;  %v30419_v20 = vld [vmem:[%s39439_s1 + $0x308] sm:$0xff] }
  0x42   :  { %18256 = vmatpush.bf16.msra.mxu0 %v30393_v10  ;;  %18225 = vmatmul.bf16.vlgmr.msrb.gmra.mxu1 %v777_v21  ;;  %v30438_v10 = vld [vmem:[%s39439_s1 + $0x3a0] sm:$0xff] }
  0x43   :  { %18269 = vmatpush.bf16.msra.mxu1 %v30401_v11  ;;  %18238 = vmatmul.bf16.vlgmr.msrb.gmra.mxu2 %v778_v18  ;;  %v30446_v11 = vld [vmem:[%s39439_s1 + $0x3e0] sm:$0xff]  ;;  %v30436_v18 = vld [vmem:[%s39439_s1 + $0x390] sm:$0xff] }
  0x44   :  { %18282 = vmatpush.bf16.msra.mxu2 %v30409_v15  ;;  %18251 = vmatmul.bf16.vlgmr.msrb.gmra.mxu3 %v779_v25  ;;  %v30445_v15 = vld [vmem:[%s39439_s1 + $0x3d8] sm:$0xff]  ;;  %v38_v21 = vld [vmem:[%s39438_s0 + $0x20] sm:$0xff] }
  0x45   :  { %18295 = vmatpush.bf16.msra.mxu3 %v30417_v17  ;;  %v30428_v17 = vld [vmem:[%s39439_s1 + $0x350] sm:$0xff]  ;;  %189 = vst [vmem:[#allocation1] ss:$4 sm:$0xff] %v38_v21  ;;  %v30418_v25 = vld [vmem:[%s39439_s1 + $0x300] sm:$0xff] }
  0x46   :  { %18257 = vmatpush.bf16.msra.mxu0 %v30392_v22  ;;  %v30427_v22 = vld [vmem:[%s39439_s1 + $0x348] sm:$0xff]  ;;  %v30512_v21 = vld [vmem:[%s39439_s1 + $0x5f0] sm:$0xff] }
  0x47   :  { %18270 = vmatpush.bf16.msra.mxu1 %v30400_v23  ;;  %v30435_v23 = vld [vmem:[%s39439_s1 + $0x388] sm:$0xff] }
  0x48   :  { %18283 = vmatpush.bf16.msra.mxu2 %v30408_v24  ;;  %v30443_v24 = vld [vmem:[%s39439_s1 + $0x3c8] sm:$0xff] }
  0x49   :  { %18296 = vmatpush.bf16.msra.mxu3 %v30416_v26  ;;  %v30426_v26 = vld [vmem:[%s39439_s1 + $0x340] sm:$0xff] }
  0x4a   :  { %18258 = vmatpush.bf16.msra.mxu0 %v30391_v27  ;;  %v30434_v27 = vld [vmem:[%s39439_s1 + $0x380] sm:$0xff] }
  0x4b   :  { %18271 = vmatpush.bf16.msra.mxu1 %v30399_v28  ;;  %v30457_v28 = vld [vmem:[%s39439_s1 + $0x438] sm:$0xff] }
  0x4c   :  { %18284 = vmatpush.bf16.msra.mxu2 %v30407_v29  ;;  %v30465_v29 = vld [vmem:[%s39439_s1 + $0x478] sm:$0xff] }
  0x4d   :  { %18297 = vmatpush.bf16.msra.mxu3 %v30415_v30  ;;  %v185_v30 = vld.sshfl [vmem:[#allocation1 + $0x20] sm:$0xff pattern:$0x73625140] }
  0x4e   :  { %18259 = vmatpush.bf16.msra.mxu0 %v30390_v31  ;;  %v187_v31 = vld.sshfl [vmem:[#allocation1 + $0x30] sm:$0xff pattern:$0x73625140] }
  0x4f   :  { %18272 = vmatpush.bf16.msra.mxu1 %v30398_v32  ;;  %v186_v32 = vld.sshfl [vmem:[#allocation1 + $0x28] sm:$0xff pattern:$0x73625140] }
  0x50   :  { %18285 = vmatpush.bf16.msra.mxu2 %v30406_v33  ;;  %v30473_v33 = vld [vmem:[%s39439_s1 + $0x4b8] sm:$0xff] }
  0x51   :  { %18298 = vmatpush.bf16.msra.mxu3 %v30414_v34  ;;  %v30442_v34 = vld [vmem:[%s39439_s1 + $0x3c0] sm:$0xff] }
  0x52   :  { %18260 = vmatpush.bf16.msra.mxu0 %v30389_v35  ;;  %v188_v35 = vld.sshfl [vmem:[#allocation1 + $0x38] sm:$0xff pattern:$0x73625140] }
  0x53   :  { %18273 = vmatpush.bf16.msra.mxu1 %v30397_v36  ;;  %v784_v36 = vpack.c.bf16 %v185_v30, %v185_v30  ;;  %v30502_v30 = vld [vmem:[%s39439_s1 + $0x5a0] sm:$0xff] }
  0x54   :  { %18286 = vmatpush.bf16.msra.mxu2 %v30405_v37  ;;  %v30481_v37 = vld [vmem:[%s39439_s1 + $0x4f8] sm:$0xff] }
  0x55   :  { %18299 = vmatpush.bf16.msra.mxu3 %v30413_v38  ;;  %v786_v38 = vpack.c.bf16 %v187_v31, %v187_v31 }
  0x56   :  { %18261 = vmatpush.bf16.msra.mxu0 %v30388_v39  ;;  %v785_v39 = vpack.c.bf16 %v186_v32, %v186_v32 }
  0x57   :  { %18274 = vmatpush.bf16.msra.mxu1 %v30396_v40  ;;  %v787_v40 = vpack.c.bf16 %v188_v35, %v188_v35  ;;  %v30485_v35 = vld [vmem:[%s39439_s1 + $0x518] sm:$0xff] }
  0x58   :  { %18287 = vmatpush.bf16.msra.mxu2 %v30404_v41  ;;  %v30456_v41 = vld [vmem:[%s39439_s1 + $0x430] sm:$0xff] }
  0x59   :  { %18300 = vmatpush.bf16.msra.mxu3 %v30412_v42  ;;  %v30464_v42 = vld [vmem:[%s39439_s1 + $0x470] sm:$0xff] }
  0x5a   :  { %18262 = vmatpush.bf16.msra.mxu0 %v30387_v44  ;;  %v30480_v44 = vld [vmem:[%s39439_s1 + $0x4f0] sm:$0xff] }
  0x5b   :  { %18275 = vmatpush.bf16.msra.mxu1 %v30395_v45  ;;  %v30455_v45 = vld [vmem:[%s39439_s1 + $0x428] sm:$0xff] }
  0x5c   :  { %18288 = vmatpush.bf16.msra.mxu2 %v30403_v46  ;;  %v30463_v46 = vld [vmem:[%s39439_s1 + $0x468] sm:$0xff] }
  0x5d   :  { %18301 = vmatpush.bf16.msra.mxu3 %v30411_v47  ;;  %v30471_v47 = vld [vmem:[%s39439_s1 + $0x4a8] sm:$0xff] }
  0x5e   :  { %18263 = vmatpush.bf16.msra.mxu0 %v30386_v48  ;;  %v30479_v48 = vld [vmem:[%s39439_s1 + $0x4e8] sm:$0xff] }
  0x5f   :  { %18276 = vmatpush.bf16.msra.mxu1 %v30394_v49  ;;  %v30454_v49 = vld [vmem:[%s39439_s1 + $0x420] sm:$0xff] }
  0x60   :  { %18289 = vmatpush.bf16.msra.mxu2 %v30402_v51  ;;  %v30470_v51 = vld [vmem:[%s39439_s1 + $0x4a0] sm:$0xff] }
  0x61   :  { %18302 = vmatpush.bf16.msra.mxu3 %v30410_v57  ;;  %18264 = vmatmul.bf16.vlgmr.msra.gmra.mxu0 %v780_v58  ;;  %v30452_v57 = vld [vmem:[%s39439_s1 + $0x410] sm:$0xff] }
  0x62   :  { %18308 = vmatpush.bf16.msrb.mxu0 %v30425_v52  ;;  %18277 = vmatmul.bf16.vlgmr.msra.gmra.mxu1 %v781_v62  ;;  %v30478_v52 = vld [vmem:[%s39439_s1 + $0x4e0] sm:$0xff]  ;;  %v30460_v58 = vld [vmem:[%s39439_s1 + $0x450] sm:$0xff]  ;;  %v39_v62 = vld [vmem:[%s39438_s0 + $0x28] sm:$0xff] }
  0x63   :  { %18321 = vmatpush.bf16.msrb.mxu1 %v30433_v54  ;;  %18290 = vmatmul.bf16.vlgmr.msra.gmra.mxu2 %v782_v60  ;;  %v30461_v54 = vld [vmem:[%s39439_s1 + $0x458] sm:$0xff]  ;;  %v30476_v60 = vld [vmem:[%s39439_s1 + $0x4d0] sm:$0xff]  ;;  %190 = vst [vmem:[#allocation1 + $0x20] ss:$4 sm:$0xff] %v39_v62 }
  0x64   :  { %18334 = vmatpush.bf16.msrb.mxu2 %v30441_v55  ;;  %18303 = vmatmul.bf16.vlgmr.msra.gmra.mxu3 %v783_v0  ;;  %v30469_v55 = vld [vmem:[%s39439_s1 + $0x498] sm:$0xff]  ;;  %v30467_v0 = vld [vmem:[%s39439_s1 + $0x488] sm:$0xff] }
  0x65   :  { %18347 = vmatpush.bf16.msrb.mxu3 %v30449_v61  ;;  %v30451_v61 = vld [vmem:[%s39439_s1 + $0x408] sm:$0xff] }
  0x66   :  { %18309 = vmatpush.bf16.msrb.mxu0 %v30424_v63  ;;  %v30459_v63 = vld [vmem:[%s39439_s1 + $0x448] sm:$0xff] }
  0x67   :  { %18322 = vmatpush.bf16.msrb.mxu1 %v30432_v1  ;;  %v30475_v1 = vld [vmem:[%s39439_s1 + $0x4c8] sm:$0xff] }
  0x68   :  { %18335 = vmatpush.bf16.msrb.mxu2 %v30440_v2  ;;  %v30450_v2 = vld [vmem:[%s39439_s1 + $0x400] sm:$0xff] }
  0x69   :  { %18348 = vmatpush.bf16.msrb.mxu3 %v30448_v3  ;;  %v30458_v3 = vld [vmem:[%s39439_s1 + $0x440] sm:$0xff] }
  0x6a   :  { %18310 = vmatpush.bf16.msrb.mxu0 %v30423_v4  ;;  %v30466_v4 = vld [vmem:[%s39439_s1 + $0x480] sm:$0xff]  ;;  %v196_v62 = vld.sshfl [vmem:[#allocation1 + $0x28] sm:$0xff pattern:$0x73625140] }
  0x6b   :  { %18323 = vmatpush.bf16.msrb.mxu1 %v30431_v5  ;;  %v191_v5 = vld.sshfl [vmem:[#allocation1] sm:$0xff pattern:$0x73625140] }
  0x6c   :  { %18336 = vmatpush.bf16.msrb.mxu2 %v30439_v6  ;;  %v193_v6 = vld.sshfl [vmem:[#allocation1 + $0x10] sm:$0xff pattern:$0x73625140] }
  0x6d   :  { %18349 = vmatpush.bf16.msrb.mxu3 %v30447_v7  ;;  %v30489_v7 = vld [vmem:[%s39439_s1 + $0x538] sm:$0xff] }
  0x6e   :  { %18311 = vmatpush.bf16.msrb.mxu0 %v30422_v8  ;;  %v30497_v8 = vld [vmem:[%s39439_s1 + $0x578] sm:$0xff] }
  0x6f   :  { %18324 = vmatpush.bf16.msrb.mxu1 %v30430_v9  ;;  %v192_v9 = vld.sshfl [vmem:[#allocation1 + $0x8] sm:$0xff pattern:$0x73625140] }
  0x70   :  { %18337 = vmatpush.bf16.msrb.mxu2 %v30438_v10  ;;  %v30505_v10 = vld [vmem:[%s39439_s1 + $0x5b8] sm:$0xff] }
  0x71   :  { %18350 = vmatpush.bf16.msrb.mxu3 %v30446_v11  ;;  %v30474_v11 = vld [vmem:[%s39439_s1 + $0x4c0] sm:$0xff] }
  0x72   :  { %18312 = vmatpush.bf16.msrb.mxu0 %v30421_v12  ;;  %v194_v12 = vld.sshfl [vmem:[#allocation1 + $0x18] sm:$0xff pattern:$0x73625140] }
  0x73   :  { %18325 = vmatpush.bf16.msrb.mxu1 %v30429_v13  ;;  %v788_v13 = vpack.c.bf16 %v191_v5, %v191_v5  ;;  %v30545_v5 = vld [vmem:[%s39439_s1 + $0x6f8] sm:$0xff] }
  0x74   :  { %18338 = vmatpush.bf16.msrb.mxu2 %v30437_v14  ;;  %v790_v14 = vpack.c.bf16 %v193_v6, %v193_v6  ;;  %v793_v6 = vpack.c.bf16 %v196_v62, %v196_v62  ;;  %v30560_v62 = vld [vmem:[%s39439_s1 + $0x770] sm:$0xff] }
  0x75   :  { %18351 = vmatpush.bf16.msrb.mxu3 %v30445_v15  ;;  %v30513_v15 = vld [vmem:[%s39439_s1 + $0x5f8] sm:$0xff] }
  0x76   :  { %18313 = vmatpush.bf16.msrb.mxu0 %v30420_v16  ;;  %v789_v16 = vpack.c.bf16 %v192_v9, %v192_v9  ;;  %v30528_v9 = vld [vmem:[%s39439_s1 + $0x670] sm:$0xff] }
  0x77   :  { %18326 = vmatpush.bf16.msrb.mxu1 %v30428_v17  ;;  %v791_v17 = vpack.c.bf16 %v194_v12, %v194_v12  ;;  %v30519_v12 = vld [vmem:[%s39439_s1 + $0x628] sm:$0xff] }
  0x78   :  { %18339 = vmatpush.bf16.msrb.mxu2 %v30436_v18  ;;  %v30488_v18 = vld [vmem:[%s39439_s1 + $0x530] sm:$0xff] }
  0x79   :  { %18352 = vmatpush.bf16.msrb.mxu3 %v30444_v19  ;;  %v30496_v19 = vld [vmem:[%s39439_s1 + $0x570] sm:$0xff] }
  0x7a   :  { %18314 = vmatpush.bf16.msrb.mxu0 %v30419_v20  ;;  %v30504_v20 = vld [vmem:[%s39439_s1 + $0x5b0] sm:$0xff] }
  0x7b   :  { %18327 = vmatpush.bf16.msrb.mxu1 %v30427_v22  ;;  %v30487_v22 = vld [vmem:[%s39439_s1 + $0x528] sm:$0xff] }
  0x7c   :  { %18340 = vmatpush.bf16.msrb.mxu2 %v30435_v23  ;;  %v30495_v23 = vld [vmem:[%s39439_s1 + $0x568] sm:$0xff] }
  0x7d   :  { %18353 = vmatpush.bf16.msrb.mxu3 %v30443_v24  ;;  %v30503_v24 = vld [vmem:[%s39439_s1 + $0x5a8] sm:$0xff] }
  0x7e   :  { %18315 = vmatpush.bf16.msrb.mxu0 %v30418_v25  ;;  %v32460_v25 = vld [vmem:[%s39440_s2] ss:$0 sm:$0xff] }
  0x7f   :  { %18328 = vmatpush.bf16.msrb.mxu1 %v30426_v26  ;;  %v30511_v26 = vld [vmem:[%s39439_s1 + $0x5e8] sm:$0xff] }
  0x80   :  { %18341 = vmatpush.bf16.msrb.mxu2 %v30434_v27  ;;  %v30486_v27 = vld [vmem:[%s39439_s1 + $0x520] sm:$0xff] }
  0x81   :  { %18354 = vmatpush.bf16.msrb.mxu3 %v30442_v34  ;;  %18316 = vmatmul.bf16.vlgmr.msrb.gmra.mxu0 %v784_v36  ;;  %v30493_v36 = vld [vmem:[%s39439_s1 + $0x558] sm:$0xff] }
  0x82   :  { %18360 = vmatpush.bf16.msra.mxu0 %v30457_v28  ;;  %18329 = vmatmul.bf16.vlgmr.msrb.gmra.mxu1 %v785_v39 }
  0x83   :  { %18373 = vmatpush.bf16.msra.mxu1 %v30465_v29  ;;  %18342 = vmatmul.bf16.vlgmr.msrb.gmra.mxu2 %v786_v38  ;;  %v30494_v29 = vld [vmem:[%s39439_s1 + $0x560] sm:$0xff]  ;;  %v30509_v38 = vld [vmem:[%s39439_s1 + $0x5d8] sm:$0xff] }
  0x84   :  { %18386 = vmatpush.bf16.msra.mxu2 %v30473_v33  ;;  %18355 = vmatmul.bf16.vlgmr.msrb.gmra.mxu3 %v787_v40  ;;  %v30510_v33 = vld [vmem:[%s39439_s1 + $0x5e0] sm:$0xff]  ;;  %v30484_v40 = vld [vmem:[%s39439_s1 + $0x510] sm:$0xff] }
  0x85   :  { %18399 = vmatpush.bf16.msra.mxu3 %v30481_v37  ;;  %v30501_v37 = vld [vmem:[%s39439_s1 + $0x598] sm:$0xff] }
  0x86   :  { %18361 = vmatpush.bf16.msra.mxu0 %v30456_v41 }
  0x87   :  { %18374 = vmatpush.bf16.msra.mxu1 %v30464_v42 }
  0x88   :  { %18387 = vmatpush.bf16.msra.mxu2 %v30472_v43  ;;  %v30492_v43 = vld [vmem:[%s39439_s1 + $0x550] sm:$0xff] }
  0x89   :  { %18400 = vmatpush.bf16.msra.mxu3 %v30480_v44  ;;  %v30500_v44 = vld [vmem:[%s39439_s1 + $0x590] sm:$0xff] }
  0x8a   :  { %18362 = vmatpush.bf16.msra.mxu0 %v30455_v45 }
  0x8b   :  { %18375 = vmatpush.bf16.msra.mxu1 %v30463_v46 }
  0x8c   :  { %18388 = vmatpush.bf16.msra.mxu2 %v30471_v47  ;;  %v30508_v47 = vld [vmem:[%s39439_s1 + $0x5d0] sm:$0xff] }
  0x8d   :  { %18401 = vmatpush.bf16.msra.mxu3 %v30479_v48 }
  0x8e   :  { %18363 = vmatpush.bf16.msra.mxu0 %v30454_v49  ;;  %v30483_v49 = vld [vmem:[%s39439_s1 + $0x508] sm:$0xff] }
  0x8f   :  { %18376 = vmatpush.bf16.msra.mxu1 %v30462_v50  ;;  %v40_v50 = vld [vmem:[%s39438_s0 + $0x30] sm:$0xff] }
  0x90   :  { %18389 = vmatpush.bf16.msra.mxu2 %v30470_v51  ;;  %v30491_v51 = vld [vmem:[%s39439_s1 + $0x548] sm:$0xff]  ;;  %199 = vst [vmem:[#allocation1] ss:$4 sm:$0xff] %v40_v50  ;;  %v30553_v50 = vld [vmem:[%s39439_s1 + $0x738] sm:$0xff] }
  0x91   :  { %18402 = vmatpush.bf16.msra.mxu3 %v30478_v52  ;;  %v30499_v52 = vld [vmem:[%s39439_s1 + $0x588] sm:$0xff] }
  0x92   :  { %18364 = vmatpush.bf16.msra.mxu0 %v30453_v53  ;;  %v30507_v53 = vld [vmem:[%s39439_s1 + $0x5c8] sm:$0xff] }
  0x93   :  { %18377 = vmatpush.bf16.msra.mxu1 %v30461_v54 }
  0x94   :  { %18390 = vmatpush.bf16.msra.mxu2 %v30469_v55  ;;  %v30482_v55 = vld [vmem:[%s39439_s1 + $0x500] sm:$0xff] }
  0x95   :  { %18403 = vmatpush.bf16.msra.mxu3 %v30477_v56  ;;  %v30490_v56 = vld [vmem:[%s39439_s1 + $0x540] sm:$0xff] }
  0x96   :  { %18365 = vmatpush.bf16.msra.mxu0 %v30452_v57  ;;  %v30498_v57 = vld [vmem:[%s39439_s1 + $0x580] sm:$0xff] }
  0x97   :  { %18378 = vmatpush.bf16.msra.mxu1 %v30460_v58  ;;  %v195_v58 = vld.sshfl [vmem:[#allocation1 + $0x20] sm:$0xff pattern:$0x73625140] }
  0x98   :  { %18391 = vmatpush.bf16.msra.mxu2 %v30468_v59  ;;  %v197_v59 = vld.sshfl [vmem:[#allocation1 + $0x30] sm:$0xff pattern:$0x73625140] }
  0x99   :  { %18404 = vmatpush.bf16.msra.mxu3 %v30476_v60  ;;  %v30521_v60 = vld [vmem:[%s39439_s1 + $0x638] sm:$0xff] }
  0x9a   :  { %18366 = vmatpush.bf16.msra.mxu0 %v30451_v61  ;;  %v30529_v61 = vld [vmem:[%s39439_s1 + $0x678] sm:$0xff] }
  0x9b   :  { %18379 = vmatpush.bf16.msra.mxu1 %v30459_v63 }
  0x9c   :  { %18392 = vmatpush.bf16.msra.mxu2 %v30467_v0  ;;  %v30537_v0 = vld [vmem:[%s39439_s1 + $0x6b8] sm:$0xff] }
  0x9d   :  { %18405 = vmatpush.bf16.msra.mxu3 %v30475_v1  ;;  %v30506_v1 = vld [vmem:[%s39439_s1 + $0x5c0] sm:$0xff] }
  0x9e   :  { %18367 = vmatpush.bf16.msra.mxu0 %v30450_v2  ;;  %v18161_v28 = vpop.f32.mrf.mxu0  ;;  %v198_v2 = vld.sshfl [vmem:[#allocation1 + $0x38] sm:$0xff pattern:$0x73625140] }
  0x9f   :  { %18380 = vmatpush.bf16.msra.mxu1 %v30458_v3  ;;  %v18162_v31 = vadd.f32 %v32460_v25, %v18161_v28  ;;  %v18174_v32 = vpop.f32.mrf.mxu1  ;;  %v792_v3 = vpack.c.bf16 %v195_v58, %v195_v58  ;;  %v30525_v25 = vld [vmem:[%s39439_s1 + $0x658] sm:$0xff] }
  0xa0   :  { %18393 = vmatpush.bf16.msra.mxu2 %v30466_v4  ;;  %v794_v4 = vpack.c.bf16 %v197_v59, %v197_v59  ;;  %v30541_v28 = vld [vmem:[%s39439_s1 + $0x6d8] sm:$0xff] }
  0xa1   :  { %18406 = vmatpush.bf16.msra.mxu3 %v30474_v11  ;;  %18368 = vmatmul.bf16.vlgmr.msra.gmra.mxu0 %v788_v13  ;;  %v18175_v34 = vadd.f32 %v18174_v32, %v18162_v31  ;;  %v30544_v11 = vld [vmem:[%s39439_s1 + $0x6f0] sm:$0xff]  ;;  %v30527_v13 = vld [vmem:[%s39439_s1 + $0x668] sm:$0xff]  ;;  %v30577_v58 = vld [vmem:[%s39439_s1 + $0x7f8] sm:$0xff] }
  0xa2   :  { %18412 = vmatpush.bf16.msrb.mxu0 %v30489_v7  ;;  %18381 = vmatmul.bf16.vlgmr.msra.gmra.mxu1 %v789_v16  ;;  %v795_v7 = vpack.c.bf16 %v198_v2, %v198_v2  ;;  %v30518_v16 = vld [vmem:[%s39439_s1 + $0x620] sm:$0xff]  ;;  %v30524_v31 = vld [vmem:[%s39439_s1 + $0x650] sm:$0xff]  ;;  %v30559_v2 = vld [vmem:[%s39439_s1 + $0x768] sm:$0xff] }
  0xa3   :  { %18425 = vmatpush.bf16.msrb.mxu1 %v30497_v8  ;;  %18394 = vmatmul.bf16.vlgmr.msra.gmra.mxu2 %v790_v14  ;;  %v30520_v8 = vld [vmem:[%s39439_s1 + $0x630] sm:$0xff]  ;;  %v30535_v14 = vld [vmem:[%s39439_s1 + $0x6a8] sm:$0xff] }
  0xa4   :  { %18438 = vmatpush.bf16.msrb.mxu2 %v30505_v10  ;;  %18407 = vmatmul.bf16.vlgmr.msra.gmra.mxu3 %v791_v17  ;;  %v30536_v10 = vld [vmem:[%s39439_s1 + $0x6b0] sm:$0xff]  ;;  %v30526_v17 = vld [vmem:[%s39439_s1 + $0x660] sm:$0xff] }
  0xa5   :  { %18451 = vmatpush.bf16.msrb.mxu3 %v30513_v15  ;;  %v30543_v15 = vld [vmem:[%s39439_s1 + $0x6e8] sm:$0xff]  ;;  %v30532_v32 = vld [vmem:[%s39439_s1 + $0x690] sm:$0xff] }
  0xa6   :  { %18413 = vmatpush.bf16.msrb.mxu0 %v30488_v18  ;;  %v18187_v39 = vpop.f32.mrf.mxu2  ;;  %v18163_v42 = vpop.f32.mrf.mxu0  ;;  %v30534_v18 = vld [vmem:[%s39439_s1 + $0x6a0] sm:$0xff] }
  0xa7   :  { %18426 = vmatpush.bf16.msrb.mxu1 %v30496_v19  ;;  %v18188_v41 = vadd.f32 %v18187_v39, %v18175_v34  ;;  %v18200_v45 = vpop.f32.mrf.mxu3  ;;  %v18176_v46 = vpop.f32.mrf.mxu1  ;;  %v41_v39 = vld [vmem:[%s39438_s0 + $0x38] sm:$0xff] }
  0xa8   :  { %18439 = vmatpush.bf16.msrb.mxu2 %v30504_v20  ;;  %200 = vst [vmem:[#allocation1 + $0x20] ss:$4 sm:$0xff] %v41_v39  ;;  %v30530_v46 = vld [vmem:[%s39439_s1 + $0x680] sm:$0xff]  ;;  %v30585_v39 = vld [vmem:[%s39439_s1 + $0x838] sm:$0xff] }
  0xa9   :  { %18452 = vmatpush.bf16.msrb.mxu3 %v30512_v21  ;;  %v33114_v48 = vadd.f32 %v18200_v45, %v18188_v41  ;;  %v30531_v41 = vld [vmem:[%s39439_s1 + $0x688] sm:$0xff]  ;;  %v30522_v45 = vld [vmem:[%s39439_s1 + $0x640] sm:$0xff] }
  0xaa   :  { %18414 = vmatpush.bf16.msrb.mxu0 %v30487_v22  ;;  %v30542_v22 = vld [vmem:[%s39439_s1 + $0x6e0] sm:$0xff] }
  0xab   :  { %18427 = vmatpush.bf16.msrb.mxu1 %v30495_v23  ;;  %v30517_v23 = vld [vmem:[%s39439_s1 + $0x618] sm:$0xff] }
  0xac   :  { %18440 = vmatpush.bf16.msrb.mxu2 %v30503_v24 }
  0xad   :  { %18453 = vmatpush.bf16.msrb.mxu3 %v30511_v26  ;;  %v30533_v26 = vld [vmem:[%s39439_s1 + $0x698] sm:$0xff] }
  0xae   :  { %18415 = vmatpush.bf16.msrb.mxu0 %v30486_v27  ;;  %v18189_v54 = vpop.f32.mrf.mxu2 }
  0xaf   :  { %18428 = vmatpush.bf16.msrb.mxu1 %v30494_v29  ;;  %v18202_v63 = vpop.f32.mrf.mxu3  ;;  %v30538_v54 = vld [vmem:[%s39439_s1 + $0x6c0] sm:$0xff] }
  0xb0   :  { %18441 = vmatpush.bf16.msrb.mxu2 %v30502_v30  ;;  %v30516_v30 = vld [vmem:[%s39439_s1 + $0x610] sm:$0xff] }
  0xb1   :  { %18454 = vmatpush.bf16.msrb.mxu3 %v30510_v33  ;;  %v30568_v63 = vld [vmem:[%s39439_s1 + $0x7b0] sm:$0xff] }
  0xb2   :  { %18416 = vmatpush.bf16.msrb.mxu0 %v30485_v35 }
  0xb3   :  { %18429 = vmatpush.bf16.msrb.mxu1 %v30493_v36 }
  0xb4   :  { %18442 = vmatpush.bf16.msrb.mxu2 %v30501_v37  ;;  %v30540_v37 = vld [vmem:[%s39439_s1 + $0x6d0] sm:$0xff] }
  0xb5   :  { %18455 = vmatpush.bf16.msrb.mxu3 %v30509_v38  ;;  %v30515_v38 = vld [vmem:[%s39439_s1 + $0x608] sm:$0xff] }
  0xb6   :  { %18417 = vmatpush.bf16.msrb.mxu0 %v30484_v40  ;;  %v30523_v40 = vld [vmem:[%s39439_s1 + $0x648] sm:$0xff] }
  0xb7   :  { %18430 = vmatpush.bf16.msrb.mxu1 %v30492_v43  ;;  %v30539_v43 = vld [vmem:[%s39439_s1 + $0x6c8] sm:$0xff] }
  0xb8   :  { %18443 = vmatpush.bf16.msrb.mxu2 %v30500_v44  ;;  %v30514_v44 = vld [vmem:[%s39439_s1 + $0x600] sm:$0xff] }
  0xb9   :  { %18456 = vmatpush.bf16.msrb.mxu3 %v30508_v47  ;;  %v201_v47 = vld.sshfl [vmem:[#allocation1] sm:$0xff pattern:$0x73625140] }
  0xba   :  { %18418 = vmatpush.bf16.msrb.mxu0 %v30483_v49 }
  0xbb   :  { %18431 = vmatpush.bf16.msrb.mxu1 %v30491_v51  ;;  %v30561_v51 = vld [vmem:[%s39439_s1 + $0x778] sm:$0xff] }
  0xbc   :  { %18444 = vmatpush.bf16.msrb.mxu2 %v30499_v52  ;;  %v202_v52 = vld.sshfl [vmem:[#allocation1 + $0x8] sm:$0xff pattern:$0x73625140] }
  0xbd   :  { %18457 = vmatpush.bf16.msrb.mxu3 %v30507_v53  ;;  %v30569_v53 = vld [vmem:[%s39439_s1 + $0x7b8] sm:$0xff]  ;;  %v797_v59 = vpack.c.bf16 %v202_v52, %v202_v52  ;;  %v30600_v52 = vld [vmem:[%s39439_s1 + $0x8b0] sm:$0xff] }
  0xbe   :  { %18419 = vmatpush.bf16.msrb.mxu0 %v30482_v55  ;;  %v18213_v19 = vpop.f32.mrf.mxu0  ;;  %v204_v55 = vld.sshfl [vmem:[#allocation1 + $0x18] sm:$0xff pattern:$0x73625140] }
  0xbf   :  { %18432 = vmatpush.bf16.msrb.mxu1 %v30490_v56  ;;  %v18226_v20 = vpop.f32.mrf.mxu1  ;;  %v18214_v21 = vadd.f32 %v18213_v19, %v33114_v48  ;;  %v203_v48 = vld.sshfl [vmem:[#allocation1 + $0x10] sm:$0xff pattern:$0x73625140]  ;;  %v796_v56 = vpack.c.bf16 %v201_v47, %v201_v47  ;;  %v30609_v47 = vld [vmem:[%s39439_s1 + $0x8f8] sm:$0xff] }
  0xc0   :  { %18445 = vmatpush.bf16.msrb.mxu2 %v30498_v57  ;;  %v798_v57 = vpack.c.bf16 %v203_v48, %v203_v48 }
  0xc1   :  { %18458 = vmatpush.bf16.msrb.mxu3 %v30506_v1  ;;  %18420 = vmatmul.bf16.vlgmr.msrb.gmra.mxu0 %v792_v3  ;;  %v18227_v24 = vadd.f32 %v18226_v20, %v18214_v21  ;;  %v30551_v1 = vld [vmem:[%s39439_s1 + $0x728] sm:$0xff]  ;;  %v30548_v21 = vld [vmem:[%s39439_s1 + $0x710] sm:$0xff] }
  0xc2   :  { %18464 = vmatpush.bf16.msra.mxu0 %v30521_v60  ;;  %18433 = vmatmul.bf16.vlgmr.msrb.gmra.mxu1 %v793_v6  ;;  %v799_v60 = vpack.c.bf16 %v204_v55, %v204_v55  ;;  %v30567_v3 = vld [vmem:[%s39439_s1 + $0x7a8] sm:$0xff] }
  0xc3   :  { %18477 = vmatpush.bf16.msra.mxu1 %v30529_v61  ;;  %18446 = vmatmul.bf16.vlgmr.msrb.gmra.mxu2 %v794_v4  ;;  %v30552_v61 = vld [vmem:[%s39439_s1 + $0x730] sm:$0xff]  ;;  %v30575_v4 = vld [vmem:[%s39439_s1 + $0x7e8] sm:$0xff] }
  0xc4   :  { %18490 = vmatpush.bf16.msra.mxu2 %v30537_v0  ;;  %18459 = vmatmul.bf16.vlgmr.msrb.gmra.mxu3 %v795_v7  ;;  %v30576_v0 = vld [vmem:[%s39439_s1 + $0x7f0] sm:$0xff]  ;;  %v30550_v7 = vld [vmem:[%s39439_s1 + $0x720] sm:$0xff]  ;;  %v30591_v55 = vld [vmem:[%s39439_s1 + $0x868] sm:$0xff] }
  0xc5   :  { %18503 = vmatpush.bf16.msra.mxu3 %v30545_v5 }
  0xc6   :  { %18465 = vmatpush.bf16.msra.mxu0 %v30520_v8  ;;  %v18239_v27 = vpop.f32.mrf.mxu2  ;;  %v18215_v34 = vpop.f32.mrf.mxu0  ;;  %v30558_v8 = vld [vmem:[%s39439_s1 + $0x760] sm:$0xff] }
  0xc7   :  { %18478 = vmatpush.bf16.msra.mxu1 %v30528_v9  ;;  %v18240_v29 = vadd.f32 %v18239_v27, %v18227_v24  ;;  %v18252_v33 = vpop.f32.mrf.mxu3  ;;  %v18228_v36 = vpop.f32.mrf.mxu1  ;;  %v30566_v9 = vld [vmem:[%s39439_s1 + $0x7a0] sm:$0xff]  ;;  %v30564_v24 = vld [vmem:[%s39439_s1 + $0x790] sm:$0xff]  ;;  %v30547_v27 = vld [vmem:[%s39439_s1 + $0x708] sm:$0xff] }
  0xc8   :  { %18491 = vmatpush.bf16.msra.mxu2 %v30536_v10  ;;  %v30554_v34 = vld [vmem:[%s39439_s1 + $0x740] sm:$0xff] }
  0xc9   :  { %18504 = vmatpush.bf16.msra.mxu3 %v30544_v11  ;;  %v18253_v35 = vadd.f32 %v18252_v33, %v18240_v29  ;;  %v30555_v29 = vld [vmem:[%s39439_s1 + $0x748] sm:$0xff]  ;;  %v30546_v33 = vld [vmem:[%s39439_s1 + $0x700] sm:$0xff] }
  0xca   :  { %18466 = vmatpush.bf16.msra.mxu0 %v30519_v12  ;;  %v30574_v12 = vld [vmem:[%s39439_s1 + $0x7e0] sm:$0xff] }
  0xcb   :  { %18479 = vmatpush.bf16.msra.mxu1 %v30527_v13  ;;  %v30549_v13 = vld [vmem:[%s39439_s1 + $0x718] sm:$0xff] }
  0xcc   :  { %18492 = vmatpush.bf16.msra.mxu2 %v30535_v14  ;;  %v30557_v14 = vld [vmem:[%s39439_s1 + $0x758] sm:$0xff] }
  0xcd   :  { %18505 = vmatpush.bf16.msra.mxu3 %v30543_v15  ;;  %v30565_v15 = vld [vmem:[%s39439_s1 + $0x798] sm:$0xff] }
  0xce   :  { %18467 = vmatpush.bf16.msra.mxu0 %v30518_v16  ;;  %v18241_v42 = vpop.f32.mrf.mxu2 }
  0xcf   :  { %18480 = vmatpush.bf16.msra.mxu1 %v30526_v17  ;;  %v18254_v49 = vpop.f32.mrf.mxu3  ;;  %v30601_v42 = vld [vmem:[%s39439_s1 + $0x8b8] sm:$0xff] }
  0xd0   :  { %18493 = vmatpush.bf16.msra.mxu2 %v30534_v18  ;;  %v30573_v18 = vld [vmem:[%s39439_s1 + $0x7d8] sm:$0xff] }
  0xd1   :  { %18506 = vmatpush.bf16.msra.mxu3 %v30542_v22 }
  0xd2   :  { %18468 = vmatpush.bf16.msra.mxu0 %v30517_v23  ;;  %v30556_v23 = vld [vmem:[%s39439_s1 + $0x750] sm:$0xff] }
  0xd3   :  { %18481 = vmatpush.bf16.msra.mxu1 %v30525_v25 }
  0xd4   :  { %18494 = vmatpush.bf16.msra.mxu2 %v30533_v26  ;;  %v30572_v26 = vld [vmem:[%s39439_s1 + $0x7d0] sm:$0xff] }
  0xd5   :  { %18507 = vmatpush.bf16.msra.mxu3 %v30541_v28  ;;  %v42_v28 = vld [vmem:[%s39438_s0 + $0x40] sm:$0xff] }
  0xd6   :  { %18469 = vmatpush.bf16.msra.mxu0 %v30516_v30  ;;  %v30563_v30 = vld [vmem:[%s39439_s1 + $0x788] sm:$0xff]  ;;  %209 = vst [vmem:[#allocation1] ss:$4 sm:$0xff] %v42_v28  ;;  %v30617_v28 = vld [vmem:[%s39439_s1 + $0x938] sm:$0xff] }
  0xd7   :  { %18482 = vmatpush.bf16.msra.mxu1 %v30524_v31 }
  0xd8   :  { %18495 = vmatpush.bf16.msra.mxu2 %v30532_v32  ;;  %v30571_v32 = vld [vmem:[%s39439_s1 + $0x7c8] sm:$0xff] }
  0xd9   :  { %18508 = vmatpush.bf16.msra.mxu3 %v30540_v37  ;;  %v205_v37 = vld.sshfl [vmem:[#allocation1 + $0x20] sm:$0xff pattern:$0x73625140] }
  0xda   :  { %18470 = vmatpush.bf16.msra.mxu0 %v30515_v38  ;;  %v207_v38 = vld.sshfl [vmem:[#allocation1 + $0x30] sm:$0xff pattern:$0x73625140] }
  0xdb   :  { %18483 = vmatpush.bf16.msra.mxu1 %v30523_v40  ;;  %v30593_v40 = vld [vmem:[%s39439_s1 + $0x878] sm:$0xff] }
  0xdc   :  { %18496 = vmatpush.bf16.msra.mxu2 %v30531_v41  ;;  %v206_v41 = vld.sshfl [vmem:[#allocation1 + $0x28] sm:$0xff pattern:$0x73625140] }
  0xdd   :  { %18509 = vmatpush.bf16.msra.mxu3 %v30539_v43  ;;  %v30570_v43 = vld [vmem:[%s39439_s1 + $0x7c0] sm:$0xff]  ;;  %v801_v48 = vpack.c.bf16 %v206_v41, %v206_v41  ;;  %v30632_v41 = vld [vmem:[%s39439_s1 + $0x9b0] sm:$0xff] }
  0xde   :  { %18471 = vmatpush.bf16.msra.mxu0 %v30514_v44  ;;  %v18265_v5 = vpop.f32.mrf.mxu0  ;;  %v208_v44 = vld.sshfl [vmem:[#allocation1 + $0x38] sm:$0xff pattern:$0x73625140] }
  0xdf   :  { %18484 = vmatpush.bf16.msra.mxu1 %v30522_v45  ;;  %v18266_v6 = vadd.f32 %v18265_v5, %v18253_v35  ;;  %v18278_v10 = vpop.f32.mrf.mxu1  ;;  %v30562_v35 = vld [vmem:[%s39439_s1 + $0x780] sm:$0xff]  ;;  %v800_v45 = vpack.c.bf16 %v205_v37, %v205_v37  ;;  %v803_v49 = vpack.c.bf16 %v208_v44, %v208_v44  ;;  %v30623_v44 = vld [vmem:[%s39439_s1 + $0x968] sm:$0xff] }
  0xe0   :  { %18497 = vmatpush.bf16.msra.mxu2 %v30530_v46  ;;  %v802_v46 = vpack.c.bf16 %v207_v38, %v207_v38 }
  0xe1   :  { %18510 = vmatpush.bf16.msra.mxu3 %v30538_v54  ;;  %18472 = vmatmul.bf16.vlgmr.msra.gmra.mxu0 %v796_v56  ;;  %v18279_v11 = vadd.f32 %v18278_v10, %v18266_v6  ;;  %v30583_v54 = vld [vmem:[%s39439_s1 + $0x828] sm:$0xff]  ;;  %v30580_v10 = vld [vmem:[%s39439_s1 + $0x810] sm:$0xff] }
  0xe2   :  { %18516 = vmatpush.bf16.msrb.mxu0 %v30553_v50  ;;  %18485 = vmatmul.bf16.vlgmr.msra.gmra.mxu1 %v797_v59  ;;  %v30584_v50 = vld [vmem:[%s39439_s1 + $0x830] sm:$0xff]  ;;  %v30599_v56 = vld [vmem:[%s39439_s1 + $0x8a8] sm:$0xff] }
  0xe3   :  { %18529 = vmatpush.bf16.msrb.mxu1 %v30561_v51  ;;  %18498 = vmatmul.bf16.vlgmr.msra.gmra.mxu2 %v798_v57  ;;  %v30592_v51 = vld [vmem:[%s39439_s1 + $0x870] sm:$0xff]  ;;  %v30607_v57 = vld [vmem:[%s39439_s1 + $0x8e8] sm:$0xff] }
  0xe4   :  { %18542 = vmatpush.bf16.msrb.mxu2 %v30569_v53  ;;  %18511 = vmatmul.bf16.vlgmr.msra.gmra.mxu3 %v799_v60  ;;  %v30608_v53 = vld [vmem:[%s39439_s1 + $0x8f0] sm:$0xff]  ;;  %v30582_v60 = vld [vmem:[%s39439_s1 + $0x820] sm:$0xff] }
  0xe5   :  { %18555 = vmatpush.bf16.msrb.mxu3 %v30577_v58 }
  0xe6   :  { %18517 = vmatpush.bf16.msrb.mxu0 %v30552_v61  ;;  %v18291_v16 = vpop.f32.mrf.mxu2  ;;  %v18267_v19 = vpop.f32.mrf.mxu0 }
  0xe7   :  { %18530 = vmatpush.bf16.msrb.mxu1 %v30560_v62  ;;  %v18292_v17 = vadd.f32 %v18291_v16, %v18279_v11  ;;  %v18304_v20 = vpop.f32.mrf.mxu3  ;;  %v18280_v25 = vpop.f32.mrf.mxu1  ;;  %v30590_v62 = vld [vmem:[%s39439_s1 + $0x860] sm:$0xff]  ;;  %v30579_v16 = vld [vmem:[%s39439_s1 + $0x808] sm:$0xff] }
  0xe8   :  { %18543 = vmatpush.bf16.msrb.mxu2 %v30568_v63  ;;  %v30598_v63 = vld [vmem:[%s39439_s1 + $0x8a0] sm:$0xff]  ;;  %v30595_v19 = vld [vmem:[%s39439_s1 + $0x888] sm:$0xff] }
  0xe9   :  { %18556 = vmatpush.bf16.msrb.mxu3 %v30576_v0  ;;  %v33306_v22 = vadd.f32 %v18304_v20, %v18292_v17  ;;  %v43_v17 = vld [vmem:[%s39438_s0 + $0x48] sm:$0xff]  ;;  %v30594_v25 = vld [vmem:[%s39439_s1 + $0x880] sm:$0xff] }
  0xea   :  { %18518 = vmatpush.bf16.msrb.mxu0 %v30551_v1  ;;  %v30606_v1 = vld [vmem:[%s39439_s1 + $0x8e0] sm:$0xff]  ;;  %210 = vst [vmem:[#allocation1 + $0x20] ss:$4 sm:$0xff] %v43_v17  ;;  %v30649_v17 = vld [vmem:[%s39439_s1 + $0xa38] sm:$0xff] }
  0xeb   :  { %18531 = vmatpush.bf16.msrb.mxu1 %v30559_v2  ;;  %v30581_v2 = vld [vmem:[%s39439_s1 + $0x818] sm:$0xff] }
  0xec   :  { %18544 = vmatpush.bf16.msrb.mxu2 %v30567_v3  ;;  %v30589_v3 = vld [vmem:[%s39439_s1 + $0x858] sm:$0xff] }
  0xed   :  { %18557 = vmatpush.bf16.msrb.mxu3 %v30575_v4  ;;  %v30597_v4 = vld [vmem:[%s39439_s1 + $0x898] sm:$0xff] }
  0xee   :  { %18519 = vmatpush.bf16.msrb.mxu0 %v30550_v7  ;;  %v18293_v31 = vpop.f32.mrf.mxu2  ;;  %v30605_v7 = vld [vmem:[%s39439_s1 + $0x8d8] sm:$0xff] }
  0xef   :  { %18532 = vmatpush.bf16.msrb.mxu1 %v30558_v8  ;;  %v18306_v36 = vpop.f32.mrf.mxu3  ;;  %v30633_v31 = vld [vmem:[%s39439_s1 + $0x9b8] sm:$0xff] }
  0xf0   :  { %18545 = vmatpush.bf16.msrb.mxu2 %v30566_v9  ;;  %v30641_v36 = vld [vmem:[%s39439_s1 + $0x9f8] sm:$0xff] }
  0xf1   :  { %18558 = vmatpush.bf16.msrb.mxu3 %v30574_v12 }
  0xf2   :  { %18520 = vmatpush.bf16.msrb.mxu0 %v30549_v13  ;;  %v30588_v13 = vld [vmem:[%s39439_s1 + $0x850] sm:$0xff] }
  0xf3   :  { %18533 = vmatpush.bf16.msrb.mxu1 %v30557_v14  ;;  %v30596_v14 = vld [vmem:[%s39439_s1 + $0x890] sm:$0xff] }
  0xf4   :  { %18546 = vmatpush.bf16.msrb.mxu2 %v30565_v15  ;;  %v30604_v15 = vld [vmem:[%s39439_s1 + $0x8d0] sm:$0xff] }
  0xf5   :  { %18559 = vmatpush.bf16.msrb.mxu3 %v30573_v18  ;;  %v30587_v18 = vld [vmem:[%s39439_s1 + $0x848] sm:$0xff] }
  0xf6   :  { %18521 = vmatpush.bf16.msrb.mxu0 %v30548_v21  ;;  %v30603_v21 = vld [vmem:[%s39439_s1 + $0x8c8] sm:$0xff] }
  0xf7   :  { %18534 = vmatpush.bf16.msrb.mxu1 %v30556_v23  ;;  %v30578_v23 = vld [vmem:[%s39439_s1 + $0x800] sm:$0xff] }
  0xf8   :  { %18547 = vmatpush.bf16.msrb.mxu2 %v30564_v24  ;;  %v30586_v24 = vld [vmem:[%s39439_s1 + $0x840] sm:$0xff] }
  0xf9   :  { %18560 = vmatpush.bf16.msrb.mxu3 %v30572_v26  ;;  %v211_v26 = vld.sshfl [vmem:[#allocation1] sm:$0xff pattern:$0x73625140] }
  0xfa   :  { %18522 = vmatpush.bf16.msrb.mxu0 %v30547_v27  ;;  %v213_v27 = vld.sshfl [vmem:[#allocation1 + $0x10] sm:$0xff pattern:$0x73625140] }
  0xfb   :  { %18535 = vmatpush.bf16.msrb.mxu1 %v30555_v29  ;;  %v30625_v29 = vld [vmem:[%s39439_s1 + $0x978] sm:$0xff] }
  0xfc   :  { %18548 = vmatpush.bf16.msrb.mxu2 %v30563_v30  ;;  %v212_v30 = vld.sshfl [vmem:[#allocation1 + $0x8] sm:$0xff pattern:$0x73625140] }
  0xfd   :  { %18561 = vmatpush.bf16.msrb.mxu3 %v30571_v32  ;;  %v30602_v32 = vld [vmem:[%s39439_s1 + $0x8c0] sm:$0xff]  ;;  %v805_v37 = vpack.c.bf16 %v212_v30, %v212_v30  ;;  %v30664_v30 = vld [vmem:[%s39439_s1 + $0xab0] sm:$0xff] }
  0xfe   :  { %18523 = vmatpush.bf16.msrb.mxu0 %v30546_v33  ;;  %v18317_v58 = vpop.f32.mrf.mxu0  ;;  %v214_v33 = vld.sshfl [vmem:[#allocation1 + $0x18] sm:$0xff pattern:$0x73625140] }
  0xff   :  { %18536 = vmatpush.bf16.msrb.mxu1 %v30554_v34  ;;  %v18318_v59 = vadd.f32 %v18317_v58, %v33306_v22  ;;  %v18330_v61 = vpop.f32.mrf.mxu1  ;;  %v804_v34 = vpack.c.bf16 %v211_v26, %v211_v26  ;;  %v807_v38 = vpack.c.bf16 %v214_v33, %v214_v33  ;;  %v30655_v33 = vld [vmem:[%s39439_s1 + $0xa68] sm:$0xff] }
 0x100   :  { %18549 = vmatpush.bf16.msrb.mxu2 %v30562_v35  ;;  %v806_v35 = vpack.c.bf16 %v213_v27, %v213_v27 }
 0x101   :  { %18562 = vmatpush.bf16.msrb.mxu3 %v30570_v43  ;;  %18524 = vmatmul.bf16.vlgmr.msrb.gmra.mxu0 %v800_v45  ;;  %v18331_v0 = vadd.f32 %v18330_v61, %v18318_v59  ;;  %v30615_v43 = vld [vmem:[%s39439_s1 + $0x928] sm:$0xff] }
 0x102   :  { %18568 = vmatpush.bf16.msra.mxu0 %v30585_v39  ;;  %18537 = vmatmul.bf16.vlgmr.msrb.gmra.mxu1 %v801_v48  ;;  %v30616_v39 = vld [vmem:[%s39439_s1 + $0x930] sm:$0xff]  ;;  %v30631_v45 = vld [vmem:[%s39439_s1 + $0x9a8] sm:$0xff] }
 0x103   :  { %18581 = vmatpush.bf16.msra.mxu1 %v30593_v40  ;;  %18550 = vmatmul.bf16.vlgmr.msrb.gmra.mxu2 %v802_v46  ;;  %v30624_v40 = vld [vmem:[%s39439_s1 + $0x970] sm:$0xff]  ;;  %v30639_v46 = vld [vmem:[%s39439_s1 + $0x9e8] sm:$0xff] }
 0x104   :  { %18594 = vmatpush.bf16.msra.mxu2 %v30601_v42  ;;  %18563 = vmatmul.bf16.vlgmr.msrb.gmra.mxu3 %v803_v49  ;;  %v30640_v42 = vld [vmem:[%s39439_s1 + $0x9f0] sm:$0xff]  ;;  %v30614_v49 = vld [vmem:[%s39439_s1 + $0x920] sm:$0xff] }
 0x105   :  { %18607 = vmatpush.bf16.msra.mxu3 %v30609_v47 }
 0x106   :  { %18569 = vmatpush.bf16.msra.mxu0 %v30584_v50  ;;  %v18343_v5 = vpop.f32.mrf.mxu2  ;;  %v18319_v9 = vpop.f32.mrf.mxu0 }
 0x107   :  { %18582 = vmatpush.bf16.msra.mxu1 %v30592_v51  ;;  %v18344_v6 = vadd.f32 %v18343_v5, %v18331_v0  ;;  %v18356_v8 = vpop.f32.mrf.mxu3  ;;  %v18332_v11 = vpop.f32.mrf.mxu1  ;;  %v30622_v51 = vld [vmem:[%s39439_s1 + $0x960] sm:$0xff]  ;;  %v30612_v0 = vld [vmem:[%s39439_s1 + $0x910] sm:$0xff]  ;;  %v30611_v5 = vld [vmem:[%s39439_s1 + $0x908] sm:$0xff] }
 0x108   :  { %18595 = vmatpush.bf16.msra.mxu2 %v30600_v52  ;;  %v30630_v52 = vld [vmem:[%s39439_s1 + $0x9a0] sm:$0xff] }
 0x109   :  { %18608 = vmatpush.bf16.msra.mxu3 %v30608_v53  ;;  %v33408_v12 = vadd.f32 %v18356_v8, %v18344_v6  ;;  %v44_v6 = vld [vmem:[%s39438_s0 + $0x50] sm:$0xff]  ;;  %v30627_v8 = vld [vmem:[%s39439_s1 + $0x988] sm:$0xff] }
 0x10a   :  { %18570 = vmatpush.bf16.msra.mxu0 %v30583_v54  ;;  %v30638_v54 = vld [vmem:[%s39439_s1 + $0x9e0] sm:$0xff]  ;;  %219 = vst [vmem:[#allocation1] ss:$4 sm:$0xff] %v44_v6  ;;  %v30681_v6 = vld [vmem:[%s39439_s1 + $0xb38] sm:$0xff] }
 0x10b   :  { %18583 = vmatpush.bf16.msra.mxu1 %v30591_v55  ;;  %v30613_v55 = vld [vmem:[%s39439_s1 + $0x918] sm:$0xff] }
 0x10c   :  { %18596 = vmatpush.bf16.msra.mxu2 %v30599_v56  ;;  %v30621_v56 = vld [vmem:[%s39439_s1 + $0x958] sm:$0xff] }
 0x10d   :  { %18609 = vmatpush.bf16.msra.mxu3 %v30607_v57  ;;  %v30629_v57 = vld [vmem:[%s39439_s1 + $0x998] sm:$0xff] }
 0x10e   :  { %18571 = vmatpush.bf16.msra.mxu0 %v30582_v60  ;;  %v18345_v20 = vpop.f32.mrf.mxu2  ;;  %v30637_v60 = vld [vmem:[%s39439_s1 + $0x9d8] sm:$0xff] }
 0x10f   :  { %18584 = vmatpush.bf16.msra.mxu1 %v30590_v62  ;;  %v18358_v22 = vpop.f32.mrf.mxu3  ;;  %v30665_v20 = vld [vmem:[%s39439_s1 + $0xab8] sm:$0xff] }
 0x110   :  { %18597 = vmatpush.bf16.msra.mxu2 %v30598_v63  ;;  %v218_v22 = vld.sshfl [vmem:[#allocation1 + $0x38] sm:$0xff pattern:$0x73625140] }
 0x111   :  { %18610 = vmatpush.bf16.msra.mxu3 %v30606_v1  ;;  %v811_v27 = vpack.c.bf16 %v218_v22, %v218_v22  ;;  %v30687_v22 = vld [vmem:[%s39439_s1 + $0xb68] sm:$0xff] }
 0x112   :  { %18572 = vmatpush.bf16.msra.mxu0 %v30581_v2  ;;  %v30620_v2 = vld [vmem:[%s39439_s1 + $0x950] sm:$0xff] }
 0x113   :  { %18585 = vmatpush.bf16.msra.mxu1 %v30589_v3  ;;  %v30628_v3 = vld [vmem:[%s39439_s1 + $0x990] sm:$0xff] }
 0x114   :  { %18598 = vmatpush.bf16.msra.mxu2 %v30597_v4  ;;  %v30636_v4 = vld [vmem:[%s39439_s1 + $0x9d0] sm:$0xff] }
 0x115   :  { %18611 = vmatpush.bf16.msra.mxu3 %v30605_v7  ;;  %v30619_v7 = vld [vmem:[%s39439_s1 + $0x948] sm:$0xff] }
 0x116   :  { %18573 = vmatpush.bf16.msra.mxu0 %v30580_v10  ;;  %v30635_v10 = vld [vmem:[%s39439_s1 + $0x9c8] sm:$0xff] }
 0x117   :  { %18586 = vmatpush.bf16.msra.mxu1 %v30588_v13  ;;  %v30618_v13 = vld [vmem:[%s39439_s1 + $0x940] sm:$0xff] }
 0x118   :  { %18599 = vmatpush.bf16.msra.mxu2 %v30596_v14  ;;  %v30626_v14 = vld [vmem:[%s39439_s1 + $0x980] sm:$0xff] }
 0x119   :  { %18612 = vmatpush.bf16.msra.mxu3 %v30604_v15  ;;  %v215_v15 = vld.sshfl [vmem:[#allocation1 + $0x20] sm:$0xff pattern:$0x73625140] }
 0x11a   :  { %18574 = vmatpush.bf16.msra.mxu0 %v30579_v16  ;;  %v217_v16 = vld.sshfl [vmem:[#allocation1 + $0x30] sm:$0xff pattern:$0x73625140] }
 0x11b   :  { %18587 = vmatpush.bf16.msra.mxu1 %v30587_v18  ;;  %v30657_v18 = vld [vmem:[%s39439_s1 + $0xa78] sm:$0xff] }
 0x11c   :  { %18600 = vmatpush.bf16.msra.mxu2 %v30595_v19  ;;  %v216_v19 = vld.sshfl [vmem:[#allocation1 + $0x28] sm:$0xff pattern:$0x73625140] }
 0x11d   :  { %18613 = vmatpush.bf16.msra.mxu3 %v30603_v21  ;;  %v30634_v21 = vld [vmem:[%s39439_s1 + $0x9c0] sm:$0xff]  ;;  %v809_v26 = vpack.c.bf16 %v216_v19, %v216_v19  ;;  %v30696_v19 = vld [vmem:[%s39439_s1 + $0xbb0] sm:$0xff] }
 0x11e   :  { %18575 = vmatpush.bf16.msra.mxu0 %v30578_v23  ;;  %v18369_v47 = vpop.f32.mrf.mxu0  ;;  %v808_v23 = vpack.c.bf16 %v215_v15, %v215_v15 }
 0x11f   :  { %18588 = vmatpush.bf16.msra.mxu1 %v30586_v24  ;;  %v18370_v48 = vadd.f32 %v18369_v47, %v33408_v12  ;;  %v18382_v50 = vpop.f32.mrf.mxu1  ;;  %v30610_v12 = vld [vmem:[%s39439_s1 + $0x900] sm:$0xff]  ;;  %v810_v24 = vpack.c.bf16 %v217_v16, %v217_v16 }
 0x120   :  { %18601 = vmatpush.bf16.msra.mxu2 %v30594_v25  ;;  %v30673_v25 = vld [vmem:[%s39439_s1 + $0xaf8] sm:$0xff] }
 0x121   :  { %18614 = vmatpush.bf16.msra.mxu3 %v30602_v32  ;;  %18576 = vmatmul.bf16.vlgmr.msra.gmra.mxu0 %v804_v34  ;;  %v18383_v53 = vadd.f32 %v18382_v50, %v18370_v48  ;;  %v30647_v32 = vld [vmem:[%s39439_s1 + $0xa28] sm:$0xff] }
 0x122   :  { %18620 = vmatpush.bf16.msrb.mxu0 %v30617_v28  ;;  %18589 = vmatmul.bf16.vlgmr.msra.gmra.mxu1 %v805_v37  ;;  %v30648_v28 = vld [vmem:[%s39439_s1 + $0xa30] sm:$0xff]  ;;  %v30663_v34 = vld [vmem:[%s39439_s1 + $0xaa8] sm:$0xff] }
 0x123   :  { %18633 = vmatpush.bf16.msrb.mxu1 %v30625_v29  ;;  %18602 = vmatmul.bf16.vlgmr.msra.gmra.mxu2 %v806_v35  ;;  %v30656_v29 = vld [vmem:[%s39439_s1 + $0xa70] sm:$0xff]  ;;  %v30671_v35 = vld [vmem:[%s39439_s1 + $0xae8] sm:$0xff] }
 0x124   :  { %18646 = vmatpush.bf16.msrb.mxu2 %v30633_v31  ;;  %18615 = vmatmul.bf16.vlgmr.msra.gmra.mxu3 %v807_v38  ;;  %v30672_v31 = vld [vmem:[%s39439_s1 + $0xaf0] sm:$0xff]  ;;  %v30646_v38 = vld [vmem:[%s39439_s1 + $0xa20] sm:$0xff] }
 0x125   :  { %18659 = vmatpush.bf16.msrb.mxu3 %v30641_v36 }
 0x126   :  { %18621 = vmatpush.bf16.msrb.mxu0 %v30616_v39  ;;  %v18395_v58 = vpop.f32.mrf.mxu2  ;;  %v18371_v62 = vpop.f32.mrf.mxu0 }
 0x127   :  { %18634 = vmatpush.bf16.msrb.mxu1 %v30624_v40  ;;  %v18396_v59 = vadd.f32 %v18395_v58, %v18383_v53  ;;  %v18408_v61 = vpop.f32.mrf.mxu3  ;;  %v18384_v1 = vpop.f32.mrf.mxu1  ;;  %v30654_v40 = vld [vmem:[%s39439_s1 + $0xa60] sm:$0xff]  ;;  %v30644_v53 = vld [vmem:[%s39439_s1 + $0xa10] sm:$0xff]  ;;  %v30643_v58 = vld [vmem:[%s39439_s1 + $0xa08] sm:$0xff] }
 0x128   :  { %18647 = vmatpush.bf16.msrb.mxu2 %v30632_v41  ;;  %v30662_v41 = vld [vmem:[%s39439_s1 + $0xaa0] sm:$0xff] }
 0x129   :  { %18660 = vmatpush.bf16.msrb.mxu3 %v30640_v42  ;;  %v33507_v63 = vadd.f32 %v18408_v61, %v18396_v59  ;;  %v45_v59 = vld [vmem:[%s39438_s0 + $0x58] sm:$0xff]  ;;  %v30659_v61 = vld [vmem:[%s39439_s1 + $0xa88] sm:$0xff]  ;;  %v30642_v1 = vld [vmem:[%s39439_s1 + $0xa00] sm:$0xff] }
 0x12a   :  { %18622 = vmatpush.bf16.msrb.mxu0 %v30615_v43  ;;  %v30670_v43 = vld [vmem:[%s39439_s1 + $0xae0] sm:$0xff]  ;;  %220 = vst [vmem:[#allocation1 + $0x20] ss:$4 sm:$0xff] %v45_v59  ;;  %v30713_v59 = vld [vmem:[%s39439_s1 + $0xc38] sm:$0xff] }
 0x12b   :  { %18635 = vmatpush.bf16.msrb.mxu1 %v30623_v44  ;;  %v30645_v44 = vld [vmem:[%s39439_s1 + $0xa18] sm:$0xff] }
 0x12c   :  { %18648 = vmatpush.bf16.msrb.mxu2 %v30631_v45  ;;  %v30653_v45 = vld [vmem:[%s39439_s1 + $0xa58] sm:$0xff] }
 0x12d   :  { %18661 = vmatpush.bf16.msrb.mxu3 %v30639_v46  ;;  %v30661_v46 = vld [vmem:[%s39439_s1 + $0xa98] sm:$0xff] }
 0x12e   :  { %18623 = vmatpush.bf16.msrb.mxu0 %v30614_v49  ;;  %v18397_v9 = vpop.f32.mrf.mxu2  ;;  %v30669_v49 = vld [vmem:[%s39439_s1 + $0xad8] sm:$0xff] }
 0x12f   :  { %18636 = vmatpush.bf16.msrb.mxu1 %v30622_v51  ;;  %v18410_v11 = vpop.f32.mrf.mxu3  ;;  %v30697_v9 = vld [vmem:[%s39439_s1 + $0xbb8] sm:$0xff] }
 0x130   :  { %18649 = vmatpush.bf16.msrb.mxu2 %v30630_v52  ;;  %v224_v11 = vld.sshfl [vmem:[#allocation1 + $0x18] sm:$0xff pattern:$0x73625140] }
 0x131   :  { %18662 = vmatpush.bf16.msrb.mxu3 %v30638_v54  ;;  %v815_v16 = vpack.c.bf16 %v224_v11, %v224_v11  ;;  %v30719_v11 = vld [vmem:[%s39439_s1 + $0xc68] sm:$0xff] }
 0x132   :  { %18624 = vmatpush.bf16.msrb.mxu0 %v30613_v55  ;;  %v30652_v55 = vld [vmem:[%s39439_s1 + $0xa50] sm:$0xff] }
 0x133   :  { %18637 = vmatpush.bf16.msrb.mxu1 %v30621_v56  ;;  %v30660_v56 = vld [vmem:[%s39439_s1 + $0xa90] sm:$0xff] }
 0x134   :  { %18650 = vmatpush.bf16.msrb.mxu2 %v30629_v57  ;;  %v30668_v57 = vld [vmem:[%s39439_s1 + $0xad0] sm:$0xff] }
 0x135   :  { %18663 = vmatpush.bf16.msrb.mxu3 %v30637_v60  ;;  %v30651_v60 = vld [vmem:[%s39439_s1 + $0xa48] sm:$0xff] }
 0x136   :  { %18625 = vmatpush.bf16.msrb.mxu0 %v30612_v0 }
 0x137   :  { %18638 = vmatpush.bf16.msrb.mxu1 %v30620_v2  ;;  %v30650_v2 = vld [vmem:[%s39439_s1 + $0xa40] sm:$0xff] }
 0x138   :  { %18651 = vmatpush.bf16.msrb.mxu2 %v30628_v3  ;;  %v30658_v3 = vld [vmem:[%s39439_s1 + $0xa80] sm:$0xff] }
 0x139   :  { %18664 = vmatpush.bf16.msrb.mxu3 %v30636_v4  ;;  %v221_v4 = vld.sshfl [vmem:[#allocation1] sm:$0xff pattern:$0x73625140] }
 0x13a   :  { %18626 = vmatpush.bf16.msrb.mxu0 %v30611_v5  ;;  %v223_v5 = vld.sshfl [vmem:[#allocation1 + $0x10] sm:$0xff pattern:$0x73625140] }
 0x13b   :  { %18639 = vmatpush.bf16.msrb.mxu1 %v30619_v7  ;;  %v30689_v7 = vld [vmem:[%s39439_s1 + $0xb78] sm:$0xff] }
 0x13c   :  { %18652 = vmatpush.bf16.msrb.mxu2 %v30627_v8  ;;  %v222_v8 = vld.sshfl [vmem:[#allocation1 + $0x8] sm:$0xff pattern:$0x73625140] }
 0x13d   :  { %18665 = vmatpush.bf16.msrb.mxu3 %v30635_v10  ;;  %v30666_v10 = vld [vmem:[%s39439_s1 + $0xac0] sm:$0xff]  ;;  %v813_v15 = vpack.c.bf16 %v222_v8, %v222_v8  ;;  %v30728_v8 = vld [vmem:[%s39439_s1 + $0xcb0] sm:$0xff] }
 0x13e   :  { %18627 = vmatpush.bf16.msrb.mxu0 %v30610_v12  ;;  %v18421_v36 = vpop.f32.mrf.mxu0  ;;  %v812_v12 = vpack.c.bf16 %v221_v4, %v221_v4 }
 0x13f   :  { %18640 = vmatpush.bf16.msrb.mxu1 %v30618_v13  ;;  %v18422_v37 = vadd.f32 %v18421_v36, %v33507_v63  ;;  %v18434_v39 = vpop.f32.mrf.mxu1  ;;  %v30667_v63 = vld [vmem:[%s39439_s1 + $0xac8] sm:$0xff]  ;;  %v814_v13 = vpack.c.bf16 %v223_v5, %v223_v5 }
 0x140   :  { %18653 = vmatpush.bf16.msrb.mxu2 %v30626_v14  ;;  %v30705_v14 = vld [vmem:[%s39439_s1 + $0xbf8] sm:$0xff] }
 0x141   :  { %18666 = vmatpush.bf16.msrb.mxu3 %v30634_v21  ;;  %18628 = vmatmul.bf16.vlgmr.msrb.gmra.mxu0 %v808_v23  ;;  %v18435_v42 = vadd.f32 %v18434_v39, %v18422_v37  ;;  %v30679_v21 = vld [vmem:[%s39439_s1 + $0xb28] sm:$0xff] }
 0x142   :  { %18672 = vmatpush.bf16.msra.mxu0 %v30649_v17  ;;  %18641 = vmatmul.bf16.vlgmr.msrb.gmra.mxu1 %v809_v26  ;;  %v30680_v17 = vld [vmem:[%s39439_s1 + $0xb30] sm:$0xff]  ;;  %v30695_v23 = vld [vmem:[%s39439_s1 + $0xba8] sm:$0xff] }
 0x143   :  { %18685 = vmatpush.bf16.msra.mxu1 %v30657_v18  ;;  %18654 = vmatmul.bf16.vlgmr.msrb.gmra.mxu2 %v810_v24  ;;  %v30688_v18 = vld [vmem:[%s39439_s1 + $0xb70] sm:$0xff]  ;;  %v30703_v24 = vld [vmem:[%s39439_s1 + $0xbe8] sm:$0xff] }
 0x144   :  { %18698 = vmatpush.bf16.msra.mxu2 %v30665_v20  ;;  %18667 = vmatmul.bf16.vlgmr.msrb.gmra.mxu3 %v811_v27  ;;  %v30704_v20 = vld [vmem:[%s39439_s1 + $0xbf0] sm:$0xff]  ;;  %v30678_v27 = vld [vmem:[%s39439_s1 + $0xb20] sm:$0xff] }
 0x145   :  { %18711 = vmatpush.bf16.msra.mxu3 %v30673_v25 }
 0x146   :  { %18673 = vmatpush.bf16.msra.mxu0 %v30648_v28  ;;  %v18447_v47 = vpop.f32.mrf.mxu2  ;;  %v18423_v51 = vpop.f32.mrf.mxu0 }
 0x147   :  { %18686 = vmatpush.bf16.msra.mxu1 %v30656_v29  ;;  %v18448_v48 = vadd.f32 %v18447_v47, %v18435_v42  ;;  %v18460_v50 = vpop.f32.mrf.mxu3  ;;  %v18436_v54 = vpop.f32.mrf.mxu1  ;;  %v30686_v29 = vld [vmem:[%s39439_s1 + $0xb60] sm:$0xff]  ;;  %v30676_v42 = vld [vmem:[%s39439_s1 + $0xb10] sm:$0xff]  ;;  %v30675_v47 = vld [vmem:[%s39439_s1 + $0xb08] sm:$0xff] }
 0x148   :  { %18699 = vmatpush.bf16.msra.mxu2 %v30664_v30  ;;  %v30694_v30 = vld [vmem:[%s39439_s1 + $0xba0] sm:$0xff] }
 0x149   :  { %18712 = vmatpush.bf16.msra.mxu3 %v30672_v31  ;;  %v33609_v52 = vadd.f32 %v18460_v50, %v18448_v48  ;;  %v46_v48 = vld [vmem:[%s39438_s0 + $0x60] sm:$0xff]  ;;  %v30691_v50 = vld [vmem:[%s39439_s1 + $0xb88] sm:$0xff] }
 0x14a   :  { %18674 = vmatpush.bf16.msra.mxu0 %v30647_v32  ;;  %v30702_v32 = vld [vmem:[%s39439_s1 + $0xbe0] sm:$0xff]  ;;  %229 = vst [vmem:[#allocation1] ss:$4 sm:$0xff] %v46_v48  ;;  %v30745_v48 = vld [vmem:[%s39439_s1 + $0xd38] sm:$0xff] }
 0x14b   :  { %18687 = vmatpush.bf16.msra.mxu1 %v30655_v33  ;;  %v30677_v33 = vld [vmem:[%s39439_s1 + $0xb18] sm:$0xff]  ;;  %v30674_v54 = vld [vmem:[%s39439_s1 + $0xb00] sm:$0xff] }
 0x14c   :  { %18700 = vmatpush.bf16.msra.mxu2 %v30663_v34  ;;  %v30685_v34 = vld [vmem:[%s39439_s1 + $0xb58] sm:$0xff] }
 0x14d   :  { %18713 = vmatpush.bf16.msra.mxu3 %v30671_v35  ;;  %v30693_v35 = vld [vmem:[%s39439_s1 + $0xb98] sm:$0xff] }
 0x14e   :  { %18675 = vmatpush.bf16.msra.mxu0 %v30646_v38  ;;  %v18449_v62 = vpop.f32.mrf.mxu2  ;;  %v30701_v38 = vld [vmem:[%s39439_s1 + $0xbd8] sm:$0xff] }
 0x14f   :  { %18688 = vmatpush.bf16.msra.mxu1 %v30654_v40  ;;  %v18462_v0 = vpop.f32.mrf.mxu3  ;;  %v30729_v62 = vld [vmem:[%s39439_s1 + $0xcb8] sm:$0xff] }
 0x150   :  { %18701 = vmatpush.bf16.msra.mxu2 %v30662_v41  ;;  %v228_v0 = vld.sshfl [vmem:[#allocation1 + $0x38] sm:$0xff pattern:$0x73625140] }
 0x151   :  { %18714 = vmatpush.bf16.msra.mxu3 %v30670_v43  ;;  %v819_v5 = vpack.c.bf16 %v228_v0, %v228_v0  ;;  %v30751_v0 = vld [vmem:[%s39439_s1 + $0xd68] sm:$0xff] }
 0x152   :  { %18676 = vmatpush.bf16.msra.mxu0 %v30645_v44  ;;  %v30684_v44 = vld [vmem:[%s39439_s1 + $0xb50] sm:$0xff] }
 0x153   :  { %18689 = vmatpush.bf16.msra.mxu1 %v30653_v45  ;;  %v30692_v45 = vld [vmem:[%s39439_s1 + $0xb90] sm:$0xff] }
 0x154   :  { %18702 = vmatpush.bf16.msra.mxu2 %v30661_v46  ;;  %v30700_v46 = vld [vmem:[%s39439_s1 + $0xbd0] sm:$0xff] }
 0x155   :  { %18715 = vmatpush.bf16.msra.mxu3 %v30669_v49  ;;  %v30683_v49 = vld [vmem:[%s39439_s1 + $0xb48] sm:$0xff] }
 0x156   :  { %18677 = vmatpush.bf16.msra.mxu0 %v30644_v53 }
 0x157   :  { %18690 = vmatpush.bf16.msra.mxu1 %v30652_v55  ;;  %v30682_v55 = vld [vmem:[%s39439_s1 + $0xb40] sm:$0xff] }
 0x158   :  { %18703 = vmatpush.bf16.msra.mxu2 %v30660_v56  ;;  %v30690_v56 = vld [vmem:[%s39439_s1 + $0xb80] sm:$0xff] }
 0x159   :  { %18716 = vmatpush.bf16.msra.mxu3 %v30668_v57  ;;  %v225_v57 = vld.sshfl [vmem:[#allocation1 + $0x20] sm:$0xff pattern:$0x73625140] }
 0x15a   :  { %18678 = vmatpush.bf16.msra.mxu0 %v30643_v58  ;;  %v227_v58 = vld.sshfl [vmem:[#allocation1 + $0x30] sm:$0xff pattern:$0x73625140] }
 0x15b   :  { %18691 = vmatpush.bf16.msra.mxu1 %v30651_v60  ;;  %v30721_v60 = vld [vmem:[%s39439_s1 + $0xc78] sm:$0xff] }
 0x15c   :  { %18704 = vmatpush.bf16.msra.mxu2 %v30659_v61  ;;  %v226_v61 = vld.sshfl [vmem:[#allocation1 + $0x28] sm:$0xff pattern:$0x73625140] }
 0x15d   :  { %18717 = vmatpush.bf16.msra.mxu3 %v30667_v63  ;;  %v30698_v63 = vld [vmem:[%s39439_s1 + $0xbc0] sm:$0xff]  ;;  %v817_v4 = vpack.c.bf16 %v226_v61, %v226_v61  ;;  %v30760_v61 = vld [vmem:[%s39439_s1 + $0xdb0] sm:$0xff] }
 0x15e   :  { %18679 = vmatpush.bf16.msra.mxu0 %v30642_v1  ;;  %v18473_v25 = vpop.f32.mrf.mxu0  ;;  %v816_v1 = vpack.c.bf16 %v225_v57, %v225_v57 }
 0x15f   :  { %18692 = vmatpush.bf16.msra.mxu1 %v30650_v2  ;;  %v18474_v26 = vadd.f32 %v18473_v25, %v33609_v52  ;;  %v18486_v28 = vpop.f32.mrf.mxu1  ;;  %v30699_v52 = vld [vmem:[%s39439_s1 + $0xbc8] sm:$0xff]  ;;  %v818_v2 = vpack.c.bf16 %v227_v58, %v227_v58 }
 0x160   :  { %18705 = vmatpush.bf16.msra.mxu2 %v30658_v3  ;;  %v30737_v3 = vld [vmem:[%s39439_s1 + $0xcf8] sm:$0xff] }
 0x161   :  { %18718 = vmatpush.bf16.msra.mxu3 %v30666_v10  ;;  %18680 = vmatmul.bf16.vlgmr.msra.gmra.mxu0 %v812_v12  ;;  %v18487_v31 = vadd.f32 %v18486_v28, %v18474_v26  ;;  %v30711_v10 = vld [vmem:[%s39439_s1 + $0xc28] sm:$0xff] }
 0x162   :  { %18724 = vmatpush.bf16.msrb.mxu0 %v30681_v6  ;;  %18693 = vmatmul.bf16.vlgmr.msra.gmra.mxu1 %v813_v15  ;;  %v30712_v6 = vld [vmem:[%s39439_s1 + $0xc30] sm:$0xff]  ;;  %v30727_v12 = vld [vmem:[%s39439_s1 + $0xca8] sm:$0xff] }
 0x163   :  { %18737 = vmatpush.bf16.msrb.mxu1 %v30689_v7  ;;  %18706 = vmatmul.bf16.vlgmr.msra.gmra.mxu2 %v814_v13  ;;  %v30720_v7 = vld [vmem:[%s39439_s1 + $0xc70] sm:$0xff]  ;;  %v30735_v13 = vld [vmem:[%s39439_s1 + $0xce8] sm:$0xff] }
 0x164   :  { %18750 = vmatpush.bf16.msrb.mxu2 %v30697_v9  ;;  %18719 = vmatmul.bf16.vlgmr.msra.gmra.mxu3 %v815_v16  ;;  %v30736_v9 = vld [vmem:[%s39439_s1 + $0xcf0] sm:$0xff]  ;;  %v30710_v16 = vld [vmem:[%s39439_s1 + $0xc20] sm:$0xff] }
 0x165   :  { %18763 = vmatpush.bf16.msrb.mxu3 %v30705_v14 }
 0x166   :  { %18725 = vmatpush.bf16.msrb.mxu0 %v30680_v17  ;;  %v18499_v36 = vpop.f32.mrf.mxu2  ;;  %v18475_v40 = vpop.f32.mrf.mxu0 }
 0x167   :  { %18738 = vmatpush.bf16.msrb.mxu1 %v30688_v18  ;;  %v18500_v37 = vadd.f32 %v18499_v36, %v18487_v31  ;;  %v18512_v39 = vpop.f32.mrf.mxu3  ;;  %v18488_v43 = vpop.f32.mrf.mxu1  ;;  %v30718_v18 = vld [vmem:[%s39439_s1 + $0xc60] sm:$0xff]  ;;  %v30708_v31 = vld [vmem:[%s39439_s1 + $0xc10] sm:$0xff]  ;;  %v30707_v36 = vld [vmem:[%s39439_s1 + $0xc08] sm:$0xff] }
 0x168   :  { %18751 = vmatpush.bf16.msrb.mxu2 %v30696_v19  ;;  %v30726_v19 = vld [vmem:[%s39439_s1 + $0xca0] sm:$0xff] }
 0x169   :  { %18764 = vmatpush.bf16.msrb.mxu3 %v30704_v20  ;;  %v33711_v41 = vadd.f32 %v18512_v39, %v18500_v37  ;;  %v47_v37 = vld [vmem:[%s39438_s0 + $0x68] sm:$0xff]  ;;  %v30706_v43 = vld [vmem:[%s39439_s1 + $0xc00] sm:$0xff] }
 0x16a   :  { %18726 = vmatpush.bf16.msrb.mxu0 %v30679_v21  ;;  %v30734_v21 = vld [vmem:[%s39439_s1 + $0xce0] sm:$0xff]  ;;  %v30723_v39 = vld [vmem:[%s39439_s1 + $0xc88] sm:$0xff]  ;;  %230 = vst [vmem:[#allocation1 + $0x20] ss:$4 sm:$0xff] %v47_v37  ;;  %v30777_v37 = vld [vmem:[%s39439_s1 + $0xe38] sm:$0xff] }
 0x16b   :  { %18739 = vmatpush.bf16.msrb.mxu1 %v30687_v22  ;;  %v30709_v22 = vld [vmem:[%s39439_s1 + $0xc18] sm:$0xff] }
 0x16c   :  { %18752 = vmatpush.bf16.msrb.mxu2 %v30695_v23  ;;  %v30717_v23 = vld [vmem:[%s39439_s1 + $0xc58] sm:$0xff] }
 0x16d   :  { %18765 = vmatpush.bf16.msrb.mxu3 %v30703_v24  ;;  %v30725_v24 = vld [vmem:[%s39439_s1 + $0xc98] sm:$0xff] }
 0x16e   :  { %18727 = vmatpush.bf16.msrb.mxu0 %v30678_v27  ;;  %v18501_v51 = vpop.f32.mrf.mxu2  ;;  %v30733_v27 = vld [vmem:[%s39439_s1 + $0xcd8] sm:$0xff] }
 0x16f   :  { %18740 = vmatpush.bf16.msrb.mxu1 %v30686_v29  ;;  %v18514_v53 = vpop.f32.mrf.mxu3  ;;  %v30761_v51 = vld [vmem:[%s39439_s1 + $0xdb8] sm:$0xff] }
 0x170   :  { %18753 = vmatpush.bf16.msrb.mxu2 %v30694_v30  ;;  %v234_v53 = vld.sshfl [vmem:[#allocation1 + $0x18] sm:$0xff pattern:$0x73625140] }
 0x171   :  { %18766 = vmatpush.bf16.msrb.mxu3 %v30702_v32  ;;  %v823_v58 = vpack.c.bf16 %v234_v53, %v234_v53  ;;  %v30783_v53 = vld [vmem:[%s39439_s1 + $0xe68] sm:$0xff] }
 0x172   :  { %18728 = vmatpush.bf16.msrb.mxu0 %v30677_v33  ;;  %v30716_v33 = vld [vmem:[%s39439_s1 + $0xc50] sm:$0xff] }
 0x173   :  { %18741 = vmatpush.bf16.msrb.mxu1 %v30685_v34  ;;  %v30724_v34 = vld [vmem:[%s39439_s1 + $0xc90] sm:$0xff] }
 0x174   :  { %18754 = vmatpush.bf16.msrb.mxu2 %v30693_v35  ;;  %v30732_v35 = vld [vmem:[%s39439_s1 + $0xcd0] sm:$0xff] }
 0x175   :  { %18767 = vmatpush.bf16.msrb.mxu3 %v30701_v38  ;;  %v30715_v38 = vld [vmem:[%s39439_s1 + $0xc48] sm:$0xff] }
 0x176   :  { %18729 = vmatpush.bf16.msrb.mxu0 %v30676_v42 }
 0x177   :  { %18742 = vmatpush.bf16.msrb.mxu1 %v30684_v44  ;;  %v30714_v44 = vld [vmem:[%s39439_s1 + $0xc40] sm:$0xff] }
 0x178   :  { %18755 = vmatpush.bf16.msrb.mxu2 %v30692_v45  ;;  %v30722_v45 = vld [vmem:[%s39439_s1 + $0xc80] sm:$0xff] }
 0x179   :  { %18768 = vmatpush.bf16.msrb.mxu3 %v30700_v46  ;;  %v231_v46 = vld.sshfl [vmem:[#allocation1] sm:$0xff pattern:$0x73625140] }
 0x17a   :  { %18730 = vmatpush.bf16.msrb.mxu0 %v30675_v47  ;;  %v233_v47 = vld.sshfl [vmem:[#allocation1 + $0x10] sm:$0xff pattern:$0x73625140] }
 0x17b   :  { %18743 = vmatpush.bf16.msrb.mxu1 %v30683_v49  ;;  %v30753_v49 = vld [vmem:[%s39439_s1 + $0xd78] sm:$0xff] }
 0x17c   :  { %18756 = vmatpush.bf16.msrb.mxu2 %v30691_v50  ;;  %v232_v50 = vld.sshfl [vmem:[#allocation1 + $0x8] sm:$0xff pattern:$0x73625140] }
 0x17d   :  { %18769 = vmatpush.bf16.msrb.mxu3 %v30699_v52  ;;  %v30730_v52 = vld [vmem:[%s39439_s1 + $0xcc0] sm:$0xff]  ;;  %v821_v57 = vpack.c.bf16 %v232_v50, %v232_v50  ;;  %v30792_v50 = vld [vmem:[%s39439_s1 + $0xeb0] sm:$0xff] }
 0x17e   :  { %18731 = vmatpush.bf16.msrb.mxu0 %v30674_v54  ;;  %v18525_v14 = vpop.f32.mrf.mxu0  ;;  %v820_v54 = vpack.c.bf16 %v231_v46, %v231_v46 }
 0x17f   :  { %18744 = vmatpush.bf16.msrb.mxu1 %v30682_v55  ;;  %v18526_v15 = vadd.f32 %v18525_v14, %v33711_v41  ;;  %v18538_v17 = vpop.f32.mrf.mxu1  ;;  %v30731_v41 = vld [vmem:[%s39439_s1 + $0xcc8] sm:$0xff]  ;;  %v822_v55 = vpack.c.bf16 %v233_v47, %v233_v47 }
 0x180   :  { %18757 = vmatpush.bf16.msrb.mxu2 %v30690_v56  ;;  %v30769_v56 = vld [vmem:[%s39439_s1 + $0xdf8] sm:$0xff] }
 0x181   :  { %18770 = vmatpush.bf16.msrb.mxu3 %v30698_v63  ;;  %18732 = vmatmul.bf16.vlgmr.msrb.gmra.mxu0 %v816_v1  ;;  %v18539_v20 = vadd.f32 %v18538_v17, %v18526_v15  ;;  %v30743_v63 = vld [vmem:[%s39439_s1 + $0xd28] sm:$0xff] }
 0x182   :  { %18776 = vmatpush.bf16.msra.mxu0 %v30713_v59  ;;  %18745 = vmatmul.bf16.vlgmr.msrb.gmra.mxu1 %v817_v4  ;;  %v30744_v59 = vld [vmem:[%s39439_s1 + $0xd30] sm:$0xff]  ;;  %v30759_v1 = vld [vmem:[%s39439_s1 + $0xda8] sm:$0xff] }
 0x183   :  { %18789 = vmatpush.bf16.msra.mxu1 %v30721_v60  ;;  %18758 = vmatmul.bf16.vlgmr.msrb.gmra.mxu2 %v818_v2  ;;  %v30752_v60 = vld [vmem:[%s39439_s1 + $0xd70] sm:$0xff]  ;;  %v30767_v2 = vld [vmem:[%s39439_s1 + $0xde8] sm:$0xff] }
 0x184   :  { %18802 = vmatpush.bf16.msra.mxu2 %v30729_v62  ;;  %18771 = vmatmul.bf16.vlgmr.msrb.gmra.mxu3 %v819_v5  ;;  %v30768_v62 = vld [vmem:[%s39439_s1 + $0xdf0] sm:$0xff]  ;;  %v30742_v5 = vld [vmem:[%s39439_s1 + $0xd20] sm:$0xff] }
 0x185   :  { %18815 = vmatpush.bf16.msra.mxu3 %v30737_v3 }
 0x186   :  { %18777 = vmatpush.bf16.msra.mxu0 %v30712_v6  ;;  %v18551_v25 = vpop.f32.mrf.mxu2  ;;  %v18527_v29 = vpop.f32.mrf.mxu0 }
 0x187   :  { %18790 = vmatpush.bf16.msra.mxu1 %v30720_v7  ;;  %v18552_v26 = vadd.f32 %v18551_v25, %v18539_v20  ;;  %v18564_v28 = vpop.f32.mrf.mxu3  ;;  %v18540_v32 = vpop.f32.mrf.mxu1  ;;  %v30750_v7 = vld [vmem:[%s39439_s1 + $0xd60] sm:$0xff]  ;;  %v30740_v20 = vld [vmem:[%s39439_s1 + $0xd10] sm:$0xff]  ;;  %v30739_v25 = vld [vmem:[%s39439_s1 + $0xd08] sm:$0xff] }
 0x188   :  { %18803 = vmatpush.bf16.msra.mxu2 %v30728_v8  ;;  %v30758_v8 = vld [vmem:[%s39439_s1 + $0xda0] sm:$0xff] }
 0x189   :  { %18816 = vmatpush.bf16.msra.mxu3 %v30736_v9  ;;  %v33813_v30 = vadd.f32 %v18564_v28, %v18552_v26  ;;  %v48_v26 = vld [vmem:[%s39438_s0 + $0x70] sm:$0xff]  ;;  %v30755_v28 = vld [vmem:[%s39439_s1 + $0xd88] sm:$0xff]  ;;  %v30738_v32 = vld [vmem:[%s39439_s1 + $0xd00] sm:$0xff] }
 0x18a   :  { %18778 = vmatpush.bf16.msra.mxu0 %v30711_v10  ;;  %v30766_v10 = vld [vmem:[%s39439_s1 + $0xde0] sm:$0xff]  ;;  %239 = vst [vmem:[#allocation1] ss:$4 sm:$0xff] %v48_v26  ;;  %v30809_v26 = vld [vmem:[%s39439_s1 + $0xf38] sm:$0xff] }
 0x18b   :  { %18791 = vmatpush.bf16.msra.mxu1 %v30719_v11  ;;  %v30741_v11 = vld [vmem:[%s39439_s1 + $0xd18] sm:$0xff] }
 0x18c   :  { %18804 = vmatpush.bf16.msra.mxu2 %v30727_v12  ;;  %v30749_v12 = vld [vmem:[%s39439_s1 + $0xd58] sm:$0xff] }
 0x18d   :  { %18817 = vmatpush.bf16.msra.mxu3 %v30735_v13  ;;  %v30757_v13 = vld [vmem:[%s39439_s1 + $0xd98] sm:$0xff] }
 0x18e   :  { %18779 = vmatpush.bf16.msra.mxu0 %v30710_v16  ;;  %v18553_v40 = vpop.f32.mrf.mxu2  ;;  %v30765_v16 = vld [vmem:[%s39439_s1 + $0xdd8] sm:$0xff] }
 0x18f   :  { %18792 = vmatpush.bf16.msra.mxu1 %v30718_v18  ;;  %v18566_v42 = vpop.f32.mrf.mxu3  ;;  %v30793_v40 = vld [vmem:[%s39439_s1 + $0xeb8] sm:$0xff] }
 0x190   :  { %18805 = vmatpush.bf16.msra.mxu2 %v30726_v19  ;;  %v238_v42 = vld.sshfl [vmem:[#allocation1 + $0x38] sm:$0xff pattern:$0x73625140] }
 0x191   :  { %18818 = vmatpush.bf16.msra.mxu3 %v30734_v21  ;;  %v827_v47 = vpack.c.bf16 %v238_v42, %v238_v42  ;;  %v30815_v42 = vld [vmem:[%s39439_s1 + $0xf68] sm:$0xff] }
 0x192   :  { %18780 = vmatpush.bf16.msra.mxu0 %v30709_v22  ;;  %v30748_v22 = vld [vmem:[%s39439_s1 + $0xd50] sm:$0xff] }
 0x193   :  { %18793 = vmatpush.bf16.msra.mxu1 %v30717_v23  ;;  %v30756_v23 = vld [vmem:[%s39439_s1 + $0xd90] sm:$0xff] }
 0x194   :  { %18806 = vmatpush.bf16.msra.mxu2 %v30725_v24  ;;  %v30764_v24 = vld [vmem:[%s39439_s1 + $0xdd0] sm:$0xff] }
 0x195   :  { %18819 = vmatpush.bf16.msra.mxu3 %v30733_v27  ;;  %v30747_v27 = vld [vmem:[%s39439_s1 + $0xd48] sm:$0xff] }
 0x196   :  { %18781 = vmatpush.bf16.msra.mxu0 %v30708_v31 }
 0x197   :  { %18794 = vmatpush.bf16.msra.mxu1 %v30716_v33  ;;  %v30746_v33 = vld [vmem:[%s39439_s1 + $0xd40] sm:$0xff] }
 0x198   :  { %18807 = vmatpush.bf16.msra.mxu2 %v30724_v34  ;;  %v30754_v34 = vld [vmem:[%s39439_s1 + $0xd80] sm:$0xff] }
 0x199   :  { %18820 = vmatpush.bf16.msra.mxu3 %v30732_v35  ;;  %v235_v35 = vld.sshfl [vmem:[#allocation1 + $0x20] sm:$0xff pattern:$0x73625140] }
 0x19a   :  { %18782 = vmatpush.bf16.msra.mxu0 %v30707_v36  ;;  %v237_v36 = vld.sshfl [vmem:[#allocation1 + $0x30] sm:$0xff pattern:$0x73625140] }
 0x19b   :  { %18795 = vmatpush.bf16.msra.mxu1 %v30715_v38  ;;  %v30785_v38 = vld [vmem:[%s39439_s1 + $0xe78] sm:$0xff] }
 0x19c   :  { %18808 = vmatpush.bf16.msra.mxu2 %v30723_v39  ;;  %v236_v39 = vld.sshfl [vmem:[#allocation1 + $0x28] sm:$0xff pattern:$0x73625140] }
 0x19d   :  { %18821 = vmatpush.bf16.msra.mxu3 %v30731_v41  ;;  %v30762_v41 = vld [vmem:[%s39439_s1 + $0xdc0] sm:$0xff]  ;;  %v825_v46 = vpack.c.bf16 %v236_v39, %v236_v39  ;;  %v30824_v39 = vld [vmem:[%s39439_s1 + $0xfb0] sm:$0xff] }
 0x19e   :  { %18783 = vmatpush.bf16.msra.mxu0 %v30706_v43  ;;  %v18577_v3 = vpop.f32.mrf.mxu0  ;;  %v824_v43 = vpack.c.bf16 %v235_v35, %v235_v35 }
 0x19f   :  { %18796 = vmatpush.bf16.msra.mxu1 %v30714_v44  ;;  %v18578_v4 = vadd.f32 %v18577_v3, %v33813_v30  ;;  %v18590_v6 = vpop.f32.mrf.mxu1  ;;  %v30763_v30 = vld [vmem:[%s39439_s1 + $0xdc8] sm:$0xff]  ;;  %v826_v44 = vpack.c.bf16 %v237_v36, %v237_v36 }
 0x1a0   :  { %18809 = vmatpush.bf16.msra.mxu2 %v30722_v45  ;;  %v30801_v45 = vld [vmem:[%s39439_s1 + $0xef8] sm:$0xff] }
 0x1a1   :  { %18822 = vmatpush.bf16.msra.mxu3 %v30730_v52  ;;  %18784 = vmatmul.bf16.vlgmr.msra.gmra.mxu0 %v820_v54  ;;  %v18591_v9 = vadd.f32 %v18590_v6, %v18578_v4  ;;  %v30775_v52 = vld [vmem:[%s39439_s1 + $0xe28] sm:$0xff] }
 0x1a2   :  { %18828 = vmatpush.bf16.msrb.mxu0 %v30745_v48  ;;  %18797 = vmatmul.bf16.vlgmr.msra.gmra.mxu1 %v821_v57  ;;  %v30776_v48 = vld [vmem:[%s39439_s1 + $0xe30] sm:$0xff]  ;;  %v30791_v54 = vld [vmem:[%s39439_s1 + $0xea8] sm:$0xff] }
 0x1a3   :  { %18841 = vmatpush.bf16.msrb.mxu1 %v30753_v49  ;;  %18810 = vmatmul.bf16.vlgmr.msra.gmra.mxu2 %v822_v55  ;;  %v30784_v49 = vld [vmem:[%s39439_s1 + $0xe70] sm:$0xff]  ;;  %v30799_v55 = vld [vmem:[%s39439_s1 + $0xee8] sm:$0xff] }
 0x1a4   :  { %18854 = vmatpush.bf16.msrb.mxu2 %v30761_v51  ;;  %18823 = vmatmul.bf16.vlgmr.msra.gmra.mxu3 %v823_v58  ;;  %v30800_v51 = vld [vmem:[%s39439_s1 + $0xef0] sm:$0xff]  ;;  %v30774_v58 = vld [vmem:[%s39439_s1 + $0xe20] sm:$0xff] }
 0x1a5   :  { %18867 = vmatpush.bf16.msrb.mxu3 %v30769_v56 }
 0x1a6   :  { %18829 = vmatpush.bf16.msrb.mxu0 %v30744_v59  ;;  %v18603_v14 = vpop.f32.mrf.mxu2  ;;  %v18579_v18 = vpop.f32.mrf.mxu0 }
 0x1a7   :  { %18842 = vmatpush.bf16.msrb.mxu1 %v30752_v60  ;;  %v18604_v15 = vadd.f32 %v18603_v14, %v18591_v9  ;;  %v18616_v17 = vpop.f32.mrf.mxu3  ;;  %v18592_v21 = vpop.f32.mrf.mxu1  ;;  %v30782_v60 = vld [vmem:[%s39439_s1 + $0xe60] sm:$0xff]  ;;  %v30772_v9 = vld [vmem:[%s39439_s1 + $0xe10] sm:$0xff]  ;;  %v30771_v14 = vld [vmem:[%s39439_s1 + $0xe08] sm:$0xff] }
 0x1a8   :  { %18855 = vmatpush.bf16.msrb.mxu2 %v30760_v61  ;;  %v30790_v61 = vld [vmem:[%s39439_s1 + $0xea0] sm:$0xff] }
 0x1a9   :  { %18868 = vmatpush.bf16.msrb.mxu3 %v30768_v62  ;;  %v33915_v19 = vadd.f32 %v18616_v17, %v18604_v15  ;;  %v49_v15 = vld [vmem:[%s39438_s0 + $0x78] sm:$0xff]  ;;  %v30787_v17 = vld [vmem:[%s39439_s1 + $0xe88] sm:$0xff]  ;;  %v30770_v21 = vld [vmem:[%s39439_s1 + $0xe00] sm:$0xff] }
 0x1aa   :  { %18830 = vmatpush.bf16.msrb.mxu0 %v30743_v63  ;;  %v30798_v63 = vld [vmem:[%s39439_s1 + $0xee0] sm:$0xff]  ;;  %240 = vst [vmem:[#allocation1 + $0x20] ss:$4 sm:$0xff] %v49_v15  ;;  %v30841_v15 = vld [vmem:[%s39439_s1 + $0x1038] sm:$0xff] }
 0x1ab   :  { %18843 = vmatpush.bf16.msrb.mxu1 %v30751_v0  ;;  %v30773_v0 = vld [vmem:[%s39439_s1 + $0xe18] sm:$0xff] }
 0x1ac   :  { %18856 = vmatpush.bf16.msrb.mxu2 %v30759_v1  ;;  %v30781_v1 = vld [vmem:[%s39439_s1 + $0xe58] sm:$0xff] }
 0x1ad   :  { %18869 = vmatpush.bf16.msrb.mxu3 %v30767_v2  ;;  %v30789_v2 = vld [vmem:[%s39439_s1 + $0xe98] sm:$0xff] }
 0x1ae   :  { %18831 = vmatpush.bf16.msrb.mxu0 %v30742_v5  ;;  %v18605_v29 = vpop.f32.mrf.mxu2  ;;  %v30797_v5 = vld [vmem:[%s39439_s1 + $0xed8] sm:$0xff] }
 0x1af   :  { %18844 = vmatpush.bf16.msrb.mxu1 %v30750_v7  ;;  %v18618_v31 = vpop.f32.mrf.mxu3  ;;  %v30825_v29 = vld [vmem:[%s39439_s1 + $0xfb8] sm:$0xff] }
 0x1b0   :  { %18857 = vmatpush.bf16.msrb.mxu2 %v30758_v8  ;;  %v244_v31 = vld.sshfl [vmem:[#allocation1 + $0x18] sm:$0xff pattern:$0x73625140] }
 0x1b1   :  { %18870 = vmatpush.bf16.msrb.mxu3 %v30766_v10  ;;  %v831_v36 = vpack.c.bf16 %v244_v31, %v244_v31  ;;  %v30847_v31 = vld [vmem:[%s39439_s1 + $0x1068] sm:$0xff] }
 0x1b2   :  { %18832 = vmatpush.bf16.msrb.mxu0 %v30741_v11  ;;  %v30780_v11 = vld [vmem:[%s39439_s1 + $0xe50] sm:$0xff] }
 0x1b3   :  { %18845 = vmatpush.bf16.msrb.mxu1 %v30749_v12  ;;  %v30788_v12 = vld [vmem:[%s39439_s1 + $0xe90] sm:$0xff] }
 0x1b4   :  { %18858 = vmatpush.bf16.msrb.mxu2 %v30757_v13  ;;  %v30796_v13 = vld [vmem:[%s39439_s1 + $0xed0] sm:$0xff] }
 0x1b5   :  { %18871 = vmatpush.bf16.msrb.mxu3 %v30765_v16  ;;  %v30779_v16 = vld [vmem:[%s39439_s1 + $0xe48] sm:$0xff] }
 0x1b6   :  { %18833 = vmatpush.bf16.msrb.mxu0 %v30740_v20 }
 0x1b7   :  { %18846 = vmatpush.bf16.msrb.mxu1 %v30748_v22  ;;  %v30778_v22 = vld [vmem:[%s39439_s1 + $0xe40] sm:$0xff] }
 0x1b8   :  { %18859 = vmatpush.bf16.msrb.mxu2 %v30756_v23  ;;  %v30786_v23 = vld [vmem:[%s39439_s1 + $0xe80] sm:$0xff] }
 0x1b9   :  { %18872 = vmatpush.bf16.msrb.mxu3 %v30764_v24  ;;  %v241_v24 = vld.sshfl [vmem:[#allocation1] sm:$0xff pattern:$0x73625140] }
 0x1ba   :  { %18834 = vmatpush.bf16.msrb.mxu0 %v30739_v25  ;;  %v243_v25 = vld.sshfl [vmem:[#allocation1 + $0x10] sm:$0xff pattern:$0x73625140] }
 0x1bb   :  { %18847 = vmatpush.bf16.msrb.mxu1 %v30747_v27  ;;  %v30817_v27 = vld [vmem:[%s39439_s1 + $0xf78] sm:$0xff] }
 0x1bc   :  { %18860 = vmatpush.bf16.msrb.mxu2 %v30755_v28  ;;  %v242_v28 = vld.sshfl [vmem:[#allocation1 + $0x8] sm:$0xff pattern:$0x73625140] }
 0x1bd   :  { %18873 = vmatpush.bf16.msrb.mxu3 %v30763_v30  ;;  %v30794_v30 = vld [vmem:[%s39439_s1 + $0xec0] sm:$0xff]  ;;  %v829_v35 = vpack.c.bf16 %v242_v28, %v242_v28  ;;  %v30856_v28 = vld [vmem:[%s39439_s1 + $0x10b0] sm:$0xff] }
 0x1be   :  { %18835 = vmatpush.bf16.msrb.mxu0 %v30738_v32  ;;  %v18629_v56 = vpop.f32.mrf.mxu0  ;;  %v828_v32 = vpack.c.bf16 %v241_v24, %v241_v24 }
 0x1bf   :  { %18848 = vmatpush.bf16.msrb.mxu1 %v30746_v33  ;;  %v18630_v57 = vadd.f32 %v18629_v56, %v33915_v19  ;;  %v18642_v59 = vpop.f32.mrf.mxu1  ;;  %v30795_v19 = vld [vmem:[%s39439_s1 + $0xec8] sm:$0xff]  ;;  %v830_v33 = vpack.c.bf16 %v243_v25, %v243_v25 }
 0x1c0   :  { %18861 = vmatpush.bf16.msrb.mxu2 %v30754_v34  ;;  %v30833_v34 = vld [vmem:[%s39439_s1 + $0xff8] sm:$0xff] }
 0x1c1   :  { %18874 = vmatpush.bf16.msrb.mxu3 %v30762_v41  ;;  %18836 = vmatmul.bf16.vlgmr.msrb.gmra.mxu0 %v824_v43  ;;  %v18643_v62 = vadd.f32 %v18642_v59, %v18630_v57  ;;  %v30807_v41 = vld [vmem:[%s39439_s1 + $0xf28] sm:$0xff] }
 0x1c2   :  { %18880 = vmatpush.bf16.msra.mxu0 %v30777_v37  ;;  %18849 = vmatmul.bf16.vlgmr.msrb.gmra.mxu1 %v825_v46  ;;  %v30808_v37 = vld [vmem:[%s39439_s1 + $0xf30] sm:$0xff]  ;;  %v30823_v43 = vld [vmem:[%s39439_s1 + $0xfa8] sm:$0xff] }
 0x1c3   :  { %18893 = vmatpush.bf16.msra.mxu1 %v30785_v38  ;;  %18862 = vmatmul.bf16.vlgmr.msrb.gmra.mxu2 %v826_v44  ;;  %v30816_v38 = vld [vmem:[%s39439_s1 + $0xf70] sm:$0xff]  ;;  %v30831_v44 = vld [vmem:[%s39439_s1 + $0xfe8] sm:$0xff] }
 0x1c4   :  { %18906 = vmatpush.bf16.msra.mxu2 %v30793_v40  ;;  %18875 = vmatmul.bf16.vlgmr.msrb.gmra.mxu3 %v827_v47  ;;  %v30832_v40 = vld [vmem:[%s39439_s1 + $0xff0] sm:$0xff]  ;;  %v30806_v47 = vld [vmem:[%s39439_s1 + $0xf20] sm:$0xff] }
 0x1c5   :  { %18919 = vmatpush.bf16.msra.mxu3 %v30801_v45 }
 0x1c6   :  { %18881 = vmatpush.bf16.msra.mxu0 %v30776_v48  ;;  %v18655_v3 = vpop.f32.mrf.mxu2  ;;  %v18631_v7 = vpop.f32.mrf.mxu0 }
 0x1c7   :  { %18894 = vmatpush.bf16.msra.mxu1 %v30784_v49  ;;  %v18656_v4 = vadd.f32 %v18655_v3, %v18643_v62  ;;  %v18668_v6 = vpop.f32.mrf.mxu3  ;;  %v18644_v10 = vpop.f32.mrf.mxu1  ;;  %v30814_v49 = vld [vmem:[%s39439_s1 + $0xf60] sm:$0xff]  ;;  %v30804_v62 = vld [vmem:[%s39439_s1 + $0xf10] sm:$0xff]  ;;  %v30803_v3 = vld [vmem:[%s39439_s1 + $0xf08] sm:$0xff] }
 0x1c8   :  { %18907 = vmatpush.bf16.msra.mxu2 %v30792_v50  ;;  %v30822_v50 = vld [vmem:[%s39439_s1 + $0xfa0] sm:$0xff] }
 0x1c9   :  { %18920 = vmatpush.bf16.msra.mxu3 %v30800_v51  ;;  %v34017_v8 = vadd.f32 %v18668_v6, %v18656_v4  ;;  %v50_v4 = vld [vmem:[%s39438_s0 + $0x80] sm:$0xff]  ;;  %v30819_v6 = vld [vmem:[%s39439_s1 + $0xf88] sm:$0xff] }
 0x1ca   :  { %18882 = vmatpush.bf16.msra.mxu0 %v30775_v52  ;;  %v30830_v52 = vld [vmem:[%s39439_s1 + $0xfe0] sm:$0xff]  ;;  %249 = vst [vmem:[#allocation1] ss:$4 sm:$0xff] %v50_v4  ;;  %v30873_v4 = vld [vmem:[%s39439_s1 + $0x1138] sm:$0xff] }
 0x1cb   :  { %18895 = vmatpush.bf16.msra.mxu1 %v30783_v53  ;;  %v30805_v53 = vld [vmem:[%s39439_s1 + $0xf18] sm:$0xff]  ;;  %v30802_v10 = vld [vmem:[%s39439_s1 + $0xf00] sm:$0xff] }
 0x1cc   :  { %18908 = vmatpush.bf16.msra.mxu2 %v30791_v54  ;;  %v30813_v54 = vld [vmem:[%s39439_s1 + $0xf58] sm:$0xff] }
 0x1cd   :  { %18921 = vmatpush.bf16.msra.mxu3 %v30799_v55  ;;  %v30821_v55 = vld [vmem:[%s39439_s1 + $0xf98] sm:$0xff] }
 0x1ce   :  { %18883 = vmatpush.bf16.msra.mxu0 %v30774_v58  ;;  %v18657_v18 = vpop.f32.mrf.mxu2  ;;  %v30829_v58 = vld [vmem:[%s39439_s1 + $0xfd8] sm:$0xff] }
 0x1cf   :  { %18896 = vmatpush.bf16.msra.mxu1 %v30782_v60  ;;  %v18670_v20 = vpop.f32.mrf.mxu3  ;;  %v30857_v18 = vld [vmem:[%s39439_s1 + $0x10b8] sm:$0xff] }
 0x1d0   :  { %18909 = vmatpush.bf16.msra.mxu2 %v30790_v61  ;;  %v248_v20 = vld.sshfl [vmem:[#allocation1 + $0x38] sm:$0xff pattern:$0x73625140] }
 0x1d1   :  { %18922 = vmatpush.bf16.msra.mxu3 %v30798_v63  ;;  %v835_v25 = vpack.c.bf16 %v248_v20, %v248_v20  ;;  %v30879_v20 = vld [vmem:[%s39439_s1 + $0x1168] sm:$0xff] }
 0x1d2   :  { %18884 = vmatpush.bf16.msra.mxu0 %v30773_v0  ;;  %v30812_v0 = vld [vmem:[%s39439_s1 + $0xf50] sm:$0xff] }
 0x1d3   :  { %18897 = vmatpush.bf16.msra.mxu1 %v30781_v1  ;;  %v30820_v1 = vld [vmem:[%s39439_s1 + $0xf90] sm:$0xff] }
 0x1d4   :  { %18910 = vmatpush.bf16.msra.mxu2 %v30789_v2  ;;  %v30828_v2 = vld [vmem:[%s39439_s1 + $0xfd0] sm:$0xff] }
 0x1d5   :  { %18923 = vmatpush.bf16.msra.mxu3 %v30797_v5  ;;  %v30811_v5 = vld [vmem:[%s39439_s1 + $0xf48] sm:$0xff] }
 0x1d6   :  { %18885 = vmatpush.bf16.msra.mxu0 %v30772_v9 }
 0x1d7   :  { %18898 = vmatpush.bf16.msra.mxu1 %v30780_v11  ;;  %v30810_v11 = vld [vmem:[%s39439_s1 + $0xf40] sm:$0xff] }
 0x1d8   :  { %18911 = vmatpush.bf16.msra.mxu2 %v30788_v12  ;;  %v30818_v12 = vld [vmem:[%s39439_s1 + $0xf80] sm:$0xff] }
 0x1d9   :  { %18924 = vmatpush.bf16.msra.mxu3 %v30796_v13  ;;  %v245_v13 = vld.sshfl [vmem:[#allocation1 + $0x20] sm:$0xff pattern:$0x73625140] }
 0x1da   :  { %18886 = vmatpush.bf16.msra.mxu0 %v30771_v14  ;;  %v247_v14 = vld.sshfl [vmem:[#allocation1 + $0x30] sm:$0xff pattern:$0x73625140] }
 0x1db   :  { %18899 = vmatpush.bf16.msra.mxu1 %v30779_v16  ;;  %v30849_v16 = vld [vmem:[%s39439_s1 + $0x1078] sm:$0xff] }
 0x1dc   :  { %18912 = vmatpush.bf16.msra.mxu2 %v30787_v17  ;;  %v246_v17 = vld.sshfl [vmem:[#allocation1 + $0x28] sm:$0xff pattern:$0x73625140] }
 0x1dd   :  { %18925 = vmatpush.bf16.msra.mxu3 %v30795_v19  ;;  %v30826_v19 = vld [vmem:[%s39439_s1 + $0xfc0] sm:$0xff]  ;;  %v833_v24 = vpack.c.bf16 %v246_v17, %v246_v17  ;;  %v30888_v17 = vld [vmem:[%s39439_s1 + $0x11b0] sm:$0xff] }
 0x1de   :  { %18887 = vmatpush.bf16.msra.mxu0 %v30770_v21  ;;  %v18681_v45 = vpop.f32.mrf.mxu0  ;;  %v832_v21 = vpack.c.bf16 %v245_v13, %v245_v13 }
 0x1df   :  { %18900 = vmatpush.bf16.msra.mxu1 %v30778_v22  ;;  %v18682_v46 = vadd.f32 %v18681_v45, %v34017_v8  ;;  %v18694_v48 = vpop.f32.mrf.mxu1  ;;  %v30827_v8 = vld [vmem:[%s39439_s1 + $0xfc8] sm:$0xff]  ;;  %v834_v22 = vpack.c.bf16 %v247_v14, %v247_v14 }
 0x1e0   :  { %18913 = vmatpush.bf16.msra.mxu2 %v30786_v23  ;;  %v30865_v23 = vld [vmem:[%s39439_s1 + $0x10f8] sm:$0xff] }
 0x1e1   :  { %18926 = vmatpush.bf16.msra.mxu3 %v30794_v30  ;;  %18888 = vmatmul.bf16.vlgmr.msra.gmra.mxu0 %v828_v32  ;;  %v18695_v51 = vadd.f32 %v18694_v48, %v18682_v46  ;;  %v30839_v30 = vld [vmem:[%s39439_s1 + $0x1028] sm:$0xff] }
 0x1e2   :  { %18932 = vmatpush.bf16.msrb.mxu0 %v30809_v26  ;;  %18901 = vmatmul.bf16.vlgmr.msra.gmra.mxu1 %v829_v35  ;;  %v30840_v26 = vld [vmem:[%s39439_s1 + $0x1030] sm:$0xff]  ;;  %v30855_v32 = vld [vmem:[%s39439_s1 + $0x10a8] sm:$0xff] }
 0x1e3   :  { %18945 = vmatpush.bf16.msrb.mxu1 %v30817_v27  ;;  %18914 = vmatmul.bf16.vlgmr.msra.gmra.mxu2 %v830_v33  ;;  %v30848_v27 = vld [vmem:[%s39439_s1 + $0x1070] sm:$0xff]  ;;  %v30863_v33 = vld [vmem:[%s39439_s1 + $0x10e8] sm:$0xff] }
 0x1e4   :  { %18958 = vmatpush.bf16.msrb.mxu2 %v30825_v29  ;;  %18927 = vmatmul.bf16.vlgmr.msra.gmra.mxu3 %v831_v36  ;;  %v30864_v29 = vld [vmem:[%s39439_s1 + $0x10f0] sm:$0xff]  ;;  %v30838_v36 = vld [vmem:[%s39439_s1 + $0x1020] sm:$0xff] }
 0x1e5   :  { %18971 = vmatpush.bf16.msrb.mxu3 %v30833_v34 }
 0x1e6   :  { %18933 = vmatpush.bf16.msrb.mxu0 %v30808_v37  ;;  %v18707_v56 = vpop.f32.mrf.mxu2  ;;  %v18683_v60 = vpop.f32.mrf.mxu0 }
 0x1e7   :  { %18946 = vmatpush.bf16.msrb.mxu1 %v30816_v38  ;;  %v18708_v57 = vadd.f32 %v18707_v56, %v18695_v51  ;;  %v18720_v59 = vpop.f32.mrf.mxu3  ;;  %v18696_v63 = vpop.f32.mrf.mxu1  ;;  %v30846_v38 = vld [vmem:[%s39439_s1 + $0x1060] sm:$0xff]  ;;  %v30836_v51 = vld [vmem:[%s39439_s1 + $0x1010] sm:$0xff]  ;;  %v30835_v56 = vld [vmem:[%s39439_s1 + $0x1008] sm:$0xff] }
 0x1e8   :  { %18959 = vmatpush.bf16.msrb.mxu2 %v30824_v39  ;;  %v30854_v39 = vld [vmem:[%s39439_s1 + $0x10a0] sm:$0xff] }
 0x1e9   :  { %18972 = vmatpush.bf16.msrb.mxu3 %v30832_v40  ;;  %v34119_v61 = vadd.f32 %v18720_v59, %v18708_v57  ;;  %v51_v57 = vld [vmem:[%s39438_s0 + $0x88] sm:$0xff]  ;;  %v30834_v63 = vld [vmem:[%s39439_s1 + $0x1000] sm:$0xff] }
 0x1ea   :  { %18934 = vmatpush.bf16.msrb.mxu0 %v30807_v41  ;;  %v30862_v41 = vld [vmem:[%s39439_s1 + $0x10e0] sm:$0xff]  ;;  %v30851_v59 = vld [vmem:[%s39439_s1 + $0x1088] sm:$0xff]  ;;  %250 = vst [vmem:[#allocation1 + $0x20] ss:$4 sm:$0xff] %v51_v57  ;;  %v30905_v57 = vld [vmem:[%s39439_s1 + $0x1238] sm:$0xff] }
 0x1eb   :  { %18947 = vmatpush.bf16.msrb.mxu1 %v30815_v42  ;;  %v30837_v42 = vld [vmem:[%s39439_s1 + $0x1018] sm:$0xff] }
 0x1ec   :  { %18960 = vmatpush.bf16.msrb.mxu2 %v30823_v43  ;;  %v30845_v43 = vld [vmem:[%s39439_s1 + $0x1058] sm:$0xff] }
 0x1ed   :  { %18973 = vmatpush.bf16.msrb.mxu3 %v30831_v44  ;;  %v30853_v44 = vld [vmem:[%s39439_s1 + $0x1098] sm:$0xff] }
 0x1ee   :  { %18935 = vmatpush.bf16.msrb.mxu0 %v30806_v47  ;;  %v18709_v7 = vpop.f32.mrf.mxu2  ;;  %v30861_v47 = vld [vmem:[%s39439_s1 + $0x10d8] sm:$0xff] }
 0x1ef   :  { %18948 = vmatpush.bf16.msrb.mxu1 %v30814_v49  ;;  %v18722_v9 = vpop.f32.mrf.mxu3  ;;  %v30889_v7 = vld [vmem:[%s39439_s1 + $0x11b8] sm:$0xff] }
 0x1f0   :  { %18961 = vmatpush.bf16.msrb.mxu2 %v30822_v50  ;;  %v254_v9 = vld.sshfl [vmem:[#allocation1 + $0x18] sm:$0xff pattern:$0x73625140] }
 0x1f1   :  { %18974 = vmatpush.bf16.msrb.mxu3 %v30830_v52  ;;  %v839_v14 = vpack.c.bf16 %v254_v9, %v254_v9  ;;  %v30911_v9 = vld [vmem:[%s39439_s1 + $0x1268] sm:$0xff] }
 0x1f2   :  { %18936 = vmatpush.bf16.msrb.mxu0 %v30805_v53  ;;  %v30844_v53 = vld [vmem:[%s39439_s1 + $0x1050] sm:$0xff] }
 0x1f3   :  { %18949 = vmatpush.bf16.msrb.mxu1 %v30813_v54  ;;  %v30852_v54 = vld [vmem:[%s39439_s1 + $0x1090] sm:$0xff] }
 0x1f4   :  { %18962 = vmatpush.bf16.msrb.mxu2 %v30821_v55  ;;  %v30860_v55 = vld [vmem:[%s39439_s1 + $0x10d0] sm:$0xff] }
 0x1f5   :  { %18975 = vmatpush.bf16.msrb.mxu3 %v30829_v58  ;;  %v30843_v58 = vld [vmem:[%s39439_s1 + $0x1048] sm:$0xff] }
 0x1f6   :  { %18937 = vmatpush.bf16.msrb.mxu0 %v30804_v62 }
 0x1f7   :  { %18950 = vmatpush.bf16.msrb.mxu1 %v30812_v0  ;;  %v30842_v0 = vld [vmem:[%s39439_s1 + $0x1040] sm:$0xff] }
 0x1f8   :  { %18963 = vmatpush.bf16.msrb.mxu2 %v30820_v1  ;;  %v30850_v1 = vld [vmem:[%s39439_s1 + $0x1080] sm:$0xff] }
 0x1f9   :  { %18976 = vmatpush.bf16.msrb.mxu3 %v30828_v2  ;;  %v251_v2 = vld.sshfl [vmem:[#allocation1] sm:$0xff pattern:$0x73625140] }
 0x1fa   :  { %18938 = vmatpush.bf16.msrb.mxu0 %v30803_v3  ;;  %v253_v3 = vld.sshfl [vmem:[#allocation1 + $0x10] sm:$0xff pattern:$0x73625140] }
 0x1fb   :  { %18951 = vmatpush.bf16.msrb.mxu1 %v30811_v5  ;;  %v30881_v5 = vld [vmem:[%s39439_s1 + $0x1178] sm:$0xff] }
 0x1fc   :  { %18964 = vmatpush.bf16.msrb.mxu2 %v30819_v6  ;;  %v252_v6 = vld.sshfl [vmem:[#allocation1 + $0x8] sm:$0xff pattern:$0x73625140] }
 0x1fd   :  { %18977 = vmatpush.bf16.msrb.mxu3 %v30827_v8  ;;  %v30858_v8 = vld [vmem:[%s39439_s1 + $0x10c0] sm:$0xff]  ;;  %v837_v13 = vpack.c.bf16 %v252_v6, %v252_v6  ;;  %v30920_v6 = vld [vmem:[%s39439_s1 + $0x12b0] sm:$0xff] }
 0x1fe   :  { %18939 = vmatpush.bf16.msrb.mxu0 %v30802_v10  ;;  %v18733_v34 = vpop.f32.mrf.mxu0  ;;  %v836_v10 = vpack.c.bf16 %v251_v2, %v251_v2 }
 0x1ff   :  { %18952 = vmatpush.bf16.msrb.mxu1 %v30810_v11  ;;  %v18734_v35 = vadd.f32 %v18733_v34, %v34119_v61  ;;  %v18746_v37 = vpop.f32.mrf.mxu1  ;;  %v30859_v61 = vld [vmem:[%s39439_s1 + $0x10c8] sm:$0xff]  ;;  %v838_v11 = vpack.c.bf16 %v253_v3, %v253_v3 }
 0x200   :  { %18965 = vmatpush.bf16.msrb.mxu2 %v30818_v12  ;;  %v30897_v12 = vld [vmem:[%s39439_s1 + $0x11f8] sm:$0xff] }
 0x201   :  { %18978 = vmatpush.bf16.msrb.mxu3 %v30826_v19  ;;  %18940 = vmatmul.bf16.vlgmr.msrb.gmra.mxu0 %v832_v21  ;;  %v18747_v40 = vadd.f32 %v18746_v37, %v18734_v35  ;;  %v30871_v19 = vld [vmem:[%s39439_s1 + $0x1128] sm:$0xff] }
 0x202   :  { %18984 = vmatpush.bf16.msra.mxu0 %v30841_v15  ;;  %18953 = vmatmul.bf16.vlgmr.msrb.gmra.mxu1 %v833_v24  ;;  %v30872_v15 = vld [vmem:[%s39439_s1 + $0x1130] sm:$0xff]  ;;  %v30887_v21 = vld [vmem:[%s39439_s1 + $0x11a8] sm:$0xff] }
 0x203   :  { %18997 = vmatpush.bf16.msra.mxu1 %v30849_v16  ;;  %18966 = vmatmul.bf16.vlgmr.msrb.gmra.mxu2 %v834_v22  ;;  %v30880_v16 = vld [vmem:[%s39439_s1 + $0x1170] sm:$0xff]  ;;  %v30895_v22 = vld [vmem:[%s39439_s1 + $0x11e8] sm:$0xff] }
 0x204   :  { %19010 = vmatpush.bf16.msra.mxu2 %v30857_v18  ;;  %18979 = vmatmul.bf16.vlgmr.msrb.gmra.mxu3 %v835_v25  ;;  %v30896_v18 = vld [vmem:[%s39439_s1 + $0x11f0] sm:$0xff]  ;;  %v30870_v25 = vld [vmem:[%s39439_s1 + $0x1120] sm:$0xff] }
 0x205   :  { %19023 = vmatpush.bf16.msra.mxu3 %v30865_v23 }
 0x206   :  { %18985 = vmatpush.bf16.msra.mxu0 %v30840_v26  ;;  %v18759_v45 = vpop.f32.mrf.mxu2  ;;  %v18735_v49 = vpop.f32.mrf.mxu0 }
 0x207   :  { %18998 = vmatpush.bf16.msra.mxu1 %v30848_v27  ;;  %v18760_v46 = vadd.f32 %v18759_v45, %v18747_v40  ;;  %v18772_v48 = vpop.f32.mrf.mxu3  ;;  %v18748_v52 = vpop.f32.mrf.mxu1  ;;  %v30878_v27 = vld [vmem:[%s39439_s1 + $0x1160] sm:$0xff]  ;;  %v30868_v40 = vld [vmem:[%s39439_s1 + $0x1110] sm:$0xff]  ;;  %v30867_v45 = vld [vmem:[%s39439_s1 + $0x1108] sm:$0xff] }
 0x208   :  { %19011 = vmatpush.bf16.msra.mxu2 %v30856_v28  ;;  %v30886_v28 = vld [vmem:[%s39439_s1 + $0x11a0] sm:$0xff] }
 0x209   :  { %19024 = vmatpush.bf16.msra.mxu3 %v30864_v29  ;;  %v34221_v50 = vadd.f32 %v18772_v48, %v18760_v46  ;;  %v52_v46 = vld [vmem:[%s39438_s0 + $0x90] sm:$0xff]  ;;  %v30883_v48 = vld [vmem:[%s39439_s1 + $0x1188] sm:$0xff]  ;;  %v30866_v52 = vld [vmem:[%s39439_s1 + $0x1100] sm:$0xff] }
 0x20a   :  { %18986 = vmatpush.bf16.msra.mxu0 %v30839_v30  ;;  %v30894_v30 = vld [vmem:[%s39439_s1 + $0x11e0] sm:$0xff]  ;;  %259 = vst [vmem:[#allocation1] ss:$4 sm:$0xff] %v52_v46  ;;  %v30937_v46 = vld [vmem:[%s39439_s1 + $0x1338] sm:$0xff] }
 0x20b   :  { %18999 = vmatpush.bf16.msra.mxu1 %v30847_v31  ;;  %v30869_v31 = vld [vmem:[%s39439_s1 + $0x1118] sm:$0xff] }
 0x20c   :  { %19012 = vmatpush.bf16.msra.mxu2 %v30855_v32  ;;  %v30877_v32 = vld [vmem:[%s39439_s1 + $0x1158] sm:$0xff] }
 0x20d   :  { %19025 = vmatpush.bf16.msra.mxu3 %v30863_v33  ;;  %v30885_v33 = vld [vmem:[%s39439_s1 + $0x1198] sm:$0xff] }
 0x20e   :  { %18987 = vmatpush.bf16.msra.mxu0 %v30838_v36  ;;  %v18761_v60 = vpop.f32.mrf.mxu2  ;;  %v30893_v36 = vld [vmem:[%s39439_s1 + $0x11d8] sm:$0xff] }
 0x20f   :  { %19000 = vmatpush.bf16.msra.mxu1 %v30846_v38  ;;  %v18774_v62 = vpop.f32.mrf.mxu3  ;;  %v30921_v60 = vld [vmem:[%s39439_s1 + $0x12b8] sm:$0xff] }
 0x210   :  { %19013 = vmatpush.bf16.msra.mxu2 %v30854_v39  ;;  %v258_v62 = vld.sshfl [vmem:[#allocation1 + $0x38] sm:$0xff pattern:$0x73625140] }
 0x211   :  { %19026 = vmatpush.bf16.msra.mxu3 %v30862_v41  ;;  %v843_v3 = vpack.c.bf16 %v258_v62, %v258_v62  ;;  %v30943_v62 = vld [vmem:[%s39439_s1 + $0x1368] sm:$0xff] }
 0x212   :  { %18988 = vmatpush.bf16.msra.mxu0 %v30837_v42  ;;  %v30876_v42 = vld [vmem:[%s39439_s1 + $0x1150] sm:$0xff] }
 0x213   :  { %19001 = vmatpush.bf16.msra.mxu1 %v30845_v43  ;;  %v30884_v43 = vld [vmem:[%s39439_s1 + $0x1190] sm:$0xff] }
 0x214   :  { %19014 = vmatpush.bf16.msra.mxu2 %v30853_v44  ;;  %v30892_v44 = vld [vmem:[%s39439_s1 + $0x11d0] sm:$0xff] }
 0x215   :  { %19027 = vmatpush.bf16.msra.mxu3 %v30861_v47  ;;  %v30875_v47 = vld [vmem:[%s39439_s1 + $0x1148] sm:$0xff] }
 0x216   :  { %18989 = vmatpush.bf16.msra.mxu0 %v30836_v51 }
 0x217   :  { %19002 = vmatpush.bf16.msra.mxu1 %v30844_v53  ;;  %v30874_v53 = vld [vmem:[%s39439_s1 + $0x1140] sm:$0xff] }
 0x218   :  { %19015 = vmatpush.bf16.msra.mxu2 %v30852_v54  ;;  %v30882_v54 = vld [vmem:[%s39439_s1 + $0x1180] sm:$0xff] }
 0x219   :  { %19028 = vmatpush.bf16.msra.mxu3 %v30860_v55  ;;  %v255_v55 = vld.sshfl [vmem:[#allocation1 + $0x20] sm:$0xff pattern:$0x73625140] }
 0x21a   :  { %18990 = vmatpush.bf16.msra.mxu0 %v30835_v56  ;;  %v257_v56 = vld.sshfl [vmem:[#allocation1 + $0x30] sm:$0xff pattern:$0x73625140] }
 0x21b   :  { %19003 = vmatpush.bf16.msra.mxu1 %v30843_v58  ;;  %v30913_v58 = vld [vmem:[%s39439_s1 + $0x1278] sm:$0xff] }
 0x21c   :  { %19016 = vmatpush.bf16.msra.mxu2 %v30851_v59  ;;  %v256_v59 = vld.sshfl [vmem:[#allocation1 + $0x28] sm:$0xff pattern:$0x73625140] }
 0x21d   :  { %19029 = vmatpush.bf16.msra.mxu3 %v30859_v61  ;;  %v30890_v61 = vld [vmem:[%s39439_s1 + $0x11c0] sm:$0xff]  ;;  %v841_v2 = vpack.c.bf16 %v256_v59, %v256_v59  ;;  %v30952_v59 = vld [vmem:[%s39439_s1 + $0x13b0] sm:$0xff] }
 0x21e   :  { %18991 = vmatpush.bf16.msra.mxu0 %v30834_v63  ;;  %v18785_v23 = vpop.f32.mrf.mxu0  ;;  %v840_v63 = vpack.c.bf16 %v255_v55, %v255_v55 }
 0x21f   :  { %19004 = vmatpush.bf16.msra.mxu1 %v30842_v0  ;;  %v18786_v24 = vadd.f32 %v18785_v23, %v34221_v50  ;;  %v18798_v26 = vpop.f32.mrf.mxu1  ;;  %v30891_v50 = vld [vmem:[%s39439_s1 + $0x11c8] sm:$0xff]  ;;  %v842_v0 = vpack.c.bf16 %v257_v56, %v257_v56 }
 0x220   :  { %19017 = vmatpush.bf16.msra.mxu2 %v30850_v1  ;;  %v30929_v1 = vld [vmem:[%s39439_s1 + $0x12f8] sm:$0xff] }
 0x221   :  { %19030 = vmatpush.bf16.msra.mxu3 %v30858_v8  ;;  %18992 = vmatmul.bf16.vlgmr.msra.gmra.mxu0 %v836_v10  ;;  %v18799_v29 = vadd.f32 %v18798_v26, %v18786_v24  ;;  %v30903_v8 = vld [vmem:[%s39439_s1 + $0x1228] sm:$0xff] }
 0x222   :  { %19036 = vmatpush.bf16.msrb.mxu0 %v30873_v4  ;;  %19005 = vmatmul.bf16.vlgmr.msra.gmra.mxu1 %v837_v13  ;;  %v30904_v4 = vld [vmem:[%s39439_s1 + $0x1230] sm:$0xff]  ;;  %v30919_v10 = vld [vmem:[%s39439_s1 + $0x12a8] sm:$0xff] }
 0x223   :  { %19049 = vmatpush.bf16.msrb.mxu1 %v30881_v5  ;;  %19018 = vmatmul.bf16.vlgmr.msra.gmra.mxu2 %v838_v11  ;;  %v30912_v5 = vld [vmem:[%s39439_s1 + $0x1270] sm:$0xff]  ;;  %v30927_v11 = vld [vmem:[%s39439_s1 + $0x12e8] sm:$0xff] }
 0x224   :  { %19062 = vmatpush.bf16.msrb.mxu2 %v30889_v7  ;;  %19031 = vmatmul.bf16.vlgmr.msra.gmra.mxu3 %v839_v14  ;;  %v30928_v7 = vld [vmem:[%s39439_s1 + $0x12f0] sm:$0xff]  ;;  %v30902_v14 = vld [vmem:[%s39439_s1 + $0x1220] sm:$0xff] }
 0x225   :  { %19075 = vmatpush.bf16.msrb.mxu3 %v30897_v12 }
 0x226   :  { %19037 = vmatpush.bf16.msrb.mxu0 %v30872_v15  ;;  %v18811_v34 = vpop.f32.mrf.mxu2  ;;  %v18787_v38 = vpop.f32.mrf.mxu0 }
 0x227   :  { %19050 = vmatpush.bf16.msrb.mxu1 %v30880_v16  ;;  %v18812_v35 = vadd.f32 %v18811_v34, %v18799_v29  ;;  %v18824_v37 = vpop.f32.mrf.mxu3  ;;  %v18800_v41 = vpop.f32.mrf.mxu1  ;;  %v30910_v16 = vld [vmem:[%s39439_s1 + $0x1260] sm:$0xff]  ;;  %v30900_v29 = vld [vmem:[%s39439_s1 + $0x1210] sm:$0xff]  ;;  %v30899_v34 = vld [vmem:[%s39439_s1 + $0x1208] sm:$0xff] }
 0x228   :  { %19063 = vmatpush.bf16.msrb.mxu2 %v30888_v17  ;;  %v30918_v17 = vld [vmem:[%s39439_s1 + $0x12a0] sm:$0xff] }
 0x229   :  { %19076 = vmatpush.bf16.msrb.mxu3 %v30896_v18  ;;  %v34323_v39 = vadd.f32 %v18824_v37, %v18812_v35  ;;  %v53_v35 = vld [vmem:[%s39438_s0 + $0x98] sm:$0xff]  ;;  %v30915_v37 = vld [vmem:[%s39439_s1 + $0x1288] sm:$0xff]  ;;  %v30898_v41 = vld [vmem:[%s39439_s1 + $0x1200] sm:$0xff] }
 0x22a   :  { %19038 = vmatpush.bf16.msrb.mxu0 %v30871_v19  ;;  %v30926_v19 = vld [vmem:[%s39439_s1 + $0x12e0] sm:$0xff]  ;;  %260 = vst [vmem:[#allocation1 + $0x20] ss:$4 sm:$0xff] %v53_v35  ;;  %v30969_v35 = vld [vmem:[%s39439_s1 + $0x1438] sm:$0xff] }
 0x22b   :  { %19051 = vmatpush.bf16.msrb.mxu1 %v30879_v20  ;;  %v30901_v20 = vld [vmem:[%s39439_s1 + $0x1218] sm:$0xff] }
 0x22c   :  { %19064 = vmatpush.bf16.msrb.mxu2 %v30887_v21  ;;  %v30909_v21 = vld [vmem:[%s39439_s1 + $0x1258] sm:$0xff] }
 0x22d   :  { %19077 = vmatpush.bf16.msrb.mxu3 %v30895_v22  ;;  %v30917_v22 = vld [vmem:[%s39439_s1 + $0x1298] sm:$0xff] }
 0x22e   :  { %19039 = vmatpush.bf16.msrb.mxu0 %v30870_v25  ;;  %v18813_v49 = vpop.f32.mrf.mxu2  ;;  %v30925_v25 = vld [vmem:[%s39439_s1 + $0x12d8] sm:$0xff] }
 0x22f   :  { %19052 = vmatpush.bf16.msrb.mxu1 %v30878_v27  ;;  %v18826_v51 = vpop.f32.mrf.mxu3  ;;  %v30953_v49 = vld [vmem:[%s39439_s1 + $0x13b8] sm:$0xff] }
 0x230   :  { %19065 = vmatpush.bf16.msrb.mxu2 %v30886_v28  ;;  %v264_v51 = vld.sshfl [vmem:[#allocation1 + $0x18] sm:$0xff pattern:$0x73625140] }
 0x231   :  { %19078 = vmatpush.bf16.msrb.mxu3 %v30894_v30  ;;  %v847_v56 = vpack.c.bf16 %v264_v51, %v264_v51  ;;  %v30975_v51 = vld [vmem:[%s39439_s1 + $0x1468] sm:$0xff] }
 0x232   :  { %19040 = vmatpush.bf16.msrb.mxu0 %v30869_v31  ;;  %v30908_v31 = vld [vmem:[%s39439_s1 + $0x1250] sm:$0xff] }
 0x233   :  { %19053 = vmatpush.bf16.msrb.mxu1 %v30877_v32  ;;  %v30916_v32 = vld [vmem:[%s39439_s1 + $0x1290] sm:$0xff] }
 0x234   :  { %19066 = vmatpush.bf16.msrb.mxu2 %v30885_v33  ;;  %v30924_v33 = vld [vmem:[%s39439_s1 + $0x12d0] sm:$0xff] }
 0x235   :  { %19079 = vmatpush.bf16.msrb.mxu3 %v30893_v36  ;;  %v30907_v36 = vld [vmem:[%s39439_s1 + $0x1248] sm:$0xff] }
 0x236   :  { %19041 = vmatpush.bf16.msrb.mxu0 %v30868_v40 }
 0x237   :  { %19054 = vmatpush.bf16.msrb.mxu1 %v30876_v42  ;;  %v30906_v42 = vld [vmem:[%s39439_s1 + $0x1240] sm:$0xff] }
 0x238   :  { %19067 = vmatpush.bf16.msrb.mxu2 %v30884_v43  ;;  %v30914_v43 = vld [vmem:[%s39439_s1 + $0x1280] sm:$0xff] }
 0x239   :  { %19080 = vmatpush.bf16.msrb.mxu3 %v30892_v44  ;;  %v261_v44 = vld.sshfl [vmem:[#allocation1] sm:$0xff pattern:$0x73625140] }
 0x23a   :  { %19042 = vmatpush.bf16.msrb.mxu0 %v30867_v45  ;;  %v263_v45 = vld.sshfl [vmem:[#allocation1 + $0x10] sm:$0xff pattern:$0x73625140] }
 0x23b   :  { %19055 = vmatpush.bf16.msrb.mxu1 %v30875_v47  ;;  %v30945_v47 = vld [vmem:[%s39439_s1 + $0x1378] sm:$0xff] }
 0x23c   :  { %19068 = vmatpush.bf16.msrb.mxu2 %v30883_v48  ;;  %v262_v48 = vld.sshfl [vmem:[#allocation1 + $0x8] sm:$0xff pattern:$0x73625140] }
 0x23d   :  { %19081 = vmatpush.bf16.msrb.mxu3 %v30891_v50  ;;  %v30922_v50 = vld [vmem:[%s39439_s1 + $0x12c0] sm:$0xff]  ;;  %v845_v55 = vpack.c.bf16 %v262_v48, %v262_v48  ;;  %v30984_v48 = vld [vmem:[%s39439_s1 + $0x14b0] sm:$0xff] }
 0x23e   :  { %19043 = vmatpush.bf16.msrb.mxu0 %v30866_v52  ;;  %v18837_v12 = vpop.f32.mrf.mxu0  ;;  %v844_v52 = vpack.c.bf16 %v261_v44, %v261_v44 }
 0x23f   :  { %19056 = vmatpush.bf16.msrb.mxu1 %v30874_v53  ;;  %v18838_v13 = vadd.f32 %v18837_v12, %v34323_v39  ;;  %v18850_v15 = vpop.f32.mrf.mxu1  ;;  %v30923_v39 = vld [vmem:[%s39439_s1 + $0x12c8] sm:$0xff]  ;;  %v846_v53 = vpack.c.bf16 %v263_v45, %v263_v45 }
 0x240   :  { %19069 = vmatpush.bf16.msrb.mxu2 %v30882_v54  ;;  %v30961_v54 = vld [vmem:[%s39439_s1 + $0x13f8] sm:$0xff] }
 0x241   :  { %19082 = vmatpush.bf16.msrb.mxu3 %v30890_v61  ;;  %19044 = vmatmul.bf16.vlgmr.msrb.gmra.mxu0 %v840_v63  ;;  %v18851_v18 = vadd.f32 %v18850_v15, %v18838_v13  ;;  %v30935_v61 = vld [vmem:[%s39439_s1 + $0x1328] sm:$0xff] }
 0x242   :  { %19088 = vmatpush.bf16.msra.mxu0 %v30905_v57  ;;  %19057 = vmatmul.bf16.vlgmr.msrb.gmra.mxu1 %v841_v2  ;;  %v30936_v57 = vld [vmem:[%s39439_s1 + $0x1330] sm:$0xff]  ;;  %v30951_v63 = vld [vmem:[%s39439_s1 + $0x13a8] sm:$0xff] }
 0x243   :  { %19101 = vmatpush.bf16.msra.mxu1 %v30913_v58  ;;  %19070 = vmatmul.bf16.vlgmr.msrb.gmra.mxu2 %v842_v0  ;;  %v30944_v58 = vld [vmem:[%s39439_s1 + $0x1370] sm:$0xff]  ;;  %v30959_v0 = vld [vmem:[%s39439_s1 + $0x13e8] sm:$0xff] }
 0x244   :  { %19114 = vmatpush.bf16.msra.mxu2 %v30921_v60  ;;  %19083 = vmatmul.bf16.vlgmr.msrb.gmra.mxu3 %v843_v3  ;;  %v30960_v60 = vld [vmem:[%s39439_s1 + $0x13f0] sm:$0xff]  ;;  %v30934_v3 = vld [vmem:[%s39439_s1 + $0x1320] sm:$0xff] }
 0x245   :  { %19127 = vmatpush.bf16.msra.mxu3 %v30929_v1 }
 0x246   :  { %19089 = vmatpush.bf16.msra.mxu0 %v30904_v4  ;;  %v18863_v23 = vpop.f32.mrf.mxu2  ;;  %v18839_v27 = vpop.f32.mrf.mxu0 }
 0x247   :  { %19102 = vmatpush.bf16.msra.mxu1 %v30912_v5  ;;  %v18864_v24 = vadd.f32 %v18863_v23, %v18851_v18  ;;  %v18876_v26 = vpop.f32.mrf.mxu3  ;;  %v18852_v30 = vpop.f32.mrf.mxu1  ;;  %v30942_v5 = vld [vmem:[%s39439_s1 + $0x1360] sm:$0xff]  ;;  %v30932_v18 = vld [vmem:[%s39439_s1 + $0x1310] sm:$0xff]  ;;  %v30931_v23 = vld [vmem:[%s39439_s1 + $0x1308] sm:$0xff] }
 0x248   :  { %19115 = vmatpush.bf16.msra.mxu2 %v30920_v6  ;;  %v30950_v6 = vld [vmem:[%s39439_s1 + $0x13a0] sm:$0xff] }
 0x249   :  { %19128 = vmatpush.bf16.msra.mxu3 %v30928_v7  ;;  %v34425_v28 = vadd.f32 %v18876_v26, %v18864_v24  ;;  %v54_v24 = vld [vmem:[%s39438_s0 + $0xa0] sm:$0xff]  ;;  %v30947_v26 = vld [vmem:[%s39439_s1 + $0x1388] sm:$0xff] }
 0x24a   :  { %19090 = vmatpush.bf16.msra.mxu0 %v30903_v8  ;;  %v30958_v8 = vld [vmem:[%s39439_s1 + $0x13e0] sm:$0xff]  ;;  %269 = vst [vmem:[#allocation1] ss:$4 sm:$0xff] %v54_v24  ;;  %v31001_v24 = vld [vmem:[%s39439_s1 + $0x1538] sm:$0xff] }
 0x24b   :  { %19103 = vmatpush.bf16.msra.mxu1 %v30911_v9  ;;  %v30933_v9 = vld [vmem:[%s39439_s1 + $0x1318] sm:$0xff]  ;;  %v30930_v30 = vld [vmem:[%s39439_s1 + $0x1300] sm:$0xff] }
 0x24c   :  { %19116 = vmatpush.bf16.msra.mxu2 %v30919_v10  ;;  %v30941_v10 = vld [vmem:[%s39439_s1 + $0x1358] sm:$0xff] }
 0x24d   :  { %19129 = vmatpush.bf16.msra.mxu3 %v30927_v11  ;;  %v30949_v11 = vld [vmem:[%s39439_s1 + $0x1398] sm:$0xff] }
 0x24e   :  { %19091 = vmatpush.bf16.msra.mxu0 %v30902_v14  ;;  %v18865_v38 = vpop.f32.mrf.mxu2  ;;  %v30957_v14 = vld [vmem:[%s39439_s1 + $0x13d8] sm:$0xff] }
 0x24f   :  { %19104 = vmatpush.bf16.msra.mxu1 %v30910_v16  ;;  %v18878_v40 = vpop.f32.mrf.mxu3  ;;  %v30985_v38 = vld [vmem:[%s39439_s1 + $0x14b8] sm:$0xff] }
 0x250   :  { %19117 = vmatpush.bf16.msra.mxu2 %v30918_v17  ;;  %v268_v40 = vld.sshfl [vmem:[#allocation1 + $0x38] sm:$0xff pattern:$0x73625140] }
 0x251   :  { %19130 = vmatpush.bf16.msra.mxu3 %v30926_v19  ;;  %v851_v45 = vpack.c.bf16 %v268_v40, %v268_v40  ;;  %v31007_v40 = vld [vmem:[%s39439_s1 + $0x1568] sm:$0xff] }
 0x252   :  { %19092 = vmatpush.bf16.msra.mxu0 %v30901_v20  ;;  %v30940_v20 = vld [vmem:[%s39439_s1 + $0x1350] sm:$0xff] }
 0x253   :  { %19105 = vmatpush.bf16.msra.mxu1 %v30909_v21  ;;  %v30948_v21 = vld [vmem:[%s39439_s1 + $0x1390] sm:$0xff] }
 0x254   :  { %19118 = vmatpush.bf16.msra.mxu2 %v30917_v22  ;;  %v30956_v22 = vld [vmem:[%s39439_s1 + $0x13d0] sm:$0xff] }
 0x255   :  { %19131 = vmatpush.bf16.msra.mxu3 %v30925_v25  ;;  %v30939_v25 = vld [vmem:[%s39439_s1 + $0x1348] sm:$0xff] }
 0x256   :  { %19093 = vmatpush.bf16.msra.mxu0 %v30900_v29 }
 0x257   :  { %19106 = vmatpush.bf16.msra.mxu1 %v30908_v31  ;;  %v30938_v31 = vld [vmem:[%s39439_s1 + $0x1340] sm:$0xff] }
 0x258   :  { %19119 = vmatpush.bf16.msra.mxu2 %v30916_v32  ;;  %v30946_v32 = vld [vmem:[%s39439_s1 + $0x1380] sm:$0xff] }
 0x259   :  { %19132 = vmatpush.bf16.msra.mxu3 %v30924_v33  ;;  %v265_v33 = vld.sshfl [vmem:[#allocation1 + $0x20] sm:$0xff pattern:$0x73625140] }
 0x25a   :  { %19094 = vmatpush.bf16.msra.mxu0 %v30899_v34  ;;  %v267_v34 = vld.sshfl [vmem:[#allocation1 + $0x30] sm:$0xff pattern:$0x73625140] }
 0x25b   :  { %19107 = vmatpush.bf16.msra.mxu1 %v30907_v36  ;;  %v30977_v36 = vld [vmem:[%s39439_s1 + $0x1478] sm:$0xff] }
 0x25c   :  { %19120 = vmatpush.bf16.msra.mxu2 %v30915_v37  ;;  %v266_v37 = vld.sshfl [vmem:[#allocation1 + $0x28] sm:$0xff pattern:$0x73625140] }
 0x25d   :  { %19133 = vmatpush.bf16.msra.mxu3 %v30923_v39  ;;  %v30954_v39 = vld [vmem:[%s39439_s1 + $0x13c0] sm:$0xff]  ;;  %v849_v44 = vpack.c.bf16 %v266_v37, %v266_v37  ;;  %v31016_v37 = vld [vmem:[%s39439_s1 + $0x15b0] sm:$0xff] }
 0x25e   :  { %19095 = vmatpush.bf16.msra.mxu0 %v30898_v41  ;;  %v18889_v1 = vpop.f32.mrf.mxu0  ;;  %v848_v41 = vpack.c.bf16 %v265_v33, %v265_v33 }
 0x25f   :  { %19108 = vmatpush.bf16.msra.mxu1 %v30906_v42  ;;  %v18890_v2 = vadd.f32 %v18889_v1, %v34425_v28  ;;  %v18902_v4 = vpop.f32.mrf.mxu1  ;;  %v30955_v28 = vld [vmem:[%s39439_s1 + $0x13c8] sm:$0xff]  ;;  %v850_v42 = vpack.c.bf16 %v267_v34, %v267_v34 }
 0x260   :  { %19121 = vmatpush.bf16.msra.mxu2 %v30914_v43  ;;  %v30993_v43 = vld [vmem:[%s39439_s1 + $0x14f8] sm:$0xff] }
 0x261   :  { %19134 = vmatpush.bf16.msra.mxu3 %v30922_v50  ;;  %19096 = vmatmul.bf16.vlgmr.msra.gmra.mxu0 %v844_v52  ;;  %v18903_v7 = vadd.f32 %v18902_v4, %v18890_v2  ;;  %v30967_v50 = vld [vmem:[%s39439_s1 + $0x1428] sm:$0xff] }
 0x262   :  { %19140 = vmatpush.bf16.msrb.mxu0 %v30937_v46  ;;  %19109 = vmatmul.bf16.vlgmr.msra.gmra.mxu1 %v845_v55  ;;  %v30968_v46 = vld [vmem:[%s39439_s1 + $0x1430] sm:$0xff]  ;;  %v30983_v52 = vld [vmem:[%s39439_s1 + $0x14a8] sm:$0xff] }
 0x263   :  { %19153 = vmatpush.bf16.msrb.mxu1 %v30945_v47  ;;  %19122 = vmatmul.bf16.vlgmr.msra.gmra.mxu2 %v846_v53  ;;  %v30976_v47 = vld [vmem:[%s39439_s1 + $0x1470] sm:$0xff]  ;;  %v30991_v53 = vld [vmem:[%s39439_s1 + $0x14e8] sm:$0xff] }
 0x264   :  { %19166 = vmatpush.bf16.msrb.mxu2 %v30953_v49  ;;  %19135 = vmatmul.bf16.vlgmr.msra.gmra.mxu3 %v847_v56  ;;  %v30992_v49 = vld [vmem:[%s39439_s1 + $0x14f0] sm:$0xff]  ;;  %v30966_v56 = vld [vmem:[%s39439_s1 + $0x1420] sm:$0xff] }
 0x265   :  { %19179 = vmatpush.bf16.msrb.mxu3 %v30961_v54 }
 0x266   :  { %19141 = vmatpush.bf16.msrb.mxu0 %v30936_v57  ;;  %v18915_v12 = vpop.f32.mrf.mxu2  ;;  %v18891_v16 = vpop.f32.mrf.mxu0 }
 0x267   :  { %19154 = vmatpush.bf16.msrb.mxu1 %v30944_v58  ;;  %v18916_v13 = vadd.f32 %v18915_v12, %v18903_v7  ;;  %v18928_v15 = vpop.f32.mrf.mxu3  ;;  %v18904_v19 = vpop.f32.mrf.mxu1  ;;  %v30974_v58 = vld [vmem:[%s39439_s1 + $0x1460] sm:$0xff]  ;;  %v30964_v7 = vld [vmem:[%s39439_s1 + $0x1410] sm:$0xff]  ;;  %v30963_v12 = vld [vmem:[%s39439_s1 + $0x1408] sm:$0xff] }
 0x268   :  { %19167 = vmatpush.bf16.msrb.mxu2 %v30952_v59  ;;  %v30982_v59 = vld [vmem:[%s39439_s1 + $0x14a0] sm:$0xff] }
 0x269   :  { %19180 = vmatpush.bf16.msrb.mxu3 %v30960_v60  ;;  %v34527_v17 = vadd.f32 %v18928_v15, %v18916_v13  ;;  %v55_v13 = vld [vmem:[%s39438_s0 + $0xa8] sm:$0xff]  ;;  %v30962_v19 = vld [vmem:[%s39439_s1 + $0x1400] sm:$0xff] }
 0x26a   :  { %19142 = vmatpush.bf16.msrb.mxu0 %v30935_v61  ;;  %v30990_v61 = vld [vmem:[%s39439_s1 + $0x14e0] sm:$0xff]  ;;  %v30979_v15 = vld [vmem:[%s39439_s1 + $0x1488] sm:$0xff]  ;;  %270 = vst [vmem:[#allocation1 + $0x20] ss:$4 sm:$0xff] %v55_v13  ;;  %v31033_v13 = vld [vmem:[%s39439_s1 + $0x1638] sm:$0xff] }
 0x26b   :  { %19155 = vmatpush.bf16.msrb.mxu1 %v30943_v62  ;;  %v30965_v62 = vld [vmem:[%s39439_s1 + $0x1418] sm:$0xff] }
 0x26c   :  { %19168 = vmatpush.bf16.msrb.mxu2 %v30951_v63  ;;  %v30973_v63 = vld [vmem:[%s39439_s1 + $0x1458] sm:$0xff] }
 0x26d   :  { %19181 = vmatpush.bf16.msrb.mxu3 %v30959_v0  ;;  %v30981_v0 = vld [vmem:[%s39439_s1 + $0x1498] sm:$0xff] }
 0x26e   :  { %19143 = vmatpush.bf16.msrb.mxu0 %v30934_v3  ;;  %v18917_v27 = vpop.f32.mrf.mxu2  ;;  %v30989_v3 = vld [vmem:[%s39439_s1 + $0x14d8] sm:$0xff] }
 0x26f   :  { %19156 = vmatpush.bf16.msrb.mxu1 %v30942_v5  ;;  %v18930_v29 = vpop.f32.mrf.mxu3  ;;  %v31017_v27 = vld [vmem:[%s39439_s1 + $0x15b8] sm:$0xff] }
 0x270   :  { %19169 = vmatpush.bf16.msrb.mxu2 %v30950_v6  ;;  %v274_v29 = vld.sshfl [vmem:[#allocation1 + $0x18] sm:$0xff pattern:$0x73625140] }
 0x271   :  { %19182 = vmatpush.bf16.msrb.mxu3 %v30958_v8  ;;  %v855_v34 = vpack.c.bf16 %v274_v29, %v274_v29  ;;  %v31039_v29 = vld [vmem:[%s39439_s1 + $0x1668] sm:$0xff] }
 0x272   :  { %19144 = vmatpush.bf16.msrb.mxu0 %v30933_v9  ;;  %v30972_v9 = vld [vmem:[%s39439_s1 + $0x1450] sm:$0xff] }
 0x273   :  { %19157 = vmatpush.bf16.msrb.mxu1 %v30941_v10  ;;  %v30980_v10 = vld [vmem:[%s39439_s1 + $0x1490] sm:$0xff] }
 0x274   :  { %19170 = vmatpush.bf16.msrb.mxu2 %v30949_v11  ;;  %v30988_v11 = vld [vmem:[%s39439_s1 + $0x14d0] sm:$0xff] }
 0x275   :  { %19183 = vmatpush.bf16.msrb.mxu3 %v30957_v14  ;;  %v30971_v14 = vld [vmem:[%s39439_s1 + $0x1448] sm:$0xff] }
 0x276   :  { %19145 = vmatpush.bf16.msrb.mxu0 %v30932_v18 }
 0x277   :  { %19158 = vmatpush.bf16.msrb.mxu1 %v30940_v20  ;;  %v30970_v20 = vld [vmem:[%s39439_s1 + $0x1440] sm:$0xff] }
 0x278   :  { %19171 = vmatpush.bf16.msrb.mxu2 %v30948_v21  ;;  %v30978_v21 = vld [vmem:[%s39439_s1 + $0x1480] sm:$0xff] }
 0x279   :  { %19184 = vmatpush.bf16.msrb.mxu3 %v30956_v22  ;;  %v271_v22 = vld.sshfl [vmem:[#allocation1] sm:$0xff pattern:$0x73625140] }
 0x27a   :  { %19146 = vmatpush.bf16.msrb.mxu0 %v30931_v23  ;;  %v273_v23 = vld.sshfl [vmem:[#allocation1 + $0x10] sm:$0xff pattern:$0x73625140] }
 0x27b   :  { %19159 = vmatpush.bf16.msrb.mxu1 %v30939_v25  ;;  %v31009_v25 = vld [vmem:[%s39439_s1 + $0x1578] sm:$0xff] }
 0x27c   :  { %19172 = vmatpush.bf16.msrb.mxu2 %v30947_v26  ;;  %v272_v26 = vld.sshfl [vmem:[#allocation1 + $0x8] sm:$0xff pattern:$0x73625140] }
 0x27d   :  { %19185 = vmatpush.bf16.msrb.mxu3 %v30955_v28  ;;  %v30986_v28 = vld [vmem:[%s39439_s1 + $0x14c0] sm:$0xff]  ;;  %v853_v33 = vpack.c.bf16 %v272_v26, %v272_v26  ;;  %v31048_v26 = vld [vmem:[%s39439_s1 + $0x16b0] sm:$0xff] }
 0x27e   :  { %19147 = vmatpush.bf16.msrb.mxu0 %v30930_v30  ;;  %v18941_v54 = vpop.f32.mrf.mxu0  ;;  %v852_v30 = vpack.c.bf16 %v271_v22, %v271_v22 }
 0x27f   :  { %19160 = vmatpush.bf16.msrb.mxu1 %v30938_v31  ;;  %v18942_v55 = vadd.f32 %v18941_v54, %v34527_v17  ;;  %v18954_v57 = vpop.f32.mrf.mxu1  ;;  %v30987_v17 = vld [vmem:[%s39439_s1 + $0x14c8] sm:$0xff]  ;;  %v854_v31 = vpack.c.bf16 %v273_v23, %v273_v23 }
 0x280   :  { %19173 = vmatpush.bf16.msrb.mxu2 %v30946_v32  ;;  %v31025_v32 = vld [vmem:[%s39439_s1 + $0x15f8] sm:$0xff] }
 0x281   :  { %19186 = vmatpush.bf16.msrb.mxu3 %v30954_v39  ;;  %19148 = vmatmul.bf16.vlgmr.msrb.gmra.mxu0 %v848_v41  ;;  %v18955_v60 = vadd.f32 %v18954_v57, %v18942_v55  ;;  %v30999_v39 = vld [vmem:[%s39439_s1 + $0x1528] sm:$0xff] }
 0x282   :  { %19192 = vmatpush.bf16.msra.mxu0 %v30969_v35  ;;  %19161 = vmatmul.bf16.vlgmr.msrb.gmra.mxu1 %v849_v44  ;;  %v31000_v35 = vld [vmem:[%s39439_s1 + $0x1530] sm:$0xff]  ;;  %v31015_v41 = vld [vmem:[%s39439_s1 + $0x15a8] sm:$0xff] }
 0x283   :  { %19205 = vmatpush.bf16.msra.mxu1 %v30977_v36  ;;  %19174 = vmatmul.bf16.vlgmr.msrb.gmra.mxu2 %v850_v42  ;;  %v31008_v36 = vld [vmem:[%s39439_s1 + $0x1570] sm:$0xff]  ;;  %v31023_v42 = vld [vmem:[%s39439_s1 + $0x15e8] sm:$0xff] }
 0x284   :  { %19218 = vmatpush.bf16.msra.mxu2 %v30985_v38  ;;  %19187 = vmatmul.bf16.vlgmr.msrb.gmra.mxu3 %v851_v45  ;;  %v31024_v38 = vld [vmem:[%s39439_s1 + $0x15f0] sm:$0xff]  ;;  %v30998_v45 = vld [vmem:[%s39439_s1 + $0x1520] sm:$0xff] }
 0x285   :  { %19231 = vmatpush.bf16.msra.mxu3 %v30993_v43 }
 0x286   :  { %19193 = vmatpush.bf16.msra.mxu0 %v30968_v46  ;;  %v18967_v1 = vpop.f32.mrf.mxu2  ;;  %v18943_v5 = vpop.f32.mrf.mxu0 }
 0x287   :  { %19206 = vmatpush.bf16.msra.mxu1 %v30976_v47  ;;  %v18968_v2 = vadd.f32 %v18967_v1, %v18955_v60  ;;  %v18980_v4 = vpop.f32.mrf.mxu3  ;;  %v18956_v8 = vpop.f32.mrf.mxu1  ;;  %v31006_v47 = vld [vmem:[%s39439_s1 + $0x1560] sm:$0xff]  ;;  %v30996_v60 = vld [vmem:[%s39439_s1 + $0x1510] sm:$0xff]  ;;  %v30995_v1 = vld [vmem:[%s39439_s1 + $0x1508] sm:$0xff] }
 0x288   :  { %19219 = vmatpush.bf16.msra.mxu2 %v30984_v48  ;;  %v31014_v48 = vld [vmem:[%s39439_s1 + $0x15a0] sm:$0xff] }
 0x289   :  { %19232 = vmatpush.bf16.msra.mxu3 %v30992_v49  ;;  %v34629_v6 = vadd.f32 %v18980_v4, %v18968_v2  ;;  %v56_v2 = vld [vmem:[%s39438_s0 + $0xb0] sm:$0xff]  ;;  %v31011_v4 = vld [vmem:[%s39439_s1 + $0x1588] sm:$0xff]  ;;  %v30994_v8 = vld [vmem:[%s39439_s1 + $0x1500] sm:$0xff] }
 0x28a   :  { %19194 = vmatpush.bf16.msra.mxu0 %v30967_v50  ;;  %v31022_v50 = vld [vmem:[%s39439_s1 + $0x15e0] sm:$0xff]  ;;  %279 = vst [vmem:[#allocation1] ss:$4 sm:$0xff] %v56_v2  ;;  %v31065_v2 = vld [vmem:[%s39439_s1 + $0x1738] sm:$0xff] }
 0x28b   :  { %19207 = vmatpush.bf16.msra.mxu1 %v30975_v51  ;;  %v30997_v51 = vld [vmem:[%s39439_s1 + $0x1518] sm:$0xff] }
 0x28c   :  { %19220 = vmatpush.bf16.msra.mxu2 %v30983_v52  ;;  %v31005_v52 = vld [vmem:[%s39439_s1 + $0x1558] sm:$0xff] }
 0x28d   :  { %19233 = vmatpush.bf16.msra.mxu3 %v30991_v53  ;;  %v31013_v53 = vld [vmem:[%s39439_s1 + $0x1598] sm:$0xff] }
 0x28e   :  { %19195 = vmatpush.bf16.msra.mxu0 %v30966_v56  ;;  %v18969_v16 = vpop.f32.mrf.mxu2  ;;  %v31021_v56 = vld [vmem:[%s39439_s1 + $0x15d8] sm:$0xff] }
 0x28f   :  { %19208 = vmatpush.bf16.msra.mxu1 %v30974_v58  ;;  %v18982_v18 = vpop.f32.mrf.mxu3  ;;  %v31049_v16 = vld [vmem:[%s39439_s1 + $0x16b8] sm:$0xff] }
 0x290   :  { %19221 = vmatpush.bf16.msra.mxu2 %v30982_v59  ;;  %v278_v18 = vld.sshfl [vmem:[#allocation1 + $0x38] sm:$0xff pattern:$0x73625140] }
 0x291   :  { %19234 = vmatpush.bf16.msra.mxu3 %v30990_v61  ;;  %v859_v23 = vpack.c.bf16 %v278_v18, %v278_v18  ;;  %v31071_v18 = vld [vmem:[%s39439_s1 + $0x1768] sm:$0xff] }
 0x292   :  { %19196 = vmatpush.bf16.msra.mxu0 %v30965_v62  ;;  %v31004_v62 = vld [vmem:[%s39439_s1 + $0x1550] sm:$0xff] }
 0x293   :  { %19209 = vmatpush.bf16.msra.mxu1 %v30973_v63  ;;  %v31012_v63 = vld [vmem:[%s39439_s1 + $0x1590] sm:$0xff] }
 0x294   :  { %19222 = vmatpush.bf16.msra.mxu2 %v30981_v0  ;;  %v31020_v0 = vld [vmem:[%s39439_s1 + $0x15d0] sm:$0xff] }
 0x295   :  { %19235 = vmatpush.bf16.msra.mxu3 %v30989_v3  ;;  %v31003_v3 = vld [vmem:[%s39439_s1 + $0x1548] sm:$0xff] }
 0x296   :  { %19197 = vmatpush.bf16.msra.mxu0 %v30964_v7 }
 0x297   :  { %19210 = vmatpush.bf16.msra.mxu1 %v30972_v9  ;;  %v31002_v9 = vld [vmem:[%s39439_s1 + $0x1540] sm:$0xff] }
 0x298   :  { %19223 = vmatpush.bf16.msra.mxu2 %v30980_v10  ;;  %v31010_v10 = vld [vmem:[%s39439_s1 + $0x1580] sm:$0xff] }
 0x299   :  { %19236 = vmatpush.bf16.msra.mxu3 %v30988_v11  ;;  %v275_v11 = vld.sshfl [vmem:[#allocation1 + $0x20] sm:$0xff pattern:$0x73625140] }
 0x29a   :  { %19198 = vmatpush.bf16.msra.mxu0 %v30963_v12  ;;  %v277_v12 = vld.sshfl [vmem:[#allocation1 + $0x30] sm:$0xff pattern:$0x73625140] }
 0x29b   :  { %19211 = vmatpush.bf16.msra.mxu1 %v30971_v14  ;;  %v31041_v14 = vld [vmem:[%s39439_s1 + $0x1678] sm:$0xff] }
 0x29c   :  { %19224 = vmatpush.bf16.msra.mxu2 %v30979_v15  ;;  %v276_v15 = vld.sshfl [vmem:[#allocation1 + $0x28] sm:$0xff pattern:$0x73625140] }
 0x29d   :  { %19237 = vmatpush.bf16.msra.mxu3 %v30987_v17  ;;  %v31018_v17 = vld [vmem:[%s39439_s1 + $0x15c0] sm:$0xff]  ;;  %v857_v22 = vpack.c.bf16 %v276_v15, %v276_v15  ;;  %v31080_v15 = vld [vmem:[%s39439_s1 + $0x17b0] sm:$0xff] }
 0x29e   :  { %19199 = vmatpush.bf16.msra.mxu0 %v30962_v19  ;;  %v18993_v43 = vpop.f32.mrf.mxu0  ;;  %v856_v19 = vpack.c.bf16 %v275_v11, %v275_v11 }
 0x29f   :  { %19212 = vmatpush.bf16.msra.mxu1 %v30970_v20  ;;  %v18994_v44 = vadd.f32 %v18993_v43, %v34629_v6  ;;  %v19006_v46 = vpop.f32.mrf.mxu1  ;;  %v31019_v6 = vld [vmem:[%s39439_s1 + $0x15c8] sm:$0xff]  ;;  %v858_v20 = vpack.c.bf16 %v277_v12, %v277_v12 }
 0x2a0   :  { %19225 = vmatpush.bf16.msra.mxu2 %v30978_v21  ;;  %v31057_v21 = vld [vmem:[%s39439_s1 + $0x16f8] sm:$0xff] }
 0x2a1   :  { %19238 = vmatpush.bf16.msra.mxu3 %v30986_v28  ;;  %19200 = vmatmul.bf16.vlgmr.msra.gmra.mxu0 %v852_v30  ;;  %v19007_v49 = vadd.f32 %v19006_v46, %v18994_v44  ;;  %v31031_v28 = vld [vmem:[%s39439_s1 + $0x1628] sm:$0xff] }
 0x2a2   :  { %19244 = vmatpush.bf16.msrb.mxu0 %v31001_v24  ;;  %19213 = vmatmul.bf16.vlgmr.msra.gmra.mxu1 %v853_v33  ;;  %v31032_v24 = vld [vmem:[%s39439_s1 + $0x1630] sm:$0xff]  ;;  %v31047_v30 = vld [vmem:[%s39439_s1 + $0x16a8] sm:$0xff] }
 0x2a3   :  { %19257 = vmatpush.bf16.msrb.mxu1 %v31009_v25  ;;  %19226 = vmatmul.bf16.vlgmr.msra.gmra.mxu2 %v854_v31  ;;  %v31040_v25 = vld [vmem:[%s39439_s1 + $0x1670] sm:$0xff]  ;;  %v31055_v31 = vld [vmem:[%s39439_s1 + $0x16e8] sm:$0xff] }
 0x2a4   :  { %19270 = vmatpush.bf16.msrb.mxu2 %v31017_v27  ;;  %19239 = vmatmul.bf16.vlgmr.msra.gmra.mxu3 %v855_v34  ;;  %v31056_v27 = vld [vmem:[%s39439_s1 + $0x16f0] sm:$0xff]  ;;  %v31030_v34 = vld [vmem:[%s39439_s1 + $0x1620] sm:$0xff] }
 0x2a5   :  { %19283 = vmatpush.bf16.msrb.mxu3 %v31025_v32 }
 0x2a6   :  { %19245 = vmatpush.bf16.msrb.mxu0 %v31000_v35  ;;  %v19019_v54 = vpop.f32.mrf.mxu2  ;;  %v18995_v58 = vpop.f32.mrf.mxu0 }
 0x2a7   :  { %19258 = vmatpush.bf16.msrb.mxu1 %v31008_v36  ;;  %v19020_v55 = vadd.f32 %v19019_v54, %v19007_v49  ;;  %v19032_v57 = vpop.f32.mrf.mxu3  ;;  %v19008_v61 = vpop.f32.mrf.mxu1  ;;  %v31038_v36 = vld [vmem:[%s39439_s1 + $0x1660] sm:$0xff]  ;;  %v31028_v49 = vld [vmem:[%s39439_s1 + $0x1610] sm:$0xff]  ;;  %v31027_v54 = vld [vmem:[%s39439_s1 + $0x1608] sm:$0xff] }
 0x2a8   :  { %19271 = vmatpush.bf16.msrb.mxu2 %v31016_v37  ;;  %v31046_v37 = vld [vmem:[%s39439_s1 + $0x16a0] sm:$0xff] }
 0x2a9   :  { %19284 = vmatpush.bf16.msrb.mxu3 %v31024_v38  ;;  %v34731_v59 = vadd.f32 %v19032_v57, %v19020_v55  ;;  %v57_v55 = vld [vmem:[%s39438_s0 + $0xb8] sm:$0xff]  ;;  %v31043_v57 = vld [vmem:[%s39439_s1 + $0x1688] sm:$0xff]  ;;  %v31026_v61 = vld [vmem:[%s39439_s1 + $0x1600] sm:$0xff] }
 0x2aa   :  { %19246 = vmatpush.bf16.msrb.mxu0 %v30999_v39  ;;  %v31054_v39 = vld [vmem:[%s39439_s1 + $0x16e0] sm:$0xff]  ;;  %280 = vst [vmem:[#allocation1 + $0x20] ss:$4 sm:$0xff] %v57_v55  ;;  %v31097_v55 = vld [vmem:[%s39439_s1 + $0x1838] sm:$0xff] }
 0x2ab   :  { %19259 = vmatpush.bf16.msrb.mxu1 %v31007_v40  ;;  %v31029_v40 = vld [vmem:[%s39439_s1 + $0x1618] sm:$0xff] }
 0x2ac   :  { %19272 = vmatpush.bf16.msrb.mxu2 %v31015_v41  ;;  %v31037_v41 = vld [vmem:[%s39439_s1 + $0x1658] sm:$0xff] }
 0x2ad   :  { %19285 = vmatpush.bf16.msrb.mxu3 %v31023_v42  ;;  %v31045_v42 = vld [vmem:[%s39439_s1 + $0x1698] sm:$0xff] }
 0x2ae   :  { %19247 = vmatpush.bf16.msrb.mxu0 %v30998_v45  ;;  %v19021_v5 = vpop.f32.mrf.mxu2  ;;  %v31053_v45 = vld [vmem:[%s39439_s1 + $0x16d8] sm:$0xff] }
 0x2af   :  { %19260 = vmatpush.bf16.msrb.mxu1 %v31006_v47  ;;  %v19034_v7 = vpop.f32.mrf.mxu3  ;;  %v31081_v5 = vld [vmem:[%s39439_s1 + $0x17b8] sm:$0xff] }
 0x2b0   :  { %19273 = vmatpush.bf16.msrb.mxu2 %v31014_v48  ;;  %v284_v7 = vld.sshfl [vmem:[#allocation1 + $0x18] sm:$0xff pattern:$0x73625140] }
 0x2b1   :  { %19286 = vmatpush.bf16.msrb.mxu3 %v31022_v50  ;;  %v863_v12 = vpack.c.bf16 %v284_v7, %v284_v7  ;;  %v31103_v7 = vld [vmem:[%s39439_s1 + $0x1868] sm:$0xff] }
 0x2b2   :  { %19248 = vmatpush.bf16.msrb.mxu0 %v30997_v51  ;;  %v31036_v51 = vld [vmem:[%s39439_s1 + $0x1650] sm:$0xff] }
 0x2b3   :  { %19261 = vmatpush.bf16.msrb.mxu1 %v31005_v52  ;;  %v31044_v52 = vld [vmem:[%s39439_s1 + $0x1690] sm:$0xff] }
 0x2b4   :  { %19274 = vmatpush.bf16.msrb.mxu2 %v31013_v53  ;;  %v31052_v53 = vld [vmem:[%s39439_s1 + $0x16d0] sm:$0xff] }
 0x2b5   :  { %19287 = vmatpush.bf16.msrb.mxu3 %v31021_v56  ;;  %v31035_v56 = vld [vmem:[%s39439_s1 + $0x1648] sm:$0xff] }
 0x2b6   :  { %19249 = vmatpush.bf16.msrb.mxu0 %v30996_v60 }
 0x2b7   :  { %19262 = vmatpush.bf16.msrb.mxu1 %v31004_v62  ;;  %v31034_v62 = vld [vmem:[%s39439_s1 + $0x1640] sm:$0xff] }
 0x2b8   :  { %19275 = vmatpush.bf16.msrb.mxu2 %v31012_v63  ;;  %v31042_v63 = vld [vmem:[%s39439_s1 + $0x1680] sm:$0xff] }
 0x2b9   :  { %19288 = vmatpush.bf16.msrb.mxu3 %v31020_v0  ;;  %v281_v0 = vld.sshfl [vmem:[#allocation1] sm:$0xff pattern:$0x73625140] }
 0x2ba   :  { %19250 = vmatpush.bf16.msrb.mxu0 %v30995_v1  ;;  %v283_v1 = vld.sshfl [vmem:[#allocation1 + $0x10] sm:$0xff pattern:$0x73625140] }
 0x2bb   :  { %19263 = vmatpush.bf16.msrb.mxu1 %v31003_v3  ;;  %v31073_v3 = vld [vmem:[%s39439_s1 + $0x1778] sm:$0xff] }
 0x2bc   :  { %19276 = vmatpush.bf16.msrb.mxu2 %v31011_v4  ;;  %v282_v4 = vld.sshfl [vmem:[#allocation1 + $0x8] sm:$0xff pattern:$0x73625140] }
 0x2bd   :  { %19289 = vmatpush.bf16.msrb.mxu3 %v31019_v6  ;;  %v31050_v6 = vld [vmem:[%s39439_s1 + $0x16c0] sm:$0xff]  ;;  %v861_v11 = vpack.c.bf16 %v282_v4, %v282_v4  ;;  %v31112_v4 = vld [vmem:[%s39439_s1 + $0x18b0] sm:$0xff] }
 0x2be   :  { %19251 = vmatpush.bf16.msrb.mxu0 %v30994_v8  ;;  %v19045_v32 = vpop.f32.mrf.mxu0  ;;  %v860_v8 = vpack.c.bf16 %v281_v0, %v281_v0 }
 0x2bf   :  { %19264 = vmatpush.bf16.msrb.mxu1 %v31002_v9  ;;  %v19046_v33 = vadd.f32 %v19045_v32, %v34731_v59  ;;  %v19058_v35 = vpop.f32.mrf.mxu1  ;;  %v31051_v59 = vld [vmem:[%s39439_s1 + $0x16c8] sm:$0xff]  ;;  %v862_v9 = vpack.c.bf16 %v283_v1, %v283_v1 }
 0x2c0   :  { %19277 = vmatpush.bf16.msrb.mxu2 %v31010_v10  ;;  %v31089_v10 = vld [vmem:[%s39439_s1 + $0x17f8] sm:$0xff] }
 0x2c1   :  { %19290 = vmatpush.bf16.msrb.mxu3 %v31018_v17  ;;  %19252 = vmatmul.bf16.vlgmr.msrb.gmra.mxu0 %v856_v19  ;;  %v19059_v38 = vadd.f32 %v19058_v35, %v19046_v33  ;;  %v31063_v17 = vld [vmem:[%s39439_s1 + $0x1728] sm:$0xff] }
 0x2c2   :  { %19296 = vmatpush.bf16.msra.mxu0 %v31033_v13  ;;  %19265 = vmatmul.bf16.vlgmr.msrb.gmra.mxu1 %v857_v22  ;;  %v31064_v13 = vld [vmem:[%s39439_s1 + $0x1730] sm:$0xff]  ;;  %v31079_v19 = vld [vmem:[%s39439_s1 + $0x17a8] sm:$0xff] }
 0x2c3   :  { %19309 = vmatpush.bf16.msra.mxu1 %v31041_v14  ;;  %19278 = vmatmul.bf16.vlgmr.msrb.gmra.mxu2 %v858_v20  ;;  %v31072_v14 = vld [vmem:[%s39439_s1 + $0x1770] sm:$0xff]  ;;  %v31087_v20 = vld [vmem:[%s39439_s1 + $0x17e8] sm:$0xff] }
 0x2c4   :  { %19322 = vmatpush.bf16.msra.mxu2 %v31049_v16  ;;  %19291 = vmatmul.bf16.vlgmr.msrb.gmra.mxu3 %v859_v23  ;;  %v31088_v16 = vld [vmem:[%s39439_s1 + $0x17f0] sm:$0xff]  ;;  %v31062_v23 = vld [vmem:[%s39439_s1 + $0x1720] sm:$0xff] }
 0x2c5   :  { %19335 = vmatpush.bf16.msra.mxu3 %v31057_v21 }
 0x2c6   :  { %19297 = vmatpush.bf16.msra.mxu0 %v31032_v24  ;;  %v19071_v43 = vpop.f32.mrf.mxu2  ;;  %v19047_v47 = vpop.f32.mrf.mxu0 }
 0x2c7   :  { %19310 = vmatpush.bf16.msra.mxu1 %v31040_v25  ;;  %v19072_v44 = vadd.f32 %v19071_v43, %v19059_v38  ;;  %v19084_v46 = vpop.f32.mrf.mxu3  ;;  %v19060_v50 = vpop.f32.mrf.mxu1  ;;  %v31070_v25 = vld [vmem:[%s39439_s1 + $0x1760] sm:$0xff]  ;;  %v31060_v38 = vld [vmem:[%s39439_s1 + $0x1710] sm:$0xff]  ;;  %v31059_v43 = vld [vmem:[%s39439_s1 + $0x1708] sm:$0xff] }
 0x2c8   :  { %19323 = vmatpush.bf16.msra.mxu2 %v31048_v26  ;;  %v31078_v26 = vld [vmem:[%s39439_s1 + $0x17a0] sm:$0xff] }
 0x2c9   :  { %19336 = vmatpush.bf16.msra.mxu3 %v31056_v27  ;;  %v34833_v48 = vadd.f32 %v19084_v46, %v19072_v44  ;;  %v58_v44 = vld [vmem:[%s39438_s0 + $0xc0] sm:$0xff]  ;;  %v31075_v46 = vld [vmem:[%s39439_s1 + $0x1788] sm:$0xff] }
 0x2ca   :  { %19298 = vmatpush.bf16.msra.mxu0 %v31031_v28  ;;  %v31086_v28 = vld [vmem:[%s39439_s1 + $0x17e0] sm:$0xff]  ;;  %289 = vst [vmem:[#allocation1] ss:$4 sm:$0xff] %v58_v44  ;;  %v31129_v44 = vld [vmem:[%s39439_s1 + $0x1938] sm:$0xff] }
 0x2cb   :  { %19311 = vmatpush.bf16.msra.mxu1 %v31039_v29  ;;  %v31061_v29 = vld [vmem:[%s39439_s1 + $0x1718] sm:$0xff]  ;;  %v31058_v50 = vld [vmem:[%s39439_s1 + $0x1700] sm:$0xff] }
 0x2cc   :  { %19324 = vmatpush.bf16.msra.mxu2 %v31047_v30  ;;  %v31069_v30 = vld [vmem:[%s39439_s1 + $0x1758] sm:$0xff] }
 0x2cd   :  { %19337 = vmatpush.bf16.msra.mxu3 %v31055_v31  ;;  %v31077_v31 = vld [vmem:[%s39439_s1 + $0x1798] sm:$0xff] }
 0x2ce   :  { %19299 = vmatpush.bf16.msra.mxu0 %v31030_v34  ;;  %v19073_v58 = vpop.f32.mrf.mxu2  ;;  %v31085_v34 = vld [vmem:[%s39439_s1 + $0x17d8] sm:$0xff] }
 0x2cf   :  { %19312 = vmatpush.bf16.msra.mxu1 %v31038_v36  ;;  %v19086_v60 = vpop.f32.mrf.mxu3  ;;  %v31113_v58 = vld [vmem:[%s39439_s1 + $0x18b8] sm:$0xff] }
 0x2d0   :  { %19325 = vmatpush.bf16.msra.mxu2 %v31046_v37  ;;  %v288_v60 = vld.sshfl [vmem:[#allocation1 + $0x38] sm:$0xff pattern:$0x73625140] }
 0x2d1   :  { %19338 = vmatpush.bf16.msra.mxu3 %v31054_v39  ;;  %v867_v1 = vpack.c.bf16 %v288_v60, %v288_v60  ;;  %v31135_v60 = vld [vmem:[%s39439_s1 + $0x1968] sm:$0xff] }
 0x2d2   :  { %19300 = vmatpush.bf16.msra.mxu0 %v31029_v40  ;;  %v31068_v40 = vld [vmem:[%s39439_s1 + $0x1750] sm:$0xff] }
 0x2d3   :  { %19313 = vmatpush.bf16.msra.mxu1 %v31037_v41  ;;  %v31076_v41 = vld [vmem:[%s39439_s1 + $0x1790] sm:$0xff] }
 0x2d4   :  { %19326 = vmatpush.bf16.msra.mxu2 %v31045_v42  ;;  %v31084_v42 = vld [vmem:[%s39439_s1 + $0x17d0] sm:$0xff] }
 0x2d5   :  { %19339 = vmatpush.bf16.msra.mxu3 %v31053_v45  ;;  %v31067_v45 = vld [vmem:[%s39439_s1 + $0x1748] sm:$0xff] }
 0x2d6   :  { %19301 = vmatpush.bf16.msra.mxu0 %v31028_v49 }
 0x2d7   :  { %19314 = vmatpush.bf16.msra.mxu1 %v31036_v51  ;;  %v31066_v51 = vld [vmem:[%s39439_s1 + $0x1740] sm:$0xff] }
 0x2d8   :  { %19327 = vmatpush.bf16.msra.mxu2 %v31044_v52  ;;  %v31074_v52 = vld [vmem:[%s39439_s1 + $0x1780] sm:$0xff] }
 0x2d9   :  { %19340 = vmatpush.bf16.msra.mxu3 %v31052_v53  ;;  %v285_v53 = vld.sshfl [vmem:[#allocation1 + $0x20] sm:$0xff pattern:$0x73625140] }
 0x2da   :  { %19302 = vmatpush.bf16.msra.mxu0 %v31027_v54  ;;  %v287_v54 = vld.sshfl [vmem:[#allocation1 + $0x30] sm:$0xff pattern:$0x73625140] }
 0x2db   :  { %19315 = vmatpush.bf16.msra.mxu1 %v31035_v56  ;;  %v31105_v56 = vld [vmem:[%s39439_s1 + $0x1878] sm:$0xff] }
 0x2dc   :  { %19328 = vmatpush.bf16.msra.mxu2 %v31043_v57  ;;  %v286_v57 = vld.sshfl [vmem:[#allocation1 + $0x28] sm:$0xff pattern:$0x73625140] }
 0x2dd   :  { %19341 = vmatpush.bf16.msra.mxu3 %v31051_v59  ;;  %v31082_v59 = vld [vmem:[%s39439_s1 + $0x17c0] sm:$0xff]  ;;  %v865_v0 = vpack.c.bf16 %v286_v57, %v286_v57  ;;  %v31144_v57 = vld [vmem:[%s39439_s1 + $0x19b0] sm:$0xff] }
 0x2de   :  { %19303 = vmatpush.bf16.msra.mxu0 %v31026_v61  ;;  %v19097_v21 = vpop.f32.mrf.mxu0  ;;  %v864_v61 = vpack.c.bf16 %v285_v53, %v285_v53 }
 0x2df   :  { %19316 = vmatpush.bf16.msra.mxu1 %v31034_v62  ;;  %v19098_v22 = vadd.f32 %v19097_v21, %v34833_v48  ;;  %v19110_v24 = vpop.f32.mrf.mxu1  ;;  %v31083_v48 = vld [vmem:[%s39439_s1 + $0x17c8] sm:$0xff]  ;;  %v866_v62 = vpack.c.bf16 %v287_v54, %v287_v54 }
 0x2e0   :  { %19329 = vmatpush.bf16.msra.mxu2 %v31042_v63  ;;  %v31121_v63 = vld [vmem:[%s39439_s1 + $0x18f8] sm:$0xff] }
 0x2e1   :  { %19342 = vmatpush.bf16.msra.mxu3 %v31050_v6  ;;  %19304 = vmatmul.bf16.vlgmr.msra.gmra.mxu0 %v860_v8  ;;  %v19111_v27 = vadd.f32 %v19110_v24, %v19098_v22  ;;  %v31095_v6 = vld [vmem:[%s39439_s1 + $0x1828] sm:$0xff] }
 0x2e2   :  { %19348 = vmatpush.bf16.msrb.mxu0 %v31065_v2  ;;  %19317 = vmatmul.bf16.vlgmr.msra.gmra.mxu1 %v861_v11  ;;  %v31096_v2 = vld [vmem:[%s39439_s1 + $0x1830] sm:$0xff]  ;;  %v31111_v8 = vld [vmem:[%s39439_s1 + $0x18a8] sm:$0xff] }
 0x2e3   :  { %19361 = vmatpush.bf16.msrb.mxu1 %v31073_v3  ;;  %19330 = vmatmul.bf16.vlgmr.msra.gmra.mxu2 %v862_v9  ;;  %v31104_v3 = vld [vmem:[%s39439_s1 + $0x1870] sm:$0xff]  ;;  %v31119_v9 = vld [vmem:[%s39439_s1 + $0x18e8] sm:$0xff] }
 0x2e4   :  { %19374 = vmatpush.bf16.msrb.mxu2 %v31081_v5  ;;  %19343 = vmatmul.bf16.vlgmr.msra.gmra.mxu3 %v863_v12  ;;  %v31120_v5 = vld [vmem:[%s39439_s1 + $0x18f0] sm:$0xff]  ;;  %v31094_v12 = vld [vmem:[%s39439_s1 + $0x1820] sm:$0xff] }
 0x2e5   :  { %19387 = vmatpush.bf16.msrb.mxu3 %v31089_v10 }
 0x2e6   :  { %19349 = vmatpush.bf16.msrb.mxu0 %v31064_v13  ;;  %v19123_v32 = vpop.f32.mrf.mxu2  ;;  %v19099_v36 = vpop.f32.mrf.mxu0 }
 0x2e7   :  { %19362 = vmatpush.bf16.msrb.mxu1 %v31072_v14  ;;  %v19124_v33 = vadd.f32 %v19123_v32, %v19111_v27  ;;  %v19136_v35 = vpop.f32.mrf.mxu3  ;;  %v19112_v39 = vpop.f32.mrf.mxu1  ;;  %v31102_v14 = vld [vmem:[%s39439_s1 + $0x1860] sm:$0xff]  ;;  %v31092_v27 = vld [vmem:[%s39439_s1 + $0x1810] sm:$0xff]  ;;  %v31091_v32 = vld [vmem:[%s39439_s1 + $0x1808] sm:$0xff] }
 0x2e8   :  { %19375 = vmatpush.bf16.msrb.mxu2 %v31080_v15  ;;  %v31110_v15 = vld [vmem:[%s39439_s1 + $0x18a0] sm:$0xff] }
 0x2e9   :  { %19388 = vmatpush.bf16.msrb.mxu3 %v31088_v16  ;;  %v34935_v37 = vadd.f32 %v19136_v35, %v19124_v33  ;;  %v59_v33 = vld [vmem:[%s39438_s0 + $0xc8] sm:$0xff]  ;;  %v31090_v39 = vld [vmem:[%s39439_s1 + $0x1800] sm:$0xff] }
 0x2ea   :  { %19350 = vmatpush.bf16.msrb.mxu0 %v31063_v17  ;;  %v31118_v17 = vld [vmem:[%s39439_s1 + $0x18e0] sm:$0xff]  ;;  %v31107_v35 = vld [vmem:[%s39439_s1 + $0x1888] sm:$0xff]  ;;  %290 = vst [vmem:[#allocation1 + $0x20] ss:$4 sm:$0xff] %v59_v33  ;;  %v31161_v33 = vld [vmem:[%s39439_s1 + $0x1a38] sm:$0xff] }
 0x2eb   :  { %19363 = vmatpush.bf16.msrb.mxu1 %v31071_v18  ;;  %v31093_v18 = vld [vmem:[%s39439_s1 + $0x1818] sm:$0xff] }
 0x2ec   :  { %19376 = vmatpush.bf16.msrb.mxu2 %v31079_v19  ;;  %v31101_v19 = vld [vmem:[%s39439_s1 + $0x1858] sm:$0xff] }
 0x2ed   :  { %19389 = vmatpush.bf16.msrb.mxu3 %v31087_v20  ;;  %v31109_v20 = vld [vmem:[%s39439_s1 + $0x1898] sm:$0xff] }
 0x2ee   :  { %19351 = vmatpush.bf16.msrb.mxu0 %v31062_v23  ;;  %v19125_v47 = vpop.f32.mrf.mxu2  ;;  %v31117_v23 = vld [vmem:[%s39439_s1 + $0x18d8] sm:$0xff] }
 0x2ef   :  { %19364 = vmatpush.bf16.msrb.mxu1 %v31070_v25  ;;  %v19138_v49 = vpop.f32.mrf.mxu3  ;;  %v31145_v47 = vld [vmem:[%s39439_s1 + $0x19b8] sm:$0xff] }
 0x2f0   :  { %19377 = vmatpush.bf16.msrb.mxu2 %v31078_v26  ;;  %v294_v49 = vld.sshfl [vmem:[#allocation1 + $0x18] sm:$0xff pattern:$0x73625140] }
 0x2f1   :  { %19390 = vmatpush.bf16.msrb.mxu3 %v31086_v28  ;;  %v871_v54 = vpack.c.bf16 %v294_v49, %v294_v49  ;;  %v31167_v49 = vld [vmem:[%s39439_s1 + $0x1a68] sm:$0xff] }
 0x2f2   :  { %19352 = vmatpush.bf16.msrb.mxu0 %v31061_v29  ;;  %v31100_v29 = vld [vmem:[%s39439_s1 + $0x1850] sm:$0xff] }
 0x2f3   :  { %19365 = vmatpush.bf16.msrb.mxu1 %v31069_v30  ;;  %v31108_v30 = vld [vmem:[%s39439_s1 + $0x1890] sm:$0xff] }
 0x2f4   :  { %19378 = vmatpush.bf16.msrb.mxu2 %v31077_v31  ;;  %v31116_v31 = vld [vmem:[%s39439_s1 + $0x18d0] sm:$0xff] }
 0x2f5   :  { %19391 = vmatpush.bf16.msrb.mxu3 %v31085_v34  ;;  %v31099_v34 = vld [vmem:[%s39439_s1 + $0x1848] sm:$0xff] }
 0x2f6   :  { %19353 = vmatpush.bf16.msrb.mxu0 %v31060_v38 }
 0x2f7   :  { %19366 = vmatpush.bf16.msrb.mxu1 %v31068_v40  ;;  %v31098_v40 = vld [vmem:[%s39439_s1 + $0x1840] sm:$0xff] }
 0x2f8   :  { %19379 = vmatpush.bf16.msrb.mxu2 %v31076_v41  ;;  %v31106_v41 = vld [vmem:[%s39439_s1 + $0x1880] sm:$0xff] }
 0x2f9   :  { %19392 = vmatpush.bf16.msrb.mxu3 %v31084_v42  ;;  %v291_v42 = vld.sshfl [vmem:[#allocation1] sm:$0xff pattern:$0x73625140] }
 0x2fa   :  { %19354 = vmatpush.bf16.msrb.mxu0 %v31059_v43  ;;  %v293_v43 = vld.sshfl [vmem:[#allocation1 + $0x10] sm:$0xff pattern:$0x73625140] }
 0x2fb   :  { %19367 = vmatpush.bf16.msrb.mxu1 %v31067_v45  ;;  %v31137_v45 = vld [vmem:[%s39439_s1 + $0x1978] sm:$0xff] }
 0x2fc   :  { %19380 = vmatpush.bf16.msrb.mxu2 %v31075_v46  ;;  %v292_v46 = vld.sshfl [vmem:[#allocation1 + $0x8] sm:$0xff pattern:$0x73625140] }
 0x2fd   :  { %19393 = vmatpush.bf16.msrb.mxu3 %v31083_v48  ;;  %v31114_v48 = vld [vmem:[%s39439_s1 + $0x18c0] sm:$0xff]  ;;  %v869_v53 = vpack.c.bf16 %v292_v46, %v292_v46  ;;  %v31176_v46 = vld [vmem:[%s39439_s1 + $0x1ab0] sm:$0xff] }
 0x2fe   :  { %19355 = vmatpush.bf16.msrb.mxu0 %v31058_v50  ;;  %v19149_v10 = vpop.f32.mrf.mxu0  ;;  %v868_v50 = vpack.c.bf16 %v291_v42, %v291_v42 }
 0x2ff   :  { %19368 = vmatpush.bf16.msrb.mxu1 %v31066_v51  ;;  %v19150_v11 = vadd.f32 %v19149_v10, %v34935_v37  ;;  %v19162_v13 = vpop.f32.mrf.mxu1  ;;  %v31115_v37 = vld [vmem:[%s39439_s1 + $0x18c8] sm:$0xff]  ;;  %v870_v51 = vpack.c.bf16 %v293_v43, %v293_v43 }
 0x300   :  { %19381 = vmatpush.bf16.msrb.mxu2 %v31074_v52  ;;  %v31153_v52 = vld [vmem:[%s39439_s1 + $0x19f8] sm:$0xff] }
 0x301   :  { %19394 = vmatpush.bf16.msrb.mxu3 %v31082_v59  ;;  %19356 = vmatmul.bf16.vlgmr.msrb.gmra.mxu0 %v864_v61  ;;  %v19163_v16 = vadd.f32 %v19162_v13, %v19150_v11  ;;  %v31127_v59 = vld [vmem:[%s39439_s1 + $0x1928] sm:$0xff] }
 0x302   :  { %19400 = vmatpush.bf16.msra.mxu0 %v31097_v55  ;;  %19369 = vmatmul.bf16.vlgmr.msrb.gmra.mxu1 %v865_v0  ;;  %v31128_v55 = vld [vmem:[%s39439_s1 + $0x1930] sm:$0xff]  ;;  %v31143_v61 = vld [vmem:[%s39439_s1 + $0x19a8] sm:$0xff] }
 0x303   :  { %19413 = vmatpush.bf16.msra.mxu1 %v31105_v56  ;;  %19382 = vmatmul.bf16.vlgmr.msrb.gmra.mxu2 %v866_v62  ;;  %v31136_v56 = vld [vmem:[%s39439_s1 + $0x1970] sm:$0xff]  ;;  %v31151_v62 = vld [vmem:[%s39439_s1 + $0x19e8] sm:$0xff] }
 0x304   :  { %19426 = vmatpush.bf16.msra.mxu2 %v31113_v58  ;;  %19395 = vmatmul.bf16.vlgmr.msrb.gmra.mxu3 %v867_v1  ;;  %v31152_v58 = vld [vmem:[%s39439_s1 + $0x19f0] sm:$0xff]  ;;  %v31126_v1 = vld [vmem:[%s39439_s1 + $0x1920] sm:$0xff] }
 0x305   :  { %19439 = vmatpush.bf16.msra.mxu3 %v31121_v63 }
 0x306   :  { %19401 = vmatpush.bf16.msra.mxu0 %v31096_v2  ;;  %v19175_v21 = vpop.f32.mrf.mxu2  ;;  %v19151_v25 = vpop.f32.mrf.mxu0 }
 0x307   :  { %19414 = vmatpush.bf16.msra.mxu1 %v31104_v3  ;;  %v19176_v22 = vadd.f32 %v19175_v21, %v19163_v16  ;;  %v19188_v24 = vpop.f32.mrf.mxu3  ;;  %v19164_v28 = vpop.f32.mrf.mxu1  ;;  %v31134_v3 = vld [vmem:[%s39439_s1 + $0x1960] sm:$0xff]  ;;  %v31124_v16 = vld [vmem:[%s39439_s1 + $0x1910] sm:$0xff]  ;;  %v31123_v21 = vld [vmem:[%s39439_s1 + $0x1908] sm:$0xff] }
 0x308   :  { %19427 = vmatpush.bf16.msra.mxu2 %v31112_v4  ;;  %v31142_v4 = vld [vmem:[%s39439_s1 + $0x19a0] sm:$0xff] }
 0x309   :  { %19440 = vmatpush.bf16.msra.mxu3 %v31120_v5  ;;  %v35037_v26 = vadd.f32 %v19188_v24, %v19176_v22  ;;  %v60_v22 = vld [vmem:[%s39438_s0 + $0xd0] sm:$0xff]  ;;  %v31139_v24 = vld [vmem:[%s39439_s1 + $0x1988] sm:$0xff]  ;;  %v31122_v28 = vld [vmem:[%s39439_s1 + $0x1900] sm:$0xff] }
 0x30a   :  { %19402 = vmatpush.bf16.msra.mxu0 %v31095_v6  ;;  %v31150_v6 = vld [vmem:[%s39439_s1 + $0x19e0] sm:$0xff]  ;;  %299 = vst [vmem:[#allocation1] ss:$4 sm:$0xff] %v60_v22  ;;  %v31193_v22 = vld [vmem:[%s39439_s1 + $0x1b38] sm:$0xff] }
 0x30b   :  { %19415 = vmatpush.bf16.msra.mxu1 %v31103_v7  ;;  %v31125_v7 = vld [vmem:[%s39439_s1 + $0x1918] sm:$0xff] }
 0x30c   :  { %19428 = vmatpush.bf16.msra.mxu2 %v31111_v8  ;;  %v31133_v8 = vld [vmem:[%s39439_s1 + $0x1958] sm:$0xff] }
 0x30d   :  { %19441 = vmatpush.bf16.msra.mxu3 %v31119_v9  ;;  %v31141_v9 = vld [vmem:[%s39439_s1 + $0x1998] sm:$0xff] }
 0x30e   :  { %19403 = vmatpush.bf16.msra.mxu0 %v31094_v12  ;;  %v19177_v36 = vpop.f32.mrf.mxu2  ;;  %v31149_v12 = vld [vmem:[%s39439_s1 + $0x19d8] sm:$0xff] }
 0x30f   :  { %19416 = vmatpush.bf16.msra.mxu1 %v31102_v14  ;;  %v19190_v38 = vpop.f32.mrf.mxu3  ;;  %v31177_v36 = vld [vmem:[%s39439_s1 + $0x1ab8] sm:$0xff] }
 0x310   :  { %19429 = vmatpush.bf16.msra.mxu2 %v31110_v15  ;;  %v298_v38 = vld.sshfl [vmem:[#allocation1 + $0x38] sm:$0xff pattern:$0x73625140] }
 0x311   :  { %19442 = vmatpush.bf16.msra.mxu3 %v31118_v17  ;;  %v875_v43 = vpack.c.bf16 %v298_v38, %v298_v38  ;;  %v31199_v38 = vld [vmem:[%s39439_s1 + $0x1b68] sm:$0xff] }
 0x312   :  { %19404 = vmatpush.bf16.msra.mxu0 %v31093_v18  ;;  %v31132_v18 = vld [vmem:[%s39439_s1 + $0x1950] sm:$0xff] }
 0x313   :  { %19417 = vmatpush.bf16.msra.mxu1 %v31101_v19  ;;  %v31140_v19 = vld [vmem:[%s39439_s1 + $0x1990] sm:$0xff] }
 0x314   :  { %19430 = vmatpush.bf16.msra.mxu2 %v31109_v20  ;;  %v31148_v20 = vld [vmem:[%s39439_s1 + $0x19d0] sm:$0xff] }
 0x315   :  { %19443 = vmatpush.bf16.msra.mxu3 %v31117_v23  ;;  %v31131_v23 = vld [vmem:[%s39439_s1 + $0x1948] sm:$0xff] }
 0x316   :  { %19405 = vmatpush.bf16.msra.mxu0 %v31092_v27 }
 0x317   :  { %19418 = vmatpush.bf16.msra.mxu1 %v31100_v29  ;;  %v31130_v29 = vld [vmem:[%s39439_s1 + $0x1940] sm:$0xff] }
 0x318   :  { %19431 = vmatpush.bf16.msra.mxu2 %v31108_v30  ;;  %v31138_v30 = vld [vmem:[%s39439_s1 + $0x1980] sm:$0xff] }
 0x319   :  { %19444 = vmatpush.bf16.msra.mxu3 %v31116_v31  ;;  %v295_v31 = vld.sshfl [vmem:[#allocation1 + $0x20] sm:$0xff pattern:$0x73625140] }
 0x31a   :  { %19406 = vmatpush.bf16.msra.mxu0 %v31091_v32  ;;  %v297_v32 = vld.sshfl [vmem:[#allocation1 + $0x30] sm:$0xff pattern:$0x73625140] }
 0x31b   :  { %19419 = vmatpush.bf16.msra.mxu1 %v31099_v34  ;;  %v31169_v34 = vld [vmem:[%s39439_s1 + $0x1a78] sm:$0xff] }
 0x31c   :  { %19432 = vmatpush.bf16.msra.mxu2 %v31107_v35  ;;  %v296_v35 = vld.sshfl [vmem:[#allocation1 + $0x28] sm:$0xff pattern:$0x73625140] }
 0x31d   :  { %19445 = vmatpush.bf16.msra.mxu3 %v31115_v37  ;;  %v31146_v37 = vld [vmem:[%s39439_s1 + $0x19c0] sm:$0xff]  ;;  %v873_v42 = vpack.c.bf16 %v296_v35, %v296_v35  ;;  %v31208_v35 = vld [vmem:[%s39439_s1 + $0x1bb0] sm:$0xff] }
 0x31e   :  { %19407 = vmatpush.bf16.msra.mxu0 %v31090_v39  ;;  %v19201_v63 = vpop.f32.mrf.mxu0  ;;  %v872_v39 = vpack.c.bf16 %v295_v31, %v295_v31 }
 0x31f   :  { %19420 = vmatpush.bf16.msra.mxu1 %v31098_v40  ;;  %v19202_v0 = vadd.f32 %v19201_v63, %v35037_v26  ;;  %v19214_v2 = vpop.f32.mrf.mxu1  ;;  %v31147_v26 = vld [vmem:[%s39439_s1 + $0x19c8] sm:$0xff]  ;;  %v874_v40 = vpack.c.bf16 %v297_v32, %v297_v32 }
 0x320   :  { %19433 = vmatpush.bf16.msra.mxu2 %v31106_v41  ;;  %v31185_v41 = vld [vmem:[%s39439_s1 + $0x1af8] sm:$0xff] }
 0x321   :  { %19446 = vmatpush.bf16.msra.mxu3 %v31114_v48  ;;  %19408 = vmatmul.bf16.vlgmr.msra.gmra.mxu0 %v868_v50  ;;  %v19215_v5 = vadd.f32 %v19214_v2, %v19202_v0  ;;  %v31159_v48 = vld [vmem:[%s39439_s1 + $0x1a28] sm:$0xff] }
 0x322   :  { %19452 = vmatpush.bf16.msrb.mxu0 %v31129_v44  ;;  %19421 = vmatmul.bf16.vlgmr.msra.gmra.mxu1 %v869_v53  ;;  %v31160_v44 = vld [vmem:[%s39439_s1 + $0x1a30] sm:$0xff]  ;;  %v31175_v50 = vld [vmem:[%s39439_s1 + $0x1aa8] sm:$0xff] }
 0x323   :  { %19465 = vmatpush.bf16.msrb.mxu1 %v31137_v45  ;;  %19434 = vmatmul.bf16.vlgmr.msra.gmra.mxu2 %v870_v51  ;;  %v31168_v45 = vld [vmem:[%s39439_s1 + $0x1a70] sm:$0xff]  ;;  %v31183_v51 = vld [vmem:[%s39439_s1 + $0x1ae8] sm:$0xff] }
 0x324   :  { %19478 = vmatpush.bf16.msrb.mxu2 %v31145_v47  ;;  %19447 = vmatmul.bf16.vlgmr.msra.gmra.mxu3 %v871_v54  ;;  %v31184_v47 = vld [vmem:[%s39439_s1 + $0x1af0] sm:$0xff]  ;;  %v31158_v54 = vld [vmem:[%s39439_s1 + $0x1a20] sm:$0xff] }
 0x325   :  { %19491 = vmatpush.bf16.msrb.mxu3 %v31153_v52 }
 0x326   :  { %19453 = vmatpush.bf16.msrb.mxu0 %v31128_v55  ;;  %v19227_v10 = vpop.f32.mrf.mxu2  ;;  %v19203_v14 = vpop.f32.mrf.mxu0 }
 0x327   :  { %19466 = vmatpush.bf16.msrb.mxu1 %v31136_v56  ;;  %v19228_v11 = vadd.f32 %v19227_v10, %v19215_v5  ;;  %v19240_v13 = vpop.f32.mrf.mxu3  ;;  %v19216_v17 = vpop.f32.mrf.mxu1  ;;  %v31166_v56 = vld [vmem:[%s39439_s1 + $0x1a60] sm:$0xff]  ;;  %v31156_v5 = vld [vmem:[%s39439_s1 + $0x1a10] sm:$0xff]  ;;  %v31155_v10 = vld [vmem:[%s39439_s1 + $0x1a08] sm:$0xff] }
 0x328   :  { %19479 = vmatpush.bf16.msrb.mxu2 %v31144_v57  ;;  %v31174_v57 = vld [vmem:[%s39439_s1 + $0x1aa0] sm:$0xff] }
 0x329   :  { %19492 = vmatpush.bf16.msrb.mxu3 %v31152_v58  ;;  %v35139_v15 = vadd.f32 %v19240_v13, %v19228_v11  ;;  %v61_v11 = vld [vmem:[%s39438_s0 + $0xd8] sm:$0xff]  ;;  %v31171_v13 = vld [vmem:[%s39439_s1 + $0x1a88] sm:$0xff]  ;;  %v31154_v17 = vld [vmem:[%s39439_s1 + $0x1a00] sm:$0xff] }
 0x32a   :  { %19454 = vmatpush.bf16.msrb.mxu0 %v31127_v59  ;;  %v31182_v59 = vld [vmem:[%s39439_s1 + $0x1ae0] sm:$0xff]  ;;  %300 = vst [vmem:[#allocation1 + $0x20] ss:$4 sm:$0xff] %v61_v11  ;;  %v31225_v11 = vld [vmem:[%s39439_s1 + $0x1c38] sm:$0xff] }
 0x32b   :  { %19467 = vmatpush.bf16.msrb.mxu1 %v31135_v60  ;;  %v31157_v60 = vld [vmem:[%s39439_s1 + $0x1a18] sm:$0xff] }
 0x32c   :  { %19480 = vmatpush.bf16.msrb.mxu2 %v31143_v61  ;;  %v31165_v61 = vld [vmem:[%s39439_s1 + $0x1a58] sm:$0xff] }
 0x32d   :  { %19493 = vmatpush.bf16.msrb.mxu3 %v31151_v62  ;;  %v31173_v62 = vld [vmem:[%s39439_s1 + $0x1a98] sm:$0xff] }
 0x32e   :  { %19455 = vmatpush.bf16.msrb.mxu0 %v31126_v1  ;;  %v19229_v25 = vpop.f32.mrf.mxu2  ;;  %v31181_v1 = vld [vmem:[%s39439_s1 + $0x1ad8] sm:$0xff] }
 0x32f   :  { %19468 = vmatpush.bf16.msrb.mxu1 %v31134_v3  ;;  %v19242_v27 = vpop.f32.mrf.mxu3  ;;  %v31209_v25 = vld [vmem:[%s39439_s1 + $0x1bb8] sm:$0xff] }
 0x330   :  { %19481 = vmatpush.bf16.msrb.mxu2 %v31142_v4  ;;  %v304_v27 = vld.sshfl [vmem:[#allocation1 + $0x18] sm:$0xff pattern:$0x73625140] }
 0x331   :  { %19494 = vmatpush.bf16.msrb.mxu3 %v31150_v6  ;;  %v879_v32 = vpack.c.bf16 %v304_v27, %v304_v27  ;;  %v31231_v27 = vld [vmem:[%s39439_s1 + $0x1c68] sm:$0xff] }
 0x332   :  { %19456 = vmatpush.bf16.msrb.mxu0 %v31125_v7  ;;  %v31164_v7 = vld [vmem:[%s39439_s1 + $0x1a50] sm:$0xff] }
 0x333   :  { %19469 = vmatpush.bf16.msrb.mxu1 %v31133_v8  ;;  %v31172_v8 = vld [vmem:[%s39439_s1 + $0x1a90] sm:$0xff] }
 0x334   :  { %19482 = vmatpush.bf16.msrb.mxu2 %v31141_v9  ;;  %v31180_v9 = vld [vmem:[%s39439_s1 + $0x1ad0] sm:$0xff] }
 0x335   :  { %19495 = vmatpush.bf16.msrb.mxu3 %v31149_v12  ;;  %v31163_v12 = vld [vmem:[%s39439_s1 + $0x1a48] sm:$0xff] }
 0x336   :  { %19457 = vmatpush.bf16.msrb.mxu0 %v31124_v16 }
 0x337   :  { %19470 = vmatpush.bf16.msrb.mxu1 %v31132_v18  ;;  %v31162_v18 = vld [vmem:[%s39439_s1 + $0x1a40] sm:$0xff] }
 0x338   :  { %19483 = vmatpush.bf16.msrb.mxu2 %v31140_v19  ;;  %v31170_v19 = vld [vmem:[%s39439_s1 + $0x1a80] sm:$0xff] }
 0x339   :  { %19496 = vmatpush.bf16.msrb.mxu3 %v31148_v20  ;;  %v301_v20 = vld.sshfl [vmem:[#allocation1] sm:$0xff pattern:$0x73625140] }
 0x33a   :  { %19458 = vmatpush.bf16.msrb.mxu0 %v31123_v21  ;;  %v303_v21 = vld.sshfl [vmem:[#allocation1 + $0x10] sm:$0xff pattern:$0x73625140] }
 0x33b   :  { %19471 = vmatpush.bf16.msrb.mxu1 %v31131_v23  ;;  %v31201_v23 = vld [vmem:[%s39439_s1 + $0x1b78] sm:$0xff] }
 0x33c   :  { %19484 = vmatpush.bf16.msrb.mxu2 %v31139_v24  ;;  %v302_v24 = vld.sshfl [vmem:[#allocation1 + $0x8] sm:$0xff pattern:$0x73625140] }
 0x33d   :  { %19497 = vmatpush.bf16.msrb.mxu3 %v31147_v26  ;;  %v31178_v26 = vld [vmem:[%s39439_s1 + $0x1ac0] sm:$0xff]  ;;  %v877_v31 = vpack.c.bf16 %v302_v24, %v302_v24  ;;  %v31240_v24 = vld [vmem:[%s39439_s1 + $0x1cb0] sm:$0xff] }
 0x33e   :  { %19459 = vmatpush.bf16.msrb.mxu0 %v31122_v28  ;;  %v19253_v52 = vpop.f32.mrf.mxu0  ;;  %v876_v28 = vpack.c.bf16 %v301_v20, %v301_v20 }
 0x33f   :  { %19472 = vmatpush.bf16.msrb.mxu1 %v31130_v29  ;;  %v19254_v53 = vadd.f32 %v19253_v52, %v35139_v15  ;;  %v19266_v55 = vpop.f32.mrf.mxu1  ;;  %v31179_v15 = vld [vmem:[%s39439_s1 + $0x1ac8] sm:$0xff]  ;;  %v878_v29 = vpack.c.bf16 %v303_v21, %v303_v21 }
 0x340   :  { %19485 = vmatpush.bf16.msrb.mxu2 %v31138_v30  ;;  %v31217_v30 = vld [vmem:[%s39439_s1 + $0x1bf8] sm:$0xff] }
 0x341   :  { %19498 = vmatpush.bf16.msrb.mxu3 %v31146_v37  ;;  %19460 = vmatmul.bf16.vlgmr.msrb.gmra.mxu0 %v872_v39  ;;  %v19267_v58 = vadd.f32 %v19266_v55, %v19254_v53  ;;  %v31191_v37 = vld [vmem:[%s39439_s1 + $0x1b28] sm:$0xff] }
 0x342   :  { %19504 = vmatpush.bf16.msra.mxu0 %v31161_v33  ;;  %19473 = vmatmul.bf16.vlgmr.msrb.gmra.mxu1 %v873_v42  ;;  %v31192_v33 = vld [vmem:[%s39439_s1 + $0x1b30] sm:$0xff]  ;;  %v31207_v39 = vld [vmem:[%s39439_s1 + $0x1ba8] sm:$0xff] }
 0x343   :  { %19517 = vmatpush.bf16.msra.mxu1 %v31169_v34  ;;  %19486 = vmatmul.bf16.vlgmr.msrb.gmra.mxu2 %v874_v40  ;;  %v31200_v34 = vld [vmem:[%s39439_s1 + $0x1b70] sm:$0xff]  ;;  %v31215_v40 = vld [vmem:[%s39439_s1 + $0x1be8] sm:$0xff] }
 0x344   :  { %19530 = vmatpush.bf16.msra.mxu2 %v31177_v36  ;;  %19499 = vmatmul.bf16.vlgmr.msrb.gmra.mxu3 %v875_v43  ;;  %v31216_v36 = vld [vmem:[%s39439_s1 + $0x1bf0] sm:$0xff]  ;;  %v31190_v43 = vld [vmem:[%s39439_s1 + $0x1b20] sm:$0xff] }
 0x345   :  { %19543 = vmatpush.bf16.msra.mxu3 %v31185_v41 }
 0x346   :  { %19505 = vmatpush.bf16.msra.mxu0 %v31160_v44  ;;  %v19279_v63 = vpop.f32.mrf.mxu2  ;;  %v19255_v3 = vpop.f32.mrf.mxu0 }
 0x347   :  { %19518 = vmatpush.bf16.msra.mxu1 %v31168_v45  ;;  %v19280_v0 = vadd.f32 %v19279_v63, %v19267_v58  ;;  %v19292_v2 = vpop.f32.mrf.mxu3  ;;  %v19268_v6 = vpop.f32.mrf.mxu1  ;;  %v31198_v45 = vld [vmem:[%s39439_s1 + $0x1b60] sm:$0xff]  ;;  %v31188_v58 = vld [vmem:[%s39439_s1 + $0x1b10] sm:$0xff]  ;;  %v31187_v63 = vld [vmem:[%s39439_s1 + $0x1b08] sm:$0xff] }
 0x348   :  { %19531 = vmatpush.bf16.msra.mxu2 %v31176_v46  ;;  %v31206_v46 = vld [vmem:[%s39439_s1 + $0x1ba0] sm:$0xff] }
 0x349   :  { %19544 = vmatpush.bf16.msra.mxu3 %v31184_v47  ;;  %v35241_v4 = vadd.f32 %v19292_v2, %v19280_v0  ;;  %v62_v0 = vld [vmem:[%s39438_s0 + $0xe0] sm:$0xff]  ;;  %v31203_v2 = vld [vmem:[%s39439_s1 + $0x1b88] sm:$0xff] }
 0x34a   :  { %19506 = vmatpush.bf16.msra.mxu0 %v31159_v48  ;;  %v31214_v48 = vld [vmem:[%s39439_s1 + $0x1be0] sm:$0xff]  ;;  %309 = vst [vmem:[#allocation1] ss:$4 sm:$0xff] %v62_v0  ;;  %v31257_v0 = vld [vmem:[%s39439_s1 + $0x1d38] sm:$0xff] }
 0x34b   :  { %19519 = vmatpush.bf16.msra.mxu1 %v31167_v49  ;;  %v31189_v49 = vld [vmem:[%s39439_s1 + $0x1b18] sm:$0xff]  ;;  %v31186_v6 = vld [vmem:[%s39439_s1 + $0x1b00] sm:$0xff] }
 0x34c   :  { %19532 = vmatpush.bf16.msra.mxu2 %v31175_v50  ;;  %v31197_v50 = vld [vmem:[%s39439_s1 + $0x1b58] sm:$0xff] }
 0x34d   :  { %19545 = vmatpush.bf16.msra.mxu3 %v31183_v51  ;;  %v31205_v51 = vld [vmem:[%s39439_s1 + $0x1b98] sm:$0xff] }
 0x34e   :  { %19507 = vmatpush.bf16.msra.mxu0 %v31158_v54  ;;  %v19281_v14 = vpop.f32.mrf.mxu2  ;;  %v31213_v54 = vld [vmem:[%s39439_s1 + $0x1bd8] sm:$0xff] }
 0x34f   :  { %19520 = vmatpush.bf16.msra.mxu1 %v31166_v56  ;;  %v19294_v16 = vpop.f32.mrf.mxu3  ;;  %v31241_v14 = vld [vmem:[%s39439_s1 + $0x1cb8] sm:$0xff] }
 0x350   :  { %19533 = vmatpush.bf16.msra.mxu2 %v31174_v57  ;;  %v308_v16 = vld.sshfl [vmem:[#allocation1 + $0x38] sm:$0xff pattern:$0x73625140] }
 0x351   :  { %19546 = vmatpush.bf16.msra.mxu3 %v31182_v59  ;;  %v883_v21 = vpack.c.bf16 %v308_v16, %v308_v16  ;;  %v31263_v16 = vld [vmem:[%s39439_s1 + $0x1d68] sm:$0xff] }
 0x352   :  { %19508 = vmatpush.bf16.msra.mxu0 %v31157_v60  ;;  %v31196_v60 = vld [vmem:[%s39439_s1 + $0x1b50] sm:$0xff] }
 0x353   :  { %19521 = vmatpush.bf16.msra.mxu1 %v31165_v61  ;;  %v31204_v61 = vld [vmem:[%s39439_s1 + $0x1b90] sm:$0xff] }
 0x354   :  { %19534 = vmatpush.bf16.msra.mxu2 %v31173_v62  ;;  %v31212_v62 = vld [vmem:[%s39439_s1 + $0x1bd0] sm:$0xff] }
 0x355   :  { %19547 = vmatpush.bf16.msra.mxu3 %v31181_v1  ;;  %v31195_v1 = vld [vmem:[%s39439_s1 + $0x1b48] sm:$0xff] }
 0x356   :  { %19509 = vmatpush.bf16.msra.mxu0 %v31156_v5 }
 0x357   :  { %19522 = vmatpush.bf16.msra.mxu1 %v31164_v7  ;;  %v31194_v7 = vld [vmem:[%s39439_s1 + $0x1b40] sm:$0xff] }
 0x358   :  { %19535 = vmatpush.bf16.msra.mxu2 %v31172_v8  ;;  %v31202_v8 = vld [vmem:[%s39439_s1 + $0x1b80] sm:$0xff] }
 0x359   :  { %19548 = vmatpush.bf16.msra.mxu3 %v31180_v9  ;;  %v305_v9 = vld.sshfl [vmem:[#allocation1 + $0x20] sm:$0xff pattern:$0x73625140] }
 0x35a   :  { %19510 = vmatpush.bf16.msra.mxu0 %v31155_v10  ;;  %v307_v10 = vld.sshfl [vmem:[#allocation1 + $0x30] sm:$0xff pattern:$0x73625140] }
 0x35b   :  { %19523 = vmatpush.bf16.msra.mxu1 %v31163_v12  ;;  %v31233_v12 = vld [vmem:[%s39439_s1 + $0x1c78] sm:$0xff] }
 0x35c   :  { %19536 = vmatpush.bf16.msra.mxu2 %v31171_v13  ;;  %v306_v13 = vld.sshfl [vmem:[#allocation1 + $0x28] sm:$0xff pattern:$0x73625140] }
 0x35d   :  { %19549 = vmatpush.bf16.msra.mxu3 %v31179_v15  ;;  %v31210_v15 = vld [vmem:[%s39439_s1 + $0x1bc0] sm:$0xff]  ;;  %v881_v20 = vpack.c.bf16 %v306_v13, %v306_v13  ;;  %v31272_v13 = vld [vmem:[%s39439_s1 + $0x1db0] sm:$0xff] }
 0x35e   :  { %19511 = vmatpush.bf16.msra.mxu0 %v31154_v17  ;;  %v19305_v41 = vpop.f32.mrf.mxu0  ;;  %v880_v17 = vpack.c.bf16 %v305_v9, %v305_v9 }
 0x35f   :  { %19524 = vmatpush.bf16.msra.mxu1 %v31162_v18  ;;  %v19306_v42 = vadd.f32 %v19305_v41, %v35241_v4  ;;  %v19318_v44 = vpop.f32.mrf.mxu1  ;;  %v31211_v4 = vld [vmem:[%s39439_s1 + $0x1bc8] sm:$0xff]  ;;  %v882_v18 = vpack.c.bf16 %v307_v10, %v307_v10 }
 0x360   :  { %19537 = vmatpush.bf16.msra.mxu2 %v31170_v19  ;;  %v31249_v19 = vld [vmem:[%s39439_s1 + $0x1cf8] sm:$0xff] }
 0x361   :  { %19550 = vmatpush.bf16.msra.mxu3 %v31178_v26  ;;  %19512 = vmatmul.bf16.vlgmr.msra.gmra.mxu0 %v876_v28  ;;  %v19319_v47 = vadd.f32 %v19318_v44, %v19306_v42  ;;  %v31223_v26 = vld [vmem:[%s39439_s1 + $0x1c28] sm:$0xff] }
 0x362   :  { %19556 = vmatpush.bf16.msrb.mxu0 %v31193_v22  ;;  %19525 = vmatmul.bf16.vlgmr.msra.gmra.mxu1 %v877_v31  ;;  %v31224_v22 = vld [vmem:[%s39439_s1 + $0x1c30] sm:$0xff]  ;;  %v31239_v28 = vld [vmem:[%s39439_s1 + $0x1ca8] sm:$0xff] }
 0x363   :  { %19569 = vmatpush.bf16.msrb.mxu1 %v31201_v23  ;;  %19538 = vmatmul.bf16.vlgmr.msra.gmra.mxu2 %v878_v29  ;;  %v31232_v23 = vld [vmem:[%s39439_s1 + $0x1c70] sm:$0xff]  ;;  %v31247_v29 = vld [vmem:[%s39439_s1 + $0x1ce8] sm:$0xff] }
 0x364   :  { %19582 = vmatpush.bf16.msrb.mxu2 %v31209_v25  ;;  %19551 = vmatmul.bf16.vlgmr.msra.gmra.mxu3 %v879_v32  ;;  %v31248_v25 = vld [vmem:[%s39439_s1 + $0x1cf0] sm:$0xff]  ;;  %v31222_v32 = vld [vmem:[%s39439_s1 + $0x1c20] sm:$0xff] }
 0x365   :  { %19595 = vmatpush.bf16.msrb.mxu3 %v31217_v30 }
 0x366   :  { %19557 = vmatpush.bf16.msrb.mxu0 %v31192_v33  ;;  %v19331_v52 = vpop.f32.mrf.mxu2  ;;  %v19307_v56 = vpop.f32.mrf.mxu0 }
 0x367   :  { %19570 = vmatpush.bf16.msrb.mxu1 %v31200_v34  ;;  %v19332_v53 = vadd.f32 %v19331_v52, %v19319_v47  ;;  %v19344_v55 = vpop.f32.mrf.mxu3  ;;  %v19320_v59 = vpop.f32.mrf.mxu1  ;;  %v31230_v34 = vld [vmem:[%s39439_s1 + $0x1c60] sm:$0xff]  ;;  %v31220_v47 = vld [vmem:[%s39439_s1 + $0x1c10] sm:$0xff]  ;;  %v31219_v52 = vld [vmem:[%s39439_s1 + $0x1c08] sm:$0xff] }
 0x368   :  { %19583 = vmatpush.bf16.msrb.mxu2 %v31208_v35  ;;  %v31238_v35 = vld [vmem:[%s39439_s1 + $0x1ca0] sm:$0xff] }
 0x369   :  { %19596 = vmatpush.bf16.msrb.mxu3 %v31216_v36  ;;  %v35343_v57 = vadd.f32 %v19344_v55, %v19332_v53  ;;  %v63_v53 = vld [vmem:[%s39438_s0 + $0xe8] sm:$0xff]  ;;  %v31218_v59 = vld [vmem:[%s39439_s1 + $0x1c00] sm:$0xff] }
 0x36a   :  { %19558 = vmatpush.bf16.msrb.mxu0 %v31191_v37  ;;  %v31246_v37 = vld [vmem:[%s39439_s1 + $0x1ce0] sm:$0xff]  ;;  %v31235_v55 = vld [vmem:[%s39439_s1 + $0x1c88] sm:$0xff]  ;;  %310 = vst [vmem:[#allocation1 + $0x20] ss:$4 sm:$0xff] %v63_v53  ;;  %v31289_v53 = vld [vmem:[%s39439_s1 + $0x1e38] sm:$0xff] }
 0x36b   :  { %19571 = vmatpush.bf16.msrb.mxu1 %v31199_v38  ;;  %v31221_v38 = vld [vmem:[%s39439_s1 + $0x1c18] sm:$0xff] }
 0x36c   :  { %19584 = vmatpush.bf16.msrb.mxu2 %v31207_v39  ;;  %v31229_v39 = vld [vmem:[%s39439_s1 + $0x1c58] sm:$0xff] }
 0x36d   :  { %19597 = vmatpush.bf16.msrb.mxu3 %v31215_v40  ;;  %v31237_v40 = vld [vmem:[%s39439_s1 + $0x1c98] sm:$0xff] }
 0x36e   :  { %19559 = vmatpush.bf16.msrb.mxu0 %v31190_v43  ;;  %v19333_v3 = vpop.f32.mrf.mxu2  ;;  %v31245_v43 = vld [vmem:[%s39439_s1 + $0x1cd8] sm:$0xff] }
 0x36f   :  { %19572 = vmatpush.bf16.msrb.mxu1 %v31198_v45  ;;  %v19346_v5 = vpop.f32.mrf.mxu3  ;;  %v31273_v3 = vld [vmem:[%s39439_s1 + $0x1db8] sm:$0xff] }
 0x370   :  { %19585 = vmatpush.bf16.msrb.mxu2 %v31206_v46  ;;  %v314_v5 = vld.sshfl [vmem:[#allocation1 + $0x18] sm:$0xff pattern:$0x73625140] }
 0x371   :  { %19598 = vmatpush.bf16.msrb.mxu3 %v31214_v48  ;;  %v887_v10 = vpack.c.bf16 %v314_v5, %v314_v5  ;;  %v31295_v5 = vld [vmem:[%s39439_s1 + $0x1e68] sm:$0xff] }
 0x372   :  { %19560 = vmatpush.bf16.msrb.mxu0 %v31189_v49  ;;  %v31228_v49 = vld [vmem:[%s39439_s1 + $0x1c50] sm:$0xff] }
 0x373   :  { %19573 = vmatpush.bf16.msrb.mxu1 %v31197_v50  ;;  %v31236_v50 = vld [vmem:[%s39439_s1 + $0x1c90] sm:$0xff] }
 0x374   :  { %19586 = vmatpush.bf16.msrb.mxu2 %v31205_v51  ;;  %v31244_v51 = vld [vmem:[%s39439_s1 + $0x1cd0] sm:$0xff] }
 0x375   :  { %19599 = vmatpush.bf16.msrb.mxu3 %v31213_v54  ;;  %v31227_v54 = vld [vmem:[%s39439_s1 + $0x1c48] sm:$0xff] }
 0x376   :  { %19561 = vmatpush.bf16.msrb.mxu0 %v31188_v58 }
 0x377   :  { %19574 = vmatpush.bf16.msrb.mxu1 %v31196_v60  ;;  %v31226_v60 = vld [vmem:[%s39439_s1 + $0x1c40] sm:$0xff] }
 0x378   :  { %19587 = vmatpush.bf16.msrb.mxu2 %v31204_v61  ;;  %v31234_v61 = vld [vmem:[%s39439_s1 + $0x1c80] sm:$0xff] }
 0x379   :  { %19600 = vmatpush.bf16.msrb.mxu3 %v31212_v62  ;;  %v311_v62 = vld.sshfl [vmem:[#allocation1] sm:$0xff pattern:$0x73625140] }
 0x37a   :  { %19562 = vmatpush.bf16.msrb.mxu0 %v31187_v63  ;;  %v313_v63 = vld.sshfl [vmem:[#allocation1 + $0x10] sm:$0xff pattern:$0x73625140] }
 0x37b   :  { %19575 = vmatpush.bf16.msrb.mxu1 %v31195_v1  ;;  %v31265_v1 = vld [vmem:[%s39439_s1 + $0x1d78] sm:$0xff] }
 0x37c   :  { %19588 = vmatpush.bf16.msrb.mxu2 %v31203_v2  ;;  %v312_v2 = vld.sshfl [vmem:[#allocation1 + $0x8] sm:$0xff pattern:$0x73625140] }
 0x37d   :  { %19601 = vmatpush.bf16.msrb.mxu3 %v31211_v4  ;;  %v31242_v4 = vld [vmem:[%s39439_s1 + $0x1cc0] sm:$0xff]  ;;  %v885_v9 = vpack.c.bf16 %v312_v2, %v312_v2  ;;  %v31304_v2 = vld [vmem:[%s39439_s1 + $0x1eb0] sm:$0xff] }
 0x37e   :  { %19563 = vmatpush.bf16.msrb.mxu0 %v31186_v6  ;;  %v19357_v30 = vpop.f32.mrf.mxu0  ;;  %v884_v6 = vpack.c.bf16 %v311_v62, %v311_v62 }
 0x37f   :  { %19576 = vmatpush.bf16.msrb.mxu1 %v31194_v7  ;;  %v19358_v31 = vadd.f32 %v19357_v30, %v35343_v57  ;;  %v19370_v33 = vpop.f32.mrf.mxu1  ;;  %v31243_v57 = vld [vmem:[%s39439_s1 + $0x1cc8] sm:$0xff]  ;;  %v886_v7 = vpack.c.bf16 %v313_v63, %v313_v63 }
 0x380   :  { %19589 = vmatpush.bf16.msrb.mxu2 %v31202_v8  ;;  %v31281_v8 = vld [vmem:[%s39439_s1 + $0x1df8] sm:$0xff] }
 0x381   :  { %19602 = vmatpush.bf16.msrb.mxu3 %v31210_v15  ;;  %19564 = vmatmul.bf16.vlgmr.msrb.gmra.mxu0 %v880_v17  ;;  %v19371_v36 = vadd.f32 %v19370_v33, %v19358_v31  ;;  %v31255_v15 = vld [vmem:[%s39439_s1 + $0x1d28] sm:$0xff] }
 0x382   :  { %19608 = vmatpush.bf16.msra.mxu0 %v31225_v11  ;;  %19577 = vmatmul.bf16.vlgmr.msrb.gmra.mxu1 %v881_v20  ;;  %v31256_v11 = vld [vmem:[%s39439_s1 + $0x1d30] sm:$0xff]  ;;  %v31271_v17 = vld [vmem:[%s39439_s1 + $0x1da8] sm:$0xff] }
 0x383   :  { %19621 = vmatpush.bf16.msra.mxu1 %v31233_v12  ;;  %19590 = vmatmul.bf16.vlgmr.msrb.gmra.mxu2 %v882_v18  ;;  %v31264_v12 = vld [vmem:[%s39439_s1 + $0x1d70] sm:$0xff]  ;;  %v31279_v18 = vld [vmem:[%s39439_s1 + $0x1de8] sm:$0xff] }
 0x384   :  { %19634 = vmatpush.bf16.msra.mxu2 %v31241_v14  ;;  %19603 = vmatmul.bf16.vlgmr.msrb.gmra.mxu3 %v883_v21  ;;  %v31280_v14 = vld [vmem:[%s39439_s1 + $0x1df0] sm:$0xff]  ;;  %v31254_v21 = vld [vmem:[%s39439_s1 + $0x1d20] sm:$0xff] }
 0x385   :  { %19647 = vmatpush.bf16.msra.mxu3 %v31249_v19 }
 0x386   :  { %19609 = vmatpush.bf16.msra.mxu0 %v31224_v22  ;;  %v19383_v41 = vpop.f32.mrf.mxu2  ;;  %v19359_v45 = vpop.f32.mrf.mxu0 }
 0x387   :  { %19622 = vmatpush.bf16.msra.mxu1 %v31232_v23  ;;  %v19384_v42 = vadd.f32 %v19383_v41, %v19371_v36  ;;  %v19396_v44 = vpop.f32.mrf.mxu3  ;;  %v19372_v48 = vpop.f32.mrf.mxu1  ;;  %v31262_v23 = vld [vmem:[%s39439_s1 + $0x1d60] sm:$0xff]  ;;  %v31252_v36 = vld [vmem:[%s39439_s1 + $0x1d10] sm:$0xff]  ;;  %v31251_v41 = vld [vmem:[%s39439_s1 + $0x1d08] sm:$0xff] }
 0x388   :  { %19635 = vmatpush.bf16.msra.mxu2 %v31240_v24  ;;  %v31270_v24 = vld [vmem:[%s39439_s1 + $0x1da0] sm:$0xff] }
 0x389   :  { %19648 = vmatpush.bf16.msra.mxu3 %v31248_v25  ;;  %v35445_v46 = vadd.f32 %v19396_v44, %v19384_v42  ;;  %v64_v42 = vld [vmem:[%s39438_s0 + $0xf0] sm:$0xff]  ;;  %v31267_v44 = vld [vmem:[%s39439_s1 + $0x1d88] sm:$0xff]  ;;  %v31250_v48 = vld [vmem:[%s39439_s1 + $0x1d00] sm:$0xff] }
 0x38a   :  { %19610 = vmatpush.bf16.msra.mxu0 %v31223_v26  ;;  %v31278_v26 = vld [vmem:[%s39439_s1 + $0x1de0] sm:$0xff]  ;;  %319 = vst [vmem:[#allocation1] ss:$4 sm:$0xff] %v64_v42  ;;  %v31321_v42 = vld [vmem:[%s39439_s1 + $0x1f38] sm:$0xff] }
 0x38b   :  { %19623 = vmatpush.bf16.msra.mxu1 %v31231_v27  ;;  %v31253_v27 = vld [vmem:[%s39439_s1 + $0x1d18] sm:$0xff] }
 0x38c   :  { %19636 = vmatpush.bf16.msra.mxu2 %v31239_v28  ;;  %v31261_v28 = vld [vmem:[%s39439_s1 + $0x1d58] sm:$0xff] }
 0x38d   :  { %19649 = vmatpush.bf16.msra.mxu3 %v31247_v29  ;;  %v31269_v29 = vld [vmem:[%s39439_s1 + $0x1d98] sm:$0xff] }
 0x38e   :  { %19611 = vmatpush.bf16.msra.mxu0 %v31222_v32  ;;  %v19385_v56 = vpop.f32.mrf.mxu2  ;;  %v31277_v32 = vld [vmem:[%s39439_s1 + $0x1dd8] sm:$0xff] }
 0x38f   :  { %19624 = vmatpush.bf16.msra.mxu1 %v31230_v34  ;;  %v19398_v58 = vpop.f32.mrf.mxu3  ;;  %v31305_v56 = vld [vmem:[%s39439_s1 + $0x1eb8] sm:$0xff] }
 0x390   :  { %19637 = vmatpush.bf16.msra.mxu2 %v31238_v35  ;;  %v318_v58 = vld.sshfl [vmem:[#allocation1 + $0x38] sm:$0xff pattern:$0x73625140] }
 0x391   :  { %19650 = vmatpush.bf16.msra.mxu3 %v31246_v37  ;;  %v891_v63 = vpack.c.bf16 %v318_v58, %v318_v58  ;;  %v31327_v58 = vld [vmem:[%s39439_s1 + $0x1f68] sm:$0xff] }
 0x392   :  { %19612 = vmatpush.bf16.msra.mxu0 %v31221_v38  ;;  %v31260_v38 = vld [vmem:[%s39439_s1 + $0x1d50] sm:$0xff] }
 0x393   :  { %19625 = vmatpush.bf16.msra.mxu1 %v31229_v39  ;;  %v31268_v39 = vld [vmem:[%s39439_s1 + $0x1d90] sm:$0xff] }
 0x394   :  { %19638 = vmatpush.bf16.msra.mxu2 %v31237_v40  ;;  %v31276_v40 = vld [vmem:[%s39439_s1 + $0x1dd0] sm:$0xff] }
 0x395   :  { %19651 = vmatpush.bf16.msra.mxu3 %v31245_v43  ;;  %v31259_v43 = vld [vmem:[%s39439_s1 + $0x1d48] sm:$0xff] }
 0x396   :  { %19613 = vmatpush.bf16.msra.mxu0 %v31220_v47 }
 0x397   :  { %19626 = vmatpush.bf16.msra.mxu1 %v31228_v49  ;;  %v31258_v49 = vld [vmem:[%s39439_s1 + $0x1d40] sm:$0xff] }
 0x398   :  { %19639 = vmatpush.bf16.msra.mxu2 %v31236_v50  ;;  %v31266_v50 = vld [vmem:[%s39439_s1 + $0x1d80] sm:$0xff] }
 0x399   :  { %19652 = vmatpush.bf16.msra.mxu3 %v31244_v51  ;;  %v315_v51 = vld.sshfl [vmem:[#allocation1 + $0x20] sm:$0xff pattern:$0x73625140] }
 0x39a   :  { %19614 = vmatpush.bf16.msra.mxu0 %v31219_v52  ;;  %v317_v52 = vld.sshfl [vmem:[#allocation1 + $0x30] sm:$0xff pattern:$0x73625140] }
 0x39b   :  { %19627 = vmatpush.bf16.msra.mxu1 %v31227_v54  ;;  %v31297_v54 = vld [vmem:[%s39439_s1 + $0x1e78] sm:$0xff] }
 0x39c   :  { %19640 = vmatpush.bf16.msra.mxu2 %v31235_v55  ;;  %v316_v55 = vld.sshfl [vmem:[#allocation1 + $0x28] sm:$0xff pattern:$0x73625140] }
 0x39d   :  { %19653 = vmatpush.bf16.msra.mxu3 %v31243_v57  ;;  %v31274_v57 = vld [vmem:[%s39439_s1 + $0x1dc0] sm:$0xff]  ;;  %v889_v62 = vpack.c.bf16 %v316_v55, %v316_v55  ;;  %v31336_v55 = vld [vmem:[%s39439_s1 + $0x1fb0] sm:$0xff] }
 0x39e   :  { %19615 = vmatpush.bf16.msra.mxu0 %v31218_v59  ;;  %v19409_v19 = vpop.f32.mrf.mxu0  ;;  %v888_v59 = vpack.c.bf16 %v315_v51, %v315_v51 }
 0x39f   :  { %19628 = vmatpush.bf16.msra.mxu1 %v31226_v60  ;;  %v19410_v20 = vadd.f32 %v19409_v19, %v35445_v46  ;;  %v19422_v22 = vpop.f32.mrf.mxu1  ;;  %v31275_v46 = vld [vmem:[%s39439_s1 + $0x1dc8] sm:$0xff]  ;;  %v890_v60 = vpack.c.bf16 %v317_v52, %v317_v52 }
 0x3a0   :  { %19641 = vmatpush.bf16.msra.mxu2 %v31234_v61  ;;  %v31313_v61 = vld [vmem:[%s39439_s1 + $0x1ef8] sm:$0xff] }
 0x3a1   :  { %19654 = vmatpush.bf16.msra.mxu3 %v31242_v4  ;;  %19616 = vmatmul.bf16.vlgmr.msra.gmra.mxu0 %v884_v6  ;;  %v19423_v25 = vadd.f32 %v19422_v22, %v19410_v20  ;;  %v31287_v4 = vld [vmem:[%s39439_s1 + $0x1e28] sm:$0xff] }
 0x3a2   :  { %19660 = vmatpush.bf16.msrb.mxu0 %v31257_v0  ;;  %19629 = vmatmul.bf16.vlgmr.msra.gmra.mxu1 %v885_v9  ;;  %v31288_v0 = vld [vmem:[%s39439_s1 + $0x1e30] sm:$0xff]  ;;  %v31303_v6 = vld [vmem:[%s39439_s1 + $0x1ea8] sm:$0xff] }
 0x3a3   :  { %19673 = vmatpush.bf16.msrb.mxu1 %v31265_v1  ;;  %19642 = vmatmul.bf16.vlgmr.msra.gmra.mxu2 %v886_v7  ;;  %v31296_v1 = vld [vmem:[%s39439_s1 + $0x1e70] sm:$0xff]  ;;  %v31311_v7 = vld [vmem:[%s39439_s1 + $0x1ee8] sm:$0xff] }
 0x3a4   :  { %19686 = vmatpush.bf16.msrb.mxu2 %v31273_v3  ;;  %19655 = vmatmul.bf16.vlgmr.msra.gmra.mxu3 %v887_v10  ;;  %v31312_v3 = vld [vmem:[%s39439_s1 + $0x1ef0] sm:$0xff]  ;;  %v31286_v10 = vld [vmem:[%s39439_s1 + $0x1e20] sm:$0xff] }
 0x3a5   :  { %19699 = vmatpush.bf16.msrb.mxu3 %v31281_v8 }
 0x3a6   :  { %19661 = vmatpush.bf16.msrb.mxu0 %v31256_v11  ;;  %v19435_v30 = vpop.f32.mrf.mxu2  ;;  %v19411_v34 = vpop.f32.mrf.mxu0 }
 0x3a7   :  { %19674 = vmatpush.bf16.msrb.mxu1 %v31264_v12  ;;  %v19436_v31 = vadd.f32 %v19435_v30, %v19423_v25  ;;  %v19448_v33 = vpop.f32.mrf.mxu3  ;;  %v19424_v37 = vpop.f32.mrf.mxu1  ;;  %v31294_v12 = vld [vmem:[%s39439_s1 + $0x1e60] sm:$0xff]  ;;  %v31284_v25 = vld [vmem:[%s39439_s1 + $0x1e10] sm:$0xff]  ;;  %v31283_v30 = vld [vmem:[%s39439_s1 + $0x1e08] sm:$0xff] }
 0x3a8   :  { %19687 = vmatpush.bf16.msrb.mxu2 %v31272_v13  ;;  %v31302_v13 = vld [vmem:[%s39439_s1 + $0x1ea0] sm:$0xff] }
 0x3a9   :  { %19700 = vmatpush.bf16.msrb.mxu3 %v31280_v14  ;;  %v35547_v35 = vadd.f32 %v19448_v33, %v19436_v31  ;;  %v65_v31 = vld [vmem:[%s39438_s0 + $0xf8] sm:$0xff]  ;;  %v31299_v33 = vld [vmem:[%s39439_s1 + $0x1e88] sm:$0xff]  ;;  %v31282_v37 = vld [vmem:[%s39439_s1 + $0x1e00] sm:$0xff] }
 0x3aa   :  { %19662 = vmatpush.bf16.msrb.mxu0 %v31255_v15  ;;  %v31310_v15 = vld [vmem:[%s39439_s1 + $0x1ee0] sm:$0xff]  ;;  %320 = vst [vmem:[#allocation1 + $0x20] ss:$4 sm:$0xff] %v65_v31  ;;  %v31353_v31 = vld [vmem:[%s39439_s1 + $0x2038] sm:$0xff] }
 0x3ab   :  { %19675 = vmatpush.bf16.msrb.mxu1 %v31263_v16  ;;  %v31285_v16 = vld [vmem:[%s39439_s1 + $0x1e18] sm:$0xff] }
 0x3ac   :  { %19688 = vmatpush.bf16.msrb.mxu2 %v31271_v17  ;;  %v31293_v17 = vld [vmem:[%s39439_s1 + $0x1e58] sm:$0xff] }
 0x3ad   :  { %19701 = vmatpush.bf16.msrb.mxu3 %v31279_v18  ;;  %v31301_v18 = vld [vmem:[%s39439_s1 + $0x1e98] sm:$0xff] }
 0x3ae   :  { %19663 = vmatpush.bf16.msrb.mxu0 %v31254_v21  ;;  %v19437_v45 = vpop.f32.mrf.mxu2  ;;  %v31309_v21 = vld [vmem:[%s39439_s1 + $0x1ed8] sm:$0xff] }
 0x3af   :  { %19676 = vmatpush.bf16.msrb.mxu1 %v31262_v23  ;;  %v19450_v47 = vpop.f32.mrf.mxu3  ;;  %v31337_v45 = vld [vmem:[%s39439_s1 + $0x1fb8] sm:$0xff] }
 0x3b0   :  { %19689 = vmatpush.bf16.msrb.mxu2 %v31270_v24  ;;  %v324_v47 = vld.sshfl [vmem:[#allocation1 + $0x18] sm:$0xff pattern:$0x73625140] }
 0x3b1   :  { %19702 = vmatpush.bf16.msrb.mxu3 %v31278_v26  ;;  %v895_v52 = vpack.c.bf16 %v324_v47, %v324_v47  ;;  %v31359_v47 = vld [vmem:[%s39439_s1 + $0x2068] sm:$0xff] }
 0x3b2   :  { %19664 = vmatpush.bf16.msrb.mxu0 %v31253_v27  ;;  %v31292_v27 = vld [vmem:[%s39439_s1 + $0x1e50] sm:$0xff] }
 0x3b3   :  { %19677 = vmatpush.bf16.msrb.mxu1 %v31261_v28  ;;  %v31300_v28 = vld [vmem:[%s39439_s1 + $0x1e90] sm:$0xff] }
 0x3b4   :  { %19690 = vmatpush.bf16.msrb.mxu2 %v31269_v29  ;;  %v31308_v29 = vld [vmem:[%s39439_s1 + $0x1ed0] sm:$0xff] }
 0x3b5   :  { %19703 = vmatpush.bf16.msrb.mxu3 %v31277_v32  ;;  %v31291_v32 = vld [vmem:[%s39439_s1 + $0x1e48] sm:$0xff] }
 0x3b6   :  { %19665 = vmatpush.bf16.msrb.mxu0 %v31252_v36 }
 0x3b7   :  { %19678 = vmatpush.bf16.msrb.mxu1 %v31260_v38  ;;  %v31290_v38 = vld [vmem:[%s39439_s1 + $0x1e40] sm:$0xff] }
 0x3b8   :  { %19691 = vmatpush.bf16.msrb.mxu2 %v31268_v39  ;;  %v31298_v39 = vld [vmem:[%s39439_s1 + $0x1e80] sm:$0xff] }
 0x3b9   :  { %19704 = vmatpush.bf16.msrb.mxu3 %v31276_v40  ;;  %v321_v40 = vld.sshfl [vmem:[#allocation1] sm:$0xff pattern:$0x73625140] }
 0x3ba   :  { %19666 = vmatpush.bf16.msrb.mxu0 %v31251_v41  ;;  %v323_v41 = vld.sshfl [vmem:[#allocation1 + $0x10] sm:$0xff pattern:$0x73625140] }
 0x3bb   :  { %19679 = vmatpush.bf16.msrb.mxu1 %v31259_v43  ;;  %v31329_v43 = vld [vmem:[%s39439_s1 + $0x1f78] sm:$0xff] }
 0x3bc   :  { %19692 = vmatpush.bf16.msrb.mxu2 %v31267_v44  ;;  %v322_v44 = vld.sshfl [vmem:[#allocation1 + $0x8] sm:$0xff pattern:$0x73625140] }
 0x3bd   :  { %19705 = vmatpush.bf16.msrb.mxu3 %v31275_v46  ;;  %v31306_v46 = vld [vmem:[%s39439_s1 + $0x1ec0] sm:$0xff]  ;;  %v893_v51 = vpack.c.bf16 %v322_v44, %v322_v44  ;;  %v31368_v44 = vld [vmem:[%s39439_s1 + $0x20b0] sm:$0xff] }
 0x3be   :  { %19667 = vmatpush.bf16.msrb.mxu0 %v31250_v48  ;;  %v19461_v8 = vpop.f32.mrf.mxu0  ;;  %v892_v48 = vpack.c.bf16 %v321_v40, %v321_v40 }
 0x3bf   :  { %19680 = vmatpush.bf16.msrb.mxu1 %v31258_v49  ;;  %v19462_v9 = vadd.f32 %v19461_v8, %v35547_v35  ;;  %v19474_v11 = vpop.f32.mrf.mxu1  ;;  %v31307_v35 = vld [vmem:[%s39439_s1 + $0x1ec8] sm:$0xff]  ;;  %v894_v49 = vpack.c.bf16 %v323_v41, %v323_v41 }
 0x3c0   :  { %19693 = vmatpush.bf16.msrb.mxu2 %v31266_v50  ;;  %v31345_v50 = vld [vmem:[%s39439_s1 + $0x1ff8] sm:$0xff] }
 0x3c1   :  { %19706 = vmatpush.bf16.msrb.mxu3 %v31274_v57  ;;  %19668 = vmatmul.bf16.vlgmr.msrb.gmra.mxu0 %v888_v59  ;;  %v19475_v14 = vadd.f32 %v19474_v11, %v19462_v9  ;;  %v31319_v57 = vld [vmem:[%s39439_s1 + $0x1f28] sm:$0xff] }
 0x3c2   :  { %19712 = vmatpush.bf16.msra.mxu0 %v31289_v53  ;;  %19681 = vmatmul.bf16.vlgmr.msrb.gmra.mxu1 %v889_v62  ;;  %v31320_v53 = vld [vmem:[%s39439_s1 + $0x1f30] sm:$0xff]  ;;  %v31335_v59 = vld [vmem:[%s39439_s1 + $0x1fa8] sm:$0xff] }
 0x3c3   :  { %19725 = vmatpush.bf16.msra.mxu1 %v31297_v54  ;;  %19694 = vmatmul.bf16.vlgmr.msrb.gmra.mxu2 %v890_v60  ;;  %v31328_v54 = vld [vmem:[%s39439_s1 + $0x1f70] sm:$0xff]  ;;  %v31343_v60 = vld [vmem:[%s39439_s1 + $0x1fe8] sm:$0xff] }
 0x3c4   :  { %19738 = vmatpush.bf16.msra.mxu2 %v31305_v56  ;;  %19707 = vmatmul.bf16.vlgmr.msrb.gmra.mxu3 %v891_v63  ;;  %v31344_v56 = vld [vmem:[%s39439_s1 + $0x1ff0] sm:$0xff]  ;;  %v31318_v63 = vld [vmem:[%s39439_s1 + $0x1f20] sm:$0xff] }
 0x3c5   :  { %19751 = vmatpush.bf16.msra.mxu3 %v31313_v61 }
 0x3c6   :  { %19713 = vmatpush.bf16.msra.mxu0 %v31288_v0  ;;  %v19487_v19 = vpop.f32.mrf.mxu2  ;;  %v19463_v23 = vpop.f32.mrf.mxu0 }
 0x3c7   :  { %19726 = vmatpush.bf16.msra.mxu1 %v31296_v1  ;;  %v19488_v20 = vadd.f32 %v19487_v19, %v19475_v14  ;;  %v19500_v22 = vpop.f32.mrf.mxu3  ;;  %v19476_v26 = vpop.f32.mrf.mxu1  ;;  %v31326_v1 = vld [vmem:[%s39439_s1 + $0x1f60] sm:$0xff]  ;;  %v31316_v14 = vld [vmem:[%s39439_s1 + $0x1f10] sm:$0xff]  ;;  %v31315_v19 = vld [vmem:[%s39439_s1 + $0x1f08] sm:$0xff] }
 0x3c8   :  { %19739 = vmatpush.bf16.msra.mxu2 %v31304_v2  ;;  %v31334_v2 = vld [vmem:[%s39439_s1 + $0x1fa0] sm:$0xff] }
 0x3c9   :  { %19752 = vmatpush.bf16.msra.mxu3 %v31312_v3  ;;  %v35649_v24 = vadd.f32 %v19500_v22, %v19488_v20  ;;  %v66_v20 = vld [vmem:[%s39438_s0 + $0x100] sm:$0xff]  ;;  %v31331_v22 = vld [vmem:[%s39439_s1 + $0x1f88] sm:$0xff] }
 0x3ca   :  { %19714 = vmatpush.bf16.msra.mxu0 %v31287_v4  ;;  %v31342_v4 = vld [vmem:[%s39439_s1 + $0x1fe0] sm:$0xff]  ;;  %329 = vst [vmem:[#allocation1] ss:$4 sm:$0xff] %v66_v20  ;;  %v31385_v20 = vld [vmem:[%s39439_s1 + $0x2138] sm:$0xff] }
 0x3cb   :  { %19727 = vmatpush.bf16.msra.mxu1 %v31295_v5  ;;  %v31317_v5 = vld [vmem:[%s39439_s1 + $0x1f18] sm:$0xff]  ;;  %v31314_v26 = vld [vmem:[%s39439_s1 + $0x1f00] sm:$0xff] }
 0x3cc   :  { %19740 = vmatpush.bf16.msra.mxu2 %v31303_v6  ;;  %v31325_v6 = vld [vmem:[%s39439_s1 + $0x1f58] sm:$0xff] }
 0x3cd   :  { %19753 = vmatpush.bf16.msra.mxu3 %v31311_v7  ;;  %v31333_v7 = vld [vmem:[%s39439_s1 + $0x1f98] sm:$0xff] }
 0x3ce   :  { %19715 = vmatpush.bf16.msra.mxu0 %v31286_v10  ;;  %v19489_v34 = vpop.f32.mrf.mxu2  ;;  %v31341_v10 = vld [vmem:[%s39439_s1 + $0x1fd8] sm:$0xff] }
 0x3cf   :  { %19728 = vmatpush.bf16.msra.mxu1 %v31294_v12  ;;  %v19502_v36 = vpop.f32.mrf.mxu3  ;;  %v31369_v34 = vld [vmem:[%s39439_s1 + $0x20b8] sm:$0xff] }
 0x3d0   :  { %19741 = vmatpush.bf16.msra.mxu2 %v31302_v13  ;;  %v328_v36 = vld.sshfl [vmem:[#allocation1 + $0x38] sm:$0xff pattern:$0x73625140] }
 0x3d1   :  { %19754 = vmatpush.bf16.msra.mxu3 %v31310_v15  ;;  %v899_v41 = vpack.c.bf16 %v328_v36, %v328_v36  ;;  %v31391_v36 = vld [vmem:[%s39439_s1 + $0x2168] sm:$0xff] }
 0x3d2   :  { %19716 = vmatpush.bf16.msra.mxu0 %v31285_v16  ;;  %v31324_v16 = vld [vmem:[%s39439_s1 + $0x1f50] sm:$0xff] }
 0x3d3   :  { %19729 = vmatpush.bf16.msra.mxu1 %v31293_v17  ;;  %v31332_v17 = vld [vmem:[%s39439_s1 + $0x1f90] sm:$0xff] }
 0x3d4   :  { %19742 = vmatpush.bf16.msra.mxu2 %v31301_v18  ;;  %v31340_v18 = vld [vmem:[%s39439_s1 + $0x1fd0] sm:$0xff] }
 0x3d5   :  { %19755 = vmatpush.bf16.msra.mxu3 %v31309_v21  ;;  %v31323_v21 = vld [vmem:[%s39439_s1 + $0x1f48] sm:$0xff] }
 0x3d6   :  { %19717 = vmatpush.bf16.msra.mxu0 %v31284_v25 }
 0x3d7   :  { %19730 = vmatpush.bf16.msra.mxu1 %v31292_v27  ;;  %v31322_v27 = vld [vmem:[%s39439_s1 + $0x1f40] sm:$0xff] }
 0x3d8   :  { %19743 = vmatpush.bf16.msra.mxu2 %v31300_v28  ;;  %v31330_v28 = vld [vmem:[%s39439_s1 + $0x1f80] sm:$0xff] }
 0x3d9   :  { %19756 = vmatpush.bf16.msra.mxu3 %v31308_v29  ;;  %v325_v29 = vld.sshfl [vmem:[#allocation1 + $0x20] sm:$0xff pattern:$0x73625140] }
 0x3da   :  { %19718 = vmatpush.bf16.msra.mxu0 %v31283_v30  ;;  %v327_v30 = vld.sshfl [vmem:[#allocation1 + $0x30] sm:$0xff pattern:$0x73625140] }
 0x3db   :  { %19731 = vmatpush.bf16.msra.mxu1 %v31291_v32  ;;  %v31361_v32 = vld [vmem:[%s39439_s1 + $0x2078] sm:$0xff] }
 0x3dc   :  { %19744 = vmatpush.bf16.msra.mxu2 %v31299_v33  ;;  %v326_v33 = vld.sshfl [vmem:[#allocation1 + $0x28] sm:$0xff pattern:$0x73625140] }
 0x3dd   :  { %19757 = vmatpush.bf16.msra.mxu3 %v31307_v35  ;;  %v31338_v35 = vld [vmem:[%s39439_s1 + $0x1fc0] sm:$0xff]  ;;  %v897_v40 = vpack.c.bf16 %v326_v33, %v326_v33  ;;  %v31400_v33 = vld [vmem:[%s39439_s1 + $0x21b0] sm:$0xff] }
 0x3de   :  { %19719 = vmatpush.bf16.msra.mxu0 %v31282_v37  ;;  %v19513_v61 = vpop.f32.mrf.mxu0  ;;  %v896_v37 = vpack.c.bf16 %v325_v29, %v325_v29 }
 0x3df   :  { %19732 = vmatpush.bf16.msra.mxu1 %v31290_v38  ;;  %v19514_v62 = vadd.f32 %v19513_v61, %v35649_v24  ;;  %v19526_v0 = vpop.f32.mrf.mxu1  ;;  %v31339_v24 = vld [vmem:[%s39439_s1 + $0x1fc8] sm:$0xff]  ;;  %v898_v38 = vpack.c.bf16 %v327_v30, %v327_v30 }
 0x3e0   :  { %19745 = vmatpush.bf16.msra.mxu2 %v31298_v39  ;;  %v31377_v39 = vld [vmem:[%s39439_s1 + $0x20f8] sm:$0xff] }
 0x3e1   :  { %19758 = vmatpush.bf16.msra.mxu3 %v31306_v46  ;;  %19720 = vmatmul.bf16.vlgmr.msra.gmra.mxu0 %v892_v48  ;;  %v19527_v3 = vadd.f32 %v19526_v0, %v19514_v62  ;;  %v31351_v46 = vld [vmem:[%s39439_s1 + $0x2028] sm:$0xff] }
 0x3e2   :  { %19764 = vmatpush.bf16.msrb.mxu0 %v31321_v42  ;;  %19733 = vmatmul.bf16.vlgmr.msra.gmra.mxu1 %v893_v51  ;;  %v31352_v42 = vld [vmem:[%s39439_s1 + $0x2030] sm:$0xff]  ;;  %v31367_v48 = vld [vmem:[%s39439_s1 + $0x20a8] sm:$0xff] }
 0x3e3   :  { %19777 = vmatpush.bf16.msrb.mxu1 %v31329_v43  ;;  %19746 = vmatmul.bf16.vlgmr.msra.gmra.mxu2 %v894_v49  ;;  %v31360_v43 = vld [vmem:[%s39439_s1 + $0x2070] sm:$0xff]  ;;  %v31375_v49 = vld [vmem:[%s39439_s1 + $0x20e8] sm:$0xff] }
 0x3e4   :  { %19790 = vmatpush.bf16.msrb.mxu2 %v31337_v45  ;;  %19759 = vmatmul.bf16.vlgmr.msra.gmra.mxu3 %v895_v52  ;;  %v31376_v45 = vld [vmem:[%s39439_s1 + $0x20f0] sm:$0xff]  ;;  %v31350_v52 = vld [vmem:[%s39439_s1 + $0x2020] sm:$0xff] }
 0x3e5   :  { %19803 = vmatpush.bf16.msrb.mxu3 %v31345_v50 }
 0x3e6   :  { %19765 = vmatpush.bf16.msrb.mxu0 %v31320_v53  ;;  %v19539_v8 = vpop.f32.mrf.mxu2  ;;  %v19515_v12 = vpop.f32.mrf.mxu0 }
 0x3e7   :  { %19778 = vmatpush.bf16.msrb.mxu1 %v31328_v54  ;;  %v19540_v9 = vadd.f32 %v19539_v8, %v19527_v3  ;;  %v19552_v11 = vpop.f32.mrf.mxu3  ;;  %v19528_v15 = vpop.f32.mrf.mxu1  ;;  %v31358_v54 = vld [vmem:[%s39439_s1 + $0x2060] sm:$0xff]  ;;  %v31348_v3 = vld [vmem:[%s39439_s1 + $0x2010] sm:$0xff]  ;;  %v31347_v8 = vld [vmem:[%s39439_s1 + $0x2008] sm:$0xff] }
 0x3e8   :  { %19791 = vmatpush.bf16.msrb.mxu2 %v31336_v55  ;;  %v31366_v55 = vld [vmem:[%s39439_s1 + $0x20a0] sm:$0xff] }
 0x3e9   :  { %19804 = vmatpush.bf16.msrb.mxu3 %v31344_v56  ;;  %v35751_v13 = vadd.f32 %v19552_v11, %v19540_v9  ;;  %v67_v9 = vld [vmem:[%s39438_s0 + $0x108] sm:$0xff]  ;;  %v31346_v15 = vld [vmem:[%s39439_s1 + $0x2000] sm:$0xff] }
 0x3ea   :  { %19766 = vmatpush.bf16.msrb.mxu0 %v31319_v57  ;;  %v31374_v57 = vld [vmem:[%s39439_s1 + $0x20e0] sm:$0xff]  ;;  %v31363_v11 = vld [vmem:[%s39439_s1 + $0x2088] sm:$0xff]  ;;  %330 = vst [vmem:[#allocation1 + $0x20] ss:$4 sm:$0xff] %v67_v9  ;;  %v31417_v9 = vld [vmem:[%s39439_s1 + $0x2238] sm:$0xff] }
 0x3eb   :  { %19779 = vmatpush.bf16.msrb.mxu1 %v31327_v58  ;;  %v31349_v58 = vld [vmem:[%s39439_s1 + $0x2018] sm:$0xff] }
 0x3ec   :  { %19792 = vmatpush.bf16.msrb.mxu2 %v31335_v59  ;;  %v31357_v59 = vld [vmem:[%s39439_s1 + $0x2058] sm:$0xff] }
 0x3ed   :  { %19805 = vmatpush.bf16.msrb.mxu3 %v31343_v60  ;;  %v31365_v60 = vld [vmem:[%s39439_s1 + $0x2098] sm:$0xff] }
 0x3ee   :  { %19767 = vmatpush.bf16.msrb.mxu0 %v31318_v63  ;;  %v19541_v23 = vpop.f32.mrf.mxu2  ;;  %v31373_v63 = vld [vmem:[%s39439_s1 + $0x20d8] sm:$0xff] }
 0x3ef   :  { %19780 = vmatpush.bf16.msrb.mxu1 %v31326_v1  ;;  %v19554_v25 = vpop.f32.mrf.mxu3  ;;  %v31401_v23 = vld [vmem:[%s39439_s1 + $0x21b8] sm:$0xff] }
 0x3f0   :  { %19793 = vmatpush.bf16.msrb.mxu2 %v31334_v2  ;;  %v334_v25 = vld.sshfl [vmem:[#allocation1 + $0x18] sm:$0xff pattern:$0x73625140] }
 0x3f1   :  { %19806 = vmatpush.bf16.msrb.mxu3 %v31342_v4  ;;  %v903_v30 = vpack.c.bf16 %v334_v25, %v334_v25  ;;  %v31423_v25 = vld [vmem:[%s39439_s1 + $0x2268] sm:$0xff] }
 0x3f2   :  { %19768 = vmatpush.bf16.msrb.mxu0 %v31317_v5  ;;  %v31356_v5 = vld [vmem:[%s39439_s1 + $0x2050] sm:$0xff] }
 0x3f3   :  { %19781 = vmatpush.bf16.msrb.mxu1 %v31325_v6  ;;  %v31364_v6 = vld [vmem:[%s39439_s1 + $0x2090] sm:$0xff] }
 0x3f4   :  { %19794 = vmatpush.bf16.msrb.mxu2 %v31333_v7  ;;  %v31372_v7 = vld [vmem:[%s39439_s1 + $0x20d0] sm:$0xff] }
 0x3f5   :  { %19807 = vmatpush.bf16.msrb.mxu3 %v31341_v10  ;;  %v31355_v10 = vld [vmem:[%s39439_s1 + $0x2048] sm:$0xff] }
 0x3f6   :  { %19769 = vmatpush.bf16.msrb.mxu0 %v31316_v14 }
 0x3f7   :  { %19782 = vmatpush.bf16.msrb.mxu1 %v31324_v16  ;;  %v31354_v16 = vld [vmem:[%s39439_s1 + $0x2040] sm:$0xff] }
 0x3f8   :  { %19795 = vmatpush.bf16.msrb.mxu2 %v31332_v17  ;;  %v31362_v17 = vld [vmem:[%s39439_s1 + $0x2080] sm:$0xff] }
 0x3f9   :  { %19808 = vmatpush.bf16.msrb.mxu3 %v31340_v18  ;;  %v331_v18 = vld.sshfl [vmem:[#allocation1] sm:$0xff pattern:$0x73625140] }
 0x3fa   :  { %19770 = vmatpush.bf16.msrb.mxu0 %v31315_v19  ;;  %v333_v19 = vld.sshfl [vmem:[#allocation1 + $0x10] sm:$0xff pattern:$0x73625140] }
 0x3fb   :  { %19783 = vmatpush.bf16.msrb.mxu1 %v31323_v21  ;;  %v31393_v21 = vld [vmem:[%s39439_s1 + $0x2178] sm:$0xff] }
 0x3fc   :  { %19796 = vmatpush.bf16.msrb.mxu2 %v31331_v22  ;;  %v332_v22 = vld.sshfl [vmem:[#allocation1 + $0x8] sm:$0xff pattern:$0x73625140] }
 0x3fd   :  { %19809 = vmatpush.bf16.msrb.mxu3 %v31339_v24  ;;  %v31370_v24 = vld [vmem:[%s39439_s1 + $0x20c0] sm:$0xff]  ;;  %v901_v29 = vpack.c.bf16 %v332_v22, %v332_v22  ;;  %v31432_v22 = vld [vmem:[%s39439_s1 + $0x22b0] sm:$0xff] }
 0x3fe   :  { %19771 = vmatpush.bf16.msrb.mxu0 %v31314_v26  ;;  %v19565_v50 = vpop.f32.mrf.mxu0  ;;  %v900_v26 = vpack.c.bf16 %v331_v18, %v331_v18 }
 0x3ff   :  { %19784 = vmatpush.bf16.msrb.mxu1 %v31322_v27  ;;  %v19566_v51 = vadd.f32 %v19565_v50, %v35751_v13  ;;  %v19578_v53 = vpop.f32.mrf.mxu1  ;;  %v31371_v13 = vld [vmem:[%s39439_s1 + $0x20c8] sm:$0xff]  ;;  %v902_v27 = vpack.c.bf16 %v333_v19, %v333_v19 }
 0x400   :  { %19797 = vmatpush.bf16.msrb.mxu2 %v31330_v28  ;;  %v31409_v28 = vld [vmem:[%s39439_s1 + $0x21f8] sm:$0xff] }
 0x401   :  { %19810 = vmatpush.bf16.msrb.mxu3 %v31338_v35  ;;  %19772 = vmatmul.bf16.vlgmr.msrb.gmra.mxu0 %v896_v37  ;;  %v19579_v56 = vadd.f32 %v19578_v53, %v19566_v51  ;;  %v31383_v35 = vld [vmem:[%s39439_s1 + $0x2128] sm:$0xff] }
 0x402   :  { %19816 = vmatpush.bf16.msra.mxu0 %v31353_v31  ;;  %19785 = vmatmul.bf16.vlgmr.msrb.gmra.mxu1 %v897_v40  ;;  %v31384_v31 = vld [vmem:[%s39439_s1 + $0x2130] sm:$0xff]  ;;  %v31399_v37 = vld [vmem:[%s39439_s1 + $0x21a8] sm:$0xff] }
 0x403   :  { %19829 = vmatpush.bf16.msra.mxu1 %v31361_v32  ;;  %19798 = vmatmul.bf16.vlgmr.msrb.gmra.mxu2 %v898_v38  ;;  %v31392_v32 = vld [vmem:[%s39439_s1 + $0x2170] sm:$0xff]  ;;  %v31407_v38 = vld [vmem:[%s39439_s1 + $0x21e8] sm:$0xff] }
 0x404   :  { %19842 = vmatpush.bf16.msra.mxu2 %v31369_v34  ;;  %19811 = vmatmul.bf16.vlgmr.msrb.gmra.mxu3 %v899_v41  ;;  %v31408_v34 = vld [vmem:[%s39439_s1 + $0x21f0] sm:$0xff]  ;;  %v31382_v41 = vld [vmem:[%s39439_s1 + $0x2120] sm:$0xff] }
 0x405   :  { %19855 = vmatpush.bf16.msra.mxu3 %v31377_v39 }
 0x406   :  { %19817 = vmatpush.bf16.msra.mxu0 %v31352_v42  ;;  %v19591_v61 = vpop.f32.mrf.mxu2  ;;  %v19567_v1 = vpop.f32.mrf.mxu0 }
 0x407   :  { %19830 = vmatpush.bf16.msra.mxu1 %v31360_v43  ;;  %v19592_v62 = vadd.f32 %v19591_v61, %v19579_v56  ;;  %v19604_v0 = vpop.f32.mrf.mxu3  ;;  %v19580_v4 = vpop.f32.mrf.mxu1  ;;  %v31390_v43 = vld [vmem:[%s39439_s1 + $0x2160] sm:$0xff]  ;;  %v31380_v56 = vld [vmem:[%s39439_s1 + $0x2110] sm:$0xff]  ;;  %v31379_v61 = vld [vmem:[%s39439_s1 + $0x2108] sm:$0xff] }
 0x408   :  { %19843 = vmatpush.bf16.msra.mxu2 %v31368_v44  ;;  %v31398_v44 = vld [vmem:[%s39439_s1 + $0x21a0] sm:$0xff] }
 0x409   :  { %19856 = vmatpush.bf16.msra.mxu3 %v31376_v45  ;;  %v35853_v2 = vadd.f32 %v19604_v0, %v19592_v62  ;;  %v68_v62 = vld [vmem:[%s39438_s0 + $0x110] sm:$0xff]  ;;  %v31395_v0 = vld [vmem:[%s39439_s1 + $0x2188] sm:$0xff]  ;;  %v31378_v4 = vld [vmem:[%s39439_s1 + $0x2100] sm:$0xff] }
 0x40a   :  { %19818 = vmatpush.bf16.msra.mxu0 %v31351_v46  ;;  %v31406_v46 = vld [vmem:[%s39439_s1 + $0x21e0] sm:$0xff]  ;;  %339 = vst [vmem:[#allocation1] ss:$4 sm:$0xff] %v68_v62  ;;  %v31449_v62 = vld [vmem:[%s39439_s1 + $0x2338] sm:$0xff] }
 0x40b   :  { %19831 = vmatpush.bf16.msra.mxu1 %v31359_v47  ;;  %v31381_v47 = vld [vmem:[%s39439_s1 + $0x2118] sm:$0xff] }
 0x40c   :  { %19844 = vmatpush.bf16.msra.mxu2 %v31367_v48  ;;  %v31389_v48 = vld [vmem:[%s39439_s1 + $0x2158] sm:$0xff] }
 0x40d   :  { %19857 = vmatpush.bf16.msra.mxu3 %v31375_v49  ;;  %v31397_v49 = vld [vmem:[%s39439_s1 + $0x2198] sm:$0xff] }
 0x40e   :  { %19819 = vmatpush.bf16.msra.mxu0 %v31350_v52  ;;  %v19593_v12 = vpop.f32.mrf.mxu2  ;;  %v31405_v52 = vld [vmem:[%s39439_s1 + $0x21d8] sm:$0xff] }
 0x40f   :  { %19832 = vmatpush.bf16.msra.mxu1 %v31358_v54  ;;  %v19606_v14 = vpop.f32.mrf.mxu3  ;;  %v31433_v12 = vld [vmem:[%s39439_s1 + $0x22b8] sm:$0xff] }
 0x410   :  { %19845 = vmatpush.bf16.msra.mxu2 %v31366_v55  ;;  %v338_v14 = vld.sshfl [vmem:[#allocation1 + $0x38] sm:$0xff pattern:$0x73625140] }
 0x411   :  { %19858 = vmatpush.bf16.msra.mxu3 %v31374_v57  ;;  %v907_v19 = vpack.c.bf16 %v338_v14, %v338_v14  ;;  %v31455_v14 = vld [vmem:[%s39439_s1 + $0x2368] sm:$0xff] }
 0x412   :  { %19820 = vmatpush.bf16.msra.mxu0 %v31349_v58  ;;  %v31388_v58 = vld [vmem:[%s39439_s1 + $0x2150] sm:$0xff] }
 0x413   :  { %19833 = vmatpush.bf16.msra.mxu1 %v31357_v59  ;;  %v31396_v59 = vld [vmem:[%s39439_s1 + $0x2190] sm:$0xff] }
 0x414   :  { %19846 = vmatpush.bf16.msra.mxu2 %v31365_v60  ;;  %v31404_v60 = vld [vmem:[%s39439_s1 + $0x21d0] sm:$0xff] }
 0x415   :  { %19859 = vmatpush.bf16.msra.mxu3 %v31373_v63  ;;  %v31387_v63 = vld [vmem:[%s39439_s1 + $0x2148] sm:$0xff] }
 0x416   :  { %19821 = vmatpush.bf16.msra.mxu0 %v31348_v3 }
 0x417   :  { %19834 = vmatpush.bf16.msra.mxu1 %v31356_v5  ;;  %v31386_v5 = vld [vmem:[%s39439_s1 + $0x2140] sm:$0xff] }
 0x418   :  { %19847 = vmatpush.bf16.msra.mxu2 %v31364_v6  ;;  %v31394_v6 = vld [vmem:[%s39439_s1 + $0x2180] sm:$0xff] }
 0x419   :  { %19860 = vmatpush.bf16.msra.mxu3 %v31372_v7  ;;  %v335_v7 = vld.sshfl [vmem:[#allocation1 + $0x20] sm:$0xff pattern:$0x73625140] }
 0x41a   :  { %19822 = vmatpush.bf16.msra.mxu0 %v31347_v8  ;;  %v337_v8 = vld.sshfl [vmem:[#allocation1 + $0x30] sm:$0xff pattern:$0x73625140] }
 0x41b   :  { %19835 = vmatpush.bf16.msra.mxu1 %v31355_v10  ;;  %v31425_v10 = vld [vmem:[%s39439_s1 + $0x2278] sm:$0xff] }
 0x41c   :  { %19848 = vmatpush.bf16.msra.mxu2 %v31363_v11  ;;  %v336_v11 = vld.sshfl [vmem:[#allocation1 + $0x28] sm:$0xff pattern:$0x73625140] }
 0x41d   :  { %19861 = vmatpush.bf16.msra.mxu3 %v31371_v13  ;;  %v31402_v13 = vld [vmem:[%s39439_s1 + $0x21c0] sm:$0xff]  ;;  %v905_v18 = vpack.c.bf16 %v336_v11, %v336_v11  ;;  %v31464_v11 = vld [vmem:[%s39439_s1 + $0x23b0] sm:$0xff] }
 0x41e   :  { %19823 = vmatpush.bf16.msra.mxu0 %v31346_v15  ;;  %v19617_v39 = vpop.f32.mrf.mxu0  ;;  %v904_v15 = vpack.c.bf16 %v335_v7, %v335_v7 }
 0x41f   :  { %19836 = vmatpush.bf16.msra.mxu1 %v31354_v16  ;;  %v19618_v40 = vadd.f32 %v19617_v39, %v35853_v2  ;;  %v19630_v42 = vpop.f32.mrf.mxu1  ;;  %v31403_v2 = vld [vmem:[%s39439_s1 + $0x21c8] sm:$0xff]  ;;  %v906_v16 = vpack.c.bf16 %v337_v8, %v337_v8 }
 0x420   :  { %19849 = vmatpush.bf16.msra.mxu2 %v31362_v17  ;;  %v31441_v17 = vld [vmem:[%s39439_s1 + $0x22f8] sm:$0xff] }
 0x421   :  { %19862 = vmatpush.bf16.msra.mxu3 %v31370_v24  ;;  %19824 = vmatmul.bf16.vlgmr.msra.gmra.mxu0 %v900_v26  ;;  %v19631_v45 = vadd.f32 %v19630_v42, %v19618_v40  ;;  %v31415_v24 = vld [vmem:[%s39439_s1 + $0x2228] sm:$0xff] }
 0x422   :  { %19868 = vmatpush.bf16.msrb.mxu0 %v31385_v20  ;;  %19837 = vmatmul.bf16.vlgmr.msra.gmra.mxu1 %v901_v29  ;;  %v31416_v20 = vld [vmem:[%s39439_s1 + $0x2230] sm:$0xff]  ;;  %v31431_v26 = vld [vmem:[%s39439_s1 + $0x22a8] sm:$0xff] }
 0x423   :  { %19881 = vmatpush.bf16.msrb.mxu1 %v31393_v21  ;;  %19850 = vmatmul.bf16.vlgmr.msra.gmra.mxu2 %v902_v27  ;;  %v31424_v21 = vld [vmem:[%s39439_s1 + $0x2270] sm:$0xff]  ;;  %v31439_v27 = vld [vmem:[%s39439_s1 + $0x22e8] sm:$0xff] }
 0x424   :  { %19894 = vmatpush.bf16.msrb.mxu2 %v31401_v23  ;;  %19863 = vmatmul.bf16.vlgmr.msra.gmra.mxu3 %v903_v30  ;;  %v31440_v23 = vld [vmem:[%s39439_s1 + $0x22f0] sm:$0xff]  ;;  %v31414_v30 = vld [vmem:[%s39439_s1 + $0x2220] sm:$0xff] }
 0x425   :  { %19907 = vmatpush.bf16.msrb.mxu3 %v31409_v28 }
 0x426   :  { %19869 = vmatpush.bf16.msrb.mxu0 %v31384_v31  ;;  %v19643_v50 = vpop.f32.mrf.mxu2  ;;  %v19619_v54 = vpop.f32.mrf.mxu0 }
 0x427   :  { %19882 = vmatpush.bf16.msrb.mxu1 %v31392_v32  ;;  %v19644_v51 = vadd.f32 %v19643_v50, %v19631_v45  ;;  %v19656_v53 = vpop.f32.mrf.mxu3  ;;  %v19632_v57 = vpop.f32.mrf.mxu1  ;;  %v31422_v32 = vld [vmem:[%s39439_s1 + $0x2260] sm:$0xff]  ;;  %v31412_v45 = vld [vmem:[%s39439_s1 + $0x2210] sm:$0xff]  ;;  %v31411_v50 = vld [vmem:[%s39439_s1 + $0x2208] sm:$0xff] }
 0x428   :  { %19895 = vmatpush.bf16.msrb.mxu2 %v31400_v33  ;;  %v31430_v33 = vld [vmem:[%s39439_s1 + $0x22a0] sm:$0xff] }
 0x429   :  { %19908 = vmatpush.bf16.msrb.mxu3 %v31408_v34  ;;  %v35955_v55 = vadd.f32 %v19656_v53, %v19644_v51  ;;  %v69_v51 = vld [vmem:[%s39438_s0 + $0x118] sm:$0xff]  ;;  %v31427_v53 = vld [vmem:[%s39439_s1 + $0x2288] sm:$0xff]  ;;  %v31410_v57 = vld [vmem:[%s39439_s1 + $0x2200] sm:$0xff] }
 0x42a   :  { %19870 = vmatpush.bf16.msrb.mxu0 %v31383_v35  ;;  %v31438_v35 = vld [vmem:[%s39439_s1 + $0x22e0] sm:$0xff]  ;;  %340 = vst [vmem:[#allocation1 + $0x20] ss:$4 sm:$0xff] %v69_v51  ;;  %v31481_v51 = vld [vmem:[%s39439_s1 + $0x2438] sm:$0xff] }
 0x42b   :  { %19883 = vmatpush.bf16.msrb.mxu1 %v31391_v36  ;;  %v31413_v36 = vld [vmem:[%s39439_s1 + $0x2218] sm:$0xff] }
 0x42c   :  { %19896 = vmatpush.bf16.msrb.mxu2 %v31399_v37  ;;  %v31421_v37 = vld [vmem:[%s39439_s1 + $0x2258] sm:$0xff] }
 0x42d   :  { %19909 = vmatpush.bf16.msrb.mxu3 %v31407_v38  ;;  %v31429_v38 = vld [vmem:[%s39439_s1 + $0x2298] sm:$0xff] }
 0x42e   :  { %19871 = vmatpush.bf16.msrb.mxu0 %v31382_v41  ;;  %v19645_v1 = vpop.f32.mrf.mxu2  ;;  %v31437_v41 = vld [vmem:[%s39439_s1 + $0x22d8] sm:$0xff] }
 0x42f   :  { %19884 = vmatpush.bf16.msrb.mxu1 %v31390_v43  ;;  %v19658_v3 = vpop.f32.mrf.mxu3  ;;  %v31465_v1 = vld [vmem:[%s39439_s1 + $0x23b8] sm:$0xff] }
 0x430   :  { %19897 = vmatpush.bf16.msrb.mxu2 %v31398_v44  ;;  %v344_v3 = vld.sshfl [vmem:[#allocation1 + $0x18] sm:$0xff pattern:$0x73625140] }
 0x431   :  { %19910 = vmatpush.bf16.msrb.mxu3 %v31406_v46  ;;  %v911_v8 = vpack.c.bf16 %v344_v3, %v344_v3  ;;  %v31487_v3 = vld [vmem:[%s39439_s1 + $0x2468] sm:$0xff] }
 0x432   :  { %19872 = vmatpush.bf16.msrb.mxu0 %v31381_v47  ;;  %v31420_v47 = vld [vmem:[%s39439_s1 + $0x2250] sm:$0xff] }
 0x433   :  { %19885 = vmatpush.bf16.msrb.mxu1 %v31389_v48  ;;  %v31428_v48 = vld [vmem:[%s39439_s1 + $0x2290] sm:$0xff] }
 0x434   :  { %19898 = vmatpush.bf16.msrb.mxu2 %v31397_v49  ;;  %v31436_v49 = vld [vmem:[%s39439_s1 + $0x22d0] sm:$0xff] }
 0x435   :  { %19911 = vmatpush.bf16.msrb.mxu3 %v31405_v52  ;;  %v31419_v52 = vld [vmem:[%s39439_s1 + $0x2248] sm:$0xff] }
 0x436   :  { %19873 = vmatpush.bf16.msrb.mxu0 %v31380_v56 }
 0x437   :  { %19886 = vmatpush.bf16.msrb.mxu1 %v31388_v58  ;;  %v31418_v58 = vld [vmem:[%s39439_s1 + $0x2240] sm:$0xff] }
 0x438   :  { %19899 = vmatpush.bf16.msrb.mxu2 %v31396_v59  ;;  %v31426_v59 = vld [vmem:[%s39439_s1 + $0x2280] sm:$0xff] }
 0x439   :  { %19912 = vmatpush.bf16.msrb.mxu3 %v31404_v60  ;;  %v341_v60 = vld.sshfl [vmem:[#allocation1] sm:$0xff pattern:$0x73625140] }
 0x43a   :  { %19874 = vmatpush.bf16.msrb.mxu0 %v31379_v61  ;;  %v343_v61 = vld.sshfl [vmem:[#allocation1 + $0x10] sm:$0xff pattern:$0x73625140] }
 0x43b   :  { %19887 = vmatpush.bf16.msrb.mxu1 %v31387_v63  ;;  %v31457_v63 = vld [vmem:[%s39439_s1 + $0x2378] sm:$0xff] }
 0x43c   :  { %19900 = vmatpush.bf16.msrb.mxu2 %v31395_v0  ;;  %v342_v0 = vld.sshfl [vmem:[#allocation1 + $0x8] sm:$0xff pattern:$0x73625140] }
 0x43d   :  { %19913 = vmatpush.bf16.msrb.mxu3 %v31403_v2  ;;  %v31434_v2 = vld [vmem:[%s39439_s1 + $0x22c0] sm:$0xff]  ;;  %v909_v7 = vpack.c.bf16 %v342_v0, %v342_v0  ;;  %v31496_v0 = vld [vmem:[%s39439_s1 + $0x24b0] sm:$0xff] }
 0x43e   :  { %19875 = vmatpush.bf16.msrb.mxu0 %v31378_v4  ;;  %v19669_v28 = vpop.f32.mrf.mxu0  ;;  %v908_v4 = vpack.c.bf16 %v341_v60, %v341_v60 }
 0x43f   :  { %19888 = vmatpush.bf16.msrb.mxu1 %v31386_v5  ;;  %v19670_v29 = vadd.f32 %v19669_v28, %v35955_v55  ;;  %v19682_v31 = vpop.f32.mrf.mxu1  ;;  %v31435_v55 = vld [vmem:[%s39439_s1 + $0x22c8] sm:$0xff]  ;;  %v910_v5 = vpack.c.bf16 %v343_v61, %v343_v61 }
 0x440   :  { %19901 = vmatpush.bf16.msrb.mxu2 %v31394_v6  ;;  %v31473_v6 = vld [vmem:[%s39439_s1 + $0x23f8] sm:$0xff] }
 0x441   :  { %19914 = vmatpush.bf16.msrb.mxu3 %v31402_v13  ;;  %19876 = vmatmul.bf16.vlgmr.msrb.gmra.mxu0 %v904_v15  ;;  %v19683_v34 = vadd.f32 %v19682_v31, %v19670_v29  ;;  %v31447_v13 = vld [vmem:[%s39439_s1 + $0x2328] sm:$0xff] }
 0x442   :  { %19920 = vmatpush.bf16.msra.mxu0 %v31417_v9  ;;  %19889 = vmatmul.bf16.vlgmr.msrb.gmra.mxu1 %v905_v18  ;;  %v31448_v9 = vld [vmem:[%s39439_s1 + $0x2330] sm:$0xff]  ;;  %v31463_v15 = vld [vmem:[%s39439_s1 + $0x23a8] sm:$0xff] }
 0x443   :  { %19933 = vmatpush.bf16.msra.mxu1 %v31425_v10  ;;  %19902 = vmatmul.bf16.vlgmr.msrb.gmra.mxu2 %v906_v16  ;;  %v31456_v10 = vld [vmem:[%s39439_s1 + $0x2370] sm:$0xff]  ;;  %v31471_v16 = vld [vmem:[%s39439_s1 + $0x23e8] sm:$0xff] }
 0x444   :  { %19946 = vmatpush.bf16.msra.mxu2 %v31433_v12  ;;  %19915 = vmatmul.bf16.vlgmr.msrb.gmra.mxu3 %v907_v19  ;;  %v31472_v12 = vld [vmem:[%s39439_s1 + $0x23f0] sm:$0xff]  ;;  %v31446_v19 = vld [vmem:[%s39439_s1 + $0x2320] sm:$0xff] }
 0x445   :  { %19959 = vmatpush.bf16.msra.mxu3 %v31441_v17 }
 0x446   :  { %19921 = vmatpush.bf16.msra.mxu0 %v31416_v20  ;;  %v19695_v39 = vpop.f32.mrf.mxu2  ;;  %v19671_v43 = vpop.f32.mrf.mxu0 }
 0x447   :  { %19934 = vmatpush.bf16.msra.mxu1 %v31424_v21  ;;  %v19696_v40 = vadd.f32 %v19695_v39, %v19683_v34  ;;  %v19708_v42 = vpop.f32.mrf.mxu3  ;;  %v19684_v46 = vpop.f32.mrf.mxu1  ;;  %v31454_v21 = vld [vmem:[%s39439_s1 + $0x2360] sm:$0xff]  ;;  %v31444_v34 = vld [vmem:[%s39439_s1 + $0x2310] sm:$0xff]  ;;  %v31443_v39 = vld [vmem:[%s39439_s1 + $0x2308] sm:$0xff] }
 0x448   :  { %19947 = vmatpush.bf16.msra.mxu2 %v31432_v22  ;;  %v31462_v22 = vld [vmem:[%s39439_s1 + $0x23a0] sm:$0xff] }
 0x449   :  { %19960 = vmatpush.bf16.msra.mxu3 %v31440_v23  ;;  %v36057_v44 = vadd.f32 %v19708_v42, %v19696_v40  ;;  %v70_v40 = vld [vmem:[%s39438_s0 + $0x120] sm:$0xff]  ;;  %v31459_v42 = vld [vmem:[%s39439_s1 + $0x2388] sm:$0xff] }
 0x44a   :  { %19922 = vmatpush.bf16.msra.mxu0 %v31415_v24  ;;  %v31470_v24 = vld [vmem:[%s39439_s1 + $0x23e0] sm:$0xff]  ;;  %349 = vst [vmem:[#allocation1] ss:$4 sm:$0xff] %v70_v40  ;;  %v31513_v40 = vld [vmem:[%s39439_s1 + $0x2538] sm:$0xff] }
 0x44b   :  { %19935 = vmatpush.bf16.msra.mxu1 %v31423_v25  ;;  %v31445_v25 = vld [vmem:[%s39439_s1 + $0x2318] sm:$0xff]  ;;  %v31442_v46 = vld [vmem:[%s39439_s1 + $0x2300] sm:$0xff] }
 0x44c   :  { %19948 = vmatpush.bf16.msra.mxu2 %v31431_v26  ;;  %v31453_v26 = vld [vmem:[%s39439_s1 + $0x2358] sm:$0xff] }
 0x44d   :  { %19961 = vmatpush.bf16.msra.mxu3 %v31439_v27  ;;  %v31461_v27 = vld [vmem:[%s39439_s1 + $0x2398] sm:$0xff] }
 0x44e   :  { %19923 = vmatpush.bf16.msra.mxu0 %v31414_v30  ;;  %v19697_v54 = vpop.f32.mrf.mxu2  ;;  %v31469_v30 = vld [vmem:[%s39439_s1 + $0x23d8] sm:$0xff] }
 0x44f   :  { %19936 = vmatpush.bf16.msra.mxu1 %v31422_v32  ;;  %v19710_v56 = vpop.f32.mrf.mxu3  ;;  %v31497_v54 = vld [vmem:[%s39439_s1 + $0x24b8] sm:$0xff] }
 0x450   :  { %19949 = vmatpush.bf16.msra.mxu2 %v31430_v33  ;;  %v348_v56 = vld.sshfl [vmem:[#allocation1 + $0x38] sm:$0xff pattern:$0x73625140] }
 0x451   :  { %19962 = vmatpush.bf16.msra.mxu3 %v31438_v35  ;;  %v915_v61 = vpack.c.bf16 %v348_v56, %v348_v56  ;;  %v31519_v56 = vld [vmem:[%s39439_s1 + $0x2568] sm:$0xff] }
 0x452   :  { %19924 = vmatpush.bf16.msra.mxu0 %v31413_v36  ;;  %v31452_v36 = vld [vmem:[%s39439_s1 + $0x2350] sm:$0xff] }
 0x453   :  { %19937 = vmatpush.bf16.msra.mxu1 %v31421_v37  ;;  %v31460_v37 = vld [vmem:[%s39439_s1 + $0x2390] sm:$0xff] }
 0x454   :  { %19950 = vmatpush.bf16.msra.mxu2 %v31429_v38  ;;  %v31468_v38 = vld [vmem:[%s39439_s1 + $0x23d0] sm:$0xff] }
 0x455   :  { %19963 = vmatpush.bf16.msra.mxu3 %v31437_v41  ;;  %v31451_v41 = vld [vmem:[%s39439_s1 + $0x2348] sm:$0xff] }
 0x456   :  { %19925 = vmatpush.bf16.msra.mxu0 %v31412_v45 }
 0x457   :  { %19938 = vmatpush.bf16.msra.mxu1 %v31420_v47  ;;  %v31450_v47 = vld [vmem:[%s39439_s1 + $0x2340] sm:$0xff] }
 0x458   :  { %19951 = vmatpush.bf16.msra.mxu2 %v31428_v48  ;;  %v31458_v48 = vld [vmem:[%s39439_s1 + $0x2380] sm:$0xff] }
 0x459   :  { %19964 = vmatpush.bf16.msra.mxu3 %v31436_v49  ;;  %v345_v49 = vld.sshfl [vmem:[#allocation1 + $0x20] sm:$0xff pattern:$0x73625140] }
 0x45a   :  { %19926 = vmatpush.bf16.msra.mxu0 %v31411_v50  ;;  %v347_v50 = vld.sshfl [vmem:[#allocation1 + $0x30] sm:$0xff pattern:$0x73625140] }
 0x45b   :  { %19939 = vmatpush.bf16.msra.mxu1 %v31419_v52  ;;  %v31489_v52 = vld [vmem:[%s39439_s1 + $0x2478] sm:$0xff] }
 0x45c   :  { %19952 = vmatpush.bf16.msra.mxu2 %v31427_v53  ;;  %v346_v53 = vld.sshfl [vmem:[#allocation1 + $0x28] sm:$0xff pattern:$0x73625140] }
 0x45d   :  { %19965 = vmatpush.bf16.msra.mxu3 %v31435_v55  ;;  %v31466_v55 = vld [vmem:[%s39439_s1 + $0x23c0] sm:$0xff]  ;;  %v913_v60 = vpack.c.bf16 %v346_v53, %v346_v53  ;;  %v31528_v53 = vld [vmem:[%s39439_s1 + $0x25b0] sm:$0xff] }
 0x45e   :  { %19927 = vmatpush.bf16.msra.mxu0 %v31410_v57  ;;  %v19721_v17 = vpop.f32.mrf.mxu0  ;;  %v912_v57 = vpack.c.bf16 %v345_v49, %v345_v49 }
 0x45f   :  { %19940 = vmatpush.bf16.msra.mxu1 %v31418_v58  ;;  %v19722_v18 = vadd.f32 %v19721_v17, %v36057_v44  ;;  %v19734_v20 = vpop.f32.mrf.mxu1  ;;  %v31467_v44 = vld [vmem:[%s39439_s1 + $0x23c8] sm:$0xff]  ;;  %v914_v58 = vpack.c.bf16 %v347_v50, %v347_v50 }
 0x460   :  { %19953 = vmatpush.bf16.msra.mxu2 %v31426_v59  ;;  %v31505_v59 = vld [vmem:[%s39439_s1 + $0x24f8] sm:$0xff] }
 0x461   :  { %19966 = vmatpush.bf16.msra.mxu3 %v31434_v2  ;;  %19928 = vmatmul.bf16.vlgmr.msra.gmra.mxu0 %v908_v4  ;;  %v19735_v23 = vadd.f32 %v19734_v20, %v19722_v18  ;;  %v31479_v2 = vld [vmem:[%s39439_s1 + $0x2428] sm:$0xff] }
 0x462   :  { %19972 = vmatpush.bf16.msrb.mxu0 %v31449_v62  ;;  %19941 = vmatmul.bf16.vlgmr.msra.gmra.mxu1 %v909_v7  ;;  %v31480_v62 = vld [vmem:[%s39439_s1 + $0x2430] sm:$0xff]  ;;  %v31495_v4 = vld [vmem:[%s39439_s1 + $0x24a8] sm:$0xff] }
 0x463   :  { %19985 = vmatpush.bf16.msrb.mxu1 %v31457_v63  ;;  %19954 = vmatmul.bf16.vlgmr.msra.gmra.mxu2 %v910_v5  ;;  %v31488_v63 = vld [vmem:[%s39439_s1 + $0x2470] sm:$0xff]  ;;  %v31503_v5 = vld [vmem:[%s39439_s1 + $0x24e8] sm:$0xff] }
 0x464   :  { %19998 = vmatpush.bf16.msrb.mxu2 %v31465_v1  ;;  %19967 = vmatmul.bf16.vlgmr.msra.gmra.mxu3 %v911_v8  ;;  %v31504_v1 = vld [vmem:[%s39439_s1 + $0x24f0] sm:$0xff]  ;;  %v31478_v8 = vld [vmem:[%s39439_s1 + $0x2420] sm:$0xff] }
 0x465   :  { %20011 = vmatpush.bf16.msrb.mxu3 %v31473_v6 }
 0x466   :  { %19973 = vmatpush.bf16.msrb.mxu0 %v31448_v9  ;;  %v19747_v28 = vpop.f32.mrf.mxu2  ;;  %v19723_v32 = vpop.f32.mrf.mxu0 }
 0x467   :  { %19986 = vmatpush.bf16.msrb.mxu1 %v31456_v10  ;;  %v19748_v29 = vadd.f32 %v19747_v28, %v19735_v23  ;;  %v19760_v31 = vpop.f32.mrf.mxu3  ;;  %v19736_v35 = vpop.f32.mrf.mxu1  ;;  %v31486_v10 = vld [vmem:[%s39439_s1 + $0x2460] sm:$0xff]  ;;  %v31476_v23 = vld [vmem:[%s39439_s1 + $0x2410] sm:$0xff]  ;;  %v31475_v28 = vld [vmem:[%s39439_s1 + $0x2408] sm:$0xff] }
 0x468   :  { %19999 = vmatpush.bf16.msrb.mxu2 %v31464_v11  ;;  %v31494_v11 = vld [vmem:[%s39439_s1 + $0x24a0] sm:$0xff] }
 0x469   :  { %20012 = vmatpush.bf16.msrb.mxu3 %v31472_v12  ;;  %v36159_v33 = vadd.f32 %v19760_v31, %v19748_v29  ;;  %v71_v29 = vld [vmem:[%s39438_s0 + $0x128] sm:$0xff]  ;;  %v31474_v35 = vld [vmem:[%s39439_s1 + $0x2400] sm:$0xff] }
 0x46a   :  { %19974 = vmatpush.bf16.msrb.mxu0 %v31447_v13  ;;  %v31502_v13 = vld [vmem:[%s39439_s1 + $0x24e0] sm:$0xff]  ;;  %v31491_v31 = vld [vmem:[%s39439_s1 + $0x2488] sm:$0xff]  ;;  %350 = vst [vmem:[#allocation1 + $0x20] ss:$4 sm:$0xff] %v71_v29  ;;  %v31545_v29 = vld [vmem:[%s39439_s1 + $0x2638] sm:$0xff] }
 0x46b   :  { %19987 = vmatpush.bf16.msrb.mxu1 %v31455_v14  ;;  %v31477_v14 = vld [vmem:[%s39439_s1 + $0x2418] sm:$0xff] }
 0x46c   :  { %20000 = vmatpush.bf16.msrb.mxu2 %v31463_v15  ;;  %v31485_v15 = vld [vmem:[%s39439_s1 + $0x2458] sm:$0xff] }
 0x46d   :  { %20013 = vmatpush.bf16.msrb.mxu3 %v31471_v16  ;;  %v31493_v16 = vld [vmem:[%s39439_s1 + $0x2498] sm:$0xff] }
 0x46e   :  { %19975 = vmatpush.bf16.msrb.mxu0 %v31446_v19  ;;  %v19749_v43 = vpop.f32.mrf.mxu2  ;;  %v31501_v19 = vld [vmem:[%s39439_s1 + $0x24d8] sm:$0xff] }
 0x46f   :  { %19988 = vmatpush.bf16.msrb.mxu1 %v31454_v21  ;;  %v19762_v45 = vpop.f32.mrf.mxu3  ;;  %v31529_v43 = vld [vmem:[%s39439_s1 + $0x25b8] sm:$0xff] }
 0x470   :  { %20001 = vmatpush.bf16.msrb.mxu2 %v31462_v22  ;;  %v354_v45 = vld.sshfl [vmem:[#allocation1 + $0x18] sm:$0xff pattern:$0x73625140] }
 0x471   :  { %20014 = vmatpush.bf16.msrb.mxu3 %v31470_v24  ;;  %v919_v50 = vpack.c.bf16 %v354_v45, %v354_v45  ;;  %v31551_v45 = vld [vmem:[%s39439_s1 + $0x2668] sm:$0xff] }
 0x472   :  { %19976 = vmatpush.bf16.msrb.mxu0 %v31445_v25  ;;  %v31484_v25 = vld [vmem:[%s39439_s1 + $0x2450] sm:$0xff] }
 0x473   :  { %19989 = vmatpush.bf16.msrb.mxu1 %v31453_v26  ;;  %v31492_v26 = vld [vmem:[%s39439_s1 + $0x2490] sm:$0xff] }
 0x474   :  { %20002 = vmatpush.bf16.msrb.mxu2 %v31461_v27  ;;  %v31500_v27 = vld [vmem:[%s39439_s1 + $0x24d0] sm:$0xff] }
 0x475   :  { %20015 = vmatpush.bf16.msrb.mxu3 %v31469_v30  ;;  %v31483_v30 = vld [vmem:[%s39439_s1 + $0x2448] sm:$0xff] }
 0x476   :  { %19977 = vmatpush.bf16.msrb.mxu0 %v31444_v34 }
 0x477   :  { %19990 = vmatpush.bf16.msrb.mxu1 %v31452_v36  ;;  %v31482_v36 = vld [vmem:[%s39439_s1 + $0x2440] sm:$0xff] }
 0x478   :  { %20003 = vmatpush.bf16.msrb.mxu2 %v31460_v37  ;;  %v31490_v37 = vld [vmem:[%s39439_s1 + $0x2480] sm:$0xff] }
 0x479   :  { %20016 = vmatpush.bf16.msrb.mxu3 %v31468_v38  ;;  %v351_v38 = vld.sshfl [vmem:[#allocation1] sm:$0xff pattern:$0x73625140] }
 0x47a   :  { %19978 = vmatpush.bf16.msrb.mxu0 %v31443_v39  ;;  %v353_v39 = vld.sshfl [vmem:[#allocation1 + $0x10] sm:$0xff pattern:$0x73625140] }
 0x47b   :  { %19991 = vmatpush.bf16.msrb.mxu1 %v31451_v41  ;;  %v31521_v41 = vld [vmem:[%s39439_s1 + $0x2578] sm:$0xff] }
 0x47c   :  { %20004 = vmatpush.bf16.msrb.mxu2 %v31459_v42  ;;  %v352_v42 = vld.sshfl [vmem:[#allocation1 + $0x8] sm:$0xff pattern:$0x73625140] }
 0x47d   :  { %20017 = vmatpush.bf16.msrb.mxu3 %v31467_v44  ;;  %v31498_v44 = vld [vmem:[%s39439_s1 + $0x24c0] sm:$0xff]  ;;  %v917_v49 = vpack.c.bf16 %v352_v42, %v352_v42  ;;  %v31560_v42 = vld [vmem:[%s39439_s1 + $0x26b0] sm:$0xff] }
 0x47e   :  { %19979 = vmatpush.bf16.msrb.mxu0 %v31442_v46  ;;  %v19773_v6 = vpop.f32.mrf.mxu0  ;;  %v916_v46 = vpack.c.bf16 %v351_v38, %v351_v38 }
 0x47f   :  { %19992 = vmatpush.bf16.msrb.mxu1 %v31450_v47  ;;  %v19774_v7 = vadd.f32 %v19773_v6, %v36159_v33  ;;  %v19786_v9 = vpop.f32.mrf.mxu1  ;;  %v31499_v33 = vld [vmem:[%s39439_s1 + $0x24c8] sm:$0xff]  ;;  %v918_v47 = vpack.c.bf16 %v353_v39, %v353_v39 }
 0x480   :  { %20005 = vmatpush.bf16.msrb.mxu2 %v31458_v48  ;;  %v31537_v48 = vld [vmem:[%s39439_s1 + $0x25f8] sm:$0xff] }
 0x481   :  { %20018 = vmatpush.bf16.msrb.mxu3 %v31466_v55  ;;  %19980 = vmatmul.bf16.vlgmr.msrb.gmra.mxu0 %v912_v57  ;;  %v19787_v12 = vadd.f32 %v19786_v9, %v19774_v7  ;;  %v31511_v55 = vld [vmem:[%s39439_s1 + $0x2528] sm:$0xff] }
 0x482   :  { %20024 = vmatpush.bf16.msra.mxu0 %v31481_v51  ;;  %19993 = vmatmul.bf16.vlgmr.msrb.gmra.mxu1 %v913_v60  ;;  %v31512_v51 = vld [vmem:[%s39439_s1 + $0x2530] sm:$0xff]  ;;  %v31527_v57 = vld [vmem:[%s39439_s1 + $0x25a8] sm:$0xff] }
 0x483   :  { %20037 = vmatpush.bf16.msra.mxu1 %v31489_v52  ;;  %20006 = vmatmul.bf16.vlgmr.msrb.gmra.mxu2 %v914_v58  ;;  %v31520_v52 = vld [vmem:[%s39439_s1 + $0x2570] sm:$0xff]  ;;  %v31535_v58 = vld [vmem:[%s39439_s1 + $0x25e8] sm:$0xff] }
 0x484   :  { %20050 = vmatpush.bf16.msra.mxu2 %v31497_v54  ;;  %20019 = vmatmul.bf16.vlgmr.msrb.gmra.mxu3 %v915_v61  ;;  %v31536_v54 = vld [vmem:[%s39439_s1 + $0x25f0] sm:$0xff]  ;;  %v31510_v61 = vld [vmem:[%s39439_s1 + $0x2520] sm:$0xff] }
 0x485   :  { %20063 = vmatpush.bf16.msra.mxu3 %v31505_v59 }
 0x486   :  { %20025 = vmatpush.bf16.msra.mxu0 %v31480_v62  ;;  %v19799_v17 = vpop.f32.mrf.mxu2  ;;  %v19775_v21 = vpop.f32.mrf.mxu0 }
 0x487   :  { %20038 = vmatpush.bf16.msra.mxu1 %v31488_v63  ;;  %v19800_v18 = vadd.f32 %v19799_v17, %v19787_v12  ;;  %v19812_v20 = vpop.f32.mrf.mxu3  ;;  %v19788_v24 = vpop.f32.mrf.mxu1  ;;  %v31518_v63 = vld [vmem:[%s39439_s1 + $0x2560] sm:$0xff]  ;;  %v31508_v12 = vld [vmem:[%s39439_s1 + $0x2510] sm:$0xff]  ;;  %v31507_v17 = vld [vmem:[%s39439_s1 + $0x2508] sm:$0xff] }
 0x488   :  { %20051 = vmatpush.bf16.msra.mxu2 %v31496_v0  ;;  %v31526_v0 = vld [vmem:[%s39439_s1 + $0x25a0] sm:$0xff] }
 0x489   :  { %20064 = vmatpush.bf16.msra.mxu3 %v31504_v1  ;;  %v36261_v22 = vadd.f32 %v19812_v20, %v19800_v18  ;;  %v72_v18 = vld [vmem:[%s39438_s0 + $0x130] sm:$0xff]  ;;  %v31523_v20 = vld [vmem:[%s39439_s1 + $0x2588] sm:$0xff]  ;;  %v31506_v24 = vld [vmem:[%s39439_s1 + $0x2500] sm:$0xff] }
 0x48a   :  { %20026 = vmatpush.bf16.msra.mxu0 %v31479_v2  ;;  %v31534_v2 = vld [vmem:[%s39439_s1 + $0x25e0] sm:$0xff]  ;;  %359 = vst [vmem:[#allocation1] ss:$4 sm:$0xff] %v72_v18  ;;  %v31577_v18 = vld [vmem:[%s39439_s1 + $0x2738] sm:$0xff] }
 0x48b   :  { %20039 = vmatpush.bf16.msra.mxu1 %v31487_v3  ;;  %v31509_v3 = vld [vmem:[%s39439_s1 + $0x2518] sm:$0xff] }
 0x48c   :  { %20052 = vmatpush.bf16.msra.mxu2 %v31495_v4  ;;  %v31517_v4 = vld [vmem:[%s39439_s1 + $0x2558] sm:$0xff] }
 0x48d   :  { %20065 = vmatpush.bf16.msra.mxu3 %v31503_v5  ;;  %v31525_v5 = vld [vmem:[%s39439_s1 + $0x2598] sm:$0xff] }
 0x48e   :  { %20027 = vmatpush.bf16.msra.mxu0 %v31478_v8  ;;  %v19801_v32 = vpop.f32.mrf.mxu2  ;;  %v31533_v8 = vld [vmem:[%s39439_s1 + $0x25d8] sm:$0xff] }
 0x48f   :  { %20040 = vmatpush.bf16.msra.mxu1 %v31486_v10  ;;  %v19814_v34 = vpop.f32.mrf.mxu3  ;;  %v31561_v32 = vld [vmem:[%s39439_s1 + $0x26b8] sm:$0xff] }
 0x490   :  { %20053 = vmatpush.bf16.msra.mxu2 %v31494_v11  ;;  %v358_v34 = vld.sshfl [vmem:[#allocation1 + $0x38] sm:$0xff pattern:$0x73625140] }
 0x491   :  { %20066 = vmatpush.bf16.msra.mxu3 %v31502_v13  ;;  %v923_v39 = vpack.c.bf16 %v358_v34, %v358_v34  ;;  %v31583_v34 = vld [vmem:[%s39439_s1 + $0x2768] sm:$0xff] }
 0x492   :  { %20028 = vmatpush.bf16.msra.mxu0 %v31477_v14  ;;  %v31516_v14 = vld [vmem:[%s39439_s1 + $0x2550] sm:$0xff] }
 0x493   :  { %20041 = vmatpush.bf16.msra.mxu1 %v31485_v15  ;;  %v31524_v15 = vld [vmem:[%s39439_s1 + $0x2590] sm:$0xff] }
 0x494   :  { %20054 = vmatpush.bf16.msra.mxu2 %v31493_v16  ;;  %v31532_v16 = vld [vmem:[%s39439_s1 + $0x25d0] sm:$0xff] }
 0x495   :  { %20067 = vmatpush.bf16.msra.mxu3 %v31501_v19  ;;  %v31515_v19 = vld [vmem:[%s39439_s1 + $0x2548] sm:$0xff] }
 0x496   :  { %20029 = vmatpush.bf16.msra.mxu0 %v31476_v23 }
 0x497   :  { %20042 = vmatpush.bf16.msra.mxu1 %v31484_v25  ;;  %v31514_v25 = vld [vmem:[%s39439_s1 + $0x2540] sm:$0xff] }
 0x498   :  { %20055 = vmatpush.bf16.msra.mxu2 %v31492_v26  ;;  %v31522_v26 = vld [vmem:[%s39439_s1 + $0x2580] sm:$0xff] }
 0x499   :  { %20068 = vmatpush.bf16.msra.mxu3 %v31500_v27  ;;  %v355_v27 = vld.sshfl [vmem:[#allocation1 + $0x20] sm:$0xff pattern:$0x73625140] }
 0x49a   :  { %20030 = vmatpush.bf16.msra.mxu0 %v31475_v28  ;;  %v357_v28 = vld.sshfl [vmem:[#allocation1 + $0x30] sm:$0xff pattern:$0x73625140] }
 0x49b   :  { %20043 = vmatpush.bf16.msra.mxu1 %v31483_v30  ;;  %v31553_v30 = vld [vmem:[%s39439_s1 + $0x2678] sm:$0xff] }
 0x49c   :  { %20056 = vmatpush.bf16.msra.mxu2 %v31491_v31  ;;  %v356_v31 = vld.sshfl [vmem:[#allocation1 + $0x28] sm:$0xff pattern:$0x73625140] }
 0x49d   :  { %20069 = vmatpush.bf16.msra.mxu3 %v31499_v33  ;;  %v31530_v33 = vld [vmem:[%s39439_s1 + $0x25c0] sm:$0xff]  ;;  %v921_v38 = vpack.c.bf16 %v356_v31, %v356_v31  ;;  %v31592_v31 = vld [vmem:[%s39439_s1 + $0x27b0] sm:$0xff] }
 0x49e   :  { %20031 = vmatpush.bf16.msra.mxu0 %v31474_v35  ;;  %v19825_v59 = vpop.f32.mrf.mxu0  ;;  %v920_v35 = vpack.c.bf16 %v355_v27, %v355_v27 }
 0x49f   :  { %20044 = vmatpush.bf16.msra.mxu1 %v31482_v36  ;;  %v19826_v60 = vadd.f32 %v19825_v59, %v36261_v22  ;;  %v19838_v62 = vpop.f32.mrf.mxu1  ;;  %v31531_v22 = vld [vmem:[%s39439_s1 + $0x25c8] sm:$0xff]  ;;  %v922_v36 = vpack.c.bf16 %v357_v28, %v357_v28 }
 0x4a0   :  { %20057 = vmatpush.bf16.msra.mxu2 %v31490_v37  ;;  %v31569_v37 = vld [vmem:[%s39439_s1 + $0x26f8] sm:$0xff] }
 0x4a1   :  { %20070 = vmatpush.bf16.msra.mxu3 %v31498_v44  ;;  %20032 = vmatmul.bf16.vlgmr.msra.gmra.mxu0 %v916_v46  ;;  %v19839_v1 = vadd.f32 %v19838_v62, %v19826_v60  ;;  %v31543_v44 = vld [vmem:[%s39439_s1 + $0x2628] sm:$0xff] }
 0x4a2   :  { %20076 = vmatpush.bf16.msrb.mxu0 %v31513_v40  ;;  %20045 = vmatmul.bf16.vlgmr.msra.gmra.mxu1 %v917_v49  ;;  %v31544_v40 = vld [vmem:[%s39439_s1 + $0x2630] sm:$0xff]  ;;  %v31559_v46 = vld [vmem:[%s39439_s1 + $0x26a8] sm:$0xff] }
 0x4a3   :  { %20089 = vmatpush.bf16.msrb.mxu1 %v31521_v41  ;;  %20058 = vmatmul.bf16.vlgmr.msra.gmra.mxu2 %v918_v47  ;;  %v31552_v41 = vld [vmem:[%s39439_s1 + $0x2670] sm:$0xff]  ;;  %v31567_v47 = vld [vmem:[%s39439_s1 + $0x26e8] sm:$0xff] }
 0x4a4   :  { %20102 = vmatpush.bf16.msrb.mxu2 %v31529_v43  ;;  %20071 = vmatmul.bf16.vlgmr.msra.gmra.mxu3 %v919_v50  ;;  %v31568_v43 = vld [vmem:[%s39439_s1 + $0x26f0] sm:$0xff]  ;;  %v31542_v50 = vld [vmem:[%s39439_s1 + $0x2620] sm:$0xff] }
 0x4a5   :  { %20115 = vmatpush.bf16.msrb.mxu3 %v31537_v48 }
 0x4a6   :  { %20077 = vmatpush.bf16.msrb.mxu0 %v31512_v51  ;;  %v19851_v6 = vpop.f32.mrf.mxu2  ;;  %v19827_v10 = vpop.f32.mrf.mxu0 }
 0x4a7   :  { %20090 = vmatpush.bf16.msrb.mxu1 %v31520_v52  ;;  %v19852_v7 = vadd.f32 %v19851_v6, %v19839_v1  ;;  %v19864_v9 = vpop.f32.mrf.mxu3  ;;  %v19840_v13 = vpop.f32.mrf.mxu1  ;;  %v31550_v52 = vld [vmem:[%s39439_s1 + $0x2660] sm:$0xff]  ;;  %v31540_v1 = vld [vmem:[%s39439_s1 + $0x2610] sm:$0xff]  ;;  %v31539_v6 = vld [vmem:[%s39439_s1 + $0x2608] sm:$0xff] }
 0x4a8   :  { %20103 = vmatpush.bf16.msrb.mxu2 %v31528_v53  ;;  %v31558_v53 = vld [vmem:[%s39439_s1 + $0x26a0] sm:$0xff] }
 0x4a9   :  { %20116 = vmatpush.bf16.msrb.mxu3 %v31536_v54  ;;  %v36363_v11 = vadd.f32 %v19864_v9, %v19852_v7  ;;  %v73_v7 = vld [vmem:[%s39438_s0 + $0x138] sm:$0xff]  ;;  %v31555_v9 = vld [vmem:[%s39439_s1 + $0x2688] sm:$0xff]  ;;  %v31538_v13 = vld [vmem:[%s39439_s1 + $0x2600] sm:$0xff] }
 0x4aa   :  { %20078 = vmatpush.bf16.msrb.mxu0 %v31511_v55  ;;  %v31566_v55 = vld [vmem:[%s39439_s1 + $0x26e0] sm:$0xff]  ;;  %360 = vst [vmem:[#allocation1 + $0x20] ss:$4 sm:$0xff] %v73_v7  ;;  %v31609_v7 = vld [vmem:[%s39439_s1 + $0x2838] sm:$0xff] }
 0x4ab   :  { %20091 = vmatpush.bf16.msrb.mxu1 %v31519_v56  ;;  %v31541_v56 = vld [vmem:[%s39439_s1 + $0x2618] sm:$0xff] }
 0x4ac   :  { %20104 = vmatpush.bf16.msrb.mxu2 %v31527_v57  ;;  %v31549_v57 = vld [vmem:[%s39439_s1 + $0x2658] sm:$0xff] }
 0x4ad   :  { %20117 = vmatpush.bf16.msrb.mxu3 %v31535_v58  ;;  %v31557_v58 = vld [vmem:[%s39439_s1 + $0x2698] sm:$0xff] }
 0x4ae   :  { %20079 = vmatpush.bf16.msrb.mxu0 %v31510_v61  ;;  %v19853_v21 = vpop.f32.mrf.mxu2  ;;  %v31565_v61 = vld [vmem:[%s39439_s1 + $0x26d8] sm:$0xff] }
 0x4af   :  { %20092 = vmatpush.bf16.msrb.mxu1 %v31518_v63  ;;  %v19866_v23 = vpop.f32.mrf.mxu3  ;;  %v31593_v21 = vld [vmem:[%s39439_s1 + $0x27b8] sm:$0xff] }
 0x4b0   :  { %20105 = vmatpush.bf16.msrb.mxu2 %v31526_v0  ;;  %v364_v23 = vld.sshfl [vmem:[#allocation1 + $0x18] sm:$0xff pattern:$0x73625140] }
 0x4b1   :  { %20118 = vmatpush.bf16.msrb.mxu3 %v31534_v2  ;;  %v927_v28 = vpack.c.bf16 %v364_v23, %v364_v23  ;;  %v31615_v23 = vld [vmem:[%s39439_s1 + $0x2868] sm:$0xff] }
 0x4b2   :  { %20080 = vmatpush.bf16.msrb.mxu0 %v31509_v3  ;;  %v31548_v3 = vld [vmem:[%s39439_s1 + $0x2650] sm:$0xff] }
 0x4b3   :  { %20093 = vmatpush.bf16.msrb.mxu1 %v31517_v4  ;;  %v31556_v4 = vld [vmem:[%s39439_s1 + $0x2690] sm:$0xff] }
 0x4b4   :  { %20106 = vmatpush.bf16.msrb.mxu2 %v31525_v5  ;;  %v31564_v5 = vld [vmem:[%s39439_s1 + $0x26d0] sm:$0xff] }
 0x4b5   :  { %20119 = vmatpush.bf16.msrb.mxu3 %v31533_v8  ;;  %v31547_v8 = vld [vmem:[%s39439_s1 + $0x2648] sm:$0xff] }
 0x4b6   :  { %20081 = vmatpush.bf16.msrb.mxu0 %v31508_v12 }
 0x4b7   :  { %20094 = vmatpush.bf16.msrb.mxu1 %v31516_v14  ;;  %v31546_v14 = vld [vmem:[%s39439_s1 + $0x2640] sm:$0xff] }
 0x4b8   :  { %20107 = vmatpush.bf16.msrb.mxu2 %v31524_v15  ;;  %v31554_v15 = vld [vmem:[%s39439_s1 + $0x2680] sm:$0xff] }
 0x4b9   :  { %20120 = vmatpush.bf16.msrb.mxu3 %v31532_v16  ;;  %v361_v16 = vld.sshfl [vmem:[#allocation1] sm:$0xff pattern:$0x73625140] }
 0x4ba   :  { %20082 = vmatpush.bf16.msrb.mxu0 %v31507_v17  ;;  %v363_v17 = vld.sshfl [vmem:[#allocation1 + $0x10] sm:$0xff pattern:$0x73625140] }
 0x4bb   :  { %20095 = vmatpush.bf16.msrb.mxu1 %v31515_v19  ;;  %v31585_v19 = vld [vmem:[%s39439_s1 + $0x2778] sm:$0xff] }
 0x4bc   :  { %20108 = vmatpush.bf16.msrb.mxu2 %v31523_v20  ;;  %v362_v20 = vld.sshfl [vmem:[#allocation1 + $0x8] sm:$0xff pattern:$0x73625140] }
 0x4bd   :  { %20121 = vmatpush.bf16.msrb.mxu3 %v31531_v22  ;;  %v31562_v22 = vld [vmem:[%s39439_s1 + $0x26c0] sm:$0xff]  ;;  %v925_v27 = vpack.c.bf16 %v362_v20, %v362_v20  ;;  %v31624_v20 = vld [vmem:[%s39439_s1 + $0x28b0] sm:$0xff] }
 0x4be   :  { %20083 = vmatpush.bf16.msrb.mxu0 %v31506_v24  ;;  %v19877_v48 = vpop.f32.mrf.mxu0  ;;  %v924_v24 = vpack.c.bf16 %v361_v16, %v361_v16 }
 0x4bf   :  { %20096 = vmatpush.bf16.msrb.mxu1 %v31514_v25  ;;  %v19878_v49 = vadd.f32 %v19877_v48, %v36363_v11  ;;  %v19890_v51 = vpop.f32.mrf.mxu1  ;;  %v31563_v11 = vld [vmem:[%s39439_s1 + $0x26c8] sm:$0xff]  ;;  %v926_v25 = vpack.c.bf16 %v363_v17, %v363_v17 }
 0x4c0   :  { %20109 = vmatpush.bf16.msrb.mxu2 %v31522_v26  ;;  %v31601_v26 = vld [vmem:[%s39439_s1 + $0x27f8] sm:$0xff] }
 0x4c1   :  { %20122 = vmatpush.bf16.msrb.mxu3 %v31530_v33  ;;  %20084 = vmatmul.bf16.vlgmr.msrb.gmra.mxu0 %v920_v35  ;;  %v19891_v54 = vadd.f32 %v19890_v51, %v19878_v49  ;;  %v31575_v33 = vld [vmem:[%s39439_s1 + $0x2728] sm:$0xff] }
 0x4c2   :  { %20128 = vmatpush.bf16.msra.mxu0 %v31545_v29  ;;  %20097 = vmatmul.bf16.vlgmr.msrb.gmra.mxu1 %v921_v38  ;;  %v31576_v29 = vld [vmem:[%s39439_s1 + $0x2730] sm:$0xff]  ;;  %v31591_v35 = vld [vmem:[%s39439_s1 + $0x27a8] sm:$0xff] }
 0x4c3   :  { %20141 = vmatpush.bf16.msra.mxu1 %v31553_v30  ;;  %20110 = vmatmul.bf16.vlgmr.msrb.gmra.mxu2 %v922_v36  ;;  %v31584_v30 = vld [vmem:[%s39439_s1 + $0x2770] sm:$0xff]  ;;  %v31599_v36 = vld [vmem:[%s39439_s1 + $0x27e8] sm:$0xff] }
 0x4c4   :  { %20154 = vmatpush.bf16.msra.mxu2 %v31561_v32  ;;  %20123 = vmatmul.bf16.vlgmr.msrb.gmra.mxu3 %v923_v39  ;;  %v31600_v32 = vld [vmem:[%s39439_s1 + $0x27f0] sm:$0xff]  ;;  %v31574_v39 = vld [vmem:[%s39439_s1 + $0x2720] sm:$0xff] }
 0x4c5   :  { %20167 = vmatpush.bf16.msra.mxu3 %v31569_v37 }
 0x4c6   :  { %20129 = vmatpush.bf16.msra.mxu0 %v31544_v40  ;;  %v19903_v59 = vpop.f32.mrf.mxu2  ;;  %v19879_v63 = vpop.f32.mrf.mxu0 }
 0x4c7   :  { %20142 = vmatpush.bf16.msra.mxu1 %v31552_v41  ;;  %v19904_v60 = vadd.f32 %v19903_v59, %v19891_v54  ;;  %v19916_v62 = vpop.f32.mrf.mxu3  ;;  %v19892_v2 = vpop.f32.mrf.mxu1  ;;  %v31582_v41 = vld [vmem:[%s39439_s1 + $0x2760] sm:$0xff]  ;;  %v31572_v54 = vld [vmem:[%s39439_s1 + $0x2710] sm:$0xff]  ;;  %v31571_v59 = vld [vmem:[%s39439_s1 + $0x2708] sm:$0xff] }
 0x4c8   :  { %20155 = vmatpush.bf16.msra.mxu2 %v31560_v42  ;;  %v31590_v42 = vld [vmem:[%s39439_s1 + $0x27a0] sm:$0xff] }
 0x4c9   :  { %20168 = vmatpush.bf16.msra.mxu3 %v31568_v43  ;;  %v36465_v0 = vadd.f32 %v19916_v62, %v19904_v60  ;;  %v74_v60 = vld [vmem:[%s39438_s0 + $0x140] sm:$0xff]  ;;  %v31587_v62 = vld [vmem:[%s39439_s1 + $0x2788] sm:$0xff] }
 0x4ca   :  { %20130 = vmatpush.bf16.msra.mxu0 %v31543_v44  ;;  %v31598_v44 = vld [vmem:[%s39439_s1 + $0x27e0] sm:$0xff]  ;;  %369 = vst [vmem:[#allocation1] ss:$4 sm:$0xff] %v74_v60  ;;  %v31641_v60 = vld [vmem:[%s39439_s1 + $0x2938] sm:$0xff] }
 0x4cb   :  { %20143 = vmatpush.bf16.msra.mxu1 %v31551_v45  ;;  %v31573_v45 = vld [vmem:[%s39439_s1 + $0x2718] sm:$0xff]  ;;  %v31570_v2 = vld [vmem:[%s39439_s1 + $0x2700] sm:$0xff] }
 0x4cc   :  { %20156 = vmatpush.bf16.msra.mxu2 %v31559_v46  ;;  %v31581_v46 = vld [vmem:[%s39439_s1 + $0x2758] sm:$0xff] }
 0x4cd   :  { %20169 = vmatpush.bf16.msra.mxu3 %v31567_v47  ;;  %v31589_v47 = vld [vmem:[%s39439_s1 + $0x2798] sm:$0xff] }
 0x4ce   :  { %20131 = vmatpush.bf16.msra.mxu0 %v31542_v50  ;;  %v19905_v10 = vpop.f32.mrf.mxu2  ;;  %v31597_v50 = vld [vmem:[%s39439_s1 + $0x27d8] sm:$0xff] }
 0x4cf   :  { %20144 = vmatpush.bf16.msra.mxu1 %v31550_v52  ;;  %v19918_v12 = vpop.f32.mrf.mxu3  ;;  %v31625_v10 = vld [vmem:[%s39439_s1 + $0x28b8] sm:$0xff] }
 0x4d0   :  { %20157 = vmatpush.bf16.msra.mxu2 %v31558_v53  ;;  %v368_v12 = vld.sshfl [vmem:[#allocation1 + $0x38] sm:$0xff pattern:$0x73625140] }
 0x4d1   :  { %20170 = vmatpush.bf16.msra.mxu3 %v31566_v55  ;;  %v931_v17 = vpack.c.bf16 %v368_v12, %v368_v12  ;;  %v31647_v12 = vld [vmem:[%s39439_s1 + $0x2968] sm:$0xff] }
 0x4d2   :  { %20132 = vmatpush.bf16.msra.mxu0 %v31541_v56  ;;  %v31580_v56 = vld [vmem:[%s39439_s1 + $0x2750] sm:$0xff] }
 0x4d3   :  { %20145 = vmatpush.bf16.msra.mxu1 %v31549_v57  ;;  %v31588_v57 = vld [vmem:[%s39439_s1 + $0x2790] sm:$0xff] }
 0x4d4   :  { %20158 = vmatpush.bf16.msra.mxu2 %v31557_v58  ;;  %v31596_v58 = vld [vmem:[%s39439_s1 + $0x27d0] sm:$0xff] }
 0x4d5   :  { %20171 = vmatpush.bf16.msra.mxu3 %v31565_v61  ;;  %v31579_v61 = vld [vmem:[%s39439_s1 + $0x2748] sm:$0xff] }
 0x4d6   :  { %20133 = vmatpush.bf16.msra.mxu0 %v31540_v1 }
 0x4d7   :  { %20146 = vmatpush.bf16.msra.mxu1 %v31548_v3  ;;  %v31578_v3 = vld [vmem:[%s39439_s1 + $0x2740] sm:$0xff] }
 0x4d8   :  { %20159 = vmatpush.bf16.msra.mxu2 %v31556_v4  ;;  %v31586_v4 = vld [vmem:[%s39439_s1 + $0x2780] sm:$0xff] }
 0x4d9   :  { %20172 = vmatpush.bf16.msra.mxu3 %v31564_v5  ;;  %v365_v5 = vld.sshfl [vmem:[#allocation1 + $0x20] sm:$0xff pattern:$0x73625140] }
 0x4da   :  { %20134 = vmatpush.bf16.msra.mxu0 %v31539_v6  ;;  %v367_v6 = vld.sshfl [vmem:[#allocation1 + $0x30] sm:$0xff pattern:$0x73625140] }
 0x4db   :  { %20147 = vmatpush.bf16.msra.mxu1 %v31547_v8  ;;  %v31617_v8 = vld [vmem:[%s39439_s1 + $0x2878] sm:$0xff] }
 0x4dc   :  { %20160 = vmatpush.bf16.msra.mxu2 %v31555_v9  ;;  %v366_v9 = vld.sshfl [vmem:[#allocation1 + $0x28] sm:$0xff pattern:$0x73625140] }
 0x4dd   :  { %20173 = vmatpush.bf16.msra.mxu3 %v31563_v11  ;;  %v31594_v11 = vld [vmem:[%s39439_s1 + $0x27c0] sm:$0xff]  ;;  %v929_v16 = vpack.c.bf16 %v366_v9, %v366_v9  ;;  %v31656_v9 = vld [vmem:[%s39439_s1 + $0x29b0] sm:$0xff] }
 0x4de   :  { %20135 = vmatpush.bf16.msra.mxu0 %v31538_v13  ;;  %v19929_v37 = vpop.f32.mrf.mxu0  ;;  %v928_v13 = vpack.c.bf16 %v365_v5, %v365_v5 }
 0x4df   :  { %20148 = vmatpush.bf16.msra.mxu1 %v31546_v14  ;;  %v19930_v38 = vadd.f32 %v19929_v37, %v36465_v0  ;;  %v19942_v40 = vpop.f32.mrf.mxu1  ;;  %v31595_v0 = vld [vmem:[%s39439_s1 + $0x27c8] sm:$0xff]  ;;  %v930_v14 = vpack.c.bf16 %v367_v6, %v367_v6 }
 0x4e0   :  { %20161 = vmatpush.bf16.msra.mxu2 %v31554_v15  ;;  %v31633_v15 = vld [vmem:[%s39439_s1 + $0x28f8] sm:$0xff] }
 0x4e1   :  { %20174 = vmatpush.bf16.msra.mxu3 %v31562_v22  ;;  %20136 = vmatmul.bf16.vlgmr.msra.gmra.mxu0 %v924_v24  ;;  %v19943_v43 = vadd.f32 %v19942_v40, %v19930_v38  ;;  %v31607_v22 = vld [vmem:[%s39439_s1 + $0x2828] sm:$0xff] }
 0x4e2   :  { %20180 = vmatpush.bf16.msrb.mxu0 %v31577_v18  ;;  %20149 = vmatmul.bf16.vlgmr.msra.gmra.mxu1 %v925_v27  ;;  %v31608_v18 = vld [vmem:[%s39439_s1 + $0x2830] sm:$0xff]  ;;  %v31623_v24 = vld [vmem:[%s39439_s1 + $0x28a8] sm:$0xff] }
 0x4e3   :  { %20193 = vmatpush.bf16.msrb.mxu1 %v31585_v19  ;;  %20162 = vmatmul.bf16.vlgmr.msra.gmra.mxu2 %v926_v25  ;;  %v31616_v19 = vld [vmem:[%s39439_s1 + $0x2870] sm:$0xff]  ;;  %v31631_v25 = vld [vmem:[%s39439_s1 + $0x28e8] sm:$0xff] }
 0x4e4   :  { %20206 = vmatpush.bf16.msrb.mxu2 %v31593_v21  ;;  %20175 = vmatmul.bf16.vlgmr.msra.gmra.mxu3 %v927_v28  ;;  %v31632_v21 = vld [vmem:[%s39439_s1 + $0x28f0] sm:$0xff]  ;;  %v31606_v28 = vld [vmem:[%s39439_s1 + $0x2820] sm:$0xff] }
 0x4e5   :  { %20219 = vmatpush.bf16.msrb.mxu3 %v31601_v26 }
 0x4e6   :  { %20181 = vmatpush.bf16.msrb.mxu0 %v31576_v29  ;;  %v19955_v48 = vpop.f32.mrf.mxu2  ;;  %v19931_v52 = vpop.f32.mrf.mxu0 }
 0x4e7   :  { %20194 = vmatpush.bf16.msrb.mxu1 %v31584_v30  ;;  %v19956_v49 = vadd.f32 %v19955_v48, %v19943_v43  ;;  %v19968_v51 = vpop.f32.mrf.mxu3  ;;  %v19944_v55 = vpop.f32.mrf.mxu1  ;;  %v31614_v30 = vld [vmem:[%s39439_s1 + $0x2860] sm:$0xff]  ;;  %v31604_v43 = vld [vmem:[%s39439_s1 + $0x2810] sm:$0xff]  ;;  %v31603_v48 = vld [vmem:[%s39439_s1 + $0x2808] sm:$0xff] }
 0x4e8   :  { %20207 = vmatpush.bf16.msrb.mxu2 %v31592_v31  ;;  %v31622_v31 = vld [vmem:[%s39439_s1 + $0x28a0] sm:$0xff] }
 0x4e9   :  { %20220 = vmatpush.bf16.msrb.mxu3 %v31600_v32  ;;  %v36567_v53 = vadd.f32 %v19968_v51, %v19956_v49  ;;  %v75_v49 = vld [vmem:[%s39438_s0 + $0x148] sm:$0xff]  ;;  %v31602_v55 = vld [vmem:[%s39439_s1 + $0x2800] sm:$0xff] }
 0x4ea   :  { %20182 = vmatpush.bf16.msrb.mxu0 %v31575_v33  ;;  %v31630_v33 = vld [vmem:[%s39439_s1 + $0x28e0] sm:$0xff]  ;;  %v31619_v51 = vld [vmem:[%s39439_s1 + $0x2888] sm:$0xff]  ;;  %370 = vst [vmem:[#allocation1 + $0x20] ss:$4 sm:$0xff] %v75_v49  ;;  %v31673_v49 = vld [vmem:[%s39439_s1 + $0x2a38] sm:$0xff] }
 0x4eb   :  { %20195 = vmatpush.bf16.msrb.mxu1 %v31583_v34  ;;  %v31605_v34 = vld [vmem:[%s39439_s1 + $0x2818] sm:$0xff] }
 0x4ec   :  { %20208 = vmatpush.bf16.msrb.mxu2 %v31591_v35  ;;  %v31613_v35 = vld [vmem:[%s39439_s1 + $0x2858] sm:$0xff] }
 0x4ed   :  { %20221 = vmatpush.bf16.msrb.mxu3 %v31599_v36  ;;  %v31621_v36 = vld [vmem:[%s39439_s1 + $0x2898] sm:$0xff] }
 0x4ee   :  { %20183 = vmatpush.bf16.msrb.mxu0 %v31574_v39  ;;  %v19957_v63 = vpop.f32.mrf.mxu2  ;;  %v31629_v39 = vld [vmem:[%s39439_s1 + $0x28d8] sm:$0xff] }
 0x4ef   :  { %20196 = vmatpush.bf16.msrb.mxu1 %v31582_v41  ;;  %v19970_v1 = vpop.f32.mrf.mxu3  ;;  %v31657_v63 = vld [vmem:[%s39439_s1 + $0x29b8] sm:$0xff] }
 0x4f0   :  { %20209 = vmatpush.bf16.msrb.mxu2 %v31590_v42  ;;  %v374_v1 = vld.sshfl [vmem:[#allocation1 + $0x18] sm:$0xff pattern:$0x73625140] }
 0x4f1   :  { %20222 = vmatpush.bf16.msrb.mxu3 %v31598_v44  ;;  %v935_v6 = vpack.c.bf16 %v374_v1, %v374_v1  ;;  %v31679_v1 = vld [vmem:[%s39439_s1 + $0x2a68] sm:$0xff] }
 0x4f2   :  { %20184 = vmatpush.bf16.msrb.mxu0 %v31573_v45  ;;  %v31612_v45 = vld [vmem:[%s39439_s1 + $0x2850] sm:$0xff] }
 0x4f3   :  { %20197 = vmatpush.bf16.msrb.mxu1 %v31581_v46  ;;  %v31620_v46 = vld [vmem:[%s39439_s1 + $0x2890] sm:$0xff] }
 0x4f4   :  { %20210 = vmatpush.bf16.msrb.mxu2 %v31589_v47  ;;  %v31628_v47 = vld [vmem:[%s39439_s1 + $0x28d0] sm:$0xff] }
 0x4f5   :  { %20223 = vmatpush.bf16.msrb.mxu3 %v31597_v50  ;;  %v31611_v50 = vld [vmem:[%s39439_s1 + $0x2848] sm:$0xff] }
 0x4f6   :  { %20185 = vmatpush.bf16.msrb.mxu0 %v31572_v54 }
 0x4f7   :  { %20198 = vmatpush.bf16.msrb.mxu1 %v31580_v56  ;;  %v31610_v56 = vld [vmem:[%s39439_s1 + $0x2840] sm:$0xff] }
 0x4f8   :  { %20211 = vmatpush.bf16.msrb.mxu2 %v31588_v57  ;;  %v31618_v57 = vld [vmem:[%s39439_s1 + $0x2880] sm:$0xff] }
 0x4f9   :  { %20224 = vmatpush.bf16.msrb.mxu3 %v31596_v58  ;;  %v371_v58 = vld.sshfl [vmem:[#allocation1] sm:$0xff pattern:$0x73625140] }
 0x4fa   :  { %20186 = vmatpush.bf16.msrb.mxu0 %v31571_v59  ;;  %v373_v59 = vld.sshfl [vmem:[#allocation1 + $0x10] sm:$0xff pattern:$0x73625140] }
 0x4fb   :  { %20199 = vmatpush.bf16.msrb.mxu1 %v31579_v61  ;;  %v31649_v61 = vld [vmem:[%s39439_s1 + $0x2978] sm:$0xff] }
 0x4fc   :  { %20212 = vmatpush.bf16.msrb.mxu2 %v31587_v62  ;;  %v372_v62 = vld.sshfl [vmem:[#allocation1 + $0x8] sm:$0xff pattern:$0x73625140] }
 0x4fd   :  { %20225 = vmatpush.bf16.msrb.mxu3 %v31595_v0  ;;  %v31626_v0 = vld [vmem:[%s39439_s1 + $0x28c0] sm:$0xff]  ;;  %v933_v5 = vpack.c.bf16 %v372_v62, %v372_v62  ;;  %v31688_v62 = vld [vmem:[%s39439_s1 + $0x2ab0] sm:$0xff] }
 0x4fe   :  { %20187 = vmatpush.bf16.msrb.mxu0 %v31570_v2  ;;  %v19981_v26 = vpop.f32.mrf.mxu0  ;;  %v932_v2 = vpack.c.bf16 %v371_v58, %v371_v58 }
 0x4ff   :  { %20200 = vmatpush.bf16.msrb.mxu1 %v31578_v3  ;;  %v19982_v27 = vadd.f32 %v19981_v26, %v36567_v53  ;;  %v19994_v29 = vpop.f32.mrf.mxu1  ;;  %v31627_v53 = vld [vmem:[%s39439_s1 + $0x28c8] sm:$0xff]  ;;  %v934_v3 = vpack.c.bf16 %v373_v59, %v373_v59 }
 0x500   :  { %20213 = vmatpush.bf16.msrb.mxu2 %v31586_v4  ;;  %v31665_v4 = vld [vmem:[%s39439_s1 + $0x29f8] sm:$0xff] }
 0x501   :  { %20226 = vmatpush.bf16.msrb.mxu3 %v31594_v11  ;;  %20188 = vmatmul.bf16.vlgmr.msrb.gmra.mxu0 %v928_v13  ;;  %v19995_v32 = vadd.f32 %v19994_v29, %v19982_v27  ;;  %v31639_v11 = vld [vmem:[%s39439_s1 + $0x2928] sm:$0xff] }
 0x502   :  { %20232 = vmatpush.bf16.msra.mxu0 %v31609_v7  ;;  %20201 = vmatmul.bf16.vlgmr.msrb.gmra.mxu1 %v929_v16  ;;  %v31640_v7 = vld [vmem:[%s39439_s1 + $0x2930] sm:$0xff]  ;;  %v31655_v13 = vld [vmem:[%s39439_s1 + $0x29a8] sm:$0xff] }
 0x503   :  { %20245 = vmatpush.bf16.msra.mxu1 %v31617_v8  ;;  %20214 = vmatmul.bf16.vlgmr.msrb.gmra.mxu2 %v930_v14  ;;  %v31648_v8 = vld [vmem:[%s39439_s1 + $0x2970] sm:$0xff]  ;;  %v31663_v14 = vld [vmem:[%s39439_s1 + $0x29e8] sm:$0xff] }
 0x504   :  { %20258 = vmatpush.bf16.msra.mxu2 %v31625_v10  ;;  %20227 = vmatmul.bf16.vlgmr.msrb.gmra.mxu3 %v931_v17  ;;  %v31664_v10 = vld [vmem:[%s39439_s1 + $0x29f0] sm:$0xff]  ;;  %v31638_v17 = vld [vmem:[%s39439_s1 + $0x2920] sm:$0xff] }
 0x505   :  { %20271 = vmatpush.bf16.msra.mxu3 %v31633_v15 }
 0x506   :  { %20233 = vmatpush.bf16.msra.mxu0 %v31608_v18  ;;  %v20007_v37 = vpop.f32.mrf.mxu2  ;;  %v19983_v41 = vpop.f32.mrf.mxu0 }
 0x507   :  { %20246 = vmatpush.bf16.msra.mxu1 %v31616_v19  ;;  %v20008_v38 = vadd.f32 %v20007_v37, %v19995_v32  ;;  %v20020_v40 = vpop.f32.mrf.mxu3  ;;  %v19996_v44 = vpop.f32.mrf.mxu1  ;;  %v31646_v19 = vld [vmem:[%s39439_s1 + $0x2960] sm:$0xff]  ;;  %v31636_v32 = vld [vmem:[%s39439_s1 + $0x2910] sm:$0xff]  ;;  %v31635_v37 = vld [vmem:[%s39439_s1 + $0x2908] sm:$0xff] }
 0x508   :  { %20259 = vmatpush.bf16.msra.mxu2 %v31624_v20  ;;  %v31654_v20 = vld [vmem:[%s39439_s1 + $0x29a0] sm:$0xff] }
 0x509   :  { %20272 = vmatpush.bf16.msra.mxu3 %v31632_v21  ;;  %v36669_v42 = vadd.f32 %v20020_v40, %v20008_v38  ;;  %v76_v38 = vld [vmem:[%s39438_s0 + $0x150] sm:$0xff]  ;;  %v31651_v40 = vld [vmem:[%s39439_s1 + $0x2988] sm:$0xff]  ;;  %v31634_v44 = vld [vmem:[%s39439_s1 + $0x2900] sm:$0xff] }
 0x50a   :  { %20234 = vmatpush.bf16.msra.mxu0 %v31607_v22  ;;  %v31662_v22 = vld [vmem:[%s39439_s1 + $0x29e0] sm:$0xff]  ;;  %379 = vst [vmem:[#allocation1] ss:$4 sm:$0xff] %v76_v38  ;;  %v31705_v38 = vld [vmem:[%s39439_s1 + $0x2b38] sm:$0xff] }
 0x50b   :  { %20247 = vmatpush.bf16.msra.mxu1 %v31615_v23  ;;  %v31637_v23 = vld [vmem:[%s39439_s1 + $0x2918] sm:$0xff] }
 0x50c   :  { %20260 = vmatpush.bf16.msra.mxu2 %v31623_v24  ;;  %v31645_v24 = vld [vmem:[%s39439_s1 + $0x2958] sm:$0xff] }
 0x50d   :  { %20273 = vmatpush.bf16.msra.mxu3 %v31631_v25  ;;  %v31653_v25 = vld [vmem:[%s39439_s1 + $0x2998] sm:$0xff] }
 0x50e   :  { %20235 = vmatpush.bf16.msra.mxu0 %v31606_v28  ;;  %v20009_v52 = vpop.f32.mrf.mxu2  ;;  %v31661_v28 = vld [vmem:[%s39439_s1 + $0x29d8] sm:$0xff] }
 0x50f   :  { %20248 = vmatpush.bf16.msra.mxu1 %v31614_v30  ;;  %v20022_v54 = vpop.f32.mrf.mxu3  ;;  %v31689_v52 = vld [vmem:[%s39439_s1 + $0x2ab8] sm:$0xff] }
 0x510   :  { %20261 = vmatpush.bf16.msra.mxu2 %v31622_v31  ;;  %v378_v54 = vld.sshfl [vmem:[#allocation1 + $0x38] sm:$0xff pattern:$0x73625140] }
 0x511   :  { %20274 = vmatpush.bf16.msra.mxu3 %v31630_v33  ;;  %v939_v59 = vpack.c.bf16 %v378_v54, %v378_v54  ;;  %v31711_v54 = vld [vmem:[%s39439_s1 + $0x2b68] sm:$0xff] }
 0x512   :  { %20236 = vmatpush.bf16.msra.mxu0 %v31605_v34  ;;  %v31644_v34 = vld [vmem:[%s39439_s1 + $0x2950] sm:$0xff] }
 0x513   :  { %20249 = vmatpush.bf16.msra.mxu1 %v31613_v35  ;;  %v31652_v35 = vld [vmem:[%s39439_s1 + $0x2990] sm:$0xff] }
 0x514   :  { %20262 = vmatpush.bf16.msra.mxu2 %v31621_v36  ;;  %v31660_v36 = vld [vmem:[%s39439_s1 + $0x29d0] sm:$0xff] }
 0x515   :  { %20275 = vmatpush.bf16.msra.mxu3 %v31629_v39  ;;  %v31643_v39 = vld [vmem:[%s39439_s1 + $0x2948] sm:$0xff] }
 0x516   :  { %20237 = vmatpush.bf16.msra.mxu0 %v31604_v43 }
 0x517   :  { %20250 = vmatpush.bf16.msra.mxu1 %v31612_v45  ;;  %v31642_v45 = vld [vmem:[%s39439_s1 + $0x2940] sm:$0xff] }
 0x518   :  { %20263 = vmatpush.bf16.msra.mxu2 %v31620_v46  ;;  %v31650_v46 = vld [vmem:[%s39439_s1 + $0x2980] sm:$0xff] }
 0x519   :  { %20276 = vmatpush.bf16.msra.mxu3 %v31628_v47  ;;  %v375_v47 = vld.sshfl [vmem:[#allocation1 + $0x20] sm:$0xff pattern:$0x73625140] }
 0x51a   :  { %20238 = vmatpush.bf16.msra.mxu0 %v31603_v48  ;;  %v377_v48 = vld.sshfl [vmem:[#allocation1 + $0x30] sm:$0xff pattern:$0x73625140] }
 0x51b   :  { %20251 = vmatpush.bf16.msra.mxu1 %v31611_v50  ;;  %v31681_v50 = vld [vmem:[%s39439_s1 + $0x2a78] sm:$0xff] }
 0x51c   :  { %20264 = vmatpush.bf16.msra.mxu2 %v31619_v51  ;;  %v376_v51 = vld.sshfl [vmem:[#allocation1 + $0x28] sm:$0xff pattern:$0x73625140] }
 0x51d   :  { %20277 = vmatpush.bf16.msra.mxu3 %v31627_v53  ;;  %v31658_v53 = vld [vmem:[%s39439_s1 + $0x29c0] sm:$0xff]  ;;  %v937_v58 = vpack.c.bf16 %v376_v51, %v376_v51  ;;  %v31720_v51 = vld [vmem:[%s39439_s1 + $0x2bb0] sm:$0xff] }
 0x51e   :  { %20239 = vmatpush.bf16.msra.mxu0 %v31602_v55  ;;  %v20033_v15 = vpop.f32.mrf.mxu0  ;;  %v936_v55 = vpack.c.bf16 %v375_v47, %v375_v47 }
 0x51f   :  { %20252 = vmatpush.bf16.msra.mxu1 %v31610_v56  ;;  %v20034_v16 = vadd.f32 %v20033_v15, %v36669_v42  ;;  %v20046_v18 = vpop.f32.mrf.mxu1  ;;  %v31659_v42 = vld [vmem:[%s39439_s1 + $0x29c8] sm:$0xff]  ;;  %v938_v56 = vpack.c.bf16 %v377_v48, %v377_v48 }
 0x520   :  { %20265 = vmatpush.bf16.msra.mxu2 %v31618_v57  ;;  %v31697_v57 = vld [vmem:[%s39439_s1 + $0x2af8] sm:$0xff] }
 0x521   :  { %20278 = vmatpush.bf16.msra.mxu3 %v31626_v0  ;;  %20240 = vmatmul.bf16.vlgmr.msra.gmra.mxu0 %v932_v2  ;;  %v20047_v21 = vadd.f32 %v20046_v18, %v20034_v16  ;;  %v31671_v0 = vld [vmem:[%s39439_s1 + $0x2a28] sm:$0xff] }
 0x522   :  { %20284 = vmatpush.bf16.msrb.mxu0 %v31641_v60  ;;  %20253 = vmatmul.bf16.vlgmr.msra.gmra.mxu1 %v933_v5  ;;  %v31672_v60 = vld [vmem:[%s39439_s1 + $0x2a30] sm:$0xff]  ;;  %v31687_v2 = vld [vmem:[%s39439_s1 + $0x2aa8] sm:$0xff] }
 0x523   :  { %20297 = vmatpush.bf16.msrb.mxu1 %v31649_v61  ;;  %20266 = vmatmul.bf16.vlgmr.msra.gmra.mxu2 %v934_v3  ;;  %v31680_v61 = vld [vmem:[%s39439_s1 + $0x2a70] sm:$0xff]  ;;  %v31695_v3 = vld [vmem:[%s39439_s1 + $0x2ae8] sm:$0xff] }
 0x524   :  { %20310 = vmatpush.bf16.msrb.mxu2 %v31657_v63  ;;  %20279 = vmatmul.bf16.vlgmr.msra.gmra.mxu3 %v935_v6  ;;  %v31696_v63 = vld [vmem:[%s39439_s1 + $0x2af0] sm:$0xff]  ;;  %v31670_v6 = vld [vmem:[%s39439_s1 + $0x2a20] sm:$0xff] }
 0x525   :  { %20323 = vmatpush.bf16.msrb.mxu3 %v31665_v4 }
 0x526   :  { %20285 = vmatpush.bf16.msrb.mxu0 %v31640_v7  ;;  %v20059_v26 = vpop.f32.mrf.mxu2  ;;  %v20035_v30 = vpop.f32.mrf.mxu0 }
 0x527   :  { %20298 = vmatpush.bf16.msrb.mxu1 %v31648_v8  ;;  %v20060_v27 = vadd.f32 %v20059_v26, %v20047_v21  ;;  %v20072_v29 = vpop.f32.mrf.mxu3  ;;  %v20048_v33 = vpop.f32.mrf.mxu1  ;;  %v31678_v8 = vld [vmem:[%s39439_s1 + $0x2a60] sm:$0xff]  ;;  %v31668_v21 = vld [vmem:[%s39439_s1 + $0x2a10] sm:$0xff]  ;;  %v31667_v26 = vld [vmem:[%s39439_s1 + $0x2a08] sm:$0xff] }
 0x528   :  { %20311 = vmatpush.bf16.msrb.mxu2 %v31656_v9  ;;  %v31686_v9 = vld [vmem:[%s39439_s1 + $0x2aa0] sm:$0xff] }
 0x529   :  { %20324 = vmatpush.bf16.msrb.mxu3 %v31664_v10  ;;  %v36771_v31 = vadd.f32 %v20072_v29, %v20060_v27  ;;  %v77_v27 = vld [vmem:[%s39438_s0 + $0x158] sm:$0xff]  ;;  %v31683_v29 = vld [vmem:[%s39439_s1 + $0x2a88] sm:$0xff]  ;;  %v31666_v33 = vld [vmem:[%s39439_s1 + $0x2a00] sm:$0xff] }
 0x52a   :  { %20286 = vmatpush.bf16.msrb.mxu0 %v31639_v11  ;;  %v31694_v11 = vld [vmem:[%s39439_s1 + $0x2ae0] sm:$0xff]  ;;  %380 = vst [vmem:[#allocation1 + $0x20] ss:$4 sm:$0xff] %v77_v27  ;;  %v31737_v27 = vld [vmem:[%s39439_s1 + $0x2c38] sm:$0xff] }
 0x52b   :  { %20299 = vmatpush.bf16.msrb.mxu1 %v31647_v12  ;;  %v31669_v12 = vld [vmem:[%s39439_s1 + $0x2a18] sm:$0xff] }
 0x52c   :  { %20312 = vmatpush.bf16.msrb.mxu2 %v31655_v13  ;;  %v31677_v13 = vld [vmem:[%s39439_s1 + $0x2a58] sm:$0xff] }
 0x52d   :  { %20325 = vmatpush.bf16.msrb.mxu3 %v31663_v14  ;;  %v31685_v14 = vld [vmem:[%s39439_s1 + $0x2a98] sm:$0xff] }
 0x52e   :  { %20287 = vmatpush.bf16.msrb.mxu0 %v31638_v17  ;;  %v20061_v41 = vpop.f32.mrf.mxu2  ;;  %v31693_v17 = vld [vmem:[%s39439_s1 + $0x2ad8] sm:$0xff] }
 0x52f   :  { %20300 = vmatpush.bf16.msrb.mxu1 %v31646_v19  ;;  %v20074_v43 = vpop.f32.mrf.mxu3  ;;  %v31721_v41 = vld [vmem:[%s39439_s1 + $0x2bb8] sm:$0xff] }
 0x530   :  { %20313 = vmatpush.bf16.msrb.mxu2 %v31654_v20  ;;  %v384_v43 = vld.sshfl [vmem:[#allocation1 + $0x18] sm:$0xff pattern:$0x73625140] }
 0x531   :  { %20326 = vmatpush.bf16.msrb.mxu3 %v31662_v22  ;;  %v943_v48 = vpack.c.bf16 %v384_v43, %v384_v43  ;;  %v31743_v43 = vld [vmem:[%s39439_s1 + $0x2c68] sm:$0xff] }
 0x532   :  { %20288 = vmatpush.bf16.msrb.mxu0 %v31637_v23  ;;  %v31676_v23 = vld [vmem:[%s39439_s1 + $0x2a50] sm:$0xff] }
 0x533   :  { %20301 = vmatpush.bf16.msrb.mxu1 %v31645_v24  ;;  %v31684_v24 = vld [vmem:[%s39439_s1 + $0x2a90] sm:$0xff] }
 0x534   :  { %20314 = vmatpush.bf16.msrb.mxu2 %v31653_v25  ;;  %v31692_v25 = vld [vmem:[%s39439_s1 + $0x2ad0] sm:$0xff] }
 0x535   :  { %20327 = vmatpush.bf16.msrb.mxu3 %v31661_v28  ;;  %v31675_v28 = vld [vmem:[%s39439_s1 + $0x2a48] sm:$0xff] }
 0x536   :  { %20289 = vmatpush.bf16.msrb.mxu0 %v31636_v32 }
 0x537   :  { %20302 = vmatpush.bf16.msrb.mxu1 %v31644_v34  ;;  %v31674_v34 = vld [vmem:[%s39439_s1 + $0x2a40] sm:$0xff] }
 0x538   :  { %20315 = vmatpush.bf16.msrb.mxu2 %v31652_v35  ;;  %v31682_v35 = vld [vmem:[%s39439_s1 + $0x2a80] sm:$0xff] }
 0x539   :  { %20328 = vmatpush.bf16.msrb.mxu3 %v31660_v36  ;;  %v381_v36 = vld.sshfl [vmem:[#allocation1] sm:$0xff pattern:$0x73625140] }
 0x53a   :  { %20290 = vmatpush.bf16.msrb.mxu0 %v31635_v37  ;;  %v383_v37 = vld.sshfl [vmem:[#allocation1 + $0x10] sm:$0xff pattern:$0x73625140] }
 0x53b   :  { %20303 = vmatpush.bf16.msrb.mxu1 %v31643_v39  ;;  %v31713_v39 = vld [vmem:[%s39439_s1 + $0x2b78] sm:$0xff] }
 0x53c   :  { %20316 = vmatpush.bf16.msrb.mxu2 %v31651_v40  ;;  %v382_v40 = vld.sshfl [vmem:[#allocation1 + $0x8] sm:$0xff pattern:$0x73625140] }
 0x53d   :  { %20329 = vmatpush.bf16.msrb.mxu3 %v31659_v42  ;;  %v31690_v42 = vld [vmem:[%s39439_s1 + $0x2ac0] sm:$0xff]  ;;  %v941_v47 = vpack.c.bf16 %v382_v40, %v382_v40  ;;  %v31752_v40 = vld [vmem:[%s39439_s1 + $0x2cb0] sm:$0xff] }
 0x53e   :  { %20291 = vmatpush.bf16.msrb.mxu0 %v31634_v44  ;;  %v20085_v4 = vpop.f32.mrf.mxu0  ;;  %v940_v44 = vpack.c.bf16 %v381_v36, %v381_v36 }
 0x53f   :  { %20304 = vmatpush.bf16.msrb.mxu1 %v31642_v45  ;;  %v20086_v5 = vadd.f32 %v20085_v4, %v36771_v31  ;;  %v20098_v7 = vpop.f32.mrf.mxu1  ;;  %v31691_v31 = vld [vmem:[%s39439_s1 + $0x2ac8] sm:$0xff]  ;;  %v942_v45 = vpack.c.bf16 %v383_v37, %v383_v37 }
 0x540   :  { %20317 = vmatpush.bf16.msrb.mxu2 %v31650_v46  ;;  %v31729_v46 = vld [vmem:[%s39439_s1 + $0x2bf8] sm:$0xff] }
 0x541   :  { %20330 = vmatpush.bf16.msrb.mxu3 %v31658_v53  ;;  %20292 = vmatmul.bf16.vlgmr.msrb.gmra.mxu0 %v936_v55  ;;  %v20099_v10 = vadd.f32 %v20098_v7, %v20086_v5  ;;  %v31703_v53 = vld [vmem:[%s39439_s1 + $0x2b28] sm:$0xff] }
 0x542   :  { %20336 = vmatpush.bf16.msra.mxu0 %v31673_v49  ;;  %20305 = vmatmul.bf16.vlgmr.msrb.gmra.mxu1 %v937_v58  ;;  %v31704_v49 = vld [vmem:[%s39439_s1 + $0x2b30] sm:$0xff]  ;;  %v31719_v55 = vld [vmem:[%s39439_s1 + $0x2ba8] sm:$0xff] }
 0x543   :  { %20349 = vmatpush.bf16.msra.mxu1 %v31681_v50  ;;  %20318 = vmatmul.bf16.vlgmr.msrb.gmra.mxu2 %v938_v56  ;;  %v31712_v50 = vld [vmem:[%s39439_s1 + $0x2b70] sm:$0xff]  ;;  %v31727_v56 = vld [vmem:[%s39439_s1 + $0x2be8] sm:$0xff] }
 0x544   :  { %20362 = vmatpush.bf16.msra.mxu2 %v31689_v52  ;;  %20331 = vmatmul.bf16.vlgmr.msrb.gmra.mxu3 %v939_v59  ;;  %v31728_v52 = vld [vmem:[%s39439_s1 + $0x2bf0] sm:$0xff]  ;;  %v31702_v59 = vld [vmem:[%s39439_s1 + $0x2b20] sm:$0xff] }
 0x545   :  { %20375 = vmatpush.bf16.msra.mxu3 %v31697_v57 }
 0x546   :  { %20337 = vmatpush.bf16.msra.mxu0 %v31672_v60  ;;  %v20111_v15 = vpop.f32.mrf.mxu2  ;;  %v20087_v19 = vpop.f32.mrf.mxu0 }
 0x547   :  { %20350 = vmatpush.bf16.msra.mxu1 %v31680_v61  ;;  %v20112_v16 = vadd.f32 %v20111_v15, %v20099_v10  ;;  %v20124_v18 = vpop.f32.mrf.mxu3  ;;  %v20100_v22 = vpop.f32.mrf.mxu1  ;;  %v31710_v61 = vld [vmem:[%s39439_s1 + $0x2b60] sm:$0xff]  ;;  %v31700_v10 = vld [vmem:[%s39439_s1 + $0x2b10] sm:$0xff]  ;;  %v31699_v15 = vld [vmem:[%s39439_s1 + $0x2b08] sm:$0xff] }
 0x548   :  { %20363 = vmatpush.bf16.msra.mxu2 %v31688_v62  ;;  %v31718_v62 = vld [vmem:[%s39439_s1 + $0x2ba0] sm:$0xff] }
 0x549   :  { %20376 = vmatpush.bf16.msra.mxu3 %v31696_v63  ;;  %v36873_v20 = vadd.f32 %v20124_v18, %v20112_v16  ;;  %v78_v16 = vld [vmem:[%s39438_s0 + $0x160] sm:$0xff]  ;;  %v31715_v18 = vld [vmem:[%s39439_s1 + $0x2b88] sm:$0xff] }
 0x54a   :  { %20338 = vmatpush.bf16.msra.mxu0 %v31671_v0  ;;  %v31726_v0 = vld [vmem:[%s39439_s1 + $0x2be0] sm:$0xff]  ;;  %389 = vst [vmem:[#allocation1] ss:$4 sm:$0xff] %v78_v16  ;;  %v31769_v16 = vld [vmem:[%s39439_s1 + $0x2d38] sm:$0xff] }
 0x54b   :  { %20351 = vmatpush.bf16.msra.mxu1 %v31679_v1  ;;  %v31701_v1 = vld [vmem:[%s39439_s1 + $0x2b18] sm:$0xff]  ;;  %v31698_v22 = vld [vmem:[%s39439_s1 + $0x2b00] sm:$0xff] }
 0x54c   :  { %20364 = vmatpush.bf16.msra.mxu2 %v31687_v2  ;;  %v31709_v2 = vld [vmem:[%s39439_s1 + $0x2b58] sm:$0xff] }
 0x54d   :  { %20377 = vmatpush.bf16.msra.mxu3 %v31695_v3  ;;  %v31717_v3 = vld [vmem:[%s39439_s1 + $0x2b98] sm:$0xff] }
 0x54e   :  { %20339 = vmatpush.bf16.msra.mxu0 %v31670_v6  ;;  %v20113_v30 = vpop.f32.mrf.mxu2  ;;  %v31725_v6 = vld [vmem:[%s39439_s1 + $0x2bd8] sm:$0xff] }
 0x54f   :  { %20352 = vmatpush.bf16.msra.mxu1 %v31678_v8  ;;  %v20126_v32 = vpop.f32.mrf.mxu3  ;;  %v31753_v30 = vld [vmem:[%s39439_s1 + $0x2cb8] sm:$0xff] }
 0x550   :  { %20365 = vmatpush.bf16.msra.mxu2 %v31686_v9  ;;  %v388_v32 = vld.sshfl [vmem:[#allocation1 + $0x38] sm:$0xff pattern:$0x73625140] }
 0x551   :  { %20378 = vmatpush.bf16.msra.mxu3 %v31694_v11  ;;  %v947_v37 = vpack.c.bf16 %v388_v32, %v388_v32  ;;  %v31775_v32 = vld [vmem:[%s39439_s1 + $0x2d68] sm:$0xff] }
 0x552   :  { %20340 = vmatpush.bf16.msra.mxu0 %v31669_v12  ;;  %v31708_v12 = vld [vmem:[%s39439_s1 + $0x2b50] sm:$0xff] }
 0x553   :  { %20353 = vmatpush.bf16.msra.mxu1 %v31677_v13  ;;  %v31716_v13 = vld [vmem:[%s39439_s1 + $0x2b90] sm:$0xff] }
 0x554   :  { %20366 = vmatpush.bf16.msra.mxu2 %v31685_v14  ;;  %v31724_v14 = vld [vmem:[%s39439_s1 + $0x2bd0] sm:$0xff] }
 0x555   :  { %20379 = vmatpush.bf16.msra.mxu3 %v31693_v17  ;;  %v31707_v17 = vld [vmem:[%s39439_s1 + $0x2b48] sm:$0xff] }
 0x556   :  { %20341 = vmatpush.bf16.msra.mxu0 %v31668_v21 }
 0x557   :  { %20354 = vmatpush.bf16.msra.mxu1 %v31676_v23  ;;  %v31706_v23 = vld [vmem:[%s39439_s1 + $0x2b40] sm:$0xff] }
 0x558   :  { %20367 = vmatpush.bf16.msra.mxu2 %v31684_v24  ;;  %v31714_v24 = vld [vmem:[%s39439_s1 + $0x2b80] sm:$0xff] }
 0x559   :  { %20380 = vmatpush.bf16.msra.mxu3 %v31692_v25  ;;  %v385_v25 = vld.sshfl [vmem:[#allocation1 + $0x20] sm:$0xff pattern:$0x73625140] }
 0x55a   :  { %20342 = vmatpush.bf16.msra.mxu0 %v31667_v26  ;;  %v387_v26 = vld.sshfl [vmem:[#allocation1 + $0x30] sm:$0xff pattern:$0x73625140] }
 0x55b   :  { %20355 = vmatpush.bf16.msra.mxu1 %v31675_v28  ;;  %v31745_v28 = vld [vmem:[%s39439_s1 + $0x2c78] sm:$0xff] }
 0x55c   :  { %20368 = vmatpush.bf16.msra.mxu2 %v31683_v29  ;;  %v386_v29 = vld.sshfl [vmem:[#allocation1 + $0x28] sm:$0xff pattern:$0x73625140] }
 0x55d   :  { %20381 = vmatpush.bf16.msra.mxu3 %v31691_v31  ;;  %v31722_v31 = vld [vmem:[%s39439_s1 + $0x2bc0] sm:$0xff]  ;;  %v945_v36 = vpack.c.bf16 %v386_v29, %v386_v29  ;;  %v31784_v29 = vld [vmem:[%s39439_s1 + $0x2db0] sm:$0xff] }
 0x55e   :  { %20343 = vmatpush.bf16.msra.mxu0 %v31666_v33  ;;  %v20137_v57 = vpop.f32.mrf.mxu0  ;;  %v944_v33 = vpack.c.bf16 %v385_v25, %v385_v25 }
 0x55f   :  { %20356 = vmatpush.bf16.msra.mxu1 %v31674_v34  ;;  %v20138_v58 = vadd.f32 %v20137_v57, %v36873_v20  ;;  %v20150_v60 = vpop.f32.mrf.mxu1  ;;  %v31723_v20 = vld [vmem:[%s39439_s1 + $0x2bc8] sm:$0xff]  ;;  %v946_v34 = vpack.c.bf16 %v387_v26, %v387_v26 }
 0x560   :  { %20369 = vmatpush.bf16.msra.mxu2 %v31682_v35  ;;  %v31761_v35 = vld [vmem:[%s39439_s1 + $0x2cf8] sm:$0xff] }
 0x561   :  { %20382 = vmatpush.bf16.msra.mxu3 %v31690_v42  ;;  %20344 = vmatmul.bf16.vlgmr.msra.gmra.mxu0 %v940_v44  ;;  %v20151_v63 = vadd.f32 %v20150_v60, %v20138_v58  ;;  %v31735_v42 = vld [vmem:[%s39439_s1 + $0x2c28] sm:$0xff] }
 0x562   :  { %20388 = vmatpush.bf16.msrb.mxu0 %v31705_v38  ;;  %20357 = vmatmul.bf16.vlgmr.msra.gmra.mxu1 %v941_v47  ;;  %v31736_v38 = vld [vmem:[%s39439_s1 + $0x2c30] sm:$0xff]  ;;  %v31751_v44 = vld [vmem:[%s39439_s1 + $0x2ca8] sm:$0xff] }
 0x563   :  { %20401 = vmatpush.bf16.msrb.mxu1 %v31713_v39  ;;  %20370 = vmatmul.bf16.vlgmr.msra.gmra.mxu2 %v942_v45  ;;  %v31744_v39 = vld [vmem:[%s39439_s1 + $0x2c70] sm:$0xff]  ;;  %v31759_v45 = vld [vmem:[%s39439_s1 + $0x2ce8] sm:$0xff] }
 0x564   :  { %20414 = vmatpush.bf16.msrb.mxu2 %v31721_v41  ;;  %20383 = vmatmul.bf16.vlgmr.msra.gmra.mxu3 %v943_v48  ;;  %v31760_v41 = vld [vmem:[%s39439_s1 + $0x2cf0] sm:$0xff]  ;;  %v31734_v48 = vld [vmem:[%s39439_s1 + $0x2c20] sm:$0xff] }
 0x565   :  { %20427 = vmatpush.bf16.msrb.mxu3 %v31729_v46 }
 0x566   :  { %20389 = vmatpush.bf16.msrb.mxu0 %v31704_v49  ;;  %v20163_v4 = vpop.f32.mrf.mxu2  ;;  %v20139_v8 = vpop.f32.mrf.mxu0 }
 0x567   :  { %20402 = vmatpush.bf16.msrb.mxu1 %v31712_v50  ;;  %v20164_v5 = vadd.f32 %v20163_v4, %v20151_v63  ;;  %v20176_v7 = vpop.f32.mrf.mxu3  ;;  %v20152_v11 = vpop.f32.mrf.mxu1  ;;  %v31742_v50 = vld [vmem:[%s39439_s1 + $0x2c60] sm:$0xff]  ;;  %v31732_v63 = vld [vmem:[%s39439_s1 + $0x2c10] sm:$0xff]  ;;  %v31731_v4 = vld [vmem:[%s39439_s1 + $0x2c08] sm:$0xff] }
 0x568   :  { %20415 = vmatpush.bf16.msrb.mxu2 %v31720_v51  ;;  %v31750_v51 = vld [vmem:[%s39439_s1 + $0x2ca0] sm:$0xff] }
 0x569   :  { %20428 = vmatpush.bf16.msrb.mxu3 %v31728_v52  ;;  %v36975_v9 = vadd.f32 %v20176_v7, %v20164_v5  ;;  %v79_v5 = vld [vmem:[%s39438_s0 + $0x168] sm:$0xff]  ;;  %v31730_v11 = vld [vmem:[%s39439_s1 + $0x2c00] sm:$0xff] }
 0x56a   :  { %20390 = vmatpush.bf16.msrb.mxu0 %v31703_v53  ;;  %v31758_v53 = vld [vmem:[%s39439_s1 + $0x2ce0] sm:$0xff]  ;;  %v31747_v7 = vld [vmem:[%s39439_s1 + $0x2c88] sm:$0xff]  ;;  %390 = vst [vmem:[#allocation1 + $0x20] ss:$4 sm:$0xff] %v79_v5  ;;  %v31801_v5 = vld [vmem:[%s39439_s1 + $0x2e38] sm:$0xff] }
 0x56b   :  { %20403 = vmatpush.bf16.msrb.mxu1 %v31711_v54  ;;  %v31733_v54 = vld [vmem:[%s39439_s1 + $0x2c18] sm:$0xff] }
 0x56c   :  { %20416 = vmatpush.bf16.msrb.mxu2 %v31719_v55  ;;  %v31741_v55 = vld [vmem:[%s39439_s1 + $0x2c58] sm:$0xff] }
 0x56d   :  { %20429 = vmatpush.bf16.msrb.mxu3 %v31727_v56  ;;  %v31749_v56 = vld [vmem:[%s39439_s1 + $0x2c98] sm:$0xff] }
 0x56e   :  { %20391 = vmatpush.bf16.msrb.mxu0 %v31702_v59  ;;  %v20165_v19 = vpop.f32.mrf.mxu2  ;;  %v31757_v59 = vld [vmem:[%s39439_s1 + $0x2cd8] sm:$0xff] }
 0x56f   :  { %20404 = vmatpush.bf16.msrb.mxu1 %v31710_v61  ;;  %v20178_v21 = vpop.f32.mrf.mxu3  ;;  %v31785_v19 = vld [vmem:[%s39439_s1 + $0x2db8] sm:$0xff] }
 0x570   :  { %20417 = vmatpush.bf16.msrb.mxu2 %v31718_v62  ;;  %v394_v21 = vld.sshfl [vmem:[#allocation1 + $0x18] sm:$0xff pattern:$0x73625140] }
 0x571   :  { %20430 = vmatpush.bf16.msrb.mxu3 %v31726_v0  ;;  %v951_v26 = vpack.c.bf16 %v394_v21, %v394_v21  ;;  %v31807_v21 = vld [vmem:[%s39439_s1 + $0x2e68] sm:$0xff] }
 0x572   :  { %20392 = vmatpush.bf16.msrb.mxu0 %v31701_v1  ;;  %v31740_v1 = vld [vmem:[%s39439_s1 + $0x2c50] sm:$0xff] }
 0x573   :  { %20405 = vmatpush.bf16.msrb.mxu1 %v31709_v2  ;;  %v31748_v2 = vld [vmem:[%s39439_s1 + $0x2c90] sm:$0xff] }
 0x574   :  { %20418 = vmatpush.bf16.msrb.mxu2 %v31717_v3  ;;  %v31756_v3 = vld [vmem:[%s39439_s1 + $0x2cd0] sm:$0xff] }
 0x575   :  { %20431 = vmatpush.bf16.msrb.mxu3 %v31725_v6  ;;  %v31739_v6 = vld [vmem:[%s39439_s1 + $0x2c48] sm:$0xff] }
 0x576   :  { %20393 = vmatpush.bf16.msrb.mxu0 %v31700_v10 }
 0x577   :  { %20406 = vmatpush.bf16.msrb.mxu1 %v31708_v12  ;;  %v31738_v12 = vld [vmem:[%s39439_s1 + $0x2c40] sm:$0xff] }
 0x578   :  { %20419 = vmatpush.bf16.msrb.mxu2 %v31716_v13  ;;  %v31746_v13 = vld [vmem:[%s39439_s1 + $0x2c80] sm:$0xff] }
 0x579   :  { %20432 = vmatpush.bf16.msrb.mxu3 %v31724_v14  ;;  %v391_v14 = vld.sshfl [vmem:[#allocation1] sm:$0xff pattern:$0x73625140] }
 0x57a   :  { %20394 = vmatpush.bf16.msrb.mxu0 %v31699_v15  ;;  %v393_v15 = vld.sshfl [vmem:[#allocation1 + $0x10] sm:$0xff pattern:$0x73625140] }
 0x57b   :  { %20407 = vmatpush.bf16.msrb.mxu1 %v31707_v17  ;;  %v31777_v17 = vld [vmem:[%s39439_s1 + $0x2d78] sm:$0xff] }
 0x57c   :  { %20420 = vmatpush.bf16.msrb.mxu2 %v31715_v18  ;;  %v392_v18 = vld.sshfl [vmem:[#allocation1 + $0x8] sm:$0xff pattern:$0x73625140] }
 0x57d   :  { %20433 = vmatpush.bf16.msrb.mxu3 %v31723_v20  ;;  %v31754_v20 = vld [vmem:[%s39439_s1 + $0x2cc0] sm:$0xff]  ;;  %v949_v25 = vpack.c.bf16 %v392_v18, %v392_v18  ;;  %v31816_v18 = vld [vmem:[%s39439_s1 + $0x2eb0] sm:$0xff] }
 0x57e   :  { %20395 = vmatpush.bf16.msrb.mxu0 %v31698_v22  ;;  %v20189_v46 = vpop.f32.mrf.mxu0  ;;  %v948_v22 = vpack.c.bf16 %v391_v14, %v391_v14 }
 0x57f   :  { %20408 = vmatpush.bf16.msrb.mxu1 %v31706_v23  ;;  %v20190_v47 = vadd.f32 %v20189_v46, %v36975_v9  ;;  %v20202_v49 = vpop.f32.mrf.mxu1  ;;  %v31755_v9 = vld [vmem:[%s39439_s1 + $0x2cc8] sm:$0xff]  ;;  %v950_v23 = vpack.c.bf16 %v393_v15, %v393_v15 }
 0x580   :  { %20421 = vmatpush.bf16.msrb.mxu2 %v31714_v24  ;;  %v31793_v24 = vld [vmem:[%s39439_s1 + $0x2df8] sm:$0xff] }
 0x581   :  { %20434 = vmatpush.bf16.msrb.mxu3 %v31722_v31  ;;  %20396 = vmatmul.bf16.vlgmr.msrb.gmra.mxu0 %v944_v33  ;;  %v20203_v52 = vadd.f32 %v20202_v49, %v20190_v47  ;;  %v31767_v31 = vld [vmem:[%s39439_s1 + $0x2d28] sm:$0xff] }
 0x582   :  { %20440 = vmatpush.bf16.msra.mxu0 %v31737_v27  ;;  %20409 = vmatmul.bf16.vlgmr.msrb.gmra.mxu1 %v945_v36  ;;  %v31768_v27 = vld [vmem:[%s39439_s1 + $0x2d30] sm:$0xff]  ;;  %v31783_v33 = vld [vmem:[%s39439_s1 + $0x2da8] sm:$0xff] }
 0x583   :  { %20453 = vmatpush.bf16.msra.mxu1 %v31745_v28  ;;  %20422 = vmatmul.bf16.vlgmr.msrb.gmra.mxu2 %v946_v34  ;;  %v31776_v28 = vld [vmem:[%s39439_s1 + $0x2d70] sm:$0xff]  ;;  %v31791_v34 = vld [vmem:[%s39439_s1 + $0x2de8] sm:$0xff] }
 0x584   :  { %20466 = vmatpush.bf16.msra.mxu2 %v31753_v30  ;;  %20435 = vmatmul.bf16.vlgmr.msrb.gmra.mxu3 %v947_v37  ;;  %v31792_v30 = vld [vmem:[%s39439_s1 + $0x2df0] sm:$0xff]  ;;  %v31766_v37 = vld [vmem:[%s39439_s1 + $0x2d20] sm:$0xff] }
 0x585   :  { %20479 = vmatpush.bf16.msra.mxu3 %v31761_v35 }
 0x586   :  { %20441 = vmatpush.bf16.msra.mxu0 %v31736_v38  ;;  %v20215_v57 = vpop.f32.mrf.mxu2  ;;  %v20191_v61 = vpop.f32.mrf.mxu0 }
 0x587   :  { %20454 = vmatpush.bf16.msra.mxu1 %v31744_v39  ;;  %v20216_v58 = vadd.f32 %v20215_v57, %v20203_v52  ;;  %v20228_v60 = vpop.f32.mrf.mxu3  ;;  %v20204_v0 = vpop.f32.mrf.mxu1  ;;  %v31774_v39 = vld [vmem:[%s39439_s1 + $0x2d60] sm:$0xff]  ;;  %v31764_v52 = vld [vmem:[%s39439_s1 + $0x2d10] sm:$0xff]  ;;  %v31763_v57 = vld [vmem:[%s39439_s1 + $0x2d08] sm:$0xff] }
 0x588   :  { %20467 = vmatpush.bf16.msra.mxu2 %v31752_v40  ;;  %v31782_v40 = vld [vmem:[%s39439_s1 + $0x2da0] sm:$0xff] }
 0x589   :  { %20480 = vmatpush.bf16.msra.mxu3 %v31760_v41  ;;  %v37077_v62 = vadd.f32 %v20228_v60, %v20216_v58  ;;  %v80_v58 = vld [vmem:[%s39438_s0 + $0x170] sm:$0xff]  ;;  %v31779_v60 = vld [vmem:[%s39439_s1 + $0x2d88] sm:$0xff]  ;;  %v31762_v0 = vld [vmem:[%s39439_s1 + $0x2d00] sm:$0xff] }
 0x58a   :  { %20442 = vmatpush.bf16.msra.mxu0 %v31735_v42  ;;  %v31790_v42 = vld [vmem:[%s39439_s1 + $0x2de0] sm:$0xff]  ;;  %399 = vst [vmem:[#allocation1] ss:$4 sm:$0xff] %v80_v58  ;;  %v31833_v58 = vld [vmem:[%s39439_s1 + $0x2f38] sm:$0xff] }
 0x58b   :  { %20455 = vmatpush.bf16.msra.mxu1 %v31743_v43  ;;  %v31765_v43 = vld [vmem:[%s39439_s1 + $0x2d18] sm:$0xff] }
 0x58c   :  { %20468 = vmatpush.bf16.msra.mxu2 %v31751_v44  ;;  %v31773_v44 = vld [vmem:[%s39439_s1 + $0x2d58] sm:$0xff] }
 0x58d   :  { %20481 = vmatpush.bf16.msra.mxu3 %v31759_v45  ;;  %v31781_v45 = vld [vmem:[%s39439_s1 + $0x2d98] sm:$0xff] }
 0x58e   :  { %20443 = vmatpush.bf16.msra.mxu0 %v31734_v48  ;;  %v20217_v8 = vpop.f32.mrf.mxu2  ;;  %v31789_v48 = vld [vmem:[%s39439_s1 + $0x2dd8] sm:$0xff] }
 0x58f   :  { %20456 = vmatpush.bf16.msra.mxu1 %v31742_v50  ;;  %v20230_v10 = vpop.f32.mrf.mxu3  ;;  %v31817_v8 = vld [vmem:[%s39439_s1 + $0x2eb8] sm:$0xff] }
 0x590   :  { %20469 = vmatpush.bf16.msra.mxu2 %v31750_v51  ;;  %v398_v10 = vld.sshfl [vmem:[#allocation1 + $0x38] sm:$0xff pattern:$0x73625140] }
 0x591   :  { %20482 = vmatpush.bf16.msra.mxu3 %v31758_v53  ;;  %v955_v15 = vpack.c.bf16 %v398_v10, %v398_v10  ;;  %v31839_v10 = vld [vmem:[%s39439_s1 + $0x2f68] sm:$0xff] }
 0x592   :  { %20444 = vmatpush.bf16.msra.mxu0 %v31733_v54  ;;  %v31772_v54 = vld [vmem:[%s39439_s1 + $0x2d50] sm:$0xff] }
 0x593   :  { %20457 = vmatpush.bf16.msra.mxu1 %v31741_v55  ;;  %v31780_v55 = vld [vmem:[%s39439_s1 + $0x2d90] sm:$0xff] }
 0x594   :  { %20470 = vmatpush.bf16.msra.mxu2 %v31749_v56  ;;  %v31788_v56 = vld [vmem:[%s39439_s1 + $0x2dd0] sm:$0xff] }
 0x595   :  { %20483 = vmatpush.bf16.msra.mxu3 %v31757_v59  ;;  %v31771_v59 = vld [vmem:[%s39439_s1 + $0x2d48] sm:$0xff] }
 0x596   :  { %20445 = vmatpush.bf16.msra.mxu0 %v31732_v63 }
 0x597   :  { %20458 = vmatpush.bf16.msra.mxu1 %v31740_v1  ;;  %v31770_v1 = vld [vmem:[%s39439_s1 + $0x2d40] sm:$0xff] }
 0x598   :  { %20471 = vmatpush.bf16.msra.mxu2 %v31748_v2  ;;  %v31778_v2 = vld [vmem:[%s39439_s1 + $0x2d80] sm:$0xff] }
 0x599   :  { %20484 = vmatpush.bf16.msra.mxu3 %v31756_v3  ;;  %v395_v3 = vld.sshfl [vmem:[#allocation1 + $0x20] sm:$0xff pattern:$0x73625140] }
 0x59a   :  { %20446 = vmatpush.bf16.msra.mxu0 %v31731_v4  ;;  %v397_v4 = vld.sshfl [vmem:[#allocation1 + $0x30] sm:$0xff pattern:$0x73625140] }
 0x59b   :  { %20459 = vmatpush.bf16.msra.mxu1 %v31739_v6  ;;  %v31809_v6 = vld [vmem:[%s39439_s1 + $0x2e78] sm:$0xff] }
 0x59c   :  { %20472 = vmatpush.bf16.msra.mxu2 %v31747_v7  ;;  %v396_v7 = vld.sshfl [vmem:[#allocation1 + $0x28] sm:$0xff pattern:$0x73625140] }
 0x59d   :  { %20485 = vmatpush.bf16.msra.mxu3 %v31755_v9  ;;  %v31786_v9 = vld [vmem:[%s39439_s1 + $0x2dc0] sm:$0xff]  ;;  %v953_v14 = vpack.c.bf16 %v396_v7, %v396_v7  ;;  %v31848_v7 = vld [vmem:[%s39439_s1 + $0x2fb0] sm:$0xff] }
 0x59e   :  { %20447 = vmatpush.bf16.msra.mxu0 %v31730_v11  ;;  %v20241_v35 = vpop.f32.mrf.mxu0  ;;  %v952_v11 = vpack.c.bf16 %v395_v3, %v395_v3 }
 0x59f   :  { %20460 = vmatpush.bf16.msra.mxu1 %v31738_v12  ;;  %v20242_v36 = vadd.f32 %v20241_v35, %v37077_v62  ;;  %v20254_v38 = vpop.f32.mrf.mxu1  ;;  %v31787_v62 = vld [vmem:[%s39439_s1 + $0x2dc8] sm:$0xff]  ;;  %v954_v12 = vpack.c.bf16 %v397_v4, %v397_v4 }
 0x5a0   :  { %20473 = vmatpush.bf16.msra.mxu2 %v31746_v13  ;;  %v31825_v13 = vld [vmem:[%s39439_s1 + $0x2ef8] sm:$0xff] }
 0x5a1   :  { %20486 = vmatpush.bf16.msra.mxu3 %v31754_v20  ;;  %20448 = vmatmul.bf16.vlgmr.msra.gmra.mxu0 %v948_v22  ;;  %v20255_v41 = vadd.f32 %v20254_v38, %v20242_v36  ;;  %v31799_v20 = vld [vmem:[%s39439_s1 + $0x2e28] sm:$0xff] }
 0x5a2   :  { %20492 = vmatpush.bf16.msrb.mxu0 %v31769_v16  ;;  %20461 = vmatmul.bf16.vlgmr.msra.gmra.mxu1 %v949_v25  ;;  %v31800_v16 = vld [vmem:[%s39439_s1 + $0x2e30] sm:$0xff]  ;;  %v31815_v22 = vld [vmem:[%s39439_s1 + $0x2ea8] sm:$0xff] }
 0x5a3   :  { %20505 = vmatpush.bf16.msrb.mxu1 %v31777_v17  ;;  %20474 = vmatmul.bf16.vlgmr.msra.gmra.mxu2 %v950_v23  ;;  %v31808_v17 = vld [vmem:[%s39439_s1 + $0x2e70] sm:$0xff]  ;;  %v31823_v23 = vld [vmem:[%s39439_s1 + $0x2ee8] sm:$0xff] }
 0x5a4   :  { %20518 = vmatpush.bf16.msrb.mxu2 %v31785_v19  ;;  %20487 = vmatmul.bf16.vlgmr.msra.gmra.mxu3 %v951_v26  ;;  %v31824_v19 = vld [vmem:[%s39439_s1 + $0x2ef0] sm:$0xff]  ;;  %v31798_v26 = vld [vmem:[%s39439_s1 + $0x2e20] sm:$0xff] }
 0x5a5   :  { %20531 = vmatpush.bf16.msrb.mxu3 %v31793_v24 }
 0x5a6   :  { %20493 = vmatpush.bf16.msrb.mxu0 %v31768_v27  ;;  %v20267_v46 = vpop.f32.mrf.mxu2  ;;  %v20243_v50 = vpop.f32.mrf.mxu0 }
 0x5a7   :  { %20506 = vmatpush.bf16.msrb.mxu1 %v31776_v28  ;;  %v20268_v47 = vadd.f32 %v20267_v46, %v20255_v41  ;;  %v20280_v49 = vpop.f32.mrf.mxu3  ;;  %v20256_v53 = vpop.f32.mrf.mxu1  ;;  %v31806_v28 = vld [vmem:[%s39439_s1 + $0x2e60] sm:$0xff]  ;;  %v31796_v41 = vld [vmem:[%s39439_s1 + $0x2e10] sm:$0xff]  ;;  %v31795_v46 = vld [vmem:[%s39439_s1 + $0x2e08] sm:$0xff] }
 0x5a8   :  { %20519 = vmatpush.bf16.msrb.mxu2 %v31784_v29  ;;  %v31814_v29 = vld [vmem:[%s39439_s1 + $0x2ea0] sm:$0xff] }
 0x5a9   :  { %20532 = vmatpush.bf16.msrb.mxu3 %v31792_v30  ;;  %v37179_v51 = vadd.f32 %v20280_v49, %v20268_v47  ;;  %v81_v47 = vld [vmem:[%s39438_s0 + $0x178] sm:$0xff]  ;;  %v31811_v49 = vld [vmem:[%s39439_s1 + $0x2e88] sm:$0xff]  ;;  %v31794_v53 = vld [vmem:[%s39439_s1 + $0x2e00] sm:$0xff] }
 0x5aa   :  { %20494 = vmatpush.bf16.msrb.mxu0 %v31767_v31  ;;  %v31822_v31 = vld [vmem:[%s39439_s1 + $0x2ee0] sm:$0xff]  ;;  %400 = vst [vmem:[#allocation1 + $0x20] ss:$4 sm:$0xff] %v81_v47  ;;  %v31865_v47 = vld [vmem:[%s39439_s1 + $0x3038] sm:$0xff] }
 0x5ab   :  { %20507 = vmatpush.bf16.msrb.mxu1 %v31775_v32  ;;  %v31797_v32 = vld [vmem:[%s39439_s1 + $0x2e18] sm:$0xff] }
 0x5ac   :  { %20520 = vmatpush.bf16.msrb.mxu2 %v31783_v33  ;;  %v31805_v33 = vld [vmem:[%s39439_s1 + $0x2e58] sm:$0xff] }
 0x5ad   :  { %20533 = vmatpush.bf16.msrb.mxu3 %v31791_v34  ;;  %v31813_v34 = vld [vmem:[%s39439_s1 + $0x2e98] sm:$0xff] }
 0x5ae   :  { %20495 = vmatpush.bf16.msrb.mxu0 %v31766_v37  ;;  %v20269_v61 = vpop.f32.mrf.mxu2  ;;  %v31821_v37 = vld [vmem:[%s39439_s1 + $0x2ed8] sm:$0xff] }
 0x5af   :  { %20508 = vmatpush.bf16.msrb.mxu1 %v31774_v39  ;;  %v20282_v63 = vpop.f32.mrf.mxu3  ;;  %v31849_v61 = vld [vmem:[%s39439_s1 + $0x2fb8] sm:$0xff] }
 0x5b0   :  { %20521 = vmatpush.bf16.msrb.mxu2 %v31782_v40  ;;  %v404_v63 = vld.sshfl [vmem:[#allocation1 + $0x18] sm:$0xff pattern:$0x73625140] }
 0x5b1   :  { %20534 = vmatpush.bf16.msrb.mxu3 %v31790_v42  ;;  %v959_v4 = vpack.c.bf16 %v404_v63, %v404_v63  ;;  %v31871_v63 = vld [vmem:[%s39439_s1 + $0x3068] sm:$0xff] }
 0x5b2   :  { %20496 = vmatpush.bf16.msrb.mxu0 %v31765_v43  ;;  %v31804_v43 = vld [vmem:[%s39439_s1 + $0x2e50] sm:$0xff] }
 0x5b3   :  { %20509 = vmatpush.bf16.msrb.mxu1 %v31773_v44  ;;  %v31812_v44 = vld [vmem:[%s39439_s1 + $0x2e90] sm:$0xff] }
 0x5b4   :  { %20522 = vmatpush.bf16.msrb.mxu2 %v31781_v45  ;;  %v31820_v45 = vld [vmem:[%s39439_s1 + $0x2ed0] sm:$0xff] }
 0x5b5   :  { %20535 = vmatpush.bf16.msrb.mxu3 %v31789_v48  ;;  %v31803_v48 = vld [vmem:[%s39439_s1 + $0x2e48] sm:$0xff] }
 0x5b6   :  { %20497 = vmatpush.bf16.msrb.mxu0 %v31764_v52 }
 0x5b7   :  { %20510 = vmatpush.bf16.msrb.mxu1 %v31772_v54  ;;  %v31802_v54 = vld [vmem:[%s39439_s1 + $0x2e40] sm:$0xff] }
 0x5b8   :  { %20523 = vmatpush.bf16.msrb.mxu2 %v31780_v55  ;;  %v31810_v55 = vld [vmem:[%s39439_s1 + $0x2e80] sm:$0xff] }
 0x5b9   :  { %20536 = vmatpush.bf16.msrb.mxu3 %v31788_v56  ;;  %v401_v56 = vld.sshfl [vmem:[#allocation1] sm:$0xff pattern:$0x73625140] }
 0x5ba   :  { %20498 = vmatpush.bf16.msrb.mxu0 %v31763_v57  ;;  %v403_v57 = vld.sshfl [vmem:[#allocation1 + $0x10] sm:$0xff pattern:$0x73625140] }
 0x5bb   :  { %20511 = vmatpush.bf16.msrb.mxu1 %v31771_v59  ;;  %v31841_v59 = vld [vmem:[%s39439_s1 + $0x2f78] sm:$0xff] }
 0x5bc   :  { %20524 = vmatpush.bf16.msrb.mxu2 %v31779_v60  ;;  %v402_v60 = vld.sshfl [vmem:[#allocation1 + $0x8] sm:$0xff pattern:$0x73625140] }
 0x5bd   :  { %20537 = vmatpush.bf16.msrb.mxu3 %v31787_v62  ;;  %v31818_v62 = vld [vmem:[%s39439_s1 + $0x2ec0] sm:$0xff]  ;;  %v957_v3 = vpack.c.bf16 %v402_v60, %v402_v60  ;;  %v31880_v60 = vld [vmem:[%s39439_s1 + $0x30b0] sm:$0xff] }
 0x5be   :  { %20499 = vmatpush.bf16.msrb.mxu0 %v31762_v0  ;;  %v20293_v24 = vpop.f32.mrf.mxu0  ;;  %v956_v0 = vpack.c.bf16 %v401_v56, %v401_v56 }
 0x5bf   :  { %20512 = vmatpush.bf16.msrb.mxu1 %v31770_v1  ;;  %v20294_v25 = vadd.f32 %v20293_v24, %v37179_v51  ;;  %v20306_v27 = vpop.f32.mrf.mxu1  ;;  %v31819_v51 = vld [vmem:[%s39439_s1 + $0x2ec8] sm:$0xff]  ;;  %v958_v1 = vpack.c.bf16 %v403_v57, %v403_v57 }
 0x5c0   :  { %20525 = vmatpush.bf16.msrb.mxu2 %v31778_v2  ;;  %v31857_v2 = vld [vmem:[%s39439_s1 + $0x2ff8] sm:$0xff] }
 0x5c1   :  { %20538 = vmatpush.bf16.msrb.mxu3 %v31786_v9  ;;  %20500 = vmatmul.bf16.vlgmr.msrb.gmra.mxu0 %v952_v11  ;;  %v20307_v30 = vadd.f32 %v20306_v27, %v20294_v25  ;;  %v31831_v9 = vld [vmem:[%s39439_s1 + $0x2f28] sm:$0xff] }
 0x5c2   :  { %20544 = vmatpush.bf16.msra.mxu0 %v31801_v5  ;;  %20513 = vmatmul.bf16.vlgmr.msrb.gmra.mxu1 %v953_v14  ;;  %v31832_v5 = vld [vmem:[%s39439_s1 + $0x2f30] sm:$0xff]  ;;  %v31847_v11 = vld [vmem:[%s39439_s1 + $0x2fa8] sm:$0xff] }
 0x5c3   :  { %20557 = vmatpush.bf16.msra.mxu1 %v31809_v6  ;;  %20526 = vmatmul.bf16.vlgmr.msrb.gmra.mxu2 %v954_v12  ;;  %v31840_v6 = vld [vmem:[%s39439_s1 + $0x2f70] sm:$0xff]  ;;  %v31855_v12 = vld [vmem:[%s39439_s1 + $0x2fe8] sm:$0xff] }
 0x5c4   :  { %20570 = vmatpush.bf16.msra.mxu2 %v31817_v8  ;;  %20539 = vmatmul.bf16.vlgmr.msrb.gmra.mxu3 %v955_v15  ;;  %v31856_v8 = vld [vmem:[%s39439_s1 + $0x2ff0] sm:$0xff]  ;;  %v31830_v15 = vld [vmem:[%s39439_s1 + $0x2f20] sm:$0xff] }
 0x5c5   :  { %20583 = vmatpush.bf16.msra.mxu3 %v31825_v13 }
 0x5c6   :  { %20545 = vmatpush.bf16.msra.mxu0 %v31800_v16  ;;  %v20319_v35 = vpop.f32.mrf.mxu2  ;;  %v20295_v39 = vpop.f32.mrf.mxu0 }
 0x5c7   :  { %20558 = vmatpush.bf16.msra.mxu1 %v31808_v17  ;;  %v20320_v36 = vadd.f32 %v20319_v35, %v20307_v30  ;;  %v20332_v38 = vpop.f32.mrf.mxu3  ;;  %v20308_v42 = vpop.f32.mrf.mxu1  ;;  %v31838_v17 = vld [vmem:[%s39439_s1 + $0x2f60] sm:$0xff]  ;;  %v31828_v30 = vld [vmem:[%s39439_s1 + $0x2f10] sm:$0xff]  ;;  %v31827_v35 = vld [vmem:[%s39439_s1 + $0x2f08] sm:$0xff] }
 0x5c8   :  { %20571 = vmatpush.bf16.msra.mxu2 %v31816_v18  ;;  %v31846_v18 = vld [vmem:[%s39439_s1 + $0x2fa0] sm:$0xff] }
 0x5c9   :  { %20584 = vmatpush.bf16.msra.mxu3 %v31824_v19  ;;  %v37281_v40 = vadd.f32 %v20332_v38, %v20320_v36  ;;  %v82_v36 = vld [vmem:[%s39438_s0 + $0x180] sm:$0xff]  ;;  %v31843_v38 = vld [vmem:[%s39439_s1 + $0x2f88] sm:$0xff] }
 0x5ca   :  { %20546 = vmatpush.bf16.msra.mxu0 %v31799_v20  ;;  %v31854_v20 = vld [vmem:[%s39439_s1 + $0x2fe0] sm:$0xff]  ;;  %409 = vst [vmem:[#allocation1] ss:$4 sm:$0xff] %v82_v36  ;;  %v31897_v36 = vld [vmem:[%s39439_s1 + $0x3138] sm:$0xff] }
 0x5cb   :  { %20559 = vmatpush.bf16.msra.mxu1 %v31807_v21  ;;  %v31829_v21 = vld [vmem:[%s39439_s1 + $0x2f18] sm:$0xff]  ;;  %v31826_v42 = vld [vmem:[%s39439_s1 + $0x2f00] sm:$0xff] }
 0x5cc   :  { %20572 = vmatpush.bf16.msra.mxu2 %v31815_v22  ;;  %v31837_v22 = vld [vmem:[%s39439_s1 + $0x2f58] sm:$0xff] }
 0x5cd   :  { %20585 = vmatpush.bf16.msra.mxu3 %v31823_v23  ;;  %v31845_v23 = vld [vmem:[%s39439_s1 + $0x2f98] sm:$0xff] }
 0x5ce   :  { %20547 = vmatpush.bf16.msra.mxu0 %v31798_v26  ;;  %v20321_v50 = vpop.f32.mrf.mxu2  ;;  %v31853_v26 = vld [vmem:[%s39439_s1 + $0x2fd8] sm:$0xff] }
 0x5cf   :  { %20560 = vmatpush.bf16.msra.mxu1 %v31806_v28  ;;  %v20334_v52 = vpop.f32.mrf.mxu3  ;;  %v31881_v50 = vld [vmem:[%s39439_s1 + $0x30b8] sm:$0xff] }
 0x5d0   :  { %20573 = vmatpush.bf16.msra.mxu2 %v31814_v29  ;;  %v408_v52 = vld.sshfl [vmem:[#allocation1 + $0x38] sm:$0xff pattern:$0x73625140] }
 0x5d1   :  { %20586 = vmatpush.bf16.msra.mxu3 %v31822_v31  ;;  %v963_v57 = vpack.c.bf16 %v408_v52, %v408_v52  ;;  %v31903_v52 = vld [vmem:[%s39439_s1 + $0x3168] sm:$0xff] }
 0x5d2   :  { %20548 = vmatpush.bf16.msra.mxu0 %v31797_v32  ;;  %v31836_v32 = vld [vmem:[%s39439_s1 + $0x2f50] sm:$0xff] }
 0x5d3   :  { %20561 = vmatpush.bf16.msra.mxu1 %v31805_v33  ;;  %v31844_v33 = vld [vmem:[%s39439_s1 + $0x2f90] sm:$0xff] }
 0x5d4   :  { %20574 = vmatpush.bf16.msra.mxu2 %v31813_v34  ;;  %v31852_v34 = vld [vmem:[%s39439_s1 + $0x2fd0] sm:$0xff] }
 0x5d5   :  { %20587 = vmatpush.bf16.msra.mxu3 %v31821_v37  ;;  %v31835_v37 = vld [vmem:[%s39439_s1 + $0x2f48] sm:$0xff] }
 0x5d6   :  { %20549 = vmatpush.bf16.msra.mxu0 %v31796_v41 }
 0x5d7   :  { %20562 = vmatpush.bf16.msra.mxu1 %v31804_v43  ;;  %v31834_v43 = vld [vmem:[%s39439_s1 + $0x2f40] sm:$0xff] }
 0x5d8   :  { %20575 = vmatpush.bf16.msra.mxu2 %v31812_v44  ;;  %v31842_v44 = vld [vmem:[%s39439_s1 + $0x2f80] sm:$0xff] }
 0x5d9   :  { %20588 = vmatpush.bf16.msra.mxu3 %v31820_v45  ;;  %v405_v45 = vld.sshfl [vmem:[#allocation1 + $0x20] sm:$0xff pattern:$0x73625140] }
 0x5da   :  { %20550 = vmatpush.bf16.msra.mxu0 %v31795_v46  ;;  %v407_v46 = vld.sshfl [vmem:[#allocation1 + $0x30] sm:$0xff pattern:$0x73625140] }
 0x5db   :  { %20563 = vmatpush.bf16.msra.mxu1 %v31803_v48  ;;  %v31873_v48 = vld [vmem:[%s39439_s1 + $0x3078] sm:$0xff] }
 0x5dc   :  { %20576 = vmatpush.bf16.msra.mxu2 %v31811_v49  ;;  %v406_v49 = vld.sshfl [vmem:[#allocation1 + $0x28] sm:$0xff pattern:$0x73625140] }
 0x5dd   :  { %20589 = vmatpush.bf16.msra.mxu3 %v31819_v51  ;;  %v31850_v51 = vld [vmem:[%s39439_s1 + $0x2fc0] sm:$0xff]  ;;  %v961_v56 = vpack.c.bf16 %v406_v49, %v406_v49  ;;  %v31912_v49 = vld [vmem:[%s39439_s1 + $0x31b0] sm:$0xff] }
 0x5de   :  { %20551 = vmatpush.bf16.msra.mxu0 %v31794_v53  ;;  %v20345_v13 = vpop.f32.mrf.mxu0  ;;  %v960_v53 = vpack.c.bf16 %v405_v45, %v405_v45 }
 0x5df   :  { %20564 = vmatpush.bf16.msra.mxu1 %v31802_v54  ;;  %v20346_v14 = vadd.f32 %v20345_v13, %v37281_v40  ;;  %v20358_v16 = vpop.f32.mrf.mxu1  ;;  %v31851_v40 = vld [vmem:[%s39439_s1 + $0x2fc8] sm:$0xff]  ;;  %v962_v54 = vpack.c.bf16 %v407_v46, %v407_v46 }
 0x5e0   :  { %20577 = vmatpush.bf16.msra.mxu2 %v31810_v55  ;;  %v31889_v55 = vld [vmem:[%s39439_s1 + $0x30f8] sm:$0xff] }
 0x5e1   :  { %20590 = vmatpush.bf16.msra.mxu3 %v31818_v62  ;;  %20552 = vmatmul.bf16.vlgmr.msra.gmra.mxu0 %v956_v0  ;;  %v20359_v19 = vadd.f32 %v20358_v16, %v20346_v14  ;;  %v31863_v62 = vld [vmem:[%s39439_s1 + $0x3028] sm:$0xff] }
 0x5e2   :  { %20596 = vmatpush.bf16.msrb.mxu0 %v31833_v58  ;;  %20565 = vmatmul.bf16.vlgmr.msra.gmra.mxu1 %v957_v3  ;;  %v31864_v58 = vld [vmem:[%s39439_s1 + $0x3030] sm:$0xff]  ;;  %v31879_v0 = vld [vmem:[%s39439_s1 + $0x30a8] sm:$0xff] }
 0x5e3   :  { %20609 = vmatpush.bf16.msrb.mxu1 %v31841_v59  ;;  %20578 = vmatmul.bf16.vlgmr.msra.gmra.mxu2 %v958_v1  ;;  %v31872_v59 = vld [vmem:[%s39439_s1 + $0x3070] sm:$0xff]  ;;  %v31887_v1 = vld [vmem:[%s39439_s1 + $0x30e8] sm:$0xff] }
 0x5e4   :  { %20622 = vmatpush.bf16.msrb.mxu2 %v31849_v61  ;;  %20591 = vmatmul.bf16.vlgmr.msra.gmra.mxu3 %v959_v4  ;;  %v31888_v61 = vld [vmem:[%s39439_s1 + $0x30f0] sm:$0xff]  ;;  %v31862_v4 = vld [vmem:[%s39439_s1 + $0x3020] sm:$0xff] }
 0x5e5   :  { %20635 = vmatpush.bf16.msrb.mxu3 %v31857_v2 }
 0x5e6   :  { %20597 = vmatpush.bf16.msrb.mxu0 %v31832_v5  ;;  %v20371_v24 = vpop.f32.mrf.mxu2  ;;  %v20347_v28 = vpop.f32.mrf.mxu0 }
 0x5e7   :  { %20610 = vmatpush.bf16.msrb.mxu1 %v31840_v6  ;;  %v20372_v25 = vadd.f32 %v20371_v24, %v20359_v19  ;;  %v20384_v27 = vpop.f32.mrf.mxu3  ;;  %v20360_v31 = vpop.f32.mrf.mxu1  ;;  %v31870_v6 = vld [vmem:[%s39439_s1 + $0x3060] sm:$0xff]  ;;  %v31860_v19 = vld [vmem:[%s39439_s1 + $0x3010] sm:$0xff]  ;;  %v31859_v24 = vld [vmem:[%s39439_s1 + $0x3008] sm:$0xff] }
 0x5e8   :  { %20623 = vmatpush.bf16.msrb.mxu2 %v31848_v7  ;;  %v31878_v7 = vld [vmem:[%s39439_s1 + $0x30a0] sm:$0xff] }
 0x5e9   :  { %20636 = vmatpush.bf16.msrb.mxu3 %v31856_v8  ;;  %v37383_v29 = vadd.f32 %v20384_v27, %v20372_v25  ;;  %v83_v25 = vld [vmem:[%s39438_s0 + $0x188] sm:$0xff]  ;;  %v31858_v31 = vld [vmem:[%s39439_s1 + $0x3000] sm:$0xff] }
 0x5ea   :  { %20598 = vmatpush.bf16.msrb.mxu0 %v31831_v9  ;;  %v31886_v9 = vld [vmem:[%s39439_s1 + $0x30e0] sm:$0xff]  ;;  %v31875_v27 = vld [vmem:[%s39439_s1 + $0x3088] sm:$0xff]  ;;  %410 = vst [vmem:[#allocation1 + $0x20] ss:$4 sm:$0xff] %v83_v25  ;;  %v31929_v25 = vld [vmem:[%s39439_s1 + $0x3238] sm:$0xff] }
 0x5eb   :  { %20611 = vmatpush.bf16.msrb.mxu1 %v31839_v10  ;;  %v31861_v10 = vld [vmem:[%s39439_s1 + $0x3018] sm:$0xff] }
 0x5ec   :  { %20624 = vmatpush.bf16.msrb.mxu2 %v31847_v11  ;;  %v31869_v11 = vld [vmem:[%s39439_s1 + $0x3058] sm:$0xff] }
 0x5ed   :  { %20637 = vmatpush.bf16.msrb.mxu3 %v31855_v12  ;;  %v31877_v12 = vld [vmem:[%s39439_s1 + $0x3098] sm:$0xff] }
 0x5ee   :  { %20599 = vmatpush.bf16.msrb.mxu0 %v31830_v15  ;;  %v20373_v39 = vpop.f32.mrf.mxu2  ;;  %v31885_v15 = vld [vmem:[%s39439_s1 + $0x30d8] sm:$0xff] }
 0x5ef   :  { %20612 = vmatpush.bf16.msrb.mxu1 %v31838_v17  ;;  %v20386_v41 = vpop.f32.mrf.mxu3  ;;  %v31913_v39 = vld [vmem:[%s39439_s1 + $0x31b8] sm:$0xff] }
 0x5f0   :  { %20625 = vmatpush.bf16.msrb.mxu2 %v31846_v18  ;;  %v414_v41 = vld.sshfl [vmem:[#allocation1 + $0x18] sm:$0xff pattern:$0x73625140] }
 0x5f1   :  { %20638 = vmatpush.bf16.msrb.mxu3 %v31854_v20  ;;  %v967_v46 = vpack.c.bf16 %v414_v41, %v414_v41  ;;  %v31935_v41 = vld [vmem:[%s39439_s1 + $0x3268] sm:$0xff] }
 0x5f2   :  { %20600 = vmatpush.bf16.msrb.mxu0 %v31829_v21  ;;  %v31868_v21 = vld [vmem:[%s39439_s1 + $0x3050] sm:$0xff] }
 0x5f3   :  { %20613 = vmatpush.bf16.msrb.mxu1 %v31837_v22  ;;  %v31876_v22 = vld [vmem:[%s39439_s1 + $0x3090] sm:$0xff] }
 0x5f4   :  { %20626 = vmatpush.bf16.msrb.mxu2 %v31845_v23  ;;  %v31884_v23 = vld [vmem:[%s39439_s1 + $0x30d0] sm:$0xff] }
 0x5f5   :  { %20639 = vmatpush.bf16.msrb.mxu3 %v31853_v26  ;;  %v31867_v26 = vld [vmem:[%s39439_s1 + $0x3048] sm:$0xff] }
 0x5f6   :  { %20601 = vmatpush.bf16.msrb.mxu0 %v31828_v30 }
 0x5f7   :  { %20614 = vmatpush.bf16.msrb.mxu1 %v31836_v32  ;;  %v31866_v32 = vld [vmem:[%s39439_s1 + $0x3040] sm:$0xff] }
 0x5f8   :  { %20627 = vmatpush.bf16.msrb.mxu2 %v31844_v33  ;;  %v31874_v33 = vld [vmem:[%s39439_s1 + $0x3080] sm:$0xff] }
 0x5f9   :  { %20640 = vmatpush.bf16.msrb.mxu3 %v31852_v34  ;;  %v411_v34 = vld.sshfl [vmem:[#allocation1] sm:$0xff pattern:$0x73625140] }
 0x5fa   :  { %20602 = vmatpush.bf16.msrb.mxu0 %v31827_v35  ;;  %v413_v35 = vld.sshfl [vmem:[#allocation1 + $0x10] sm:$0xff pattern:$0x73625140] }
 0x5fb   :  { %20615 = vmatpush.bf16.msrb.mxu1 %v31835_v37  ;;  %v31905_v37 = vld [vmem:[%s39439_s1 + $0x3178] sm:$0xff] }
 0x5fc   :  { %20628 = vmatpush.bf16.msrb.mxu2 %v31843_v38  ;;  %v412_v38 = vld.sshfl [vmem:[#allocation1 + $0x8] sm:$0xff pattern:$0x73625140] }
 0x5fd   :  { %20641 = vmatpush.bf16.msrb.mxu3 %v31851_v40  ;;  %v31882_v40 = vld [vmem:[%s39439_s1 + $0x30c0] sm:$0xff]  ;;  %v965_v45 = vpack.c.bf16 %v412_v38, %v412_v38  ;;  %v31944_v38 = vld [vmem:[%s39439_s1 + $0x32b0] sm:$0xff] }
 0x5fe   :  { %20603 = vmatpush.bf16.msrb.mxu0 %v31826_v42  ;;  %v20397_v2 = vpop.f32.mrf.mxu0  ;;  %v964_v42 = vpack.c.bf16 %v411_v34, %v411_v34 }
 0x5ff   :  { %20616 = vmatpush.bf16.msrb.mxu1 %v31834_v43  ;;  %v20398_v3 = vadd.f32 %v20397_v2, %v37383_v29  ;;  %v20410_v5 = vpop.f32.mrf.mxu1  ;;  %v31883_v29 = vld [vmem:[%s39439_s1 + $0x30c8] sm:$0xff]  ;;  %v966_v43 = vpack.c.bf16 %v413_v35, %v413_v35 }
 0x600   :  { %20629 = vmatpush.bf16.msrb.mxu2 %v31842_v44  ;;  %v31921_v44 = vld [vmem:[%s39439_s1 + $0x31f8] sm:$0xff] }
 0x601   :  { %20642 = vmatpush.bf16.msrb.mxu3 %v31850_v51  ;;  %20604 = vmatmul.bf16.vlgmr.msrb.gmra.mxu0 %v960_v53  ;;  %v20411_v8 = vadd.f32 %v20410_v5, %v20398_v3  ;;  %v31895_v51 = vld [vmem:[%s39439_s1 + $0x3128] sm:$0xff] }
 0x602   :  { %20648 = vmatpush.bf16.msra.mxu0 %v31865_v47  ;;  %20617 = vmatmul.bf16.vlgmr.msrb.gmra.mxu1 %v961_v56  ;;  %v31896_v47 = vld [vmem:[%s39439_s1 + $0x3130] sm:$0xff]  ;;  %v31911_v53 = vld [vmem:[%s39439_s1 + $0x31a8] sm:$0xff] }
 0x603   :  { %20661 = vmatpush.bf16.msra.mxu1 %v31873_v48  ;;  %20630 = vmatmul.bf16.vlgmr.msrb.gmra.mxu2 %v962_v54  ;;  %v31904_v48 = vld [vmem:[%s39439_s1 + $0x3170] sm:$0xff]  ;;  %v31919_v54 = vld [vmem:[%s39439_s1 + $0x31e8] sm:$0xff] }
 0x604   :  { %20674 = vmatpush.bf16.msra.mxu2 %v31881_v50  ;;  %20643 = vmatmul.bf16.vlgmr.msrb.gmra.mxu3 %v963_v57  ;;  %v31920_v50 = vld [vmem:[%s39439_s1 + $0x31f0] sm:$0xff]  ;;  %v31894_v57 = vld [vmem:[%s39439_s1 + $0x3120] sm:$0xff] }
 0x605   :  { %20687 = vmatpush.bf16.msra.mxu3 %v31889_v55 }
 0x606   :  { %20649 = vmatpush.bf16.msra.mxu0 %v31864_v58  ;;  %v20423_v13 = vpop.f32.mrf.mxu2  ;;  %v20399_v17 = vpop.f32.mrf.mxu0 }
 0x607   :  { %20662 = vmatpush.bf16.msra.mxu1 %v31872_v59  ;;  %v20424_v14 = vadd.f32 %v20423_v13, %v20411_v8  ;;  %v20436_v16 = vpop.f32.mrf.mxu3  ;;  %v20412_v20 = vpop.f32.mrf.mxu1  ;;  %v31902_v59 = vld [vmem:[%s39439_s1 + $0x3160] sm:$0xff]  ;;  %v31892_v8 = vld [vmem:[%s39439_s1 + $0x3110] sm:$0xff]  ;;  %v31891_v13 = vld [vmem:[%s39439_s1 + $0x3108] sm:$0xff] }
 0x608   :  { %20675 = vmatpush.bf16.msra.mxu2 %v31880_v60  ;;  %v31910_v60 = vld [vmem:[%s39439_s1 + $0x31a0] sm:$0xff] }
 0x609   :  { %20688 = vmatpush.bf16.msra.mxu3 %v31888_v61  ;;  %v37485_v18 = vadd.f32 %v20436_v16, %v20424_v14  ;;  %v84_v14 = vld [vmem:[%s39438_s0 + $0x190] sm:$0xff]  ;;  %v31907_v16 = vld [vmem:[%s39439_s1 + $0x3188] sm:$0xff]  ;;  %v31890_v20 = vld [vmem:[%s39439_s1 + $0x3100] sm:$0xff] }
 0x60a   :  { %20650 = vmatpush.bf16.msra.mxu0 %v31863_v62  ;;  %v31918_v62 = vld [vmem:[%s39439_s1 + $0x31e0] sm:$0xff]  ;;  %419 = vst [vmem:[#allocation1] ss:$4 sm:$0xff] %v84_v14  ;;  %v31961_v14 = vld [vmem:[%s39439_s1 + $0x3338] sm:$0xff] }
 0x60b   :  { %20663 = vmatpush.bf16.msra.mxu1 %v31871_v63  ;;  %v31893_v63 = vld [vmem:[%s39439_s1 + $0x3118] sm:$0xff] }
 0x60c   :  { %20676 = vmatpush.bf16.msra.mxu2 %v31879_v0  ;;  %v31901_v0 = vld [vmem:[%s39439_s1 + $0x3158] sm:$0xff] }
 0x60d   :  { %20689 = vmatpush.bf16.msra.mxu3 %v31887_v1  ;;  %v31909_v1 = vld [vmem:[%s39439_s1 + $0x3198] sm:$0xff] }
 0x60e   :  { %20651 = vmatpush.bf16.msra.mxu0 %v31862_v4  ;;  %v20425_v28 = vpop.f32.mrf.mxu2  ;;  %v31917_v4 = vld [vmem:[%s39439_s1 + $0x31d8] sm:$0xff] }
 0x60f   :  { %20664 = vmatpush.bf16.msra.mxu1 %v31870_v6  ;;  %v20438_v30 = vpop.f32.mrf.mxu3  ;;  %v31945_v28 = vld [vmem:[%s39439_s1 + $0x32b8] sm:$0xff] }
 0x610   :  { %20677 = vmatpush.bf16.msra.mxu2 %v31878_v7  ;;  %v418_v30 = vld.sshfl [vmem:[#allocation1 + $0x38] sm:$0xff pattern:$0x73625140] }
 0x611   :  { %20690 = vmatpush.bf16.msra.mxu3 %v31886_v9  ;;  %v971_v35 = vpack.c.bf16 %v418_v30, %v418_v30  ;;  %v31967_v30 = vld [vmem:[%s39439_s1 + $0x3368] sm:$0xff] }
 0x612   :  { %20652 = vmatpush.bf16.msra.mxu0 %v31861_v10  ;;  %v31900_v10 = vld [vmem:[%s39439_s1 + $0x3150] sm:$0xff] }
 0x613   :  { %20665 = vmatpush.bf16.msra.mxu1 %v31869_v11  ;;  %v31908_v11 = vld [vmem:[%s39439_s1 + $0x3190] sm:$0xff] }
 0x614   :  { %20678 = vmatpush.bf16.msra.mxu2 %v31877_v12  ;;  %v31916_v12 = vld [vmem:[%s39439_s1 + $0x31d0] sm:$0xff] }
 0x615   :  { %20691 = vmatpush.bf16.msra.mxu3 %v31885_v15  ;;  %v31899_v15 = vld [vmem:[%s39439_s1 + $0x3148] sm:$0xff] }
 0x616   :  { %20653 = vmatpush.bf16.msra.mxu0 %v31860_v19 }
 0x617   :  { %20666 = vmatpush.bf16.msra.mxu1 %v31868_v21  ;;  %v31898_v21 = vld [vmem:[%s39439_s1 + $0x3140] sm:$0xff] }
 0x618   :  { %20679 = vmatpush.bf16.msra.mxu2 %v31876_v22  ;;  %v31906_v22 = vld [vmem:[%s39439_s1 + $0x3180] sm:$0xff] }
 0x619   :  { %20692 = vmatpush.bf16.msra.mxu3 %v31884_v23  ;;  %v415_v23 = vld.sshfl [vmem:[#allocation1 + $0x20] sm:$0xff pattern:$0x73625140] }
 0x61a   :  { %20654 = vmatpush.bf16.msra.mxu0 %v31859_v24  ;;  %v417_v24 = vld.sshfl [vmem:[#allocation1 + $0x30] sm:$0xff pattern:$0x73625140] }
 0x61b   :  { %20667 = vmatpush.bf16.msra.mxu1 %v31867_v26  ;;  %v31937_v26 = vld [vmem:[%s39439_s1 + $0x3278] sm:$0xff] }
 0x61c   :  { %20680 = vmatpush.bf16.msra.mxu2 %v31875_v27  ;;  %v416_v27 = vld.sshfl [vmem:[#allocation1 + $0x28] sm:$0xff pattern:$0x73625140] }
 0x61d   :  { %20693 = vmatpush.bf16.msra.mxu3 %v31883_v29  ;;  %v31914_v29 = vld [vmem:[%s39439_s1 + $0x31c0] sm:$0xff]  ;;  %v969_v34 = vpack.c.bf16 %v416_v27, %v416_v27  ;;  %v31976_v27 = vld [vmem:[%s39439_s1 + $0x33b0] sm:$0xff] }
 0x61e   :  { %20655 = vmatpush.bf16.msra.mxu0 %v31858_v31  ;;  %v20449_v55 = vpop.f32.mrf.mxu0  ;;  %v968_v31 = vpack.c.bf16 %v415_v23, %v415_v23 }
 0x61f   :  { %20668 = vmatpush.bf16.msra.mxu1 %v31866_v32  ;;  %v20450_v56 = vadd.f32 %v20449_v55, %v37485_v18  ;;  %v20462_v58 = vpop.f32.mrf.mxu1  ;;  %v31915_v18 = vld [vmem:[%s39439_s1 + $0x31c8] sm:$0xff]  ;;  %v970_v32 = vpack.c.bf16 %v417_v24, %v417_v24 }
 0x620   :  { %20681 = vmatpush.bf16.msra.mxu2 %v31874_v33  ;;  %v31953_v33 = vld [vmem:[%s39439_s1 + $0x32f8] sm:$0xff] }
 0x621   :  { %20694 = vmatpush.bf16.msra.mxu3 %v31882_v40  ;;  %20656 = vmatmul.bf16.vlgmr.msra.gmra.mxu0 %v964_v42  ;;  %v20463_v61 = vadd.f32 %v20462_v58, %v20450_v56  ;;  %v31927_v40 = vld [vmem:[%s39439_s1 + $0x3228] sm:$0xff] }
 0x622   :  { %20700 = vmatpush.bf16.msrb.mxu0 %v31897_v36  ;;  %20669 = vmatmul.bf16.vlgmr.msra.gmra.mxu1 %v965_v45  ;;  %v31928_v36 = vld [vmem:[%s39439_s1 + $0x3230] sm:$0xff]  ;;  %v31943_v42 = vld [vmem:[%s39439_s1 + $0x32a8] sm:$0xff] }
 0x623   :  { %20713 = vmatpush.bf16.msrb.mxu1 %v31905_v37  ;;  %20682 = vmatmul.bf16.vlgmr.msra.gmra.mxu2 %v966_v43  ;;  %v31936_v37 = vld [vmem:[%s39439_s1 + $0x3270] sm:$0xff]  ;;  %v31951_v43 = vld [vmem:[%s39439_s1 + $0x32e8] sm:$0xff] }
 0x624   :  { %20726 = vmatpush.bf16.msrb.mxu2 %v31913_v39  ;;  %20695 = vmatmul.bf16.vlgmr.msra.gmra.mxu3 %v967_v46  ;;  %v31952_v39 = vld [vmem:[%s39439_s1 + $0x32f0] sm:$0xff]  ;;  %v31926_v46 = vld [vmem:[%s39439_s1 + $0x3220] sm:$0xff] }
 0x625   :  { %20739 = vmatpush.bf16.msrb.mxu3 %v31921_v44 }
 0x626   :  { %20701 = vmatpush.bf16.msrb.mxu0 %v31896_v47  ;;  %v20475_v2 = vpop.f32.mrf.mxu2  ;;  %v20451_v6 = vpop.f32.mrf.mxu0 }
 0x627   :  { %20714 = vmatpush.bf16.msrb.mxu1 %v31904_v48  ;;  %v20476_v3 = vadd.f32 %v20475_v2, %v20463_v61  ;;  %v20488_v5 = vpop.f32.mrf.mxu3  ;;  %v20464_v9 = vpop.f32.mrf.mxu1  ;;  %v31934_v48 = vld [vmem:[%s39439_s1 + $0x3260] sm:$0xff]  ;;  %v31924_v61 = vld [vmem:[%s39439_s1 + $0x3210] sm:$0xff]  ;;  %v31923_v2 = vld [vmem:[%s39439_s1 + $0x3208] sm:$0xff] }
 0x628   :  { %20727 = vmatpush.bf16.msrb.mxu2 %v31912_v49  ;;  %v31942_v49 = vld [vmem:[%s39439_s1 + $0x32a0] sm:$0xff] }
 0x629   :  { %20740 = vmatpush.bf16.msrb.mxu3 %v31920_v50  ;;  %v37587_v7 = vadd.f32 %v20488_v5, %v20476_v3  ;;  %v85_v3 = vld [vmem:[%s39438_s0 + $0x198] sm:$0xff]  ;;  %v31939_v5 = vld [vmem:[%s39439_s1 + $0x3288] sm:$0xff]  ;;  %v31922_v9 = vld [vmem:[%s39439_s1 + $0x3200] sm:$0xff] }
 0x62a   :  { %20702 = vmatpush.bf16.msrb.mxu0 %v31895_v51  ;;  %v31950_v51 = vld [vmem:[%s39439_s1 + $0x32e0] sm:$0xff]  ;;  %420 = vst [vmem:[#allocation1 + $0x20] ss:$4 sm:$0xff] %v85_v3  ;;  %v31993_v3 = vld [vmem:[%s39439_s1 + $0x3438] sm:$0xff] }
 0x62b   :  { %20715 = vmatpush.bf16.msrb.mxu1 %v31903_v52  ;;  %v31925_v52 = vld [vmem:[%s39439_s1 + $0x3218] sm:$0xff] }
 0x62c   :  { %20728 = vmatpush.bf16.msrb.mxu2 %v31911_v53  ;;  %v31933_v53 = vld [vmem:[%s39439_s1 + $0x3258] sm:$0xff] }
 0x62d   :  { %20741 = vmatpush.bf16.msrb.mxu3 %v31919_v54  ;;  %v31941_v54 = vld [vmem:[%s39439_s1 + $0x3298] sm:$0xff] }
 0x62e   :  { %20703 = vmatpush.bf16.msrb.mxu0 %v31894_v57  ;;  %v20477_v17 = vpop.f32.mrf.mxu2  ;;  %v31949_v57 = vld [vmem:[%s39439_s1 + $0x32d8] sm:$0xff] }
 0x62f   :  { %20716 = vmatpush.bf16.msrb.mxu1 %v31902_v59  ;;  %v20490_v19 = vpop.f32.mrf.mxu3  ;;  %v31977_v17 = vld [vmem:[%s39439_s1 + $0x33b8] sm:$0xff] }
 0x630   :  { %20729 = vmatpush.bf16.msrb.mxu2 %v31910_v60  ;;  %v424_v19 = vld.sshfl [vmem:[#allocation1 + $0x18] sm:$0xff pattern:$0x73625140] }
 0x631   :  { %20742 = vmatpush.bf16.msrb.mxu3 %v31918_v62  ;;  %v975_v24 = vpack.c.bf16 %v424_v19, %v424_v19  ;;  %v31999_v19 = vld [vmem:[%s39439_s1 + $0x3468] sm:$0xff] }
 0x632   :  { %20704 = vmatpush.bf16.msrb.mxu0 %v31893_v63  ;;  %v31932_v63 = vld [vmem:[%s39439_s1 + $0x3250] sm:$0xff] }
 0x633   :  { %20717 = vmatpush.bf16.msrb.mxu1 %v31901_v0  ;;  %v31940_v0 = vld [vmem:[%s39439_s1 + $0x3290] sm:$0xff] }
 0x634   :  { %20730 = vmatpush.bf16.msrb.mxu2 %v31909_v1  ;;  %v31948_v1 = vld [vmem:[%s39439_s1 + $0x32d0] sm:$0xff] }
 0x635   :  { %20743 = vmatpush.bf16.msrb.mxu3 %v31917_v4  ;;  %v31931_v4 = vld [vmem:[%s39439_s1 + $0x3248] sm:$0xff] }
 0x636   :  { %20705 = vmatpush.bf16.msrb.mxu0 %v31892_v8 }
 0x637   :  { %20718 = vmatpush.bf16.msrb.mxu1 %v31900_v10  ;;  %v31930_v10 = vld [vmem:[%s39439_s1 + $0x3240] sm:$0xff] }
 0x638   :  { %20731 = vmatpush.bf16.msrb.mxu2 %v31908_v11  ;;  %v31938_v11 = vld [vmem:[%s39439_s1 + $0x3280] sm:$0xff] }
 0x639   :  { %20744 = vmatpush.bf16.msrb.mxu3 %v31916_v12  ;;  %v421_v12 = vld.sshfl [vmem:[#allocation1] sm:$0xff pattern:$0x73625140] }
 0x63a   :  { %20706 = vmatpush.bf16.msrb.mxu0 %v31891_v13  ;;  %v423_v13 = vld.sshfl [vmem:[#allocation1 + $0x10] sm:$0xff pattern:$0x73625140] }
 0x63b   :  { %20719 = vmatpush.bf16.msrb.mxu1 %v31899_v15  ;;  %v31969_v15 = vld [vmem:[%s39439_s1 + $0x3378] sm:$0xff] }
 0x63c   :  { %20732 = vmatpush.bf16.msrb.mxu2 %v31907_v16  ;;  %v422_v16 = vld.sshfl [vmem:[#allocation1 + $0x8] sm:$0xff pattern:$0x73625140] }
 0x63d   :  { %20745 = vmatpush.bf16.msrb.mxu3 %v31915_v18  ;;  %v31946_v18 = vld [vmem:[%s39439_s1 + $0x32c0] sm:$0xff]  ;;  %v973_v23 = vpack.c.bf16 %v422_v16, %v422_v16  ;;  %v32008_v16 = vld [vmem:[%s39439_s1 + $0x34b0] sm:$0xff] }
 0x63e   :  { %20707 = vmatpush.bf16.msrb.mxu0 %v31890_v20  ;;  %v20501_v44 = vpop.f32.mrf.mxu0  ;;  %v972_v20 = vpack.c.bf16 %v421_v12, %v421_v12 }
 0x63f   :  { %20720 = vmatpush.bf16.msrb.mxu1 %v31898_v21  ;;  %v20502_v45 = vadd.f32 %v20501_v44, %v37587_v7  ;;  %v20514_v47 = vpop.f32.mrf.mxu1  ;;  %v31947_v7 = vld [vmem:[%s39439_s1 + $0x32c8] sm:$0xff]  ;;  %v974_v21 = vpack.c.bf16 %v423_v13, %v423_v13 }
 0x640   :  { %20733 = vmatpush.bf16.msrb.mxu2 %v31906_v22  ;;  %v31985_v22 = vld [vmem:[%s39439_s1 + $0x33f8] sm:$0xff] }
 0x641   :  { %20746 = vmatpush.bf16.msrb.mxu3 %v31914_v29  ;;  %20708 = vmatmul.bf16.vlgmr.msrb.gmra.mxu0 %v968_v31  ;;  %v20515_v50 = vadd.f32 %v20514_v47, %v20502_v45  ;;  %v31959_v29 = vld [vmem:[%s39439_s1 + $0x3328] sm:$0xff] }
 0x642   :  { %20752 = vmatpush.bf16.msra.mxu0 %v31929_v25  ;;  %20721 = vmatmul.bf16.vlgmr.msrb.gmra.mxu1 %v969_v34  ;;  %v31960_v25 = vld [vmem:[%s39439_s1 + $0x3330] sm:$0xff]  ;;  %v31975_v31 = vld [vmem:[%s39439_s1 + $0x33a8] sm:$0xff] }
 0x643   :  { %20765 = vmatpush.bf16.msra.mxu1 %v31937_v26  ;;  %20734 = vmatmul.bf16.vlgmr.msrb.gmra.mxu2 %v970_v32  ;;  %v31968_v26 = vld [vmem:[%s39439_s1 + $0x3370] sm:$0xff]  ;;  %v31983_v32 = vld [vmem:[%s39439_s1 + $0x33e8] sm:$0xff] }
 0x644   :  { %20778 = vmatpush.bf16.msra.mxu2 %v31945_v28  ;;  %20747 = vmatmul.bf16.vlgmr.msrb.gmra.mxu3 %v971_v35  ;;  %v31984_v28 = vld [vmem:[%s39439_s1 + $0x33f0] sm:$0xff]  ;;  %v31958_v35 = vld [vmem:[%s39439_s1 + $0x3320] sm:$0xff] }
 0x645   :  { %20791 = vmatpush.bf16.msra.mxu3 %v31953_v33 }
 0x646   :  { %20753 = vmatpush.bf16.msra.mxu0 %v31928_v36  ;;  %v20527_v55 = vpop.f32.mrf.mxu2  ;;  %v20503_v59 = vpop.f32.mrf.mxu0 }
 0x647   :  { %20766 = vmatpush.bf16.msra.mxu1 %v31936_v37  ;;  %v20528_v56 = vadd.f32 %v20527_v55, %v20515_v50  ;;  %v20540_v58 = vpop.f32.mrf.mxu3  ;;  %v20516_v62 = vpop.f32.mrf.mxu1  ;;  %v31966_v37 = vld [vmem:[%s39439_s1 + $0x3360] sm:$0xff]  ;;  %v31956_v50 = vld [vmem:[%s39439_s1 + $0x3310] sm:$0xff]  ;;  %v31955_v55 = vld [vmem:[%s39439_s1 + $0x3308] sm:$0xff] }
 0x648   :  { %20779 = vmatpush.bf16.msra.mxu2 %v31944_v38  ;;  %v31974_v38 = vld [vmem:[%s39439_s1 + $0x33a0] sm:$0xff] }
 0x649   :  { %20792 = vmatpush.bf16.msra.mxu3 %v31952_v39  ;;  %v37689_v60 = vadd.f32 %v20540_v58, %v20528_v56  ;;  %v86_v56 = vld [vmem:[%s39438_s0 + $0x1a0] sm:$0xff]  ;;  %v31971_v58 = vld [vmem:[%s39439_s1 + $0x3388] sm:$0xff] }
 0x64a   :  { %20754 = vmatpush.bf16.msra.mxu0 %v31927_v40  ;;  %v31982_v40 = vld [vmem:[%s39439_s1 + $0x33e0] sm:$0xff]  ;;  %429 = vst [vmem:[#allocation1] ss:$4 sm:$0xff] %v86_v56  ;;  %v32025_v56 = vld [vmem:[%s39439_s1 + $0x3538] sm:$0xff] }
 0x64b   :  { %20767 = vmatpush.bf16.msra.mxu1 %v31935_v41  ;;  %v31957_v41 = vld [vmem:[%s39439_s1 + $0x3318] sm:$0xff]  ;;  %v31954_v62 = vld [vmem:[%s39439_s1 + $0x3300] sm:$0xff] }
 0x64c   :  { %20780 = vmatpush.bf16.msra.mxu2 %v31943_v42  ;;  %v31965_v42 = vld [vmem:[%s39439_s1 + $0x3358] sm:$0xff] }
 0x64d   :  { %20793 = vmatpush.bf16.msra.mxu3 %v31951_v43  ;;  %v31973_v43 = vld [vmem:[%s39439_s1 + $0x3398] sm:$0xff] }
 0x64e   :  { %20755 = vmatpush.bf16.msra.mxu0 %v31926_v46  ;;  %v20529_v6 = vpop.f32.mrf.mxu2  ;;  %v31981_v46 = vld [vmem:[%s39439_s1 + $0x33d8] sm:$0xff] }
 0x64f   :  { %20768 = vmatpush.bf16.msra.mxu1 %v31934_v48  ;;  %v20542_v8 = vpop.f32.mrf.mxu3  ;;  %v32009_v6 = vld [vmem:[%s39439_s1 + $0x34b8] sm:$0xff] }
 0x650   :  { %20781 = vmatpush.bf16.msra.mxu2 %v31942_v49  ;;  %v428_v8 = vld.sshfl [vmem:[#allocation1 + $0x38] sm:$0xff pattern:$0x73625140] }
 0x651   :  { %20794 = vmatpush.bf16.msra.mxu3 %v31950_v51  ;;  %v979_v13 = vpack.c.bf16 %v428_v8, %v428_v8  ;;  %v32031_v8 = vld [vmem:[%s39439_s1 + $0x3568] sm:$0xff] }
 0x652   :  { %20756 = vmatpush.bf16.msra.mxu0 %v31925_v52  ;;  %v31964_v52 = vld [vmem:[%s39439_s1 + $0x3350] sm:$0xff] }
 0x653   :  { %20769 = vmatpush.bf16.msra.mxu1 %v31933_v53  ;;  %v31972_v53 = vld [vmem:[%s39439_s1 + $0x3390] sm:$0xff] }
 0x654   :  { %20782 = vmatpush.bf16.msra.mxu2 %v31941_v54  ;;  %v31980_v54 = vld [vmem:[%s39439_s1 + $0x33d0] sm:$0xff] }
 0x655   :  { %20795 = vmatpush.bf16.msra.mxu3 %v31949_v57  ;;  %v31963_v57 = vld [vmem:[%s39439_s1 + $0x3348] sm:$0xff] }
 0x656   :  { %20757 = vmatpush.bf16.msra.mxu0 %v31924_v61 }
 0x657   :  { %20770 = vmatpush.bf16.msra.mxu1 %v31932_v63  ;;  %v31962_v63 = vld [vmem:[%s39439_s1 + $0x3340] sm:$0xff] }
 0x658   :  { %20783 = vmatpush.bf16.msra.mxu2 %v31940_v0  ;;  %v31970_v0 = vld [vmem:[%s39439_s1 + $0x3380] sm:$0xff] }
 0x659   :  { %20796 = vmatpush.bf16.msra.mxu3 %v31948_v1  ;;  %v425_v1 = vld.sshfl [vmem:[#allocation1 + $0x20] sm:$0xff pattern:$0x73625140] }
 0x65a   :  { %20758 = vmatpush.bf16.msra.mxu0 %v31923_v2  ;;  %v427_v2 = vld.sshfl [vmem:[#allocation1 + $0x30] sm:$0xff pattern:$0x73625140] }
 0x65b   :  { %20771 = vmatpush.bf16.msra.mxu1 %v31931_v4  ;;  %v32001_v4 = vld [vmem:[%s39439_s1 + $0x3478] sm:$0xff] }
 0x65c   :  { %20784 = vmatpush.bf16.msra.mxu2 %v31939_v5  ;;  %v426_v5 = vld.sshfl [vmem:[#allocation1 + $0x28] sm:$0xff pattern:$0x73625140] }
 0x65d   :  { %20797 = vmatpush.bf16.msra.mxu3 %v31947_v7  ;;  %v31978_v7 = vld [vmem:[%s39439_s1 + $0x33c0] sm:$0xff]  ;;  %v977_v12 = vpack.c.bf16 %v426_v5, %v426_v5  ;;  %v32040_v5 = vld [vmem:[%s39439_s1 + $0x35b0] sm:$0xff] }
 0x65e   :  { %20759 = vmatpush.bf16.msra.mxu0 %v31922_v9  ;;  %v20553_v33 = vpop.f32.mrf.mxu0  ;;  %v976_v9 = vpack.c.bf16 %v425_v1, %v425_v1 }
 0x65f   :  { %20772 = vmatpush.bf16.msra.mxu1 %v31930_v10  ;;  %v20554_v34 = vadd.f32 %v20553_v33, %v37689_v60  ;;  %v20566_v36 = vpop.f32.mrf.mxu1  ;;  %v31979_v60 = vld [vmem:[%s39439_s1 + $0x33c8] sm:$0xff]  ;;  %v978_v10 = vpack.c.bf16 %v427_v2, %v427_v2 }
 0x660   :  { %20785 = vmatpush.bf16.msra.mxu2 %v31938_v11  ;;  %v32017_v11 = vld [vmem:[%s39439_s1 + $0x34f8] sm:$0xff] }
 0x661   :  { %20798 = vmatpush.bf16.msra.mxu3 %v31946_v18  ;;  %20760 = vmatmul.bf16.vlgmr.msra.gmra.mxu0 %v972_v20  ;;  %v20567_v39 = vadd.f32 %v20566_v36, %v20554_v34  ;;  %v31991_v18 = vld [vmem:[%s39439_s1 + $0x3428] sm:$0xff] }
 0x662   :  { %20804 = vmatpush.bf16.msrb.mxu0 %v31961_v14  ;;  %20773 = vmatmul.bf16.vlgmr.msra.gmra.mxu1 %v973_v23  ;;  %v31992_v14 = vld [vmem:[%s39439_s1 + $0x3430] sm:$0xff]  ;;  %v32007_v20 = vld [vmem:[%s39439_s1 + $0x34a8] sm:$0xff] }
 0x663   :  { %20817 = vmatpush.bf16.msrb.mxu1 %v31969_v15  ;;  %20786 = vmatmul.bf16.vlgmr.msra.gmra.mxu2 %v974_v21  ;;  %v32000_v15 = vld [vmem:[%s39439_s1 + $0x3470] sm:$0xff]  ;;  %v32015_v21 = vld [vmem:[%s39439_s1 + $0x34e8] sm:$0xff] }
 0x664   :  { %20830 = vmatpush.bf16.msrb.mxu2 %v31977_v17  ;;  %20799 = vmatmul.bf16.vlgmr.msra.gmra.mxu3 %v975_v24  ;;  %v32016_v17 = vld [vmem:[%s39439_s1 + $0x34f0] sm:$0xff]  ;;  %v31990_v24 = vld [vmem:[%s39439_s1 + $0x3420] sm:$0xff] }
 0x665   :  { %20843 = vmatpush.bf16.msrb.mxu3 %v31985_v22 }
 0x666   :  { %20805 = vmatpush.bf16.msrb.mxu0 %v31960_v25  ;;  %v20579_v44 = vpop.f32.mrf.mxu2  ;;  %v20555_v48 = vpop.f32.mrf.mxu0 }
 0x667   :  { %20818 = vmatpush.bf16.msrb.mxu1 %v31968_v26  ;;  %v20580_v45 = vadd.f32 %v20579_v44, %v20567_v39  ;;  %v20592_v47 = vpop.f32.mrf.mxu3  ;;  %v20568_v51 = vpop.f32.mrf.mxu1  ;;  %v31998_v26 = vld [vmem:[%s39439_s1 + $0x3460] sm:$0xff]  ;;  %v31988_v39 = vld [vmem:[%s39439_s1 + $0x3410] sm:$0xff]  ;;  %v31987_v44 = vld [vmem:[%s39439_s1 + $0x3408] sm:$0xff] }
 0x668   :  { %20831 = vmatpush.bf16.msrb.mxu2 %v31976_v27  ;;  %v32006_v27 = vld [vmem:[%s39439_s1 + $0x34a0] sm:$0xff] }
 0x669   :  { %20844 = vmatpush.bf16.msrb.mxu3 %v31984_v28  ;;  %v37791_v49 = vadd.f32 %v20592_v47, %v20580_v45  ;;  %v87_v45 = vld [vmem:[%s39438_s0 + $0x1a8] sm:$0xff]  ;;  %v31986_v51 = vld [vmem:[%s39439_s1 + $0x3400] sm:$0xff] }
 0x66a   :  { %20806 = vmatpush.bf16.msrb.mxu0 %v31959_v29  ;;  %v32014_v29 = vld [vmem:[%s39439_s1 + $0x34e0] sm:$0xff]  ;;  %v32003_v47 = vld [vmem:[%s39439_s1 + $0x3488] sm:$0xff]  ;;  %430 = vst [vmem:[#allocation1 + $0x20] ss:$4 sm:$0xff] %v87_v45  ;;  %v32057_v45 = vld [vmem:[%s39439_s1 + $0x3638] sm:$0xff] }
 0x66b   :  { %20819 = vmatpush.bf16.msrb.mxu1 %v31967_v30  ;;  %v31989_v30 = vld [vmem:[%s39439_s1 + $0x3418] sm:$0xff] }
 0x66c   :  { %20832 = vmatpush.bf16.msrb.mxu2 %v31975_v31  ;;  %v31997_v31 = vld [vmem:[%s39439_s1 + $0x3458] sm:$0xff] }
 0x66d   :  { %20845 = vmatpush.bf16.msrb.mxu3 %v31983_v32  ;;  %v32005_v32 = vld [vmem:[%s39439_s1 + $0x3498] sm:$0xff] }
 0x66e   :  { %20807 = vmatpush.bf16.msrb.mxu0 %v31958_v35  ;;  %v20581_v59 = vpop.f32.mrf.mxu2  ;;  %v32013_v35 = vld [vmem:[%s39439_s1 + $0x34d8] sm:$0xff] }
 0x66f   :  { %20820 = vmatpush.bf16.msrb.mxu1 %v31966_v37  ;;  %v20594_v61 = vpop.f32.mrf.mxu3  ;;  %v32041_v59 = vld [vmem:[%s39439_s1 + $0x35b8] sm:$0xff] }
 0x670   :  { %20833 = vmatpush.bf16.msrb.mxu2 %v31974_v38  ;;  %v434_v61 = vld.sshfl [vmem:[#allocation1 + $0x18] sm:$0xff pattern:$0x73625140] }
 0x671   :  { %20846 = vmatpush.bf16.msrb.mxu3 %v31982_v40  ;;  %v983_v2 = vpack.c.bf16 %v434_v61, %v434_v61  ;;  %v32063_v61 = vld [vmem:[%s39439_s1 + $0x3668] sm:$0xff] }
 0x672   :  { %20808 = vmatpush.bf16.msrb.mxu0 %v31957_v41  ;;  %v31996_v41 = vld [vmem:[%s39439_s1 + $0x3450] sm:$0xff] }
 0x673   :  { %20821 = vmatpush.bf16.msrb.mxu1 %v31965_v42  ;;  %v32004_v42 = vld [vmem:[%s39439_s1 + $0x3490] sm:$0xff] }
 0x674   :  { %20834 = vmatpush.bf16.msrb.mxu2 %v31973_v43  ;;  %v32012_v43 = vld [vmem:[%s39439_s1 + $0x34d0] sm:$0xff] }
 0x675   :  { %20847 = vmatpush.bf16.msrb.mxu3 %v31981_v46  ;;  %v31995_v46 = vld [vmem:[%s39439_s1 + $0x3448] sm:$0xff] }
 0x676   :  { %20809 = vmatpush.bf16.msrb.mxu0 %v31956_v50 }
 0x677   :  { %20822 = vmatpush.bf16.msrb.mxu1 %v31964_v52  ;;  %v31994_v52 = vld [vmem:[%s39439_s1 + $0x3440] sm:$0xff] }
 0x678   :  { %20835 = vmatpush.bf16.msrb.mxu2 %v31972_v53  ;;  %v32002_v53 = vld [vmem:[%s39439_s1 + $0x3480] sm:$0xff] }
 0x679   :  { %20848 = vmatpush.bf16.msrb.mxu3 %v31980_v54  ;;  %v431_v54 = vld.sshfl [vmem:[#allocation1] sm:$0xff pattern:$0x73625140] }
 0x67a   :  { %20810 = vmatpush.bf16.msrb.mxu0 %v31955_v55  ;;  %v433_v55 = vld.sshfl [vmem:[#allocation1 + $0x10] sm:$0xff pattern:$0x73625140] }
 0x67b   :  { %20823 = vmatpush.bf16.msrb.mxu1 %v31963_v57  ;;  %v32033_v57 = vld [vmem:[%s39439_s1 + $0x3578] sm:$0xff] }
 0x67c   :  { %20836 = vmatpush.bf16.msrb.mxu2 %v31971_v58  ;;  %v432_v58 = vld.sshfl [vmem:[#allocation1 + $0x8] sm:$0xff pattern:$0x73625140] }
 0x67d   :  { %20849 = vmatpush.bf16.msrb.mxu3 %v31979_v60  ;;  %v32010_v60 = vld [vmem:[%s39439_s1 + $0x34c0] sm:$0xff]  ;;  %v981_v1 = vpack.c.bf16 %v432_v58, %v432_v58  ;;  %v32072_v58 = vld [vmem:[%s39439_s1 + $0x36b0] sm:$0xff] }
 0x67e   :  { %20811 = vmatpush.bf16.msrb.mxu0 %v31954_v62  ;;  %v20605_v22 = vpop.f32.mrf.mxu0  ;;  %v980_v62 = vpack.c.bf16 %v431_v54, %v431_v54 }
 0x67f   :  { %20824 = vmatpush.bf16.msrb.mxu1 %v31962_v63  ;;  %v20606_v23 = vadd.f32 %v20605_v22, %v37791_v49  ;;  %v20618_v25 = vpop.f32.mrf.mxu1  ;;  %v32011_v49 = vld [vmem:[%s39439_s1 + $0x34c8] sm:$0xff]  ;;  %v982_v63 = vpack.c.bf16 %v433_v55, %v433_v55 }
 0x680   :  { %20837 = vmatpush.bf16.msrb.mxu2 %v31970_v0  ;;  %v32049_v0 = vld [vmem:[%s39439_s1 + $0x35f8] sm:$0xff] }
 0x681   :  { %20850 = vmatpush.bf16.msrb.mxu3 %v31978_v7  ;;  %20812 = vmatmul.bf16.vlgmr.msrb.gmra.mxu0 %v976_v9  ;;  %v20619_v28 = vadd.f32 %v20618_v25, %v20606_v23  ;;  %v32023_v7 = vld [vmem:[%s39439_s1 + $0x3528] sm:$0xff] }
 0x682   :  { %20856 = vmatpush.bf16.msra.mxu0 %v31993_v3  ;;  %20825 = vmatmul.bf16.vlgmr.msrb.gmra.mxu1 %v977_v12  ;;  %v32024_v3 = vld [vmem:[%s39439_s1 + $0x3530] sm:$0xff]  ;;  %v32039_v9 = vld [vmem:[%s39439_s1 + $0x35a8] sm:$0xff] }
 0x683   :  { %20869 = vmatpush.bf16.msra.mxu1 %v32001_v4  ;;  %20838 = vmatmul.bf16.vlgmr.msrb.gmra.mxu2 %v978_v10  ;;  %v32032_v4 = vld [vmem:[%s39439_s1 + $0x3570] sm:$0xff]  ;;  %v32047_v10 = vld [vmem:[%s39439_s1 + $0x35e8] sm:$0xff] }
 0x684   :  { %20882 = vmatpush.bf16.msra.mxu2 %v32009_v6  ;;  %20851 = vmatmul.bf16.vlgmr.msrb.gmra.mxu3 %v979_v13  ;;  %v32048_v6 = vld [vmem:[%s39439_s1 + $0x35f0] sm:$0xff]  ;;  %v32022_v13 = vld [vmem:[%s39439_s1 + $0x3520] sm:$0xff] }
 0x685   :  { %20895 = vmatpush.bf16.msra.mxu3 %v32017_v11 }
 0x686   :  { %20857 = vmatpush.bf16.msra.mxu0 %v31992_v14  ;;  %v20631_v33 = vpop.f32.mrf.mxu2  ;;  %v20607_v37 = vpop.f32.mrf.mxu0 }
 0x687   :  { %20870 = vmatpush.bf16.msra.mxu1 %v32000_v15  ;;  %v20632_v34 = vadd.f32 %v20631_v33, %v20619_v28  ;;  %v20644_v36 = vpop.f32.mrf.mxu3  ;;  %v20620_v40 = vpop.f32.mrf.mxu1  ;;  %v32030_v15 = vld [vmem:[%s39439_s1 + $0x3560] sm:$0xff]  ;;  %v32020_v28 = vld [vmem:[%s39439_s1 + $0x3510] sm:$0xff]  ;;  %v32019_v33 = vld [vmem:[%s39439_s1 + $0x3508] sm:$0xff] }
 0x688   :  { %20883 = vmatpush.bf16.msra.mxu2 %v32008_v16  ;;  %v32038_v16 = vld [vmem:[%s39439_s1 + $0x35a0] sm:$0xff] }
 0x689   :  { %20896 = vmatpush.bf16.msra.mxu3 %v32016_v17  ;;  %v37893_v38 = vadd.f32 %v20644_v36, %v20632_v34  ;;  %v88_v34 = vld [vmem:[%s39438_s0 + $0x1b0] sm:$0xff]  ;;  %v32035_v36 = vld [vmem:[%s39439_s1 + $0x3588] sm:$0xff]  ;;  %v32018_v40 = vld [vmem:[%s39439_s1 + $0x3500] sm:$0xff] }
 0x68a   :  { %20858 = vmatpush.bf16.msra.mxu0 %v31991_v18  ;;  %v32046_v18 = vld [vmem:[%s39439_s1 + $0x35e0] sm:$0xff]  ;;  %439 = vst [vmem:[#allocation1] ss:$4 sm:$0xff] %v88_v34  ;;  %v32089_v34 = vld [vmem:[%s39439_s1 + $0x3738] sm:$0xff] }
 0x68b   :  { %20871 = vmatpush.bf16.msra.mxu1 %v31999_v19  ;;  %v32021_v19 = vld [vmem:[%s39439_s1 + $0x3518] sm:$0xff] }
 0x68c   :  { %20884 = vmatpush.bf16.msra.mxu2 %v32007_v20  ;;  %v32029_v20 = vld [vmem:[%s39439_s1 + $0x3558] sm:$0xff] }
 0x68d   :  { %20897 = vmatpush.bf16.msra.mxu3 %v32015_v21  ;;  %v32037_v21 = vld [vmem:[%s39439_s1 + $0x3598] sm:$0xff] }
 0x68e   :  { %20859 = vmatpush.bf16.msra.mxu0 %v31990_v24  ;;  %v20633_v48 = vpop.f32.mrf.mxu2  ;;  %v32045_v24 = vld [vmem:[%s39439_s1 + $0x35d8] sm:$0xff] }
 0x68f   :  { %20872 = vmatpush.bf16.msra.mxu1 %v31998_v26  ;;  %v20646_v50 = vpop.f32.mrf.mxu3  ;;  %v32073_v48 = vld [vmem:[%s39439_s1 + $0x36b8] sm:$0xff] }
 0x690   :  { %20885 = vmatpush.bf16.msra.mxu2 %v32006_v27  ;;  %v438_v50 = vld.sshfl [vmem:[#allocation1 + $0x38] sm:$0xff pattern:$0x73625140] }
 0x691   :  { %20898 = vmatpush.bf16.msra.mxu3 %v32014_v29  ;;  %v987_v55 = vpack.c.bf16 %v438_v50, %v438_v50  ;;  %v32095_v50 = vld [vmem:[%s39439_s1 + $0x3768] sm:$0xff] }
 0x692   :  { %20860 = vmatpush.bf16.msra.mxu0 %v31989_v30  ;;  %v32028_v30 = vld [vmem:[%s39439_s1 + $0x3550] sm:$0xff] }
 0x693   :  { %20873 = vmatpush.bf16.msra.mxu1 %v31997_v31  ;;  %v32036_v31 = vld [vmem:[%s39439_s1 + $0x3590] sm:$0xff] }
 0x694   :  { %20886 = vmatpush.bf16.msra.mxu2 %v32005_v32  ;;  %v32044_v32 = vld [vmem:[%s39439_s1 + $0x35d0] sm:$0xff] }
 0x695   :  { %20899 = vmatpush.bf16.msra.mxu3 %v32013_v35  ;;  %v32027_v35 = vld [vmem:[%s39439_s1 + $0x3548] sm:$0xff] }
 0x696   :  { %20861 = vmatpush.bf16.msra.mxu0 %v31988_v39 }
 0x697   :  { %20874 = vmatpush.bf16.msra.mxu1 %v31996_v41  ;;  %v32026_v41 = vld [vmem:[%s39439_s1 + $0x3540] sm:$0xff] }
 0x698   :  { %20887 = vmatpush.bf16.msra.mxu2 %v32004_v42  ;;  %v32034_v42 = vld [vmem:[%s39439_s1 + $0x3580] sm:$0xff] }
 0x699   :  { %20900 = vmatpush.bf16.msra.mxu3 %v32012_v43  ;;  %v435_v43 = vld.sshfl [vmem:[#allocation1 + $0x20] sm:$0xff pattern:$0x73625140] }
 0x69a   :  { %20862 = vmatpush.bf16.msra.mxu0 %v31987_v44  ;;  %v437_v44 = vld.sshfl [vmem:[#allocation1 + $0x30] sm:$0xff pattern:$0x73625140] }
 0x69b   :  { %20875 = vmatpush.bf16.msra.mxu1 %v31995_v46  ;;  %v32065_v46 = vld [vmem:[%s39439_s1 + $0x3678] sm:$0xff] }
 0x69c   :  { %20888 = vmatpush.bf16.msra.mxu2 %v32003_v47  ;;  %v436_v47 = vld.sshfl [vmem:[#allocation1 + $0x28] sm:$0xff pattern:$0x73625140] }
 0x69d   :  { %20901 = vmatpush.bf16.msra.mxu3 %v32011_v49  ;;  %v32042_v49 = vld [vmem:[%s39439_s1 + $0x35c0] sm:$0xff]  ;;  %v985_v54 = vpack.c.bf16 %v436_v47, %v436_v47  ;;  %v32104_v47 = vld [vmem:[%s39439_s1 + $0x37b0] sm:$0xff] }
 0x69e   :  { %20863 = vmatpush.bf16.msra.mxu0 %v31986_v51  ;;  %v20657_v11 = vpop.f32.mrf.mxu0  ;;  %v984_v51 = vpack.c.bf16 %v435_v43, %v435_v43 }
 0x69f   :  { %20876 = vmatpush.bf16.msra.mxu1 %v31994_v52  ;;  %v20658_v12 = vadd.f32 %v20657_v11, %v37893_v38  ;;  %v20670_v14 = vpop.f32.mrf.mxu1  ;;  %v32043_v38 = vld [vmem:[%s39439_s1 + $0x35c8] sm:$0xff]  ;;  %v986_v52 = vpack.c.bf16 %v437_v44, %v437_v44 }
 0x6a0   :  { %20889 = vmatpush.bf16.msra.mxu2 %v32002_v53  ;;  %v32081_v53 = vld [vmem:[%s39439_s1 + $0x36f8] sm:$0xff] }
 0x6a1   :  { %20902 = vmatpush.bf16.msra.mxu3 %v32010_v60  ;;  %20864 = vmatmul.bf16.vlgmr.msra.gmra.mxu0 %v980_v62  ;;  %v20671_v17 = vadd.f32 %v20670_v14, %v20658_v12  ;;  %v32055_v60 = vld [vmem:[%s39439_s1 + $0x3628] sm:$0xff] }
 0x6a2   :  { %20908 = vmatpush.bf16.msrb.mxu0 %v32025_v56  ;;  %20877 = vmatmul.bf16.vlgmr.msra.gmra.mxu1 %v981_v1  ;;  %v32056_v56 = vld [vmem:[%s39439_s1 + $0x3630] sm:$0xff]  ;;  %v32071_v62 = vld [vmem:[%s39439_s1 + $0x36a8] sm:$0xff] }
 0x6a3   :  { %20921 = vmatpush.bf16.msrb.mxu1 %v32033_v57  ;;  %20890 = vmatmul.bf16.vlgmr.msra.gmra.mxu2 %v982_v63  ;;  %v32064_v57 = vld [vmem:[%s39439_s1 + $0x3670] sm:$0xff]  ;;  %v32079_v63 = vld [vmem:[%s39439_s1 + $0x36e8] sm:$0xff] }
 0x6a4   :  { %20934 = vmatpush.bf16.msrb.mxu2 %v32041_v59  ;;  %20903 = vmatmul.bf16.vlgmr.msra.gmra.mxu3 %v983_v2  ;;  %v32080_v59 = vld [vmem:[%s39439_s1 + $0x36f0] sm:$0xff]  ;;  %v32054_v2 = vld [vmem:[%s39439_s1 + $0x3620] sm:$0xff] }
 0x6a5   :  { %20947 = vmatpush.bf16.msrb.mxu3 %v32049_v0 }
 0x6a6   :  { %20909 = vmatpush.bf16.msrb.mxu0 %v32024_v3  ;;  %v20683_v22 = vpop.f32.mrf.mxu2  ;;  %v20659_v26 = vpop.f32.mrf.mxu0 }
 0x6a7   :  { %20922 = vmatpush.bf16.msrb.mxu1 %v32032_v4  ;;  %v20684_v23 = vadd.f32 %v20683_v22, %v20671_v17  ;;  %v20696_v25 = vpop.f32.mrf.mxu3  ;;  %v20672_v29 = vpop.f32.mrf.mxu1  ;;  %v32062_v4 = vld [vmem:[%s39439_s1 + $0x3660] sm:$0xff]  ;;  %v32052_v17 = vld [vmem:[%s39439_s1 + $0x3610] sm:$0xff]  ;;  %v32051_v22 = vld [vmem:[%s39439_s1 + $0x3608] sm:$0xff] }
 0x6a8   :  { %20935 = vmatpush.bf16.msrb.mxu2 %v32040_v5  ;;  %v32070_v5 = vld [vmem:[%s39439_s1 + $0x36a0] sm:$0xff] }
 0x6a9   :  { %20948 = vmatpush.bf16.msrb.mxu3 %v32048_v6  ;;  %v37995_v27 = vadd.f32 %v20696_v25, %v20684_v23  ;;  %v89_v23 = vld [vmem:[%s39438_s0 + $0x1b8] sm:$0xff]  ;;  %v32067_v25 = vld [vmem:[%s39439_s1 + $0x3688] sm:$0xff]  ;;  %v32050_v29 = vld [vmem:[%s39439_s1 + $0x3600] sm:$0xff] }
 0x6aa   :  { %20910 = vmatpush.bf16.msrb.mxu0 %v32023_v7  ;;  %v32078_v7 = vld [vmem:[%s39439_s1 + $0x36e0] sm:$0xff]  ;;  %440 = vst [vmem:[#allocation1 + $0x20] ss:$4 sm:$0xff] %v89_v23  ;;  %v32121_v23 = vld [vmem:[%s39439_s1 + $0x3838] sm:$0xff] }
 0x6ab   :  { %20923 = vmatpush.bf16.msrb.mxu1 %v32031_v8  ;;  %v32053_v8 = vld [vmem:[%s39439_s1 + $0x3618] sm:$0xff] }
 0x6ac   :  { %20936 = vmatpush.bf16.msrb.mxu2 %v32039_v9  ;;  %v32061_v9 = vld [vmem:[%s39439_s1 + $0x3658] sm:$0xff] }
 0x6ad   :  { %20949 = vmatpush.bf16.msrb.mxu3 %v32047_v10  ;;  %v32069_v10 = vld [vmem:[%s39439_s1 + $0x3698] sm:$0xff] }
 0x6ae   :  { %20911 = vmatpush.bf16.msrb.mxu0 %v32022_v13  ;;  %v20685_v37 = vpop.f32.mrf.mxu2  ;;  %v32077_v13 = vld [vmem:[%s39439_s1 + $0x36d8] sm:$0xff] }
 0x6af   :  { %20924 = vmatpush.bf16.msrb.mxu1 %v32030_v15  ;;  %v20698_v39 = vpop.f32.mrf.mxu3  ;;  %v32105_v37 = vld [vmem:[%s39439_s1 + $0x37b8] sm:$0xff] }
 0x6b0   :  { %20937 = vmatpush.bf16.msrb.mxu2 %v32038_v16  ;;  %v444_v39 = vld.sshfl [vmem:[#allocation1 + $0x18] sm:$0xff pattern:$0x73625140] }
 0x6b1   :  { %20950 = vmatpush.bf16.msrb.mxu3 %v32046_v18  ;;  %v991_v44 = vpack.c.bf16 %v444_v39, %v444_v39  ;;  %v32127_v39 = vld [vmem:[%s39439_s1 + $0x3868] sm:$0xff] }
 0x6b2   :  { %20912 = vmatpush.bf16.msrb.mxu0 %v32021_v19  ;;  %v32060_v19 = vld [vmem:[%s39439_s1 + $0x3650] sm:$0xff] }
 0x6b3   :  { %20925 = vmatpush.bf16.msrb.mxu1 %v32029_v20  ;;  %v32068_v20 = vld [vmem:[%s39439_s1 + $0x3690] sm:$0xff] }
 0x6b4   :  { %20938 = vmatpush.bf16.msrb.mxu2 %v32037_v21  ;;  %v32076_v21 = vld [vmem:[%s39439_s1 + $0x36d0] sm:$0xff] }
 0x6b5   :  { %20951 = vmatpush.bf16.msrb.mxu3 %v32045_v24  ;;  %v32059_v24 = vld [vmem:[%s39439_s1 + $0x3648] sm:$0xff] }
 0x6b6   :  { %20913 = vmatpush.bf16.msrb.mxu0 %v32020_v28 }
 0x6b7   :  { %20926 = vmatpush.bf16.msrb.mxu1 %v32028_v30  ;;  %v32058_v30 = vld [vmem:[%s39439_s1 + $0x3640] sm:$0xff] }
 0x6b8   :  { %20939 = vmatpush.bf16.msrb.mxu2 %v32036_v31  ;;  %v32066_v31 = vld [vmem:[%s39439_s1 + $0x3680] sm:$0xff] }
 0x6b9   :  { %20952 = vmatpush.bf16.msrb.mxu3 %v32044_v32  ;;  %v441_v32 = vld.sshfl [vmem:[#allocation1] sm:$0xff pattern:$0x73625140] }
 0x6ba   :  { %20914 = vmatpush.bf16.msrb.mxu0 %v32019_v33  ;;  %v443_v33 = vld.sshfl [vmem:[#allocation1 + $0x10] sm:$0xff pattern:$0x73625140] }
 0x6bb   :  { %20927 = vmatpush.bf16.msrb.mxu1 %v32027_v35  ;;  %v32097_v35 = vld [vmem:[%s39439_s1 + $0x3778] sm:$0xff] }
 0x6bc   :  { %20940 = vmatpush.bf16.msrb.mxu2 %v32035_v36  ;;  %v442_v36 = vld.sshfl [vmem:[#allocation1 + $0x8] sm:$0xff pattern:$0x73625140] }
 0x6bd   :  { %20953 = vmatpush.bf16.msrb.mxu3 %v32043_v38  ;;  %v32074_v38 = vld [vmem:[%s39439_s1 + $0x36c0] sm:$0xff]  ;;  %v989_v43 = vpack.c.bf16 %v442_v36, %v442_v36  ;;  %v32136_v36 = vld [vmem:[%s39439_s1 + $0x38b0] sm:$0xff] }
 0x6be   :  { %20915 = vmatpush.bf16.msrb.mxu0 %v32018_v40  ;;  %v20709_v0 = vpop.f32.mrf.mxu0  ;;  %v988_v40 = vpack.c.bf16 %v441_v32, %v441_v32 }
 0x6bf   :  { %20928 = vmatpush.bf16.msrb.mxu1 %v32026_v41  ;;  %v20710_v1 = vadd.f32 %v20709_v0, %v37995_v27  ;;  %v20722_v3 = vpop.f32.mrf.mxu1  ;;  %v32075_v27 = vld [vmem:[%s39439_s1 + $0x36c8] sm:$0xff]  ;;  %v990_v41 = vpack.c.bf16 %v443_v33, %v443_v33 }
 0x6c0   :  { %20941 = vmatpush.bf16.msrb.mxu2 %v32034_v42  ;;  %v32113_v42 = vld [vmem:[%s39439_s1 + $0x37f8] sm:$0xff] }
 0x6c1   :  { %20954 = vmatpush.bf16.msrb.mxu3 %v32042_v49  ;;  %20916 = vmatmul.bf16.vlgmr.msrb.gmra.mxu0 %v984_v51  ;;  %v20723_v6 = vadd.f32 %v20722_v3, %v20710_v1  ;;  %v32087_v49 = vld [vmem:[%s39439_s1 + $0x3728] sm:$0xff] }
 0x6c2   :  { %20960 = vmatpush.bf16.msra.mxu0 %v32057_v45  ;;  %20929 = vmatmul.bf16.vlgmr.msrb.gmra.mxu1 %v985_v54  ;;  %v32088_v45 = vld [vmem:[%s39439_s1 + $0x3730] sm:$0xff]  ;;  %v32103_v51 = vld [vmem:[%s39439_s1 + $0x37a8] sm:$0xff] }
 0x6c3   :  { %20973 = vmatpush.bf16.msra.mxu1 %v32065_v46  ;;  %20942 = vmatmul.bf16.vlgmr.msrb.gmra.mxu2 %v986_v52  ;;  %v32096_v46 = vld [vmem:[%s39439_s1 + $0x3770] sm:$0xff]  ;;  %v32111_v52 = vld [vmem:[%s39439_s1 + $0x37e8] sm:$0xff] }
 0x6c4   :  { %20986 = vmatpush.bf16.msra.mxu2 %v32073_v48  ;;  %20955 = vmatmul.bf16.vlgmr.msrb.gmra.mxu3 %v987_v55  ;;  %v32112_v48 = vld [vmem:[%s39439_s1 + $0x37f0] sm:$0xff]  ;;  %v32086_v55 = vld [vmem:[%s39439_s1 + $0x3720] sm:$0xff] }
 0x6c5   :  { %20999 = vmatpush.bf16.msra.mxu3 %v32081_v53 }
 0x6c6   :  { %20961 = vmatpush.bf16.msra.mxu0 %v32056_v56  ;;  %v20735_v11 = vpop.f32.mrf.mxu2  ;;  %v20711_v15 = vpop.f32.mrf.mxu0 }
 0x6c7   :  { %20974 = vmatpush.bf16.msra.mxu1 %v32064_v57  ;;  %v20736_v12 = vadd.f32 %v20735_v11, %v20723_v6  ;;  %v20748_v14 = vpop.f32.mrf.mxu3  ;;  %v20724_v18 = vpop.f32.mrf.mxu1  ;;  %v32094_v57 = vld [vmem:[%s39439_s1 + $0x3760] sm:$0xff]  ;;  %v32084_v6 = vld [vmem:[%s39439_s1 + $0x3710] sm:$0xff]  ;;  %v32083_v11 = vld [vmem:[%s39439_s1 + $0x3708] sm:$0xff] }
 0x6c8   :  { %20987 = vmatpush.bf16.msra.mxu2 %v32072_v58  ;;  %v32102_v58 = vld [vmem:[%s39439_s1 + $0x37a0] sm:$0xff] }
 0x6c9   :  { %21000 = vmatpush.bf16.msra.mxu3 %v32080_v59  ;;  %v38097_v16 = vadd.f32 %v20748_v14, %v20736_v12  ;;  %v90_v12 = vld [vmem:[%s39438_s0 + $0x1c0] sm:$0xff]  ;;  %v32099_v14 = vld [vmem:[%s39439_s1 + $0x3788] sm:$0xff] }
 0x6ca   :  { %20962 = vmatpush.bf16.msra.mxu0 %v32055_v60  ;;  %v32110_v60 = vld [vmem:[%s39439_s1 + $0x37e0] sm:$0xff]  ;;  %449 = vst [vmem:[#allocation1] ss:$4 sm:$0xff] %v90_v12  ;;  %v32153_v12 = vld [vmem:[%s39439_s1 + $0x3938] sm:$0xff] }
 0x6cb   :  { %20975 = vmatpush.bf16.msra.mxu1 %v32063_v61  ;;  %v32085_v61 = vld [vmem:[%s39439_s1 + $0x3718] sm:$0xff]  ;;  %v32082_v18 = vld [vmem:[%s39439_s1 + $0x3700] sm:$0xff] }
 0x6cc   :  { %20988 = vmatpush.bf16.msra.mxu2 %v32071_v62  ;;  %v32093_v62 = vld [vmem:[%s39439_s1 + $0x3758] sm:$0xff] }
 0x6cd   :  { %21001 = vmatpush.bf16.msra.mxu3 %v32079_v63  ;;  %v32101_v63 = vld [vmem:[%s39439_s1 + $0x3798] sm:$0xff] }
 0x6ce   :  { %20963 = vmatpush.bf16.msra.mxu0 %v32054_v2  ;;  %v20737_v26 = vpop.f32.mrf.mxu2  ;;  %v32109_v2 = vld [vmem:[%s39439_s1 + $0x37d8] sm:$0xff] }
 0x6cf   :  { %20976 = vmatpush.bf16.msra.mxu1 %v32062_v4  ;;  %v20750_v28 = vpop.f32.mrf.mxu3  ;;  %v32137_v26 = vld [vmem:[%s39439_s1 + $0x38b8] sm:$0xff] }
 0x6d0   :  { %20989 = vmatpush.bf16.msra.mxu2 %v32070_v5  ;;  %v448_v28 = vld.sshfl [vmem:[#allocation1 + $0x38] sm:$0xff pattern:$0x73625140] }
 0x6d1   :  { %21002 = vmatpush.bf16.msra.mxu3 %v32078_v7  ;;  %v995_v33 = vpack.c.bf16 %v448_v28, %v448_v28  ;;  %v32159_v28 = vld [vmem:[%s39439_s1 + $0x3968] sm:$0xff] }
 0x6d2   :  { %20964 = vmatpush.bf16.msra.mxu0 %v32053_v8  ;;  %v32092_v8 = vld [vmem:[%s39439_s1 + $0x3750] sm:$0xff] }
 0x6d3   :  { %20977 = vmatpush.bf16.msra.mxu1 %v32061_v9  ;;  %v32100_v9 = vld [vmem:[%s39439_s1 + $0x3790] sm:$0xff] }
 0x6d4   :  { %20990 = vmatpush.bf16.msra.mxu2 %v32069_v10  ;;  %v32108_v10 = vld [vmem:[%s39439_s1 + $0x37d0] sm:$0xff] }
 0x6d5   :  { %21003 = vmatpush.bf16.msra.mxu3 %v32077_v13  ;;  %v32091_v13 = vld [vmem:[%s39439_s1 + $0x3748] sm:$0xff] }
 0x6d6   :  { %20965 = vmatpush.bf16.msra.mxu0 %v32052_v17 }
 0x6d7   :  { %20978 = vmatpush.bf16.msra.mxu1 %v32060_v19  ;;  %v32090_v19 = vld [vmem:[%s39439_s1 + $0x3740] sm:$0xff] }
 0x6d8   :  { %20991 = vmatpush.bf16.msra.mxu2 %v32068_v20  ;;  %v32098_v20 = vld [vmem:[%s39439_s1 + $0x3780] sm:$0xff] }
 0x6d9   :  { %21004 = vmatpush.bf16.msra.mxu3 %v32076_v21  ;;  %v445_v21 = vld.sshfl [vmem:[#allocation1 + $0x20] sm:$0xff pattern:$0x73625140] }
 0x6da   :  { %20966 = vmatpush.bf16.msra.mxu0 %v32051_v22  ;;  %v447_v22 = vld.sshfl [vmem:[#allocation1 + $0x30] sm:$0xff pattern:$0x73625140] }
 0x6db   :  { %20979 = vmatpush.bf16.msra.mxu1 %v32059_v24  ;;  %v32129_v24 = vld [vmem:[%s39439_s1 + $0x3878] sm:$0xff] }
 0x6dc   :  { %20992 = vmatpush.bf16.msra.mxu2 %v32067_v25  ;;  %v446_v25 = vld.sshfl [vmem:[#allocation1 + $0x28] sm:$0xff pattern:$0x73625140] }
 0x6dd   :  { %21005 = vmatpush.bf16.msra.mxu3 %v32075_v27  ;;  %v32106_v27 = vld [vmem:[%s39439_s1 + $0x37c0] sm:$0xff]  ;;  %v993_v32 = vpack.c.bf16 %v446_v25, %v446_v25  ;;  %v32168_v25 = vld [vmem:[%s39439_s1 + $0x39b0] sm:$0xff] }
 0x6de   :  { %20967 = vmatpush.bf16.msra.mxu0 %v32050_v29  ;;  %v20761_v53 = vpop.f32.mrf.mxu0  ;;  %v992_v29 = vpack.c.bf16 %v445_v21, %v445_v21 }
 0x6df   :  { %20980 = vmatpush.bf16.msra.mxu1 %v32058_v30  ;;  %v20762_v54 = vadd.f32 %v20761_v53, %v38097_v16  ;;  %v20774_v56 = vpop.f32.mrf.mxu1  ;;  %v32107_v16 = vld [vmem:[%s39439_s1 + $0x37c8] sm:$0xff]  ;;  %v994_v30 = vpack.c.bf16 %v447_v22, %v447_v22 }
 0x6e0   :  { %20993 = vmatpush.bf16.msra.mxu2 %v32066_v31  ;;  %v32145_v31 = vld [vmem:[%s39439_s1 + $0x38f8] sm:$0xff] }
 0x6e1   :  { %21006 = vmatpush.bf16.msra.mxu3 %v32074_v38  ;;  %20968 = vmatmul.bf16.vlgmr.msra.gmra.mxu0 %v988_v40  ;;  %v20775_v59 = vadd.f32 %v20774_v56, %v20762_v54  ;;  %v32119_v38 = vld [vmem:[%s39439_s1 + $0x3828] sm:$0xff] }
 0x6e2   :  { %21012 = vmatpush.bf16.msrb.mxu0 %v32089_v34  ;;  %20981 = vmatmul.bf16.vlgmr.msra.gmra.mxu1 %v989_v43  ;;  %v32120_v34 = vld [vmem:[%s39439_s1 + $0x3830] sm:$0xff]  ;;  %v32135_v40 = vld [vmem:[%s39439_s1 + $0x38a8] sm:$0xff] }
 0x6e3   :  { %21025 = vmatpush.bf16.msrb.mxu1 %v32097_v35  ;;  %20994 = vmatmul.bf16.vlgmr.msra.gmra.mxu2 %v990_v41  ;;  %v32128_v35 = vld [vmem:[%s39439_s1 + $0x3870] sm:$0xff]  ;;  %v32143_v41 = vld [vmem:[%s39439_s1 + $0x38e8] sm:$0xff] }
 0x6e4   :  { %21038 = vmatpush.bf16.msrb.mxu2 %v32105_v37  ;;  %21007 = vmatmul.bf16.vlgmr.msra.gmra.mxu3 %v991_v44  ;;  %v32144_v37 = vld [vmem:[%s39439_s1 + $0x38f0] sm:$0xff]  ;;  %v32118_v44 = vld [vmem:[%s39439_s1 + $0x3820] sm:$0xff] }
 0x6e5   :  { %21051 = vmatpush.bf16.msrb.mxu3 %v32113_v42 }
 0x6e6   :  { %21013 = vmatpush.bf16.msrb.mxu0 %v32088_v45  ;;  %v20787_v0 = vpop.f32.mrf.mxu2  ;;  %v20763_v4 = vpop.f32.mrf.mxu0 }
 0x6e7   :  { %21026 = vmatpush.bf16.msrb.mxu1 %v32096_v46  ;;  %v20788_v1 = vadd.f32 %v20787_v0, %v20775_v59  ;;  %v20800_v3 = vpop.f32.mrf.mxu3  ;;  %v20776_v7 = vpop.f32.mrf.mxu1  ;;  %v32126_v46 = vld [vmem:[%s39439_s1 + $0x3860] sm:$0xff]  ;;  %v32116_v59 = vld [vmem:[%s39439_s1 + $0x3810] sm:$0xff]  ;;  %v32115_v0 = vld [vmem:[%s39439_s1 + $0x3808] sm:$0xff] }
 0x6e8   :  { %21039 = vmatpush.bf16.msrb.mxu2 %v32104_v47  ;;  %v32134_v47 = vld [vmem:[%s39439_s1 + $0x38a0] sm:$0xff] }
 0x6e9   :  { %21052 = vmatpush.bf16.msrb.mxu3 %v32112_v48  ;;  %v38199_v5 = vadd.f32 %v20800_v3, %v20788_v1  ;;  %v91_v1 = vld [vmem:[%s39438_s0 + $0x1c8] sm:$0xff]  ;;  %v32114_v7 = vld [vmem:[%s39439_s1 + $0x3800] sm:$0xff] }
 0x6ea   :  { %21014 = vmatpush.bf16.msrb.mxu0 %v32087_v49  ;;  %v32142_v49 = vld [vmem:[%s39439_s1 + $0x38e0] sm:$0xff]  ;;  %v32131_v3 = vld [vmem:[%s39439_s1 + $0x3888] sm:$0xff]  ;;  %450 = vst [vmem:[#allocation1 + $0x20] ss:$4 sm:$0xff] %v91_v1  ;;  %v32185_v1 = vld [vmem:[%s39439_s1 + $0x3a38] sm:$0xff] }
 0x6eb   :  { %21027 = vmatpush.bf16.msrb.mxu1 %v32095_v50  ;;  %v32117_v50 = vld [vmem:[%s39439_s1 + $0x3818] sm:$0xff] }
 0x6ec   :  { %21040 = vmatpush.bf16.msrb.mxu2 %v32103_v51  ;;  %v32125_v51 = vld [vmem:[%s39439_s1 + $0x3858] sm:$0xff] }
 0x6ed   :  { %21053 = vmatpush.bf16.msrb.mxu3 %v32111_v52  ;;  %v32133_v52 = vld [vmem:[%s39439_s1 + $0x3898] sm:$0xff] }
 0x6ee   :  { %21015 = vmatpush.bf16.msrb.mxu0 %v32086_v55  ;;  %v20789_v15 = vpop.f32.mrf.mxu2  ;;  %v32141_v55 = vld [vmem:[%s39439_s1 + $0x38d8] sm:$0xff] }
 0x6ef   :  { %21028 = vmatpush.bf16.msrb.mxu1 %v32094_v57  ;;  %v20802_v17 = vpop.f32.mrf.mxu3  ;;  %v32169_v15 = vld [vmem:[%s39439_s1 + $0x39b8] sm:$0xff] }
 0x6f0   :  { %21041 = vmatpush.bf16.msrb.mxu2 %v32102_v58  ;;  %v454_v17 = vld.sshfl [vmem:[#allocation1 + $0x18] sm:$0xff pattern:$0x73625140] }
 0x6f1   :  { %21054 = vmatpush.bf16.msrb.mxu3 %v32110_v60  ;;  %v999_v22 = vpack.c.bf16 %v454_v17, %v454_v17  ;;  %v32191_v17 = vld [vmem:[%s39439_s1 + $0x3a68] sm:$0xff] }
 0x6f2   :  { %21016 = vmatpush.bf16.msrb.mxu0 %v32085_v61  ;;  %v32124_v61 = vld [vmem:[%s39439_s1 + $0x3850] sm:$0xff] }
 0x6f3   :  { %21029 = vmatpush.bf16.msrb.mxu1 %v32093_v62  ;;  %v32132_v62 = vld [vmem:[%s39439_s1 + $0x3890] sm:$0xff] }
 0x6f4   :  { %21042 = vmatpush.bf16.msrb.mxu2 %v32101_v63  ;;  %v32140_v63 = vld [vmem:[%s39439_s1 + $0x38d0] sm:$0xff] }
 0x6f5   :  { %21055 = vmatpush.bf16.msrb.mxu3 %v32109_v2  ;;  %v32123_v2 = vld [vmem:[%s39439_s1 + $0x3848] sm:$0xff] }
 0x6f6   :  { %21017 = vmatpush.bf16.msrb.mxu0 %v32084_v6 }
 0x6f7   :  { %21030 = vmatpush.bf16.msrb.mxu1 %v32092_v8  ;;  %v32122_v8 = vld [vmem:[%s39439_s1 + $0x3840] sm:$0xff] }
 0x6f8   :  { %21043 = vmatpush.bf16.msrb.mxu2 %v32100_v9  ;;  %v32130_v9 = vld [vmem:[%s39439_s1 + $0x3880] sm:$0xff] }
 0x6f9   :  { %21056 = vmatpush.bf16.msrb.mxu3 %v32108_v10  ;;  %v451_v10 = vld.sshfl [vmem:[#allocation1] sm:$0xff pattern:$0x73625140] }
 0x6fa   :  { %21018 = vmatpush.bf16.msrb.mxu0 %v32083_v11  ;;  %v453_v11 = vld.sshfl [vmem:[#allocation1 + $0x10] sm:$0xff pattern:$0x73625140] }
 0x6fb   :  { %21031 = vmatpush.bf16.msrb.mxu1 %v32091_v13  ;;  %v32161_v13 = vld [vmem:[%s39439_s1 + $0x3978] sm:$0xff] }
 0x6fc   :  { %21044 = vmatpush.bf16.msrb.mxu2 %v32099_v14  ;;  %v452_v14 = vld.sshfl [vmem:[#allocation1 + $0x8] sm:$0xff pattern:$0x73625140] }
 0x6fd   :  { %21057 = vmatpush.bf16.msrb.mxu3 %v32107_v16  ;;  %v32138_v16 = vld [vmem:[%s39439_s1 + $0x38c0] sm:$0xff]  ;;  %v997_v21 = vpack.c.bf16 %v452_v14, %v452_v14  ;;  %v32200_v14 = vld [vmem:[%s39439_s1 + $0x3ab0] sm:$0xff] }
 0x6fe   :  { %21019 = vmatpush.bf16.msrb.mxu0 %v32082_v18  ;;  %v20813_v42 = vpop.f32.mrf.mxu0  ;;  %v996_v18 = vpack.c.bf16 %v451_v10, %v451_v10 }
 0x6ff   :  { %21032 = vmatpush.bf16.msrb.mxu1 %v32090_v19  ;;  %v20814_v43 = vadd.f32 %v20813_v42, %v38199_v5  ;;  %v20826_v45 = vpop.f32.mrf.mxu1  ;;  %v32139_v5 = vld [vmem:[%s39439_s1 + $0x38c8] sm:$0xff]  ;;  %v998_v19 = vpack.c.bf16 %v453_v11, %v453_v11 }
 0x700   :  { %21045 = vmatpush.bf16.msrb.mxu2 %v32098_v20  ;;  %v32177_v20 = vld [vmem:[%s39439_s1 + $0x39f8] sm:$0xff] }
 0x701   :  { %21058 = vmatpush.bf16.msrb.mxu3 %v32106_v27  ;;  %21020 = vmatmul.bf16.vlgmr.msrb.gmra.mxu0 %v992_v29  ;;  %v20827_v48 = vadd.f32 %v20826_v45, %v20814_v43  ;;  %v32151_v27 = vld [vmem:[%s39439_s1 + $0x3928] sm:$0xff] }
 0x702   :  { %21064 = vmatpush.bf16.msra.mxu0 %v32121_v23  ;;  %21033 = vmatmul.bf16.vlgmr.msrb.gmra.mxu1 %v993_v32  ;;  %v32152_v23 = vld [vmem:[%s39439_s1 + $0x3930] sm:$0xff]  ;;  %v32167_v29 = vld [vmem:[%s39439_s1 + $0x39a8] sm:$0xff] }
 0x703   :  { %21077 = vmatpush.bf16.msra.mxu1 %v32129_v24  ;;  %21046 = vmatmul.bf16.vlgmr.msrb.gmra.mxu2 %v994_v30  ;;  %v32160_v24 = vld [vmem:[%s39439_s1 + $0x3970] sm:$0xff]  ;;  %v32175_v30 = vld [vmem:[%s39439_s1 + $0x39e8] sm:$0xff] }
 0x704   :  { %21090 = vmatpush.bf16.msra.mxu2 %v32137_v26  ;;  %21059 = vmatmul.bf16.vlgmr.msrb.gmra.mxu3 %v995_v33  ;;  %v32176_v26 = vld [vmem:[%s39439_s1 + $0x39f0] sm:$0xff]  ;;  %v32150_v33 = vld [vmem:[%s39439_s1 + $0x3920] sm:$0xff] }
 0x705   :  { %21103 = vmatpush.bf16.msra.mxu3 %v32145_v31 }
 0x706   :  { %21065 = vmatpush.bf16.msra.mxu0 %v32120_v34  ;;  %v20839_v53 = vpop.f32.mrf.mxu2  ;;  %v20815_v57 = vpop.f32.mrf.mxu0 }
 0x707   :  { %21078 = vmatpush.bf16.msra.mxu1 %v32128_v35  ;;  %v20840_v54 = vadd.f32 %v20839_v53, %v20827_v48  ;;  %v20852_v56 = vpop.f32.mrf.mxu3  ;;  %v20828_v60 = vpop.f32.mrf.mxu1  ;;  %v32158_v35 = vld [vmem:[%s39439_s1 + $0x3960] sm:$0xff]  ;;  %v32148_v48 = vld [vmem:[%s39439_s1 + $0x3910] sm:$0xff]  ;;  %v32147_v53 = vld [vmem:[%s39439_s1 + $0x3908] sm:$0xff] }
 0x708   :  { %21091 = vmatpush.bf16.msra.mxu2 %v32136_v36  ;;  %v32166_v36 = vld [vmem:[%s39439_s1 + $0x39a0] sm:$0xff] }
 0x709   :  { %21104 = vmatpush.bf16.msra.mxu3 %v32144_v37  ;;  %v38301_v58 = vadd.f32 %v20852_v56, %v20840_v54  ;;  %v92_v54 = vld [vmem:[%s39438_s0 + $0x1d0] sm:$0xff]  ;;  %v32163_v56 = vld [vmem:[%s39439_s1 + $0x3988] sm:$0xff]  ;;  %v32146_v60 = vld [vmem:[%s39439_s1 + $0x3900] sm:$0xff] }
 0x70a   :  { %21066 = vmatpush.bf16.msra.mxu0 %v32119_v38  ;;  %v32174_v38 = vld [vmem:[%s39439_s1 + $0x39e0] sm:$0xff]  ;;  %459 = vst [vmem:[#allocation1] ss:$4 sm:$0xff] %v92_v54  ;;  %v32217_v54 = vld [vmem:[%s39439_s1 + $0x3b38] sm:$0xff] }
 0x70b   :  { %21079 = vmatpush.bf16.msra.mxu1 %v32127_v39  ;;  %v32149_v39 = vld [vmem:[%s39439_s1 + $0x3918] sm:$0xff] }
 0x70c   :  { %21092 = vmatpush.bf16.msra.mxu2 %v32135_v40  ;;  %v32157_v40 = vld [vmem:[%s39439_s1 + $0x3958] sm:$0xff] }
 0x70d   :  { %21105 = vmatpush.bf16.msra.mxu3 %v32143_v41  ;;  %v32165_v41 = vld [vmem:[%s39439_s1 + $0x3998] sm:$0xff] }
 0x70e   :  { %21067 = vmatpush.bf16.msra.mxu0 %v32118_v44  ;;  %v20841_v4 = vpop.f32.mrf.mxu2  ;;  %v32173_v44 = vld [vmem:[%s39439_s1 + $0x39d8] sm:$0xff] }
 0x70f   :  { %21080 = vmatpush.bf16.msra.mxu1 %v32126_v46  ;;  %v20854_v6 = vpop.f32.mrf.mxu3  ;;  %v32201_v4 = vld [vmem:[%s39439_s1 + $0x3ab8] sm:$0xff] }
 0x710   :  { %21093 = vmatpush.bf16.msra.mxu2 %v32134_v47  ;;  %v458_v6 = vld.sshfl [vmem:[#allocation1 + $0x38] sm:$0xff pattern:$0x73625140] }
 0x711   :  { %21106 = vmatpush.bf16.msra.mxu3 %v32142_v49  ;;  %v1003_v11 = vpack.c.bf16 %v458_v6, %v458_v6  ;;  %v32223_v6 = vld [vmem:[%s39439_s1 + $0x3b68] sm:$0xff] }
 0x712   :  { %21068 = vmatpush.bf16.msra.mxu0 %v32117_v50  ;;  %v32156_v50 = vld [vmem:[%s39439_s1 + $0x3950] sm:$0xff] }
 0x713   :  { %21081 = vmatpush.bf16.msra.mxu1 %v32125_v51  ;;  %v32164_v51 = vld [vmem:[%s39439_s1 + $0x3990] sm:$0xff] }
 0x714   :  { %21094 = vmatpush.bf16.msra.mxu2 %v32133_v52  ;;  %v32172_v52 = vld [vmem:[%s39439_s1 + $0x39d0] sm:$0xff] }
 0x715   :  { %21107 = vmatpush.bf16.msra.mxu3 %v32141_v55  ;;  %v32155_v55 = vld [vmem:[%s39439_s1 + $0x3948] sm:$0xff] }
 0x716   :  { %21069 = vmatpush.bf16.msra.mxu0 %v32116_v59 }
 0x717   :  { %21082 = vmatpush.bf16.msra.mxu1 %v32124_v61  ;;  %v32154_v61 = vld [vmem:[%s39439_s1 + $0x3940] sm:$0xff] }
 0x718   :  { %21095 = vmatpush.bf16.msra.mxu2 %v32132_v62  ;;  %v32162_v62 = vld [vmem:[%s39439_s1 + $0x3980] sm:$0xff] }
 0x719   :  { %21108 = vmatpush.bf16.msra.mxu3 %v32140_v63  ;;  %v455_v63 = vld.sshfl [vmem:[#allocation1 + $0x20] sm:$0xff pattern:$0x73625140] }
 0x71a   :  { %21070 = vmatpush.bf16.msra.mxu0 %v32115_v0  ;;  %v457_v0 = vld.sshfl [vmem:[#allocation1 + $0x30] sm:$0xff pattern:$0x73625140] }
 0x71b   :  { %21083 = vmatpush.bf16.msra.mxu1 %v32123_v2  ;;  %v32193_v2 = vld [vmem:[%s39439_s1 + $0x3a78] sm:$0xff] }
 0x71c   :  { %21096 = vmatpush.bf16.msra.mxu2 %v32131_v3  ;;  %v456_v3 = vld.sshfl [vmem:[#allocation1 + $0x28] sm:$0xff pattern:$0x73625140] }
 0x71d   :  { %21109 = vmatpush.bf16.msra.mxu3 %v32139_v5  ;;  %v32170_v5 = vld [vmem:[%s39439_s1 + $0x39c0] sm:$0xff]  ;;  %v1001_v10 = vpack.c.bf16 %v456_v3, %v456_v3  ;;  %v32232_v3 = vld [vmem:[%s39439_s1 + $0x3bb0] sm:$0xff] }
 0x71e   :  { %21071 = vmatpush.bf16.msra.mxu0 %v32114_v7  ;;  %v20865_v31 = vpop.f32.mrf.mxu0  ;;  %v1000_v7 = vpack.c.bf16 %v455_v63, %v455_v63 }
 0x71f   :  { %21084 = vmatpush.bf16.msra.mxu1 %v32122_v8  ;;  %v20866_v32 = vadd.f32 %v20865_v31, %v38301_v58  ;;  %v20878_v34 = vpop.f32.mrf.mxu1  ;;  %v32171_v58 = vld [vmem:[%s39439_s1 + $0x39c8] sm:$0xff]  ;;  %v1002_v8 = vpack.c.bf16 %v457_v0, %v457_v0 }
 0x720   :  { %21097 = vmatpush.bf16.msra.mxu2 %v32130_v9  ;;  %v32209_v9 = vld [vmem:[%s39439_s1 + $0x3af8] sm:$0xff] }
 0x721   :  { %21110 = vmatpush.bf16.msra.mxu3 %v32138_v16  ;;  %21072 = vmatmul.bf16.vlgmr.msra.gmra.mxu0 %v996_v18  ;;  %v20879_v37 = vadd.f32 %v20878_v34, %v20866_v32  ;;  %v32183_v16 = vld [vmem:[%s39439_s1 + $0x3a28] sm:$0xff] }
 0x722   :  { %21116 = vmatpush.bf16.msrb.mxu0 %v32153_v12  ;;  %21085 = vmatmul.bf16.vlgmr.msra.gmra.mxu1 %v997_v21  ;;  %v32184_v12 = vld [vmem:[%s39439_s1 + $0x3a30] sm:$0xff]  ;;  %v32199_v18 = vld [vmem:[%s39439_s1 + $0x3aa8] sm:$0xff] }
 0x723   :  { %21129 = vmatpush.bf16.msrb.mxu1 %v32161_v13  ;;  %21098 = vmatmul.bf16.vlgmr.msra.gmra.mxu2 %v998_v19  ;;  %v32192_v13 = vld [vmem:[%s39439_s1 + $0x3a70] sm:$0xff]  ;;  %v32207_v19 = vld [vmem:[%s39439_s1 + $0x3ae8] sm:$0xff] }
 0x724   :  { %21142 = vmatpush.bf16.msrb.mxu2 %v32169_v15  ;;  %21111 = vmatmul.bf16.vlgmr.msra.gmra.mxu3 %v999_v22  ;;  %v32208_v15 = vld [vmem:[%s39439_s1 + $0x3af0] sm:$0xff]  ;;  %v32182_v22 = vld [vmem:[%s39439_s1 + $0x3a20] sm:$0xff] }
 0x725   :  { %21155 = vmatpush.bf16.msrb.mxu3 %v32177_v20 }
 0x726   :  { %21117 = vmatpush.bf16.msrb.mxu0 %v32152_v23  ;;  %v20891_v42 = vpop.f32.mrf.mxu2  ;;  %v20867_v46 = vpop.f32.mrf.mxu0 }
 0x727   :  { %21130 = vmatpush.bf16.msrb.mxu1 %v32160_v24  ;;  %v20892_v43 = vadd.f32 %v20891_v42, %v20879_v37  ;;  %v20904_v45 = vpop.f32.mrf.mxu3  ;;  %v20880_v49 = vpop.f32.mrf.mxu1  ;;  %v32190_v24 = vld [vmem:[%s39439_s1 + $0x3a60] sm:$0xff]  ;;  %v32180_v37 = vld [vmem:[%s39439_s1 + $0x3a10] sm:$0xff]  ;;  %v32179_v42 = vld [vmem:[%s39439_s1 + $0x3a08] sm:$0xff] }
 0x728   :  { %21143 = vmatpush.bf16.msrb.mxu2 %v32168_v25  ;;  %v32198_v25 = vld [vmem:[%s39439_s1 + $0x3aa0] sm:$0xff] }
 0x729   :  { %21156 = vmatpush.bf16.msrb.mxu3 %v32176_v26  ;;  %v38403_v47 = vadd.f32 %v20904_v45, %v20892_v43  ;;  %v93_v43 = vld [vmem:[%s39438_s0 + $0x1d8] sm:$0xff]  ;;  %v32195_v45 = vld [vmem:[%s39439_s1 + $0x3a88] sm:$0xff]  ;;  %v32178_v49 = vld [vmem:[%s39439_s1 + $0x3a00] sm:$0xff] }
 0x72a   :  { %21118 = vmatpush.bf16.msrb.mxu0 %v32151_v27  ;;  %v32206_v27 = vld [vmem:[%s39439_s1 + $0x3ae0] sm:$0xff]  ;;  %460 = vst [vmem:[#allocation1 + $0x20] ss:$4 sm:$0xff] %v93_v43  ;;  %v32249_v43 = vld [vmem:[%s39439_s1 + $0x3c38] sm:$0xff] }
 0x72b   :  { %21131 = vmatpush.bf16.msrb.mxu1 %v32159_v28  ;;  %v32181_v28 = vld [vmem:[%s39439_s1 + $0x3a18] sm:$0xff] }
 0x72c   :  { %21144 = vmatpush.bf16.msrb.mxu2 %v32167_v29  ;;  %v32189_v29 = vld [vmem:[%s39439_s1 + $0x3a58] sm:$0xff] }
 0x72d   :  { %21157 = vmatpush.bf16.msrb.mxu3 %v32175_v30  ;;  %v32197_v30 = vld [vmem:[%s39439_s1 + $0x3a98] sm:$0xff] }
 0x72e   :  { %21119 = vmatpush.bf16.msrb.mxu0 %v32150_v33  ;;  %v20893_v57 = vpop.f32.mrf.mxu2  ;;  %v32205_v33 = vld [vmem:[%s39439_s1 + $0x3ad8] sm:$0xff] }
 0x72f   :  { %21132 = vmatpush.bf16.msrb.mxu1 %v32158_v35  ;;  %v20906_v59 = vpop.f32.mrf.mxu3  ;;  %v32233_v57 = vld [vmem:[%s39439_s1 + $0x3bb8] sm:$0xff] }
 0x730   :  { %21145 = vmatpush.bf16.msrb.mxu2 %v32166_v36  ;;  %v464_v59 = vld.sshfl [vmem:[#allocation1 + $0x18] sm:$0xff pattern:$0x73625140] }
 0x731   :  { %21158 = vmatpush.bf16.msrb.mxu3 %v32174_v38  ;;  %v1007_v0 = vpack.c.bf16 %v464_v59, %v464_v59  ;;  %v32255_v59 = vld [vmem:[%s39439_s1 + $0x3c68] sm:$0xff] }
 0x732   :  { %21120 = vmatpush.bf16.msrb.mxu0 %v32149_v39  ;;  %v32188_v39 = vld [vmem:[%s39439_s1 + $0x3a50] sm:$0xff] }
 0x733   :  { %21133 = vmatpush.bf16.msrb.mxu1 %v32157_v40  ;;  %v32196_v40 = vld [vmem:[%s39439_s1 + $0x3a90] sm:$0xff] }
 0x734   :  { %21146 = vmatpush.bf16.msrb.mxu2 %v32165_v41  ;;  %v32204_v41 = vld [vmem:[%s39439_s1 + $0x3ad0] sm:$0xff] }
 0x735   :  { %21159 = vmatpush.bf16.msrb.mxu3 %v32173_v44  ;;  %v32187_v44 = vld [vmem:[%s39439_s1 + $0x3a48] sm:$0xff] }
 0x736   :  { %21121 = vmatpush.bf16.msrb.mxu0 %v32148_v48 }
 0x737   :  { %21134 = vmatpush.bf16.msrb.mxu1 %v32156_v50  ;;  %v32186_v50 = vld [vmem:[%s39439_s1 + $0x3a40] sm:$0xff] }
 0x738   :  { %21147 = vmatpush.bf16.msrb.mxu2 %v32164_v51  ;;  %v32194_v51 = vld [vmem:[%s39439_s1 + $0x3a80] sm:$0xff] }
 0x739   :  { %21160 = vmatpush.bf16.msrb.mxu3 %v32172_v52  ;;  %v461_v52 = vld.sshfl [vmem:[#allocation1] sm:$0xff pattern:$0x73625140] }
 0x73a   :  { %21122 = vmatpush.bf16.msrb.mxu0 %v32147_v53  ;;  %v463_v53 = vld.sshfl [vmem:[#allocation1 + $0x10] sm:$0xff pattern:$0x73625140] }
 0x73b   :  { %21135 = vmatpush.bf16.msrb.mxu1 %v32155_v55  ;;  %v32225_v55 = vld [vmem:[%s39439_s1 + $0x3b78] sm:$0xff] }
 0x73c   :  { %21148 = vmatpush.bf16.msrb.mxu2 %v32163_v56  ;;  %v462_v56 = vld.sshfl [vmem:[#allocation1 + $0x8] sm:$0xff pattern:$0x73625140] }
 0x73d   :  { %21161 = vmatpush.bf16.msrb.mxu3 %v32171_v58  ;;  %v32202_v58 = vld [vmem:[%s39439_s1 + $0x3ac0] sm:$0xff]  ;;  %v1005_v63 = vpack.c.bf16 %v462_v56, %v462_v56  ;;  %v32264_v56 = vld [vmem:[%s39439_s1 + $0x3cb0] sm:$0xff] }
 0x73e   :  { %21123 = vmatpush.bf16.msrb.mxu0 %v32146_v60  ;;  %v20917_v20 = vpop.f32.mrf.mxu0  ;;  %v1004_v60 = vpack.c.bf16 %v461_v52, %v461_v52 }
 0x73f   :  { %21136 = vmatpush.bf16.msrb.mxu1 %v32154_v61  ;;  %v20918_v21 = vadd.f32 %v20917_v20, %v38403_v47  ;;  %v20930_v23 = vpop.f32.mrf.mxu1  ;;  %v32203_v47 = vld [vmem:[%s39439_s1 + $0x3ac8] sm:$0xff]  ;;  %v1006_v61 = vpack.c.bf16 %v463_v53, %v463_v53 }
 0x740   :  { %21149 = vmatpush.bf16.msrb.mxu2 %v32162_v62  ;;  %v32241_v62 = vld [vmem:[%s39439_s1 + $0x3bf8] sm:$0xff] }
 0x741   :  { %21162 = vmatpush.bf16.msrb.mxu3 %v32170_v5  ;;  %21124 = vmatmul.bf16.vlgmr.msrb.gmra.mxu0 %v1000_v7  ;;  %v20931_v26 = vadd.f32 %v20930_v23, %v20918_v21  ;;  %v32215_v5 = vld [vmem:[%s39439_s1 + $0x3b28] sm:$0xff] }
 0x742   :  { %21168 = vmatpush.bf16.msra.mxu0 %v32185_v1  ;;  %21137 = vmatmul.bf16.vlgmr.msrb.gmra.mxu1 %v1001_v10  ;;  %v32216_v1 = vld [vmem:[%s39439_s1 + $0x3b30] sm:$0xff]  ;;  %v32231_v7 = vld [vmem:[%s39439_s1 + $0x3ba8] sm:$0xff] }
 0x743   :  { %21181 = vmatpush.bf16.msra.mxu1 %v32193_v2  ;;  %21150 = vmatmul.bf16.vlgmr.msrb.gmra.mxu2 %v1002_v8  ;;  %v32224_v2 = vld [vmem:[%s39439_s1 + $0x3b70] sm:$0xff]  ;;  %v32239_v8 = vld [vmem:[%s39439_s1 + $0x3be8] sm:$0xff] }
 0x744   :  { %21194 = vmatpush.bf16.msra.mxu2 %v32201_v4  ;;  %21163 = vmatmul.bf16.vlgmr.msrb.gmra.mxu3 %v1003_v11  ;;  %v32240_v4 = vld [vmem:[%s39439_s1 + $0x3bf0] sm:$0xff]  ;;  %v32214_v11 = vld [vmem:[%s39439_s1 + $0x3b20] sm:$0xff] }
 0x745   :  { %21207 = vmatpush.bf16.msra.mxu3 %v32209_v9 }
 0x746   :  { %21169 = vmatpush.bf16.msra.mxu0 %v32184_v12  ;;  %v20943_v31 = vpop.f32.mrf.mxu2  ;;  %v20919_v35 = vpop.f32.mrf.mxu0 }
 0x747   :  { %21182 = vmatpush.bf16.msra.mxu1 %v32192_v13  ;;  %v20944_v32 = vadd.f32 %v20943_v31, %v20931_v26  ;;  %v20956_v34 = vpop.f32.mrf.mxu3  ;;  %v20932_v38 = vpop.f32.mrf.mxu1  ;;  %v32222_v13 = vld [vmem:[%s39439_s1 + $0x3b60] sm:$0xff]  ;;  %v32212_v26 = vld [vmem:[%s39439_s1 + $0x3b10] sm:$0xff]  ;;  %v32211_v31 = vld [vmem:[%s39439_s1 + $0x3b08] sm:$0xff] }
 0x748   :  { %21195 = vmatpush.bf16.msra.mxu2 %v32200_v14  ;;  %v32230_v14 = vld [vmem:[%s39439_s1 + $0x3ba0] sm:$0xff] }
 0x749   :  { %21208 = vmatpush.bf16.msra.mxu3 %v32208_v15  ;;  %v38505_v36 = vadd.f32 %v20956_v34, %v20944_v32  ;;  %v94_v32 = vld [vmem:[%s39438_s0 + $0x1e0] sm:$0xff]  ;;  %v32227_v34 = vld [vmem:[%s39439_s1 + $0x3b88] sm:$0xff] }
 0x74a   :  { %21170 = vmatpush.bf16.msra.mxu0 %v32183_v16  ;;  %v32238_v16 = vld [vmem:[%s39439_s1 + $0x3be0] sm:$0xff]  ;;  %469 = vst [vmem:[#allocation1] ss:$4 sm:$0xff] %v94_v32  ;;  %v32289_v32 = vld [vmem:[%s39439_s1 + $0x3d78] sm:$0xff] }
 0x74b   :  { %21183 = vmatpush.bf16.msra.mxu1 %v32191_v17  ;;  %v32213_v17 = vld [vmem:[%s39439_s1 + $0x3b18] sm:$0xff]  ;;  %v32210_v38 = vld [vmem:[%s39439_s1 + $0x3b00] sm:$0xff] }
 0x74c   :  { %21196 = vmatpush.bf16.msra.mxu2 %v32199_v18  ;;  %v32221_v18 = vld [vmem:[%s39439_s1 + $0x3b58] sm:$0xff] }
 0x74d   :  { %21209 = vmatpush.bf16.msra.mxu3 %v32207_v19  ;;  %v32229_v19 = vld [vmem:[%s39439_s1 + $0x3b98] sm:$0xff] }
 0x74e   :  { %21171 = vmatpush.bf16.msra.mxu0 %v32182_v22  ;;  %v20945_v46 = vpop.f32.mrf.mxu2  ;;  %v32237_v22 = vld [vmem:[%s39439_s1 + $0x3bd8] sm:$0xff] }
 0x74f   :  { %21184 = vmatpush.bf16.msra.mxu1 %v32190_v24  ;;  %v20958_v48 = vpop.f32.mrf.mxu3  ;;  %v32265_v46 = vld [vmem:[%s39439_s1 + $0x3cb8] sm:$0xff] }
 0x750   :  { %21197 = vmatpush.bf16.msra.mxu2 %v32198_v25  ;;  %v468_v48 = vld.sshfl [vmem:[#allocation1 + $0x38] sm:$0xff pattern:$0x73625140] }
 0x751   :  { %21210 = vmatpush.bf16.msra.mxu3 %v32206_v27  ;;  %v1011_v53 = vpack.c.bf16 %v468_v48, %v468_v48  ;;  %v32295_v48 = vld [vmem:[%s39439_s1 + $0x3da8] sm:$0xff] }
 0x752   :  { %21172 = vmatpush.bf16.msra.mxu0 %v32181_v28  ;;  %v32220_v28 = vld [vmem:[%s39439_s1 + $0x3b50] sm:$0xff] }
 0x753   :  { %21185 = vmatpush.bf16.msra.mxu1 %v32189_v29  ;;  %v32228_v29 = vld [vmem:[%s39439_s1 + $0x3b90] sm:$0xff] }
 0x754   :  { %21198 = vmatpush.bf16.msra.mxu2 %v32197_v30  ;;  %v32236_v30 = vld [vmem:[%s39439_s1 + $0x3bd0] sm:$0xff] }
 0x755   :  { %21211 = vmatpush.bf16.msra.mxu3 %v32205_v33  ;;  %v32219_v33 = vld [vmem:[%s39439_s1 + $0x3b48] sm:$0xff] }
 0x756   :  { %21173 = vmatpush.bf16.msra.mxu0 %v32180_v37 }
 0x757   :  { %21186 = vmatpush.bf16.msra.mxu1 %v32188_v39  ;;  %v32218_v39 = vld [vmem:[%s39439_s1 + $0x3b40] sm:$0xff] }
 0x758   :  { %21199 = vmatpush.bf16.msra.mxu2 %v32196_v40  ;;  %v32226_v40 = vld [vmem:[%s39439_s1 + $0x3b80] sm:$0xff] }
 0x759   :  { %21212 = vmatpush.bf16.msra.mxu3 %v32204_v41  ;;  %v465_v41 = vld.sshfl [vmem:[#allocation1 + $0x20] sm:$0xff pattern:$0x73625140] }
 0x75a   :  { %21174 = vmatpush.bf16.msra.mxu0 %v32179_v42  ;;  %v467_v42 = vld.sshfl [vmem:[#allocation1 + $0x30] sm:$0xff pattern:$0x73625140] }
 0x75b   :  { %21187 = vmatpush.bf16.msra.mxu1 %v32187_v44  ;;  %v32257_v44 = vld [vmem:[%s39439_s1 + $0x3c78] sm:$0xff] }
 0x75c   :  { %21200 = vmatpush.bf16.msra.mxu2 %v32195_v45  ;;  %v466_v45 = vld.sshfl [vmem:[#allocation1 + $0x28] sm:$0xff pattern:$0x73625140] }
 0x75d   :  { %21213 = vmatpush.bf16.msra.mxu3 %v32203_v47  ;;  %v32234_v47 = vld [vmem:[%s39439_s1 + $0x3bc0] sm:$0xff]  ;;  %v1009_v52 = vpack.c.bf16 %v466_v45, %v466_v45  ;;  %v32304_v45 = vld [vmem:[%s39439_s1 + $0x3df0] sm:$0xff] }
 0x75e   :  { %21175 = vmatpush.bf16.msra.mxu0 %v32178_v49  ;;  %v20969_v9 = vpop.f32.mrf.mxu0  ;;  %v1008_v49 = vpack.c.bf16 %v465_v41, %v465_v41 }
 0x75f   :  { %21188 = vmatpush.bf16.msra.mxu1 %v32186_v50  ;;  %v20970_v10 = vadd.f32 %v20969_v9, %v38505_v36  ;;  %v20982_v12 = vpop.f32.mrf.mxu1  ;;  %v32235_v36 = vld [vmem:[%s39439_s1 + $0x3bc8] sm:$0xff]  ;;  %v1010_v50 = vpack.c.bf16 %v467_v42, %v467_v42  ;;  %v32280_v42 = vld [vmem:[%s39439_s1 + $0x3d30] sm:$0xff] }
 0x760   :  { %21201 = vmatpush.bf16.msra.mxu2 %v32194_v51  ;;  %v32273_v51 = vld [vmem:[%s39439_s1 + $0x3cf8] sm:$0xff] }
 0x761   :  { %21214 = vmatpush.bf16.msra.mxu3 %v32202_v58  ;;  %21176 = vmatmul.bf16.vlgmr.msra.gmra.mxu0 %v1004_v60  ;;  %v20983_v15 = vadd.f32 %v20982_v12, %v20970_v10  ;;  %v32247_v58 = vld [vmem:[%s39439_s1 + $0x3c28] sm:$0xff] }
 0x762   :  { %21220 = vmatpush.bf16.msrb.mxu0 %v32217_v54  ;;  %21189 = vmatmul.bf16.vlgmr.msra.gmra.mxu1 %v1005_v63  ;;  %v32248_v54 = vld [vmem:[%s39439_s1 + $0x3c30] sm:$0xff]  ;;  %v32263_v60 = vld [vmem:[%s39439_s1 + $0x3ca8] sm:$0xff] }
 0x763   :  { %21233 = vmatpush.bf16.msrb.mxu1 %v32225_v55  ;;  %21202 = vmatmul.bf16.vlgmr.msra.gmra.mxu2 %v1006_v61  ;;  %v32256_v55 = vld [vmem:[%s39439_s1 + $0x3c70] sm:$0xff]  ;;  %v32271_v61 = vld [vmem:[%s39439_s1 + $0x3ce8] sm:$0xff] }
 0x764   :  { %21246 = vmatpush.bf16.msrb.mxu2 %v32233_v57  ;;  %21215 = vmatmul.bf16.vlgmr.msra.gmra.mxu3 %v1007_v0  ;;  %v32272_v57 = vld [vmem:[%s39439_s1 + $0x3cf0] sm:$0xff]  ;;  %v32246_v0 = vld [vmem:[%s39439_s1 + $0x3c20] sm:$0xff] }
 0x765   :  { %21259 = vmatpush.bf16.msrb.mxu3 %v32241_v62 }
 0x766   :  { %21221 = vmatpush.bf16.msrb.mxu0 %v32216_v1  ;;  %v20995_v20 = vpop.f32.mrf.mxu2  ;;  %v20971_v24 = vpop.f32.mrf.mxu0 }
 0x767   :  { %21234 = vmatpush.bf16.msrb.mxu1 %v32224_v2  ;;  %v20996_v21 = vadd.f32 %v20995_v20, %v20983_v15  ;;  %v21008_v23 = vpop.f32.mrf.mxu3  ;;  %v20984_v27 = vpop.f32.mrf.mxu1  ;;  %v32254_v2 = vld [vmem:[%s39439_s1 + $0x3c60] sm:$0xff]  ;;  %v95_v20 = vld [vmem:[%s39438_s0 + $0x1e8] sm:$0xff] }
 0x768   :  { %21247 = vmatpush.bf16.msrb.mxu2 %v32232_v3  ;;  %v32262_v3 = vld [vmem:[%s39439_s1 + $0x3ca0] sm:$0xff]  ;;  %470 = vst [vmem:[#allocation1 + $0x20] ss:$4 sm:$0xff] %v95_v20  ;;  %v32267_v24 = vld [vmem:[%s39439_s1 + $0x3cc8] sm:$0xff] }
 0x769   :  { %21260 = vmatpush.bf16.msrb.mxu3 %v32240_v4  ;;  %v38607_v25 = vadd.f32 %v21008_v23, %v20996_v21  ;;  %v32251_v21 = vld [vmem:[%s39439_s1 + $0x3c48] sm:$0xff]  ;;  %v32250_v27 = vld [vmem:[%s39439_s1 + $0x3c40] sm:$0xff] }
 0x76a   :  { %21222 = vmatpush.bf16.msrb.mxu0 %v32215_v5  ;;  %v32270_v5 = vld [vmem:[%s39439_s1 + $0x3ce0] sm:$0xff] }
 0x76b   :  { %21235 = vmatpush.bf16.msrb.mxu1 %v32223_v6  ;;  %v32245_v6 = vld [vmem:[%s39439_s1 + $0x3c18] sm:$0xff] }
 0x76c   :  { %21248 = vmatpush.bf16.msrb.mxu2 %v32231_v7  ;;  %v32253_v7 = vld [vmem:[%s39439_s1 + $0x3c58] sm:$0xff] }
 0x76d   :  { %21261 = vmatpush.bf16.msrb.mxu3 %v32239_v8  ;;  %v32261_v8 = vld [vmem:[%s39439_s1 + $0x3c98] sm:$0xff] }
 0x76e   :  { %21223 = vmatpush.bf16.msrb.mxu0 %v32214_v11  ;;  %v20997_v35 = vpop.f32.mrf.mxu2  ;;  %v32269_v11 = vld [vmem:[%s39439_s1 + $0x3cd8] sm:$0xff] }
 0x76f   :  { %21236 = vmatpush.bf16.msrb.mxu1 %v32222_v13  ;;  %v21010_v37 = vpop.f32.mrf.mxu3  ;;  %v32266_v35 = vld [vmem:[%s39439_s1 + $0x3cc0] sm:$0xff]  ;;  %v477_v20 = vld.sshfl [vmem:[#allocation1 + $0x30] sm:$0xff pattern:$0x73625140] }
 0x770   :  { %21249 = vmatpush.bf16.msrb.mxu2 %v32230_v14  ;;  %v32244_v14 = vld [vmem:[%s39439_s1 + $0x3c10] sm:$0xff] }
 0x771   :  { %21262 = vmatpush.bf16.msrb.mxu3 %v32238_v16  ;;  %v32252_v16 = vld [vmem:[%s39439_s1 + $0x3c50] sm:$0xff] }
 0x772   :  { %21224 = vmatpush.bf16.msrb.mxu0 %v32213_v17  ;;  %v32260_v17 = vld [vmem:[%s39439_s1 + $0x3c90] sm:$0xff] }
 0x773   :  { %21237 = vmatpush.bf16.msrb.mxu1 %v32221_v18  ;;  %v32268_v18 = vld [vmem:[%s39439_s1 + $0x3cd0] sm:$0xff] }
 0x774   :  { %21250 = vmatpush.bf16.msrb.mxu2 %v32229_v19  ;;  %v32243_v19 = vld [vmem:[%s39439_s1 + $0x3c08] sm:$0xff] }
 0x775   :  { %21263 = vmatpush.bf16.msrb.mxu3 %v32237_v22  ;;  %v32259_v22 = vld [vmem:[%s39439_s1 + $0x3c88] sm:$0xff] }
 0x776   :  { %21225 = vmatpush.bf16.msrb.mxu0 %v32212_v26  ;;  %v32242_v26 = vld [vmem:[%s39439_s1 + $0x3c00] sm:$0xff] }
 0x777   :  { %21238 = vmatpush.bf16.msrb.mxu1 %v32220_v28  ;;  %v32258_v28 = vld [vmem:[%s39439_s1 + $0x3c80] sm:$0xff] }
 0x778   :  { %21251 = vmatpush.bf16.msrb.mxu2 %v32228_v29  ;;  %v471_v29 = vld.sshfl [vmem:[#allocation1] sm:$0xff pattern:$0x73625140] }
 0x779   :  { %21264 = vmatpush.bf16.msrb.mxu3 %v32236_v30  ;;  %v473_v30 = vld.sshfl [vmem:[#allocation1 + $0x10] sm:$0xff pattern:$0x73625140]  ;;  %v1012_v37 = vpack.c.bf16 %v471_v29, %v471_v29  ;;  %v32337_v29 = vld [vmem:[%s39439_s1 + $0x3ef8] sm:$0xff] }
 0x77a   :  { %21226 = vmatpush.bf16.msrb.mxu0 %v32211_v31  ;;  %v32281_v31 = vld [vmem:[%s39439_s1 + $0x3d38] sm:$0xff] }
 0x77b   :  { %21239 = vmatpush.bf16.msrb.mxu1 %v32219_v33  ;;  %v472_v33 = vld.sshfl [vmem:[#allocation1 + $0x8] sm:$0xff pattern:$0x73625140] }
 0x77c   :  { %21252 = vmatpush.bf16.msrb.mxu2 %v32227_v34  ;;  %v32297_v34 = vld [vmem:[%s39439_s1 + $0x3db8] sm:$0xff] }
 0x77d   :  { %21265 = vmatpush.bf16.msrb.mxu3 %v32235_v36  ;;  %v474_v36 = vld.sshfl [vmem:[#allocation1 + $0x18] sm:$0xff pattern:$0x73625140] }
 0x77e   :  { %21227 = vmatpush.bf16.msrb.mxu0 %v32210_v38  ;;  %v21021_v62 = vpop.f32.mrf.mxu0  ;;  %v1014_v38 = vpack.c.bf16 %v473_v30, %v473_v30  ;;  %v1015_v41 = vpack.c.bf16 %v474_v36, %v474_v36  ;;  %v32311_v36 = vld [vmem:[%s39439_s1 + $0x3e28] sm:$0xff] }
 0x77f   :  { %21240 = vmatpush.bf16.msrb.mxu1 %v32218_v39  ;;  %v21022_v63 = vadd.f32 %v21021_v62, %v38607_v25  ;;  %v21034_v1 = vpop.f32.mrf.mxu1  ;;  %v32305_v39 = vld [vmem:[%s39439_s1 + $0x3df8] sm:$0xff] }
 0x780   :  { %21253 = vmatpush.bf16.msrb.mxu2 %v32226_v40  ;;  %v1013_v40 = vpack.c.bf16 %v472_v33, %v472_v33  ;;  %v32320_v33 = vld [vmem:[%s39439_s1 + $0x3e70] sm:$0xff] }
 0x781   :  { %21266 = vmatpush.bf16.msrb.mxu3 %v32234_v47  ;;  %21228 = vmatmul.bf16.vlgmr.msrb.gmra.mxu0 %v1008_v49  ;;  %v21035_v4 = vadd.f32 %v21034_v1, %v21022_v63  ;;  %v32287_v47 = vld [vmem:[%s39439_s1 + $0x3d68] sm:$0xff] }
 0x782   :  { %21272 = vmatpush.bf16.msra.mxu0 %v32249_v43  ;;  %21241 = vmatmul.bf16.vlgmr.msrb.gmra.mxu1 %v1009_v52  ;;  %v32288_v43 = vld [vmem:[%s39439_s1 + $0x3d70] sm:$0xff] }
 0x783   :  { %21285 = vmatpush.bf16.msra.mxu1 %v32257_v44  ;;  %21254 = vmatmul.bf16.vlgmr.msrb.gmra.mxu2 %v1010_v50  ;;  %v32296_v44 = vld [vmem:[%s39439_s1 + $0x3db0] sm:$0xff]  ;;  %v32303_v50 = vld [vmem:[%s39439_s1 + $0x3de8] sm:$0xff] }
 0x784   :  { %21298 = vmatpush.bf16.msra.mxu2 %v32265_v46  ;;  %21267 = vmatmul.bf16.vlgmr.msrb.gmra.mxu3 %v1011_v53  ;;  %v32279_v46 = vld [vmem:[%s39439_s1 + $0x3d28] sm:$0xff]  ;;  %v32278_v53 = vld [vmem:[%s39439_s1 + $0x3d20] sm:$0xff] }
 0x785   :  { %21311 = vmatpush.bf16.msra.mxu3 %v32273_v51 }
 0x786   :  { %21273 = vmatpush.bf16.msra.mxu0 %v32248_v54  ;;  %v21047_v9 = vpop.f32.mrf.mxu2  ;;  %v21023_v13 = vpop.f32.mrf.mxu0 }
 0x787   :  { %21286 = vmatpush.bf16.msra.mxu1 %v32256_v55  ;;  %v38706_v10 = vadd.f32 %v21047_v9, %v21035_v4  ;;  %v38711_v12 = vpop.f32.mrf.mxu3  ;;  %v21036_v15 = vpop.f32.mrf.mxu1  ;;  %v32286_v55 = vld [vmem:[%s39439_s1 + $0x3d60] sm:$0xff]  ;;  %v32276_v4 = vld [vmem:[%s39439_s1 + $0x3d10] sm:$0xff]  ;;  %v32275_v9 = vld [vmem:[%s39439_s1 + $0x3d08] sm:$0xff] }
 0x788   :  { %21299 = vmatpush.bf16.msra.mxu2 %v32264_v56  ;;  %v32294_v56 = vld [vmem:[%s39439_s1 + $0x3da0] sm:$0xff] }
 0x789   :  { %21312 = vmatpush.bf16.msra.mxu3 %v32272_v57  ;;  %v21061_v49 = vadd.f32 %v38711_v12, %v38706_v10  ;;  %v96_v10 = vld [vmem:[%s39438_s0 + $0x1f0] sm:$0xff]  ;;  %v32291_v12 = vld [vmem:[%s39439_s1 + $0x3d88] sm:$0xff] }
 0x78a   :  { %21274 = vmatpush.bf16.msra.mxu0 %v32247_v58  ;;  %v32302_v58 = vld [vmem:[%s39439_s1 + $0x3de0] sm:$0xff]  ;;  %479 = vst [vmem:[#allocation1] ss:$4 sm:$0xff] %v96_v10  ;;  %v32345_v10 = vld [vmem:[%s39439_s1 + $0x3f38] sm:$0xff] }
 0x78b   :  { %21287 = vmatpush.bf16.msra.mxu1 %v32255_v59  ;;  %v32277_v59 = vld [vmem:[%s39439_s1 + $0x3d18] sm:$0xff] }
 0x78c   :  { %21300 = vmatpush.bf16.msra.mxu2 %v32263_v60  ;;  %v32285_v60 = vld [vmem:[%s39439_s1 + $0x3d58] sm:$0xff] }
 0x78d   :  { %21313 = vmatpush.bf16.msra.mxu3 %v32271_v61  ;;  %v32293_v61 = vld [vmem:[%s39439_s1 + $0x3d98] sm:$0xff] }
 0x78e   :  { %21275 = vmatpush.bf16.msra.mxu0 %v32246_v0  ;;  %v21049_v23 = vpop.f32.mrf.mxu2  ;;  %v32301_v0 = vld [vmem:[%s39439_s1 + $0x3dd8] sm:$0xff] }
 0x78f   :  { %21288 = vmatpush.bf16.msra.mxu1 %v32254_v2  ;;  %v21062_v25 = vpop.f32.mrf.mxu3  ;;  %v476_v23 = vld.sshfl [vmem:[#allocation1 + $0x28] sm:$0xff pattern:$0x73625140] }
 0x790   :  { %21301 = vmatpush.bf16.msra.mxu2 %v32262_v3  ;;  %v32298_v25 = vld [vmem:[%s39439_s1 + $0x3dc0] sm:$0xff]  ;;  %v1017_v30 = vpack.c.bf16 %v476_v23, %v476_v23  ;;  %v32360_v23 = vld [vmem:[%s39439_s1 + $0x3fb0] sm:$0xff] }
 0x791   :  { %21314 = vmatpush.bf16.msra.mxu3 %v32270_v5 }
 0x792   :  { %21276 = vmatpush.bf16.msra.mxu0 %v32245_v6  ;;  %v32284_v6 = vld [vmem:[%s39439_s1 + $0x3d50] sm:$0xff] }
 0x793   :  { %21289 = vmatpush.bf16.msra.mxu1 %v32253_v7  ;;  %v32292_v7 = vld [vmem:[%s39439_s1 + $0x3d90] sm:$0xff] }
 0x794   :  { %21302 = vmatpush.bf16.msra.mxu2 %v32261_v8  ;;  %v32300_v8 = vld [vmem:[%s39439_s1 + $0x3dd0] sm:$0xff] }
 0x795   :  { %21315 = vmatpush.bf16.msra.mxu3 %v32269_v11  ;;  %v32283_v11 = vld [vmem:[%s39439_s1 + $0x3d48] sm:$0xff] }
 0x796   :  { %21277 = vmatpush.bf16.msra.mxu0 %v32244_v14  ;;  %v32299_v14 = vld [vmem:[%s39439_s1 + $0x3dc8] sm:$0xff] }
 0x797   :  { %21290 = vmatpush.bf16.msra.mxu1 %v32252_v16  ;;  %v32274_v16 = vld [vmem:[%s39439_s1 + $0x3d00] sm:$0xff] }
 0x798   :  { %21303 = vmatpush.bf16.msra.mxu2 %v32260_v17  ;;  %v32282_v17 = vld [vmem:[%s39439_s1 + $0x3d40] sm:$0xff] }
 0x799   :  { %21316 = vmatpush.bf16.msra.mxu3 %v32268_v18  ;;  %v32290_v18 = vld [vmem:[%s39439_s1 + $0x3d80] sm:$0xff] }
 0x79a   :  { %21278 = vmatpush.bf16.msra.mxu0 %v32243_v19  ;;  %v475_v19 = vld.sshfl [vmem:[#allocation1 + $0x20] sm:$0xff pattern:$0x73625140] }
 0x79b   :  { %21291 = vmatpush.bf16.msra.mxu1 %v32251_v21  ;;  %v32313_v21 = vld [vmem:[%s39439_s1 + $0x3e38] sm:$0xff] }
 0x79c   :  { %21304 = vmatpush.bf16.msra.mxu2 %v32259_v22  ;;  %v32321_v22 = vld [vmem:[%s39439_s1 + $0x3e78] sm:$0xff] }
 0x79d   :  { %21317 = vmatpush.bf16.msra.mxu3 %v32267_v24  ;;  %v32329_v24 = vld [vmem:[%s39439_s1 + $0x3eb8] sm:$0xff] }
 0x79e   :  { %21279 = vmatpush.bf16.msra.mxu0 %v32242_v26  ;;  %v21073_v51 = vpop.f32.mrf.mxu0  ;;  %v478_v26 = vld.sshfl [vmem:[#allocation1 + $0x38] sm:$0xff pattern:$0x73625140] }
 0x79f   :  { %21292 = vmatpush.bf16.msra.mxu1 %v32250_v27  ;;  %v21074_v52 = vadd.f32 %v21073_v51, %v21061_v49  ;;  %v21086_v54 = vpop.f32.mrf.mxu1  ;;  %v1016_v27 = vpack.c.bf16 %v475_v19, %v475_v19  ;;  %v32317_v49 = vld [vmem:[%s39439_s1 + $0x3e58] sm:$0xff] }
 0x7a0   :  { %21305 = vmatpush.bf16.msra.mxu2 %v32258_v28  ;;  %v1018_v28 = vpack.c.bf16 %v477_v20, %v477_v20 }
 0x7a1   :  { %21318 = vmatpush.bf16.msra.mxu3 %v32266_v35  ;;  %21280 = vmatmul.bf16.vlgmr.msra.gmra.mxu0 %v1012_v37  ;;  %v21087_v57 = vadd.f32 %v21086_v54, %v21074_v52  ;;  %v32336_v35 = vld [vmem:[%s39439_s1 + $0x3ef0] sm:$0xff]  ;;  %v32319_v37 = vld [vmem:[%s39439_s1 + $0x3e68] sm:$0xff] }
 0x7a2   :  { %21324 = vmatpush.bf16.msrb.mxu0 %v32281_v31  ;;  %21293 = vmatmul.bf16.vlgmr.msra.gmra.mxu1 %v1013_v40  ;;  %v1019_v31 = vpack.c.bf16 %v478_v26, %v478_v26  ;;  %v32351_v26 = vld [vmem:[%s39439_s1 + $0x3f68] sm:$0xff] }
 0x7a3   :  { %21337 = vmatpush.bf16.msrb.mxu1 %v32289_v32  ;;  %21306 = vmatmul.bf16.vlgmr.msra.gmra.mxu2 %v1014_v38  ;;  %v32312_v32 = vld [vmem:[%s39439_s1 + $0x3e30] sm:$0xff]  ;;  %v32327_v38 = vld [vmem:[%s39439_s1 + $0x3ea8] sm:$0xff] }
 0x7a4   :  { %21350 = vmatpush.bf16.msrb.mxu2 %v32297_v34  ;;  %21319 = vmatmul.bf16.vlgmr.msra.gmra.mxu3 %v1015_v41  ;;  %v32328_v34 = vld [vmem:[%s39439_s1 + $0x3eb0] sm:$0xff] }
 0x7a5   :  { %21363 = vmatpush.bf16.msrb.mxu3 %v32305_v39  ;;  %v32335_v39 = vld [vmem:[%s39439_s1 + $0x3ee8] sm:$0xff] }
 0x7a6   :  { %21325 = vmatpush.bf16.msrb.mxu0 %v32280_v42  ;;  %v21099_v62 = vpop.f32.mrf.mxu2  ;;  %v21075_v2 = vpop.f32.mrf.mxu0  ;;  %v32310_v42 = vld [vmem:[%s39439_s1 + $0x3e20] sm:$0xff] }
 0x7a7   :  { %21338 = vmatpush.bf16.msrb.mxu1 %v32288_v43  ;;  %v21100_v63 = vadd.f32 %v21099_v62, %v21087_v57  ;;  %v21112_v1 = vpop.f32.mrf.mxu3  ;;  %v21088_v5 = vpop.f32.mrf.mxu1  ;;  %v32308_v57 = vld [vmem:[%s39439_s1 + $0x3e10] sm:$0xff]  ;;  %v32307_v62 = vld [vmem:[%s39439_s1 + $0x3e08] sm:$0xff] }
 0x7a8   :  { %21351 = vmatpush.bf16.msrb.mxu2 %v32296_v44  ;;  %v32318_v44 = vld [vmem:[%s39439_s1 + $0x3e60] sm:$0xff] }
 0x7a9   :  { %21364 = vmatpush.bf16.msrb.mxu3 %v32304_v45  ;;  %v38814_v3 = vadd.f32 %v21112_v1, %v21100_v63  ;;  %v32326_v45 = vld [vmem:[%s39439_s1 + $0x3ea0] sm:$0xff]  ;;  %v97_v63 = vld [vmem:[%s39438_s0 + $0x1f8] sm:$0xff]  ;;  %v32323_v1 = vld [vmem:[%s39439_s1 + $0x3e88] sm:$0xff] }
 0x7aa   :  { %21326 = vmatpush.bf16.msrb.mxu0 %v32279_v46  ;;  %480 = vst [vmem:[#allocation1 + $0x20] ss:$4 sm:$0xff] %v97_v63  ;;  %v32306_v5 = vld [vmem:[%s39439_s1 + $0x3e00] sm:$0xff]  ;;  %v32377_v63 = vld [vmem:[%s39439_s1 + $0x4038] sm:$0xff] }
 0x7ab   :  { %21339 = vmatpush.bf16.msrb.mxu1 %v32287_v47  ;;  %v32334_v47 = vld [vmem:[%s39439_s1 + $0x3ee0] sm:$0xff] }
 0x7ac   :  { %21352 = vmatpush.bf16.msrb.mxu2 %v32295_v48  ;;  %v32309_v48 = vld [vmem:[%s39439_s1 + $0x3e18] sm:$0xff] }
 0x7ad   :  { %21365 = vmatpush.bf16.msrb.mxu3 %v32303_v50  ;;  %v32325_v50 = vld [vmem:[%s39439_s1 + $0x3e98] sm:$0xff] }
 0x7ae   :  { %21327 = vmatpush.bf16.msrb.mxu0 %v32278_v53  ;;  %v21101_v13 = vpop.f32.mrf.mxu2  ;;  %v32333_v53 = vld [vmem:[%s39439_s1 + $0x3ed8] sm:$0xff] }
 0x7af   :  { %21340 = vmatpush.bf16.msrb.mxu1 %v32286_v55  ;;  %v21114_v15 = vpop.f32.mrf.mxu3  ;;  %v32361_v13 = vld [vmem:[%s39439_s1 + $0x3fb8] sm:$0xff] }
 0x7b0   :  { %21353 = vmatpush.bf16.msrb.mxu2 %v32294_v56  ;;  %v484_v15 = vld.sshfl [vmem:[#allocation1 + $0x18] sm:$0xff pattern:$0x73625140] }
 0x7b1   :  { %21366 = vmatpush.bf16.msrb.mxu3 %v32302_v58  ;;  %v1023_v20 = vpack.c.bf16 %v484_v15, %v484_v15  ;;  %v32383_v15 = vld [vmem:[%s39439_s1 + $0x4068] sm:$0xff] }
 0x7b2   :  { %21328 = vmatpush.bf16.msrb.mxu0 %v32277_v59  ;;  %v32316_v59 = vld [vmem:[%s39439_s1 + $0x3e50] sm:$0xff] }
 0x7b3   :  { %21341 = vmatpush.bf16.msrb.mxu1 %v32285_v60  ;;  %v32324_v60 = vld [vmem:[%s39439_s1 + $0x3e90] sm:$0xff] }
 0x7b4   :  { %21354 = vmatpush.bf16.msrb.mxu2 %v32293_v61  ;;  %v32332_v61 = vld [vmem:[%s39439_s1 + $0x3ed0] sm:$0xff] }
 0x7b5   :  { %21367 = vmatpush.bf16.msrb.mxu3 %v32301_v0  ;;  %v32315_v0 = vld [vmem:[%s39439_s1 + $0x3e48] sm:$0xff] }
 0x7b6   :  { %21329 = vmatpush.bf16.msrb.mxu0 %v32276_v4 }
 0x7b7   :  { %21342 = vmatpush.bf16.msrb.mxu1 %v32284_v6  ;;  %v32314_v6 = vld [vmem:[%s39439_s1 + $0x3e40] sm:$0xff] }
 0x7b8   :  { %21355 = vmatpush.bf16.msrb.mxu2 %v32292_v7  ;;  %v32322_v7 = vld [vmem:[%s39439_s1 + $0x3e80] sm:$0xff] }
 0x7b9   :  { %21368 = vmatpush.bf16.msrb.mxu3 %v32300_v8  ;;  %v481_v8 = vld.sshfl [vmem:[#allocation1] sm:$0xff pattern:$0x73625140] }
 0x7ba   :  { %21330 = vmatpush.bf16.msrb.mxu0 %v32275_v9  ;;  %v483_v9 = vld.sshfl [vmem:[#allocation1 + $0x10] sm:$0xff pattern:$0x73625140] }
 0x7bb   :  { %21343 = vmatpush.bf16.msrb.mxu1 %v32283_v11  ;;  %v32353_v11 = vld [vmem:[%s39439_s1 + $0x3f78] sm:$0xff] }
 0x7bc   :  { %21356 = vmatpush.bf16.msrb.mxu2 %v32291_v12  ;;  %v482_v12 = vld.sshfl [vmem:[#allocation1 + $0x8] sm:$0xff pattern:$0x73625140] }
 0x7bd   :  { %21369 = vmatpush.bf16.msrb.mxu3 %v32299_v14  ;;  %v32330_v14 = vld [vmem:[%s39439_s1 + $0x3ec0] sm:$0xff]  ;;  %v1021_v19 = vpack.c.bf16 %v482_v12, %v482_v12  ;;  %v32392_v12 = vld [vmem:[%s39439_s1 + $0x40b0] sm:$0xff] }
 0x7be   :  { %21331 = vmatpush.bf16.msrb.mxu0 %v32274_v16  ;;  %v21125_v40 = vpop.f32.mrf.mxu0  ;;  %v1020_v16 = vpack.c.bf16 %v481_v8, %v481_v8 }
 0x7bf   :  { %21344 = vmatpush.bf16.msrb.mxu1 %v32282_v17  ;;  %v21126_v41 = vadd.f32 %v21125_v40, %v38814_v3  ;;  %v21138_v43 = vpop.f32.mrf.mxu1  ;;  %v32331_v3 = vld [vmem:[%s39439_s1 + $0x3ec8] sm:$0xff]  ;;  %v1022_v17 = vpack.c.bf16 %v483_v9, %v483_v9 }
 0x7c0   :  { %21357 = vmatpush.bf16.msrb.mxu2 %v32290_v18  ;;  %v32369_v18 = vld [vmem:[%s39439_s1 + $0x3ff8] sm:$0xff] }
 0x7c1   :  { %21370 = vmatpush.bf16.msrb.mxu3 %v32298_v25  ;;  %21332 = vmatmul.bf16.vlgmr.msrb.gmra.mxu0 %v1016_v27  ;;  %v21139_v46 = vadd.f32 %v21138_v43, %v21126_v41  ;;  %v32343_v25 = vld [vmem:[%s39439_s1 + $0x3f28] sm:$0xff] }
 0x7c2   :  { %21376 = vmatpush.bf16.msra.mxu0 %v32313_v21  ;;  %21345 = vmatmul.bf16.vlgmr.msrb.gmra.mxu1 %v1017_v30  ;;  %v32344_v21 = vld [vmem:[%s39439_s1 + $0x3f30] sm:$0xff]  ;;  %v32359_v27 = vld [vmem:[%s39439_s1 + $0x3fa8] sm:$0xff] }
 0x7c3   :  { %21389 = vmatpush.bf16.msra.mxu1 %v32321_v22  ;;  %21358 = vmatmul.bf16.vlgmr.msrb.gmra.mxu2 %v1018_v28  ;;  %v32352_v22 = vld [vmem:[%s39439_s1 + $0x3f70] sm:$0xff]  ;;  %v32367_v28 = vld [vmem:[%s39439_s1 + $0x3fe8] sm:$0xff] }
 0x7c4   :  { %21402 = vmatpush.bf16.msra.mxu2 %v32329_v24  ;;  %21371 = vmatmul.bf16.vlgmr.msrb.gmra.mxu3 %v1019_v31  ;;  %v32368_v24 = vld [vmem:[%s39439_s1 + $0x3ff0] sm:$0xff]  ;;  %v32342_v31 = vld [vmem:[%s39439_s1 + $0x3f20] sm:$0xff] }
 0x7c5   :  { %21415 = vmatpush.bf16.msra.mxu3 %v32337_v29 }
 0x7c6   :  { %21377 = vmatpush.bf16.msra.mxu0 %v32312_v32  ;;  %v21151_v51 = vpop.f32.mrf.mxu2  ;;  %v21127_v55 = vpop.f32.mrf.mxu0 }
 0x7c7   :  { %21390 = vmatpush.bf16.msra.mxu1 %v32320_v33  ;;  %v21152_v52 = vadd.f32 %v21151_v51, %v21139_v46  ;;  %v21164_v54 = vpop.f32.mrf.mxu3  ;;  %v21140_v58 = vpop.f32.mrf.mxu1  ;;  %v32350_v33 = vld [vmem:[%s39439_s1 + $0x3f60] sm:$0xff]  ;;  %v32340_v46 = vld [vmem:[%s39439_s1 + $0x3f10] sm:$0xff]  ;;  %v32339_v51 = vld [vmem:[%s39439_s1 + $0x3f08] sm:$0xff] }
 0x7c8   :  { %21403 = vmatpush.bf16.msra.mxu2 %v32328_v34  ;;  %v32358_v34 = vld [vmem:[%s39439_s1 + $0x3fa0] sm:$0xff] }
 0x7c9   :  { %21416 = vmatpush.bf16.msra.mxu3 %v32336_v35  ;;  %v38916_v56 = vadd.f32 %v21164_v54, %v21152_v52  ;;  %v98_v52 = vld [vmem:[%s39438_s0 + $0x200] sm:$0xff]  ;;  %v32355_v54 = vld [vmem:[%s39439_s1 + $0x3f88] sm:$0xff] }
 0x7ca   :  { %21378 = vmatpush.bf16.msra.mxu0 %v32311_v36  ;;  %v32366_v36 = vld [vmem:[%s39439_s1 + $0x3fe0] sm:$0xff]  ;;  %489 = vst [vmem:[#allocation1] ss:$4 sm:$0xff] %v98_v52  ;;  %v32409_v52 = vld [vmem:[%s39439_s1 + $0x4138] sm:$0xff] }
 0x7cb   :  { %21391 = vmatpush.bf16.msra.mxu1 %v32319_v37  ;;  %v32341_v37 = vld [vmem:[%s39439_s1 + $0x3f18] sm:$0xff]  ;;  %v32338_v58 = vld [vmem:[%s39439_s1 + $0x3f00] sm:$0xff] }
 0x7cc   :  { %21404 = vmatpush.bf16.msra.mxu2 %v32327_v38  ;;  %v32349_v38 = vld [vmem:[%s39439_s1 + $0x3f58] sm:$0xff] }
 0x7cd   :  { %21417 = vmatpush.bf16.msra.mxu3 %v32335_v39  ;;  %v32357_v39 = vld [vmem:[%s39439_s1 + $0x3f98] sm:$0xff] }
 0x7ce   :  { %21379 = vmatpush.bf16.msra.mxu0 %v32310_v42  ;;  %v21153_v2 = vpop.f32.mrf.mxu2  ;;  %v32365_v42 = vld [vmem:[%s39439_s1 + $0x3fd8] sm:$0xff] }
 0x7cf   :  { %21392 = vmatpush.bf16.msra.mxu1 %v32318_v44  ;;  %v21166_v4 = vpop.f32.mrf.mxu3  ;;  %v32393_v2 = vld [vmem:[%s39439_s1 + $0x40b8] sm:$0xff] }
 0x7d0   :  { %21405 = vmatpush.bf16.msra.mxu2 %v32326_v45  ;;  %v488_v4 = vld.sshfl [vmem:[#allocation1 + $0x38] sm:$0xff pattern:$0x73625140] }
 0x7d1   :  { %21418 = vmatpush.bf16.msra.mxu3 %v32334_v47  ;;  %v1027_v9 = vpack.c.bf16 %v488_v4, %v488_v4  ;;  %v32415_v4 = vld [vmem:[%s39439_s1 + $0x4168] sm:$0xff] }
 0x7d2   :  { %21380 = vmatpush.bf16.msra.mxu0 %v32309_v48  ;;  %v32348_v48 = vld [vmem:[%s39439_s1 + $0x3f50] sm:$0xff] }
 0x7d3   :  { %21393 = vmatpush.bf16.msra.mxu1 %v32317_v49  ;;  %v32356_v49 = vld [vmem:[%s39439_s1 + $0x3f90] sm:$0xff] }
 0x7d4   :  { %21406 = vmatpush.bf16.msra.mxu2 %v32325_v50  ;;  %v32364_v50 = vld [vmem:[%s39439_s1 + $0x3fd0] sm:$0xff] }
 0x7d5   :  { %21419 = vmatpush.bf16.msra.mxu3 %v32333_v53  ;;  %v32347_v53 = vld [vmem:[%s39439_s1 + $0x3f48] sm:$0xff] }
 0x7d6   :  { %21381 = vmatpush.bf16.msra.mxu0 %v32308_v57 }
 0x7d7   :  { %21394 = vmatpush.bf16.msra.mxu1 %v32316_v59  ;;  %v32346_v59 = vld [vmem:[%s39439_s1 + $0x3f40] sm:$0xff] }
 0x7d8   :  { %21407 = vmatpush.bf16.msra.mxu2 %v32324_v60  ;;  %v32354_v60 = vld [vmem:[%s39439_s1 + $0x3f80] sm:$0xff] }
 0x7d9   :  { %21420 = vmatpush.bf16.msra.mxu3 %v32332_v61  ;;  %v485_v61 = vld.sshfl [vmem:[#allocation1 + $0x20] sm:$0xff pattern:$0x73625140] }
 0x7da   :  { %21382 = vmatpush.bf16.msra.mxu0 %v32307_v62  ;;  %v487_v62 = vld.sshfl [vmem:[#allocation1 + $0x30] sm:$0xff pattern:$0x73625140] }
 0x7db   :  { %21395 = vmatpush.bf16.msra.mxu1 %v32315_v0  ;;  %v32385_v0 = vld [vmem:[%s39439_s1 + $0x4078] sm:$0xff] }
 0x7dc   :  { %21408 = vmatpush.bf16.msra.mxu2 %v32323_v1  ;;  %v486_v1 = vld.sshfl [vmem:[#allocation1 + $0x28] sm:$0xff pattern:$0x73625140] }
 0x7dd   :  { %21421 = vmatpush.bf16.msra.mxu3 %v32331_v3  ;;  %v32362_v3 = vld [vmem:[%s39439_s1 + $0x3fc0] sm:$0xff]  ;;  %v1025_v8 = vpack.c.bf16 %v486_v1, %v486_v1  ;;  %v32424_v1 = vld [vmem:[%s39439_s1 + $0x41b0] sm:$0xff] }
 0x7de   :  { %21383 = vmatpush.bf16.msra.mxu0 %v32306_v5  ;;  %v21177_v29 = vpop.f32.mrf.mxu0  ;;  %v1024_v5 = vpack.c.bf16 %v485_v61, %v485_v61 }
 0x7df   :  { %21396 = vmatpush.bf16.msra.mxu1 %v32314_v6  ;;  %v21178_v30 = vadd.f32 %v21177_v29, %v38916_v56  ;;  %v21190_v32 = vpop.f32.mrf.mxu1  ;;  %v32363_v56 = vld [vmem:[%s39439_s1 + $0x3fc8] sm:$0xff]  ;;  %v1026_v6 = vpack.c.bf16 %v487_v62, %v487_v62 }
 0x7e0   :  { %21409 = vmatpush.bf16.msra.mxu2 %v32322_v7  ;;  %v32401_v7 = vld [vmem:[%s39439_s1 + $0x40f8] sm:$0xff] }
 0x7e1   :  { %21422 = vmatpush.bf16.msra.mxu3 %v32330_v14  ;;  %21384 = vmatmul.bf16.vlgmr.msra.gmra.mxu0 %v1020_v16  ;;  %v21191_v35 = vadd.f32 %v21190_v32, %v21178_v30  ;;  %v32375_v14 = vld [vmem:[%s39439_s1 + $0x4028] sm:$0xff] }
 0x7e2   :  { %21428 = vmatpush.bf16.msrb.mxu0 %v32345_v10  ;;  %21397 = vmatmul.bf16.vlgmr.msra.gmra.mxu1 %v1021_v19  ;;  %v32376_v10 = vld [vmem:[%s39439_s1 + $0x4030] sm:$0xff]  ;;  %v32391_v16 = vld [vmem:[%s39439_s1 + $0x40a8] sm:$0xff] }
 0x7e3   :  { %21441 = vmatpush.bf16.msrb.mxu1 %v32353_v11  ;;  %21410 = vmatmul.bf16.vlgmr.msra.gmra.mxu2 %v1022_v17  ;;  %v32384_v11 = vld [vmem:[%s39439_s1 + $0x4070] sm:$0xff]  ;;  %v32399_v17 = vld [vmem:[%s39439_s1 + $0x40e8] sm:$0xff] }
 0x7e4   :  { %21454 = vmatpush.bf16.msrb.mxu2 %v32361_v13  ;;  %21423 = vmatmul.bf16.vlgmr.msra.gmra.mxu3 %v1023_v20  ;;  %v32400_v13 = vld [vmem:[%s39439_s1 + $0x40f0] sm:$0xff]  ;;  %v32374_v20 = vld [vmem:[%s39439_s1 + $0x4020] sm:$0xff] }
 0x7e5   :  { %21467 = vmatpush.bf16.msrb.mxu3 %v32369_v18 }
 0x7e6   :  { %21429 = vmatpush.bf16.msrb.mxu0 %v32344_v21  ;;  %v21203_v40 = vpop.f32.mrf.mxu2  ;;  %v21179_v44 = vpop.f32.mrf.mxu0 }
 0x7e7   :  { %21442 = vmatpush.bf16.msrb.mxu1 %v32352_v22  ;;  %v21204_v41 = vadd.f32 %v21203_v40, %v21191_v35  ;;  %v21216_v43 = vpop.f32.mrf.mxu3  ;;  %v21192_v47 = vpop.f32.mrf.mxu1  ;;  %v32382_v22 = vld [vmem:[%s39439_s1 + $0x4060] sm:$0xff]  ;;  %v32372_v35 = vld [vmem:[%s39439_s1 + $0x4010] sm:$0xff]  ;;  %v32371_v40 = vld [vmem:[%s39439_s1 + $0x4008] sm:$0xff] }
 0x7e8   :  { %21455 = vmatpush.bf16.msrb.mxu2 %v32360_v23  ;;  %v32390_v23 = vld [vmem:[%s39439_s1 + $0x40a0] sm:$0xff] }
 0x7e9   :  { %21468 = vmatpush.bf16.msrb.mxu3 %v32368_v24  ;;  %v39018_v45 = vadd.f32 %v21216_v43, %v21204_v41  ;;  %v99_v41 = vld [vmem:[%s39438_s0 + $0x208] sm:$0xff]  ;;  %v32370_v47 = vld [vmem:[%s39439_s1 + $0x4000] sm:$0xff] }
 0x7ea   :  { %21430 = vmatpush.bf16.msrb.mxu0 %v32343_v25  ;;  %v32398_v25 = vld [vmem:[%s39439_s1 + $0x40e0] sm:$0xff]  ;;  %v32387_v43 = vld [vmem:[%s39439_s1 + $0x4088] sm:$0xff]  ;;  %490 = vst [vmem:[#allocation1 + $0x20] ss:$4 sm:$0xff] %v99_v41 }
 0x7eb   :  { %21443 = vmatpush.bf16.msrb.mxu1 %v32351_v26  ;;  %v32373_v26 = vld [vmem:[%s39439_s1 + $0x4018] sm:$0xff] }
 0x7ec   :  { %21456 = vmatpush.bf16.msrb.mxu2 %v32359_v27  ;;  %v32381_v27 = vld [vmem:[%s39439_s1 + $0x4058] sm:$0xff] }
 0x7ed   :  { %21469 = vmatpush.bf16.msrb.mxu3 %v32367_v28  ;;  %v32389_v28 = vld [vmem:[%s39439_s1 + $0x4098] sm:$0xff] }
 0x7ee   :  { %21431 = vmatpush.bf16.msrb.mxu0 %v32342_v31  ;;  %v21205_v55 = vpop.f32.mrf.mxu2  ;;  %v32397_v31 = vld [vmem:[%s39439_s1 + $0x40d8] sm:$0xff] }
 0x7ef   :  { %21444 = vmatpush.bf16.msrb.mxu1 %v32350_v33  ;;  %v21218_v57 = vpop.f32.mrf.mxu3  ;;  %v32425_v55 = vld [vmem:[%s39439_s1 + $0x41b8] sm:$0xff] }
 0x7f0   :  { %21457 = vmatpush.bf16.msrb.mxu2 %v32358_v34  ;;  %v494_v57 = vld.sshfl [vmem:[#allocation1 + $0x18] sm:$0xff pattern:$0x73625140] }
 0x7f1   :  { %21470 = vmatpush.bf16.msrb.mxu3 %v32366_v36  ;;  %v1031_v62 = vpack.c.bf16 %v494_v57, %v494_v57  ;;  %v495_v41 = vld.sshfl [vmem:[#allocation1 + $0x20] sm:$0xff pattern:$0x73625140]  ;;  %v32456_v57 = vld [vmem:[%s39439_s1 + $0x42b0] sm:$0xff] }
 0x7f2   :  { %21432 = vmatpush.bf16.msrb.mxu0 %v32341_v37  ;;  %v32380_v37 = vld [vmem:[%s39439_s1 + $0x4050] sm:$0xff] }
 0x7f3   :  { %21445 = vmatpush.bf16.msrb.mxu1 %v32349_v38  ;;  %v32388_v38 = vld [vmem:[%s39439_s1 + $0x4090] sm:$0xff] }
 0x7f4   :  { %21458 = vmatpush.bf16.msrb.mxu2 %v32357_v39  ;;  %v32396_v39 = vld [vmem:[%s39439_s1 + $0x40d0] sm:$0xff] }
 0x7f5   :  { %21471 = vmatpush.bf16.msrb.mxu3 %v32365_v42  ;;  %v32379_v42 = vld [vmem:[%s39439_s1 + $0x4048] sm:$0xff] }
 0x7f6   :  { %21433 = vmatpush.bf16.msrb.mxu0 %v32340_v46 }
 0x7f7   :  { %21446 = vmatpush.bf16.msrb.mxu1 %v32348_v48  ;;  %v32378_v48 = vld [vmem:[%s39439_s1 + $0x4040] sm:$0xff] }
 0x7f8   :  { %21459 = vmatpush.bf16.msrb.mxu2 %v32356_v49  ;;  %v32386_v49 = vld [vmem:[%s39439_s1 + $0x4080] sm:$0xff] }
 0x7f9   :  { %21472 = vmatpush.bf16.msrb.mxu3 %v32364_v50  ;;  %v491_v50 = vld.sshfl [vmem:[#allocation1] sm:$0xff pattern:$0x73625140] }
 0x7fa   :  { %21434 = vmatpush.bf16.msrb.mxu0 %v32339_v51  ;;  %v493_v51 = vld.sshfl [vmem:[#allocation1 + $0x10] sm:$0xff pattern:$0x73625140] }
 0x7fb   :  { %21447 = vmatpush.bf16.msrb.mxu1 %v32347_v53  ;;  %v32417_v53 = vld [vmem:[%s39439_s1 + $0x4178] sm:$0xff] }
 0x7fc   :  { %21460 = vmatpush.bf16.msrb.mxu2 %v32355_v54  ;;  %v492_v54 = vld.sshfl [vmem:[#allocation1 + $0x8] sm:$0xff pattern:$0x73625140] }
 0x7fd   :  { %21473 = vmatpush.bf16.msrb.mxu3 %v32363_v56  ;;  %v32394_v56 = vld [vmem:[%s39439_s1 + $0x40c0] sm:$0xff]  ;;  %v1029_v61 = vpack.c.bf16 %v492_v54, %v492_v54  ;;  %v32440_v54 = vld [vmem:[%s39439_s1 + $0x4230] sm:$0xff] }
 0x7fe   :  { %21435 = vmatpush.bf16.msrb.mxu0 %v32338_v58  ;;  %v21229_v18 = vpop.f32.mrf.mxu0  ;;  %v1028_v58 = vpack.c.bf16 %v491_v50, %v491_v50  ;;  %v1032_v50 = vpack.c.bf16 %v495_v41, %v495_v41 }
 0x7ff   :  { %21448 = vmatpush.bf16.msrb.mxu1 %v32346_v59  ;;  %v21230_v19 = vadd.f32 %v21229_v18, %v39018_v45  ;;  %v21242_v21 = vpop.f32.mrf.mxu1  ;;  %v32395_v45 = vld [vmem:[%s39439_s1 + $0x40c8] sm:$0xff]  ;;  %v1030_v59 = vpack.c.bf16 %v493_v51, %v493_v51 }
 0x800   :  { %21461 = vmatpush.bf16.msrb.mxu2 %v32354_v60  ;;  %v32433_v60 = vld [vmem:[%s39439_s1 + $0x41f8] sm:$0xff] }
 0x801   :  { %21474 = vmatpush.bf16.msrb.mxu3 %v32362_v3  ;;  %21436 = vmatmul.bf16.vlgmr.msrb.gmra.mxu0 %v1024_v5  ;;  %v21243_v24 = vadd.f32 %v21242_v21, %v21230_v19  ;;  %v32407_v3 = vld [vmem:[%s39439_s1 + $0x4128] sm:$0xff]  ;;  %v100_v19 = vld [vmem:[%s39438_s0 + $0x210] sm:$0xff]  ;;  %v32429_v21 = vld [vmem:[%s39439_s1 + $0x41d8] sm:$0xff] }
 0x802   :  { %21480 = vmatpush.bf16.msra.mxu0 %v32377_v63  ;;  %21449 = vmatmul.bf16.vlgmr.msrb.gmra.mxu1 %v1025_v8  ;;  %v32408_v63 = vld [vmem:[%s39439_s1 + $0x4130] sm:$0xff]  ;;  %v32423_v5 = vld [vmem:[%s39439_s1 + $0x41a8] sm:$0xff]  ;;  %499 = vst [vmem:[#allocation1] ss:$4 sm:$0xff] %v100_v19 }
 0x803   :  { %21493 = vmatpush.bf16.msra.mxu1 %v32385_v0  ;;  %21462 = vmatmul.bf16.vlgmr.msrb.gmra.mxu2 %v1026_v6  ;;  %v32416_v0 = vld [vmem:[%s39439_s1 + $0x4170] sm:$0xff]  ;;  %v32431_v6 = vld [vmem:[%s39439_s1 + $0x41e8] sm:$0xff] }
 0x804   :  { %21506 = vmatpush.bf16.msra.mxu2 %v32393_v2  ;;  %21475 = vmatmul.bf16.vlgmr.msrb.gmra.mxu3 %v1027_v9  ;;  %v32432_v2 = vld [vmem:[%s39439_s1 + $0x41f0] sm:$0xff]  ;;  %v32406_v9 = vld [vmem:[%s39439_s1 + $0x4120] sm:$0xff]  ;;  %v32435_v19 = vld [vmem:[%s39439_s1 + $0x4208] sm:$0xff] }
 0x805   :  { %21519 = vmatpush.bf16.msra.mxu3 %v32401_v7 }
 0x806   :  { %21481 = vmatpush.bf16.msra.mxu0 %v32376_v10  ;;  %v21255_v29 = vpop.f32.mrf.mxu2  ;;  %v21231_v33 = vpop.f32.mrf.mxu0 }
 0x807   :  { %21494 = vmatpush.bf16.msra.mxu1 %v32384_v11  ;;  %v21256_v30 = vadd.f32 %v21255_v29, %v21243_v24  ;;  %v21268_v32 = vpop.f32.mrf.mxu3  ;;  %v21244_v36 = vpop.f32.mrf.mxu1  ;;  %v32414_v11 = vld [vmem:[%s39439_s1 + $0x4160] sm:$0xff]  ;;  %v32428_v29 = vld [vmem:[%s39439_s1 + $0x41d0] sm:$0xff]  ;;  %v32419_v33 = vld [vmem:[%s39439_s1 + $0x4188] sm:$0xff] }
 0x808   :  { %21507 = vmatpush.bf16.msra.mxu2 %v32392_v12  ;;  %v32422_v12 = vld [vmem:[%s39439_s1 + $0x41a0] sm:$0xff]  ;;  %v32427_v36 = vld [vmem:[%s39439_s1 + $0x41c8] sm:$0xff] }
 0x809   :  { %21520 = vmatpush.bf16.msra.mxu3 %v32400_v13  ;;  %v39120_v34 = vadd.f32 %v21268_v32, %v21256_v30  ;;  %v5314_v30 = vld [vmem:[%s39439_s1 + $0x42c8] sm:$0xf] }
 0x80a   :  { %21482 = vmatpush.bf16.msra.mxu0 %v32375_v14  ;;  %v32430_v14 = vld [vmem:[%s39439_s1 + $0x41e0] sm:$0xff]  ;;  %v32411_v32 = vld [vmem:[%s39439_s1 + $0x4148] sm:$0xff] }
 0x80b   :  { %21495 = vmatpush.bf16.msra.mxu1 %v32383_v15  ;;  %v32405_v15 = vld [vmem:[%s39439_s1 + $0x4118] sm:$0xff] }
 0x80c   :  { %21508 = vmatpush.bf16.msra.mxu2 %v32391_v16  ;;  %v32413_v16 = vld [vmem:[%s39439_s1 + $0x4158] sm:$0xff] }
 0x80d   :  { %21521 = vmatpush.bf16.msra.mxu3 %v32399_v17  ;;  %v32421_v17 = vld [vmem:[%s39439_s1 + $0x4198] sm:$0xff] }
 0x80e   :  { %21483 = vmatpush.bf16.msra.mxu0 %v32374_v20  ;;  %v21257_v44 = vpop.f32.mrf.mxu2 }
 0x80f   :  { %21496 = vmatpush.bf16.msra.mxu1 %v32382_v22  ;;  %v21270_v46 = vpop.f32.mrf.mxu3  ;;  %v32449_v44 = vld [vmem:[%s39439_s1 + $0x4278] sm:$0xff] }
 0x810   :  { %21509 = vmatpush.bf16.msra.mxu2 %v32390_v23 }
 0x811   :  { %21522 = vmatpush.bf16.msra.mxu3 %v32398_v25  ;;  %v32404_v25 = vld [vmem:[%s39439_s1 + $0x4110] sm:$0xff] }
 0x812   :  { %21484 = vmatpush.bf16.msra.mxu0 %v32373_v26 }
 0x813   :  { %21497 = vmatpush.bf16.msra.mxu1 %v32381_v27  ;;  %v32412_v27 = vld [vmem:[%s39439_s1 + $0x4150] sm:$0xff] }
 0x814   :  { %21510 = vmatpush.bf16.msra.mxu2 %v32389_v28  ;;  %v32420_v28 = vld [vmem:[%s39439_s1 + $0x4190] sm:$0xff] }
 0x815   :  { %21523 = vmatpush.bf16.msra.mxu3 %v32397_v31  ;;  %v32403_v31 = vld [vmem:[%s39439_s1 + $0x4108] sm:$0xff] }
 0x816   :  { %21485 = vmatpush.bf16.msra.mxu0 %v32372_v35  ;;  %v13868_v35 = vunpack.c.l.b16 %v5314_v30 }
 0x817   :  { %21498 = vmatpush.bf16.msra.mxu1 %v32380_v37 }
 0x818   :  { %21511 = vmatpush.bf16.msra.mxu2 %v32388_v38  ;;  %v32402_v38 = vld [vmem:[%s39439_s1 + $0x4100] sm:$0xff]  ;;  %v16006_v46 = vpack.c.b16 %v13868_v35, %v13868_v35 }
 0x819   :  { %21524 = vmatpush.bf16.msra.mxu3 %v32396_v39  ;;  %v32410_v39 = vld [vmem:[%s39439_s1 + $0x4140] sm:$0xff] }
 0x81a   :  { %21486 = vmatpush.bf16.msra.mxu0 %v32371_v40  ;;  %v32418_v40 = vld [vmem:[%s39439_s1 + $0x4180] sm:$0xff] }
 0x81b   :  { %21499 = vmatpush.bf16.msra.mxu1 %v32379_v42  ;;  %v497_v42 = vld.sshfl [vmem:[#allocation1 + $0x30] sm:$0xff pattern:$0x73625140] }
 0x81c   :  { %21512 = vmatpush.bf16.msra.mxu2 %v32387_v43  ;;  %v32441_v43 = vld [vmem:[%s39439_s1 + $0x4238] sm:$0xff]  ;;  %v1034_v51 = vpack.c.bf16 %v497_v42, %v497_v42 }
 0x81d   :  { %21525 = vmatpush.bf16.msra.mxu3 %v32395_v45  ;;  %v496_v45 = vld.sshfl [vmem:[#allocation1 + $0x28] sm:$0xff pattern:$0x73625140] }
 0x81e   :  { %21487 = vmatpush.bf16.msra.mxu0 %v32370_v47  ;;  %v21281_v7 = vpop.f32.mrf.mxu0  ;;  %v32457_v47 = vld [vmem:[%s39439_s1 + $0x42b8] sm:$0xff] }
 0x81f   :  { %21500 = vmatpush.bf16.msra.mxu1 %v32378_v48  ;;  %v21282_v8 = vadd.f32 %v21281_v7, %v39120_v34  ;;  %v21294_v10 = vpop.f32.mrf.mxu1  ;;  %v32426_v48 = vld [vmem:[%s39439_s1 + $0x41c0] sm:$0xff]  ;;  %v32453_v7 = vld [vmem:[%s39439_s1 + $0x4298] sm:$0xff] }
 0x820   :  { %21513 = vmatpush.bf16.msra.mxu2 %v32386_v49  ;;  %v498_v49 = vld.sshfl [vmem:[#allocation1 + $0x38] sm:$0xff pattern:$0x73625140] }
 0x821   :  { %21526 = vmatpush.bf16.msra.mxu3 %v32394_v56  ;;  %21488 = vmatmul.bf16.vlgmr.msra.gmra.mxu0 %v1028_v58  ;;  %v21295_v13 = vadd.f32 %v21294_v10, %v21282_v8  ;;  %v32448_v56 = vld [vmem:[%s39439_s1 + $0x4270] sm:$0xff]  ;;  %v32458_v58 = vld [vmem:[%s39439_s1 + $0x42c0] sm:$0xff] }
 0x822   :  { %21532 = vmatpush.bf16.msrb.mxu0 %v32409_v52  ;;  %21501 = vmatmul.bf16.vlgmr.msra.gmra.mxu1 %v1029_v61  ;;  %v1033_v52 = vpack.c.bf16 %v496_v45, %v496_v45  ;;  %v32455_v61 = vld [vmem:[%s39439_s1 + $0x42a8] sm:$0xff] }
 0x823   :  { %21545 = vmatpush.bf16.msrb.mxu1 %v32417_v53  ;;  %21514 = vmatmul.bf16.vlgmr.msra.gmra.mxu2 %v1030_v59  ;;  %v1035_v53 = vpack.c.bf16 %v498_v49, %v498_v49  ;;  %v32439_v59 = vld [vmem:[%s39439_s1 + $0x4228] sm:$0xff] }
 0x824   :  { %21558 = vmatpush.bf16.msrb.mxu2 %v32425_v55  ;;  %21527 = vmatmul.bf16.vlgmr.msra.gmra.mxu3 %v1031_v62  ;;  %v18150_v55 = vsel %vm18148_vm0, %v16006_v46, 0 }
 0x825   :  { %21571 = vmatpush.bf16.msrb.mxu3 %v32433_v60  ;;  %v32447_v60 = vld [vmem:[%s39439_s1 + $0x4268] sm:$0xff] }
 0x826   :  { %21533 = vmatpush.bf16.msrb.mxu0 %v32408_v63  ;;  %v21307_v18 = vpop.f32.mrf.mxu2  ;;  %v21283_v23 = vpop.f32.mrf.mxu0 }
 0x827   :  { %21546 = vmatpush.bf16.msrb.mxu1 %v32416_v0  ;;  %v21308_v20 = vadd.f32 %v21307_v18, %v21295_v13  ;;  %v21320_v22 = vpop.f32.mrf.mxu3  ;;  %v21296_v26 = vpop.f32.mrf.mxu1  ;;  %v32438_v0 = vld [vmem:[%s39439_s1 + $0x4220] sm:$0xff]  ;;  %v32452_v18 = vld [vmem:[%s39439_s1 + $0x4290] sm:$0xff] }
 0x828   :  { %21559 = vmatpush.bf16.msrb.mxu2 %v32424_v1  ;;  %v32434_v23 = vld [vmem:[%s39439_s1 + $0x4200] sm:$0xff] }
 0x829   :  { %21572 = vmatpush.bf16.msrb.mxu3 %v32432_v2  ;;  %v39225_v24 = vadd.f32 %v21320_v22, %v21308_v20  ;;  %v32446_v2 = vld [vmem:[%s39439_s1 + $0x4260] sm:$0xff]  ;;  %v32443_v20 = vld [vmem:[%s39439_s1 + $0x4248] sm:$0xff] }
 0x82a   :  { %21534 = vmatpush.bf16.msrb.mxu0 %v32407_v3  ;;  %v32454_v3 = vld [vmem:[%s39439_s1 + $0x42a0] sm:$0xff] }
 0x82b   :  { %21547 = vmatpush.bf16.msrb.mxu1 %v32415_v4  ;;  %v32450_v26 = vld [vmem:[%s39439_s1 + $0x4280] sm:$0xff] }
 0x82c   :  { %21560 = vmatpush.bf16.msrb.mxu2 %v32423_v5  ;;  %v32437_v5 = vld [vmem:[%s39439_s1 + $0x4218] sm:$0xff] }
 0x82d   :  { %21573 = vmatpush.bf16.msrb.mxu3 %v32431_v6  ;;  %v32445_v6 = vld [vmem:[%s39439_s1 + $0x4258] sm:$0xff] }
 0x82e   :  { %21535 = vmatpush.bf16.msrb.mxu0 %v32406_v9  ;;  %v21309_v34 = vpop.f32.mrf.mxu2  ;;  %v503_v9 = vld.sshfl [vmem:[#allocation1 + $0x18] sm:$0xff pattern:$0x73625140] }
 0x82f   :  { %21548 = vmatpush.bf16.msrb.mxu1 %v32414_v11  ;;  %v21322_v37 = vpop.f32.mrf.mxu3 }
 0x830   :  { %21561 = vmatpush.bf16.msrb.mxu2 %v32422_v12 }
 0x831   :  { %21574 = vmatpush.bf16.msrb.mxu3 %v32430_v14  ;;  %v32436_v14 = vld [vmem:[%s39439_s1 + $0x4210] sm:$0xff] }
 0x832   :  { %21536 = vmatpush.bf16.msrb.mxu0 %v32405_v15  ;;  %v1039_v15 = vpack.c.bf16 %v503_v9, %v503_v9  ;;  %v21641_v9 = vld [vmem:[%s39441_s3 + $0x10] sm:$0xff] }
 0x833   :  { %21549 = vmatpush.bf16.msrb.mxu1 %v32413_v16 }
 0x834   :  { %21562 = vmatpush.bf16.msrb.mxu2 %v32421_v17  ;;  %v32444_v17 = vld [vmem:[%s39439_s1 + $0x4250] sm:$0xff] }
 0x835   :  { %21575 = vmatpush.bf16.msrb.mxu3 %v32429_v21  ;;  %v32451_v21 = vld [vmem:[%s39439_s1 + $0x4288] sm:$0xff] }
 0x836   :  { %21537 = vmatpush.bf16.msrb.mxu0 %v32404_v25  ;;  %v32442_v25 = vld [vmem:[%s39439_s1 + $0x4240] sm:$0xff] }
 0x837   :  { %21550 = vmatpush.bf16.msrb.mxu1 %v32412_v27  ;;  %v500_v27 = vld.sshfl [vmem:[#allocation1] sm:$0xff pattern:$0x73625140] }
 0x838   :  { %21563 = vmatpush.bf16.msrb.mxu2 %v32420_v28  ;;  %v501_v28 = vld.sshfl [vmem:[#allocation1 + $0x8] sm:$0xff pattern:$0x73625140]  ;;  %v1036_v30 = vpack.c.bf16 %v500_v27, %v500_v27  ;;  %v21688_v27 = vld [vmem:[%s39443_s5 + $0x50] sm:$0xff] }
 0x839   :  { %21576 = vmatpush.bf16.msrb.mxu3 %v32428_v29  ;;  %v502_v29 = vld.sshfl [vmem:[#allocation1 + $0x10] sm:$0xff pattern:$0x73625140] }
 0x83a   :  { %21538 = vmatpush.bf16.msrb.mxu0 %v32403_v31  ;;  %v1037_v31 = vpack.c.bf16 %v501_v28, %v501_v28  ;;  %v21687_v28 = vld [vmem:[%s39443_s5 + $0x48] sm:$0xff] }
 0x83b   :  { %21551 = vmatpush.bf16.msrb.mxu1 %v32411_v32  ;;  %v1038_v32 = vpack.c.bf16 %v502_v29, %v502_v29 }
 0x83c   :  { %21564 = vmatpush.bf16.msrb.mxu2 %v32419_v33 }
 0x83d   :  { %21577 = vmatpush.bf16.msrb.mxu3 %v32427_v36 }
 0x83e   :  { %21539 = vmatpush.bf16.msrb.mxu0 %v32402_v38  ;;  %v21333_v62 = vpop.f32.mrf.mxu0 }
 0x83f   :  { %21552 = vmatpush.bf16.msrb.mxu1 %v32410_v39  ;;  %v21334_v63 = vadd.f32 %v21333_v62, %v39225_v24  ;;  %v21346_v1 = vpop.f32.mrf.mxu1 }
 0x840   :  { %21565 = vmatpush.bf16.msrb.mxu2 %v32418_v40 }
 0x841   :  { %21578 = vmatpush.bf16.msrb.mxu3 %v32426_v48  ;;  %21540 = vmatmul.bf16.vlgmr.msrb.gmra.mxu0 %v1032_v50  ;;  %v21347_v4 = vadd.f32 %v21346_v1, %v21334_v63 }
 0x842   :  { %21584 = vmatpush.bf16.msra.mxu0 %v32441_v43  ;;  %21553 = vmatmul.bf16.vlgmr.msrb.gmra.mxu1 %v1033_v52 }
 0x843   :  { %21597 = vmatpush.bf16.msra.mxu1 %v32449_v44  ;;  %21566 = vmatmul.bf16.vlgmr.msrb.gmra.mxu2 %v1034_v51 }
 0x844   :  { %21610 = vmatpush.bf16.msra.mxu2 %v32457_v47  ;;  %21579 = vmatmul.bf16.vlgmr.msrb.gmra.mxu3 %v1035_v53 }
 0x845   :  { %21629 = vmatpush.bf16.msra.mxu3 %v18150_v55 }
 0x846   :  { %21585 = vmatpush.bf16.msra.mxu0 %v32440_v54  ;;  %v21359_v8 = vpop.f32.mrf.mxu2  ;;  %v21335_v12 = vpop.f32.mrf.mxu0 }
 0x847   :  { %21598 = vmatpush.bf16.msra.mxu1 %v32448_v56  ;;  %v21360_v10 = vadd.f32 %v21359_v8, %v21347_v4  ;;  %v21372_v11 = vpop.f32.mrf.mxu3  ;;  %v21348_v16 = vpop.f32.mrf.mxu1  ;;  %v21644_v4 = vld [vmem:[%s39441_s3 + $0x28] sm:$0xff] }
 0x848   :  { %21611 = vmatpush.bf16.msra.mxu2 %v32456_v57 }
 0x849   :  { %21630 = vmatpush.bf16.msra.mxu3 %v32458_v58  ;;  %v21373_v13 = vadd.f32 %v21372_v11, %v21360_v10 }
 0x84a   :  { %21586 = vmatpush.bf16.msra.mxu0 %v32439_v59 }
 0x84b   :  { %21599 = vmatpush.bf16.msra.mxu1 %v32447_v60 }
 0x84c   :  { %21612 = vmatpush.bf16.msra.mxu2 %v32455_v61 }
 0x84e   :  { %21587 = vmatpush.bf16.msra.mxu0 %v32438_v0  ;;  %v21361_v22 = vpop.f32.mrf.mxu2  ;;  %v21646_v0 = vld [vmem:[%s39441_s3 + $0x38] sm:$0xff] }
 0x84f   :  { %21600 = vmatpush.bf16.msra.mxu1 %v32446_v2  ;;  %v21374_v24 = vpop.f32.mrf.mxu3  ;;  %21663 = vmatpush.msrb.mxu3 %v21646_v0  ;;  %v21645_v2 = vld [vmem:[%s39441_s3 + $0x30] sm:$0xff]  ;;  %v32462_v0 = vld [vmem:[%s39444_s6] ss:$0 sm:$0xff] }
 0x850   :  { %21613 = vmatpush.bf16.msra.mxu2 %v32454_v3 }
 0x851   :  { %21664 = vmatpush.msrb.mxu3 %v21645_v2 }
 0x852   :  { %21588 = vmatpush.bf16.msra.mxu0 %v32437_v5  ;;  %v21643_v5 = vld [vmem:[%s39441_s3 + $0x20] sm:$0xff] }
 0x853   :  { %21601 = vmatpush.bf16.msra.mxu1 %v32445_v6  ;;  %21665 = vmatpush.msrb.mxu3 %v21644_v4 }
 0x854   :  { %21614 = vmatpush.bf16.msra.mxu2 %v32453_v7  ;;  %30319 = vmatmul.msk.bf16.vlgmr.msra.gmra.mxu3 %vm18144_vm1, %v1039_v15  ;;  %v21642_v7 = vld [vmem:[%s39441_s3 + $0x18] sm:$0xff]  ;;  %v21639_v15 = vld [vmem:[%s39441_s3] sm:$0xff] }
 0x855   :  { %21666 = vmatpush.msrb.mxu3 %v21643_v5  ;;  %v32463_v5 = vld [vmem:[%s39446_s8] ss:$0 sm:$0xff] }
 0x856   :  { %21589 = vmatpush.bf16.msra.mxu0 %v32436_v14 }
 0x857   :  { %21602 = vmatpush.bf16.msra.mxu1 %v32444_v17  ;;  %21667 = vmatpush.msrb.mxu3 %v21642_v7  ;;  %v21693_v17 = vld [vmem:[%s39443_s5 + $0x78] sm:$0xff] }
 0x858   :  { %21615 = vmatpush.bf16.msra.mxu2 %v32452_v18  ;;  %v21692_v18 = vld [vmem:[%s39443_s5 + $0x70] sm:$0xff] }
 0x859   :  { %21668 = vmatpush.msrb.mxu3 %v21641_v9 }
 0x85a   :  { %21590 = vmatpush.bf16.msra.mxu0 %v32435_v19 }
 0x85b   :  { %21603 = vmatpush.bf16.msra.mxu1 %v32443_v20 }
 0x85c   :  { %21616 = vmatpush.bf16.msra.mxu2 %v32451_v21  ;;  %v21691_v21 = vld [vmem:[%s39443_s5 + $0x68] sm:$0xff] }
 0x85e   :  { %21591 = vmatpush.bf16.msra.mxu0 %v32434_v23  ;;  %v21385_v33 = vpop.f32.mrf.mxu0  ;;  %v21690_v23 = vld [vmem:[%s39443_s5 + $0x60] sm:$0xff] }
 0x85f   :  { %21604 = vmatpush.bf16.msra.mxu1 %v32442_v25  ;;  %v21386_v34 = vadd.f32 %v21385_v33, %v21373_v13  ;;  %v21398_v35 = vpop.f32.mrf.mxu1  ;;  %v21640_v13 = vld [vmem:[%s39441_s3 + $0x8] sm:$0xff]  ;;  %v21689_v25 = vld [vmem:[%s39443_s5 + $0x58] sm:$0xff] }
 0x860   :  { %21617 = vmatpush.bf16.msra.mxu2 %v32450_v26  ;;  %21669 = vmatpush.msrb.mxu3 %v21640_v13  ;;  %v21685_v33 = vld [vmem:[%s39443_s5 + $0x38] sm:$0xff] }
 0x861   :  { %21592 = vmatmul.bf16.vlgmr.msra.gmra.mxu0 %v1036_v30  ;;  %v21399_v36 = vadd.f32 %v21398_v35, %v21386_v34  ;;  %v21684_v34 = vld [vmem:[%s39443_s5 + $0x30] sm:$0xff] }
 0x862   :  { %21605 = vmatmul.bf16.vlgmr.msra.gmra.mxu1 %v1037_v31  ;;  %21670 = vmatpush.msrb.mxu3 %v21639_v15  ;;  %v21686_v31 = vld [vmem:[%s39443_s5 + $0x40] sm:$0xff] }
 0x863   :  { %21618 = vmatmul.bf16.vlgmr.msra.gmra.mxu2 %v1038_v32  ;;  %21698 = vmatpush.msrb.mxu0 %v21693_v17 }
 0x865   :  { %21699 = vmatpush.msrb.mxu0 %v21692_v18 }
 0x866   :  { %v21411_v37 = vpop.f32.mrf.mxu2  ;;  %v21387_v40 = vpop.f32.mrf.mxu0 }
 0x867   :  { %v21412_v38 = vadd.f32 %v21411_v37, %v21399_v36  ;;  %v21424_v39 = vpop.f32.mrf.mxu3  ;;  %v21400_v42 = vpop.f32.mrf.mxu1  ;;  %21700 = vmatpush.msrb.mxu0 %v21691_v21 }
 0x868   :  { %v21681_v42 = vld [vmem:[%s39443_s5 + $0x18] sm:$0xff] }
 0x869   :  { %v21425_v41 = vadd.f32 %v21424_v39, %v21412_v38  ;;  %21701 = vmatpush.msrb.mxu0 %v21690_v23  ;;  %v21683_v38 = vld [vmem:[%s39443_s5 + $0x28] sm:$0xff] }
 0x86b   :  { %21702 = vmatpush.msrb.mxu0 %v21689_v25 }
 0x86d   :  { %21703 = vmatpush.msrb.mxu0 %v21688_v27 }
 0x86e   :  { %v21413_v43 = vpop.f32.mrf.mxu2 }
 0x86f   :  { %v21426_v44 = vpop.f32.mrf.mxu3  ;;  %21704 = vmatpush.msrb.mxu0 %v21687_v28 }
 0x871   :  { %21705 = vmatpush.msrb.mxu0 %v21686_v31 }
 0x873   :  { %21706 = vmatpush.msrb.mxu0 %v21685_v33 }
 0x875   :  { %21707 = vmatpush.msrb.mxu0 %v21684_v34 }
 0x877   :  { %21708 = vmatpush.msrb.mxu0 %v21683_v38 }
 0x87e   :  { %v21437_v45 = vpop.f32.mrf.mxu0 }
 0x87f   :  { %v21438_v46 = vadd.f32 %v21437_v45, %v21425_v41  ;;  %v21450_v47 = vpop.f32.mrf.mxu1  ;;  %v21682_v41 = vld [vmem:[%s39443_s5 + $0x20] sm:$0xff] }
 0x880   :  { %21709 = vmatpush.msrb.mxu0 %v21682_v41 }
 0x881   :  { %v21451_v48 = vadd.f32 %v21450_v47, %v21438_v46 }
 0x882   :  { %21710 = vmatpush.msrb.mxu0 %v21681_v42 }
 0x886   :  { %v21463_v49 = vpop.f32.mrf.mxu2  ;;  %v21439_v52 = vpop.f32.mrf.mxu0 }
 0x887   :  { %v21464_v50 = vadd.f32 %v21463_v49, %v21451_v48  ;;  %v21476_v51 = vpop.f32.mrf.mxu3  ;;  %v21452_v54 = vpop.f32.mrf.mxu1  ;;  %v21680_v52 = vld [vmem:[%s39443_s5 + $0x10] sm:$0xff] }
 0x888   :  { %21711 = vmatpush.msrb.mxu0 %v21680_v52  ;;  %v21678_v54 = vld [vmem:[%s39443_s5] sm:$0xff] }
 0x889   :  { %v21477_v53 = vadd.f32 %v21476_v51, %v21464_v50 }
 0x88e   :  { %v21465_v55 = vpop.f32.mrf.mxu2 }
 0x88f   :  { %v21478_v56 = vpop.f32.mrf.mxu3  ;;  %v21724_v55 = vld [vmem:[%s39445_s7 + $0x18] sm:$0xff] }
 0x890   :  { %21745 = vmatpush.msra.mxu3 %v21724_v55  ;;  %v32461_v56 = vld [vmem:[%s39442_s4] ss:$0 sm:$0xff] }
 0x89e   :  { %v21489_v57 = vpop.f32.mrf.mxu0 }
 0x89f   :  { %v21502_v58 = vpop.f32.mrf.mxu1  ;;  %v21490_v10 = vadd.f32 %v21489_v57, %v21477_v53  ;;  %v21679_v53 = vld [vmem:[%s39443_s5 + $0x8] sm:$0xff] }
 0x8a0   :  { %21712 = vmatpush.msrb.mxu0 %v21679_v53 }
 0x8a1   :  { %v21503_v16 = vadd.f32 %v21502_v58, %v21490_v10 }
 0x8a2   :  { %21713 = vmatpush.msrb.mxu0 %v21678_v54 }
 0x8a6   :  { %v21515_v59 = vpop.f32.mrf.mxu2  ;;  %v21491_v61 = vpop.f32.mrf.mxu0 }
 0x8a7   :  { %v21528_v60 = vpop.f32.mrf.mxu3  ;;  %v21504_v62 = vpop.f32.mrf.mxu1  ;;  %v21516_v19 = vadd.f32 %v21515_v59, %v21503_v16  ;;  %v21723_v61 = vld [vmem:[%s39445_s7 + $0x10] sm:$0xff] }
 0x8a8   :  { %21746 = vmatpush.msra.mxu3 %v21723_v61  ;;  %v21722_v62 = vld [vmem:[%s39445_s7 + $0x8] sm:$0xff] }
 0x8a9   :  { %v21529_v24 = vadd.f32 %v21528_v60, %v21516_v19 }
 0x8aa   :  { %21747 = vmatpush.msra.mxu3 %v21722_v62 }
 0x8ae   :  { %v21517_v63 = vpop.f32.mrf.mxu2 }
 0x8af   :  { %v21530_v1 = vpop.f32.mrf.mxu3  ;;  %v21721_v63 = vld [vmem:[%s39445_s7] sm:$0xff] }
 0x8b0   :  { %21748 = vmatpush.msra.mxu3 %v21721_v63 }
 0x8be   :  { %v21541_v3 = vpop.f32.mrf.mxu0 }
 0x8bf   :  { %v21554_v6 = vpop.f32.mrf.mxu1  ;;  %v21542_v26 = vadd.f32 %v21541_v3, %v21529_v24 }
 0x8c1   :  { %v21555_v29 = vadd.f32 %v21554_v6, %v21542_v26 }
 0x8c6   :  { %v21567_v8 = vpop.f32.mrf.mxu2  ;;  %v21543_v12 = vpop.f32.mrf.mxu0 }
 0x8c7   :  { %v21580_v11 = vpop.f32.mrf.mxu3  ;;  %v21556_v14 = vpop.f32.mrf.mxu1  ;;  %v21568_v32 = vadd.f32 %v21567_v8, %v21555_v29 }
 0x8c9   :  { %v21581_v35 = vadd.f32 %v21580_v11, %v21568_v32 }
 0x8ce   :  { %v21569_v20 = vpop.f32.mrf.mxu2 }
 0x8cf   :  { %v21582_v22 = vpop.f32.mrf.mxu3 }
 0x8d7   :  { %v21632_v30 = vpop.f32.mrf.mxu3 }
 0x8de   :  { %v21593_v36 = vpop.f32.mrf.mxu0 }
 0x8df   :  { %v21606_v37 = vpop.f32.mrf.mxu1  ;;  %v21594_v39 = vadd.f32 %v21593_v36, %v21581_v35  ;;  %v21634_v40 = vpop.f32.mrf.mxu3 }
 0x8e1   :  { %v21607_v43 = vadd.f32 %v21606_v37, %v21594_v39 }
 0x8e6   :  { %v21619_v44 = vpop.f32.mrf.mxu2  ;;  %v21595_v46 = vpop.f32.mrf.mxu0 }
 0x8e7   :  { %v21620_v45 = vadd.f32 %v21619_v44, %v21607_v43  ;;  %v21608_v47 = vpop.f32.mrf.mxu1 }
 0x8e9   :  { %v21633_v48 = vadd.f32 %v21632_v30, %v21620_v45 }
 0x8eb   :  { %vm21636_vm2 = vcmp.gt.f32.partialorder %v21633_v48, 0.0  ;;  %v21637_v49 = vmul.f32 0.01, %v21633_v48 }
 0x8ed   :  { %v21638_v50 = vsel %vm21636_vm2, %v21633_v48, %v21637_v49 }
 0x8ee   :  { %v21621_v51 = vpop.f32.mrf.mxu2  ;;  %30320 = vmatmul.msk.f32.vlgmr.msrb.gmra.mxu3 %vm21651_vm3, %v21638_v50 }
 0x971   :  { %v21672_v57 = vpop.f32.mrf.mxu3 }
 0x972   :  { %v21673_v58 = vadd.f32 %v32461_v56, %v21672_v57 }
 0x974   :  { %vm21675_vm4 = vcmp.gt.f32.partialorder %v21673_v58, 0.0  ;;  %v21676_v59 = vmul.f32 0.01, %v21673_v58 }
 0x976   :  { %v21677_v60 = vsel %vm21675_vm4, %v21673_v58, %v21676_v59 }
 0x977   :  { %21714 = vmatmul.f32.vlgmr.msrb.gmra.mxu0 %v21677_v60 }
 0x9f4   :  { %v21715_v1 = vpop.f32.mrf.mxu0 }
 0x9f5   :  { %v21716_v2 = vadd.f32 %v32462_v0, %v21715_v1 }
 0x9f7   :  { %vm21718_vm5 = vcmp.gt.f32.partialorder %v21716_v2, 0.0  ;;  %v21719_v3 = vmul.f32 0.01, %v21716_v2 }
 0x9f9   :  { %v21720_v4 = vsel %vm21718_vm5, %v21716_v2, %v21719_v3 }
 0x9fa   :  { %30321 = vmatmul.msk.f32.vlgmr.msra.gmra.mxu3 %vm21729_vm6, %v21720_v4 }
 0xa7d   :  { %v21750_v6 = vpop.f32.mrf.mxu3 }
 0xa7e   :  { %v21751_v7 = vadd.f32 %v32463_v5, %v21750_v6 }
 0xa80   :  { %21754 = vst.msk [vmem:[#allocation2] sm:$0x3] %vm21753_vm7, %v21751_v7 }
 0xa81   :  { %21765 = dma.vmem_to_hbm [thread:$0]  %s21761_s21, 32, %s21763_s23, [#allocation3]  }
 0xa82   :  { %32488 = dma.done.wait [#allocation3], 32  }
 0xa83   :  { %32489 = vsyncadd [#allocation3], 4294967264 }
 0xa84   :  { %21770 = vsyncpa [#allocation3], 1 }

</bundles_post_ra>
